<compile_context>
chip_gen: v7x
topology: tpu7x:2x2x1
jax: 0.10.0
libtpu: 0.0.40
codegen_flags: <defaults>
</compile_context>

<pallas_src>
import jax
import jax.numpy as jnp
from jax import lax
from jax.experimental import pallas as pl
from jax.experimental.pallas import tpu as pltpu


# --------------------------------------------------------------------------- #
# helpers
# --------------------------------------------------------------------------- #
def _largest_divisor(n, candidates):
    for c in candidates:
        if c <= n and n % c == 0:
            return c
    return n


def _choose_h_tile(H, W, mult=1, max_rows=1024):
    """Largest divisor of H that is a multiple of `mult` with tile*W <= max_rows."""
    assert H % mult == 0
    best = mult
    th = mult
    while th <= H:
        if H % th == 0 and th * W <= max_rows:
            best = th
        th += mult
    return best


def _fold_bn(gamma, beta, mean, var, eps=1e-5):
    scale = gamma / jnp.sqrt(var + eps)
    bias = beta - mean * scale
    return scale, bias


def _leaky(y):
    return jnp.where(y > 0, y, 0.1 * y)


# --------------------------------------------------------------------------- #
# Kernel A: 1x1 conv (matmul over channels) + bias (BN folded) + LeakyReLU(0.1)
# --------------------------------------------------------------------------- #
def _conv1x1_kernel(x_ref, w_ref, b_ref, o_ref):
    y = jnp.dot(x_ref[...], w_ref[...], preferred_element_type=jnp.float32)
    y = y + b_ref[...]
    o_ref[...] = _leaky(y).astype(o_ref.dtype)


def conv1x1_bn_leaky(x_nhwc, w, bias, out_dtype=jnp.bfloat16):
    N, H, W, Cin = x_nhwc.shape
    Cout = w.shape[1]
    M = N * H * W
    tm = _largest_divisor(M, (1024, 512, 256, 128, 64, 32, 16, 8))
    xm = x_nhwc.reshape(M, Cin)
    out = pl.pallas_call(
        _conv1x1_kernel,
        out_shape=jax.ShapeDtypeStruct((M, Cout), out_dtype),
        grid=(M // tm,),
        in_specs=[
            pl.BlockSpec((tm, Cin), lambda i: (i, 0)),
            pl.BlockSpec((Cin, Cout), lambda i: (0, 0)),
            pl.BlockSpec((1, Cout), lambda i: (0, 0)),
        ],
        out_specs=pl.BlockSpec((tm, Cout), lambda i: (i, 0)),
        compiler_params=pltpu.CompilerParams(dimension_semantics=("parallel",)),
    )(xm, w, bias.reshape(1, Cout))
    return out.reshape(N, H, W, Cout)


# --------------------------------------------------------------------------- #
# Kernel B: fused weight_level convs + weight_levels (48->3) + softmax + fusion
#           (in-kernel nearest upsample along H; W is pre-upsampled at low-res)
# --------------------------------------------------------------------------- #
def _fused_weights_kernel(l0_ref, l1_ref, l2_ref,
                          w0_ref, b0_ref, w1_ref, b1_ref, w2_ref, b2_ref,
                          wl0_ref, wl1_ref, wl2_ref, bl_ref, o_ref):
    _, th, W, C = o_ref.shape
    h4 = l0_ref.shape[1]            # th // 4
    h2 = l1_ref.shape[1]            # th // 2
    M = th * W

    # nearest upsample along H via leading-dim broadcast (no HBM round trip)
    l0m = jnp.broadcast_to(l0_ref[0][:, None, :, :],
                           (h4, th // h4, W, C)).reshape(M, C)
    l1m = jnp.broadcast_to(l1_ref[0][:, None, :, :],
                           (h2, th // h2, W, C)).reshape(M, C)
    l2m = l2_ref[0].reshape(M, C)

    def _weight_feat(lm, w_r, b_r):
        y = jnp.dot(lm, w_r[...], preferred_element_type=jnp.float32) + b_r[...]
        return _leaky(y)

    v0 = _weight_feat(l0m, w0_ref, b0_ref)          # (M, 16) f32, stays in VMEM
    v1 = _weight_feat(l1m, w1_ref, b1_ref)
    v2 = _weight_feat(l2m, w2_ref, b2_ref)

    # weight_levels: logits = [v0|v1|v2] @ Wl + b  (no concat needed)
    logits = (jnp.dot(v0, wl0_ref[...], preferred_element_type=jnp.float32)
              + jnp.dot(v1, wl1_ref[...], preferred_element_type=jnp.float32)
              + jnp.dot(v2, wl2_ref[...], preferred_element_type=jnp.float32)
              + bl_ref[...])                         # (M, 3)

    m = jnp.max(logits, axis=-1, keepdims=True)
    e = jnp.exp(logits - m)
    p = e * pl.reciprocal(jnp.sum(e, axis=-1, keepdims=True), approx=True)

    fused = (l0m.astype(jnp.float32) * p[:, 0:1]
             + l1m.astype(jnp.float32) * p[:, 1:2]
             + l2m.astype(jnp.float32) * p[:, 2:3])
    o_ref[0] = fused.reshape(th, W, C).astype(o_ref.dtype)


def fused_weight_softmax_sum(l0w, l1w, l2, p, out_dtype=jnp.bfloat16):
    """l0w: (N,H/4,W,C), l1w: (N,H/2,W,C), l2: (N,H,W,C) -> fused (N,H,W,C)."""
    N, H, W, C = l2.shape
    assert H % 4 == 0 and W % 8 == 0
    assert l0w.shape == (N, H // 4, W, C) and l1w.shape == (N, H // 2, W, C)
    w0, b0 = p["w0"]
    w1, b1 = p["w1"]
    w2, b2 = p["w2"]
    cc = w0.shape[1]
    th = _choose_h_tile(H, W, mult=4, max_rows=1024)
    grid = (N, H // th)

    def _const2(n, i):
        return (0, 0)

    return pl.pallas_call(
        _fused_weights_kernel,
        out_shape=jax.ShapeDtypeStruct((N, H, W, C), out_dtype),
        grid=grid,
        in_specs=[
            pl.BlockSpec((1, th // 4, W, C), lambda n, i: (n, i, 0, 0)),
            pl.BlockSpec((1, th // 2, W, C), lambda n, i: (n, i, 0, 0)),
            pl.BlockSpec((1, th, W, C), lambda n, i: (n, i, 0, 0)),
            pl.BlockSpec((C, cc), _const2),
            pl.BlockSpec((1, cc), _const2),
            pl.BlockSpec((C, cc), _const2),
            pl.BlockSpec((1, cc), _const2),
            pl.BlockSpec((C, cc), _const2),
            pl.BlockSpec((1, cc), _const2),
            pl.BlockSpec((cc, 3), _const2),
            pl.BlockSpec((cc, 3), _const2),
            pl.BlockSpec((cc, 3), _const2),
            pl.BlockSpec((1, 3), _const2),
        ],
        out_specs=pl.BlockSpec((1, th, W, C), lambda n, i: (n, i, 0, 0)),
        compiler_params=pltpu.CompilerParams(
            dimension_semantics=("parallel", "parallel")),
    )(l0w, l1w, l2,
      w0, b0.reshape(1, cc), w1, b1.reshape(1, cc), w2, b2.reshape(1, cc),
      p["wl0"], p["wl1"], p["wl2"], p["wl_b"])


# --------------------------------------------------------------------------- #
# Kernel C: 3x3 conv (stride 1, pad 1) + bias (BN folded) + LeakyReLU(0.1)
#           grid = (N, Cout tiles, H row tiles); VMEM scratch accumulator.
# --------------------------------------------------------------------------- #
def _conv3x3_kernel(x_ref, w_ref, b_ref, o_ref, acc_ref):
    # x_ref : (1, H+2, W+2, Cin) bf16 (whole padded image, fetched once per n)
    # w_ref : (3, 3, Cin, tco) bf16     b_ref: (1, tco) f32
    # o_ref : (1, th, W, tco)  f32      acc_ref: VMEM (th*W, tco) f32
    _, th, W, tco = o_ref.shape
    Cin = x_ref.shape[3]
    r = pl.program_id(2)
    row0 = r * th

    acc_ref[...] = jnp.zeros_like(acc_ref)
    for ky in range(3):
        xk = x_ref[0, pl.ds(row0 + ky, th), :, :]           # (th, W+2, Cin)
        for kx in range(3):
            patch = xk[:, kx:kx + W, :].reshape(th * W, Cin)
            acc_ref[...] += jnp.dot(patch, w_ref[ky, kx],
                                    preferred_element_type=jnp.float32)
    y = _leaky(acc_ref[...] + b_ref[...])
    o_ref[0] = y.reshape(th, W, tco)


def conv3x3_bn_leaky(x_nhwc, w_hwio, bias):
    N, H, W, Cin = x_nhwc.shape
    Cout = w_hwio.shape[-1]
    assert W % 8 == 0
    tco = 128 if Cout % 128 == 0 else Cout
    th = _choose_h_tile(H, W, mult=1, max_rows=1024)
    xp = jnp.pad(x_nhwc, ((0, 0), (1, 1), (1, 1), (0, 0)))
    grid = (N, Cout // tco, H // th)
    # TODO(synk): for very large feature maps the whole padded image per-batch
    # exceeds VMEM; a manual-DMA halo row pipeline would be needed there.
    return pl.pallas_call(
        _conv3x3_kernel,
        out_shape=jax.ShapeDtypeStruct((N, H, W, Cout), jnp.float32),
        grid=grid,
        in_specs=[
            pl.BlockSpec((1, H + 2, W + 2, Cin), lambda n, co, r: (n, 0, 0, 0)),
            pl.BlockSpec((3, 3, Cin, tco), lambda n, co, r: (0, 0, 0, co)),
            pl.BlockSpec((1, tco), lambda n, co, r: (0, co)),
        ],
        out_specs=pl.BlockSpec((1, th, W, tco), lambda n, co, r: (n, r, 0, co)),
        scratch_shapes=[pltpu.VMEM((th * W, tco), jnp.float32)],
        compiler_params=pltpu.CompilerParams(
            dimension_semantics=("parallel", "parallel", "arbitrary")),
    )(xp, w_hwio, bias.reshape(1, Cout))


# --------------------------------------------------------------------------- #
# Parameter construction (deterministic, synthetic). BN scale folded into W.
# --------------------------------------------------------------------------- #
def init_asff_level2_params(key, rfb=False):
    inter_dim = 256
    compress_c = 8 if rfb else 16
    ks = jax.random.split(key, 7)

    def conv_block(k, cin, cout, ksize):
        k1, k2, k3, k4, k5 = jax.random.split(k, 5)
        w = 0.05 * jax.random.normal(k1, (ksize, ksize, cin, cout), jnp.float32)
        gamma = 1.0 + 0.1 * jax.random.normal(k2, (cout,), jnp.float32)
        beta = 0.1 * jax.random.normal(k3, (cout,), jnp.float32)
        mean = 0.1 * jax.random.normal(k4, (cout,), jnp.float32)
        var = 0.5 + 0.5 * jax.random.uniform(k5, (cout,), jnp.float32)
        scale, bias = _fold_bn(gamma, beta, mean, var)
        w = w * scale                       # fold BN scale into the conv weights
        if ksize == 1:
            w = w[0, 0]                     # (cin, cout)
        return w.astype(jnp.bfloat16), bias  # bias stays f32

    wl = 0.05 * jax.random.normal(ks[5], (compress_c * 3, 3), jnp.float32)
    bl = 0.01 * jax.random.normal(ks[6], (3,), jnp.float32)
    return {
        "compress0": conv_block(ks[0], 512, inter_dim, 1),   # compress_level_0
        "w0": conv_block(ks[1], inter_dim, compress_c, 1),   # weight_level_0
        "w1": conv_block(ks[2], inter_dim, compress_c, 1),   # weight_level_1
        "w2": conv_block(ks[3], inter_dim, compress_c, 1),   # weight_level_2
        "expand": conv_block(ks[4], inter_dim, 256, 3),      # expand
        "wl0": wl[0:compress_c],                             # weight_levels split
        "wl1": wl[compress_c:2 * compress_c],
        "wl2": wl[2 * compress_c:3 * compress_c],
        "wl_b": bl.reshape(1, 3),
    }


# --------------------------------------------------------------------------- #
# ASFF level-2 forward (Pallas)
# --------------------------------------------------------------------------- #
@jax.jit
def asff_level2_forward(x0_nchw, x1_nchw, x2_nchw, p):
    x0 = jnp.transpose(x0_nchw, (0, 2, 3, 1)).astype(jnp.bfloat16)
    x1 = jnp.transpose(x1_nchw, (0, 2, 3, 1)).astype(jnp.bfloat16)
    x2 = jnp.transpose(x2_nchw, (0, 2, 3, 1)).astype(jnp.bfloat16)

    # compress_level_0 (1x1 conv at 1/4 resolution)
    l0c = conv1x1_bn_leaky(x0, *p["compress0"])       # (N, H/4, W/4, 256) bf16

    # nearest upsample: only the (cheap, low-res) W axis is materialized here;
    # the H axis upsample happens inside the fused kernel.
    l0w = jnp.repeat(l0c, 4, axis=2)                  # (N, H/4, W, 256)
    l1w = jnp.repeat(x1, 2, axis=2)                   # (N, H/2, W, 256)

    fused = fused_weight_softmax_sum(l0w, l1w, x2, p)  # (N, H, W, 256) bf16
    out = conv3x3_bn_leaky(fused, *p["expand"])        # (N, H, W, 256) f32
    return jnp.transpose(out, (0, 3, 1, 2))            # NCHW


# --------------------------------------------------------------------------- #
# Pure-JAX reference (matching bf16 casts) for a correctness check
# --------------------------------------------------------------------------- #
@jax.jit
def asff_level2_reference(x0_nchw, x1_nchw, x2_nchw, p):
    hp = lax.Precision.HIGHEST
    f32 = jnp.float32
    x0 = jnp.transpose(x0_nchw, (0, 2, 3, 1)).astype(jnp.bfloat16).astype(f32)
    x1 = jnp.transpose(x1_nchw, (0, 2, 3, 1)).astype(jnp.bfloat16).astype(f32)
    x2 = jnp.transpose(x2_nchw, (0, 2, 3, 1)).astype(jnp.bfloat16).astype(f32)

    def conv1x1(x, w, b):
        y = jnp.einsum("nhwc,cd->nhwd", x, w.astype(f32), precision=hp) + b
        return _leaky(y)

    l0c = conv1x1(x0, *p["compress0"]).astype(jnp.bfloat16).astype(f32)
    l0r = jnp.repeat(jnp.repeat(l0c, 4, axis=1), 4, axis=2)
    l1r = jnp.repeat(jnp.repeat(x1, 2, axis=1), 2, axis=2)
    l2r = x2

    v0 = conv1x1(l0r, *p["w0"])
    v1 = conv1x1(l1r, *p["w1"])
    v2 = conv1x1(l2r, *p["w2"])
    logits = (jnp.einsum("nhwc,cd->nhwd", v0, p["wl0"], precision=hp)
              + jnp.einsum("nhwc,cd->nhwd", v1, p["wl1"], precision=hp)
              + jnp.einsum("nhwc,cd->nhwd", v2, p["wl2"], precision=hp)
              + p["wl_b"].reshape(1, 1, 1, 3))
    w = jax.nn.softmax(logits, axis=-1)
    fused = (l0r * w[..., 0:1] + l1r * w[..., 1:2] + l2r * w[..., 2:3])
    fused = fused.astype(jnp.bfloat16).astype(f32)

    wexp, bexp = p["expand"]
    y = lax.conv_general_dilated(
        fused, wexp.astype(f32), window_strides=(1, 1), padding="SAME",
        dimension_numbers=("NHWC", "HWIO", "NHWC"), precision=hp) + bexp
    y = _leaky(y)
    return jnp.transpose(y, (0, 3, 1, 2))


# --------------------------------------------------------------------------- #
if __name__ == "__main__":
    key = jax.random.PRNGKey(0)
    kp, k0, k1, k2 = jax.random.split(key, 4)
    params = init_asff_level2_params(kp)

    N = 2
    H = W = 16
    # ASFF(level=2): x0 is 1/4 res with 512 ch, x1 is 1/2 res with 256 ch,
    # x2 is level-2 (full) res with 256 ch.
    x_level_0 = jax.random.normal(k0, (N, 512, H // 4, W // 4), jnp.float32)
    x_level_1 = jax.random.normal(k1, (N, 256, H // 2, W // 2), jnp.float32)
    x_level_2 = jax.random.normal(k2, (N, 256, H, W), jnp.float32)

    out = asff_level2_forward(x_level_0, x_level_1, x_level_2, params)
    out = jax.block_until_ready(out)
    assert out.shape == (N, 256, H, W), out.shape
    assert bool(jnp.all(jnp.isfinite(out)))

    ref = asff_level2_reference(x_level_0, x_level_1, x_level_2, params)
    ref = jax.block_until_ready(ref)
    err = float(jnp.max(jnp.abs(out - ref)) / (jnp.max(jnp.abs(ref)) + 1e-6))
    assert err < 5e-2, f"mismatch vs reference: rel-max err = {err}"

    print("KERNEL_OK")
</pallas_src>

<mosaic_0001>
module attributes {stable_mosaic.version = 11 : i64} {
  func.func @_conv1x1_kernel(%arg0: i32, %arg1: memref<32x512xbf16, #tpu.memory_space<vmem>>, %arg2: memref<512x256xbf16, #tpu.memory_space<vmem>>, %arg3: memref<1x256xf32, #tpu.memory_space<vmem>>, %arg4: memref<32x256xbf16, #tpu.memory_space<vmem>>) attributes {dimension_semantics = [#tpu.dimension_semantics<parallel>], iteration_bounds = array<i64: 1>, scalar_prefetch = 0 : i64, scratch_operands = 0 : i64, tpu.core_type = #tpu.core_type<tc>, window_params = [{transform_indices = @transform_0, window_bounds = array<i64: 32, 512>}, {pipeline_mode = #tpu.pipeline_mode<synchronous>, transform_indices = @transform_1, window_bounds = array<i64: 512, 256>}, {pipeline_mode = #tpu.pipeline_mode<synchronous>, transform_indices = @transform_2, window_bounds = array<i64: 1, 256>}, {transform_indices = @transform_3, window_bounds = array<i64: 32, 256>}]} {
    %c0 = arith.constant 0 : index
    %c0_0 = arith.constant 0 : index
    %0 = vector.load %arg1[%c0, %c0_0] : memref<32x512xbf16, #tpu.memory_space<vmem>>, vector<32x512xbf16>
    %c0_1 = arith.constant 0 : index
    %c0_2 = arith.constant 0 : index
    %1 = vector.load %arg2[%c0_1, %c0_2] : memref<512x256xbf16, #tpu.memory_space<vmem>>, vector<512x256xbf16>
    %cst = arith.constant dense<0.000000e+00> : vector<32x256xf32>
    %2 = tpu.matmul %0, %1, %cst {dimension_numbers = #tpu.dot_dimension_numbers<[1], [0], [0], [1], [0, 0, 1, 1], [], []>} : vector<32x512xbf16>, vector<512x256xbf16>, vector<32x256xf32> -> vector<32x256xf32>
    %c0_3 = arith.constant 0 : index
    %c0_4 = arith.constant 0 : index
    %3 = vector.load %arg3[%c0_3, %c0_4] : memref<1x256xf32, #tpu.memory_space<vmem>>, vector<1x256xf32>
    %4 = vector.broadcast %3 : vector<1x256xf32> to vector<32x256xf32>
    %5 = arith.addf %2, %4 : vector<32x256xf32>
    %cst_5 = arith.constant 0.000000e+00 : f32
    %6 = vector.broadcast %cst_5 : f32 to vector<32x256xf32>
    %7 = arith.cmpf ogt, %5, %6 : vector<32x256xf32>
    %cst_6 = arith.constant 1.000000e-01 : f32
    %8 = vector.broadcast %cst_6 : f32 to vector<32x256xf32>
    %9 = arith.mulf %8, %5 : vector<32x256xf32>
    %10 = arith.select %7, %5, %9 : vector<32x256xi1>, vector<32x256xf32>
    %11 = arith.truncf %10 : vector<32x256xf32> to vector<32x256xbf16>
    %c0_7 = arith.constant 0 : index
    %c0_8 = arith.constant 0 : index
    %12 = vector.load %arg4[%c0_7, %c0_8] : memref<32x256xbf16, #tpu.memory_space<vmem>>, vector<32x256xbf16>
    tpu.vector_store %arg4[%c0_7, %c0_8], %11 {strides = array<i32>} : memref<32x256xbf16, #tpu.memory_space<vmem>>, vector<32x256xbf16>,
    return
  }
  func.func @transform_0(%arg0: i32) -> (i32, i32) {
    %c0_i32 = arith.constant 0 : i32
    %c0_i32_0 = arith.constant 0 : i32
    return %arg0, %c0_i32 : i32, i32
  }
  func.func @transform_1(%arg0: i32) -> (i32, i32) {
    %c0_i32 = arith.constant 0 : i32
    %c0_i32_0 = arith.constant 0 : i32
    %c0_i32_1 = arith.constant 0 : i32
    return %c0_i32, %c0_i32_0 : i32, i32
  }
  func.func @transform_2(%arg0: i32) -> (i32, i32) {
    %c0_i32 = arith.constant 0 : i32
    %c0_i32_0 = arith.constant 0 : i32
    %c0_i32_1 = arith.constant 0 : i32
    return %c0_i32, %c0_i32_0 : i32, i32
  }
  func.func @transform_3(%arg0: i32) -> (i32, i32) {
    %c0_i32 = arith.constant 0 : i32
    %c0_i32_0 = arith.constant 0 : i32
    return %arg0, %c0_i32 : i32, i32
  }
}

module attributes {stable_mosaic.version = 11 : i64} {
  func.func @_fused_weights_kernel(%arg0: i32, %arg1: i32, %arg2: memref<1x4x16x256xbf16, #tpu.memory_space<vmem>>, %arg3: memref<1x8x16x256xbf16, #tpu.memory_space<vmem>>, %arg4: memref<1x16x16x256xbf16, #tpu.memory_space<vmem>>, %arg5: memref<256x16xbf16, #tpu.memory_space<vmem>>, %arg6: memref<1x16xf32, #tpu.memory_space<vmem>>, %arg7: memref<256x16xbf16, #tpu.memory_space<vmem>>, %arg8: memref<1x16xf32, #tpu.memory_space<vmem>>, %arg9: memref<256x16xbf16, #tpu.memory_space<vmem>>, %arg10: memref<1x16xf32, #tpu.memory_space<vmem>>, %arg11: memref<16x3xf32, #tpu.memory_space<vmem>>, %arg12: memref<16x3xf32, #tpu.memory_space<vmem>>, %arg13: memref<16x3xf32, #tpu.memory_space<vmem>>, %arg14: memref<1x3xf32, #tpu.memory_space<vmem>>, %arg15: memref<1x16x16x256xbf16, #tpu.memory_space<vmem>>) attributes {dimension_semantics = [#tpu.dimension_semantics<parallel>, #tpu.dimension_semantics<parallel>], iteration_bounds = array<i64: 2, 1>, scalar_prefetch = 0 : i64, scratch_operands = 0 : i64, tpu.core_type = #tpu.core_type<tc>, window_params = [{transform_indices = @transform_0, window_bounds = array<i64: 1, 4, 16, 256>}, {transform_indices = @transform_1, window_bounds = array<i64: 1, 8, 16, 256>}, {transform_indices = @transform_2, window_bounds = array<i64: 1, 16, 16, 256>}, {pipeline_mode = #tpu.pipeline_mode<synchronous>, transform_indices = @transform_3, window_bounds = array<i64: 256, 16>}, {pipeline_mode = #tpu.pipeline_mode<synchronous>, transform_indices = @transform_4, window_bounds = array<i64: 1, 16>}, {pipeline_mode = #tpu.pipeline_mode<synchronous>, transform_indices = @transform_5, window_bounds = array<i64: 256, 16>}, {pipeline_mode = #tpu.pipeline_mode<synchronous>, transform_indices = @transform_6, window_bounds = array<i64: 1, 16>}, {pipeline_mode = #tpu.pipeline_mode<synchronous>, transform_indices = @transform_7, window_bounds = array<i64: 256, 16>}, {pipeline_mode = #tpu.pipeline_mode<synchronous>, transform_indices = @transform_8, window_bounds = array<i64: 1, 16>}, {pipeline_mode = #tpu.pipeline_mode<synchronous>, transform_indices = @transform_9, window_bounds = array<i64: 16, 3>}, {pipeline_mode = #tpu.pipeline_mode<synchronous>, transform_indices = @transform_10, window_bounds = array<i64: 16, 3>}, {pipeline_mode = #tpu.pipeline_mode<synchronous>, transform_indices = @transform_11, window_bounds = array<i64: 16, 3>}, {pipeline_mode = #tpu.pipeline_mode<synchronous>, transform_indices = @transform_12, window_bounds = array<i64: 1, 3>}, {transform_indices = @transform_13, window_bounds = array<i64: 1, 16, 16, 256>}]} {
    %c0 = arith.constant 0 : index
    %c0_0 = arith.constant 0 : index
    %c0_1 = arith.constant 0 : index
    %c0_2 = arith.constant 0 : index
    %0 = vector.load %arg2[%c0, %c0_0, %c0_1, %c0_2] : memref<1x4x16x256xbf16, #tpu.memory_space<vmem>>, vector<1x4x16x256xbf16>
    %1 = vector.shape_cast %0 : vector<1x4x16x256xbf16> to vector<4x16x256xbf16>
    %2 = vector.shape_cast %1 : vector<4x16x256xbf16> to vector<4x1x16x256xbf16>
    %3 = vector.shape_cast %2 : vector<4x1x16x256xbf16> to vector<4x1x16x256xbf16>
    %4 = vector.broadcast %3 : vector<4x1x16x256xbf16> to vector<4x4x16x256xbf16>
    %5 = vector.shape_cast %4 : vector<4x4x16x256xbf16> to vector<256x256xbf16>
    %c0_3 = arith.constant 0 : index
    %c0_4 = arith.constant 0 : index
    %c0_5 = arith.constant 0 : index
    %c0_6 = arith.constant 0 : index
    %6 = vector.load %arg3[%c0_3, %c0_4, %c0_5, %c0_6] : memref<1x8x16x256xbf16, #tpu.memory_space<vmem>>, vector<1x8x16x256xbf16>
    %7 = vector.shape_cast %6 : vector<1x8x16x256xbf16> to vector<8x16x256xbf16>
    %8 = vector.shape_cast %7 : vector<8x16x256xbf16> to vector<8x1x16x256xbf16>
    %9 = vector.shape_cast %8 : vector<8x1x16x256xbf16> to vector<8x1x16x256xbf16>
    %10 = vector.broadcast %9 : vector<8x1x16x256xbf16> to vector<8x2x16x256xbf16>
    %11 = vector.shape_cast %10 : vector<8x2x16x256xbf16> to vector<256x256xbf16>
    %c0_7 = arith.constant 0 : index
    %c0_8 = arith.constant 0 : index
    %c0_9 = arith.constant 0 : index
    %c0_10 = arith.constant 0 : index
    %12 = vector.load %arg4[%c0_7, %c0_8, %c0_9, %c0_10] : memref<1x16x16x256xbf16, #tpu.memory_space<vmem>>, vector<1x16x16x256xbf16>
    %13 = vector.shape_cast %12 : vector<1x16x16x256xbf16> to vector<16x16x256xbf16>
    %14 = vector.shape_cast %13 : vector<16x16x256xbf16> to vector<256x256xbf16>
    %c0_11 = arith.constant 0 : index
    %c0_12 = arith.constant 0 : index
    %15 = vector.load %arg5[%c0_11, %c0_12] : memref<256x16xbf16, #tpu.memory_space<vmem>>, vector<256x16xbf16>
    %cst = arith.constant dense<0.000000e+00> : vector<256x16xf32>
    %16 = tpu.matmul %5, %15, %cst {dimension_numbers = #tpu.dot_dimension_numbers<[1], [0], [0], [1], [0, 0, 1, 1], [], []>} : vector<256x256xbf16>, vector<256x16xbf16>, vector<256x16xf32> -> vector<256x16xf32>
    %c0_13 = arith.constant 0 : index
    %c0_14 = arith.constant 0 : index
    %17 = vector.load %arg6[%c0_13, %c0_14] : memref<1x16xf32, #tpu.memory_space<vmem>>, vector<1x16xf32>
    %18 = vector.broadcast %17 : vector<1x16xf32> to vector<256x16xf32>
    %19 = arith.addf %16, %18 : vector<256x16xf32>
    %cst_15 = arith.constant 0.000000e+00 : f32
    %20 = vector.broadcast %cst_15 : f32 to vector<256x16xf32>
    %21 = arith.cmpf ogt, %19, %20 : vector<256x16xf32>
    %cst_16 = arith.constant 1.000000e-01 : f32
    %22 = vector.broadcast %cst_16 : f32 to vector<256x16xf32>
    %23 = arith.mulf %22, %19 : vector<256x16xf32>
    %24 = arith.select %21, %19, %23 : vector<256x16xi1>, vector<256x16xf32>
    %c0_17 = arith.constant 0 : index
    %c0_18 = arith.constant 0 : index
    %25 = vector.load %arg7[%c0_17, %c0_18] : memref<256x16xbf16, #tpu.memory_space<vmem>>, vector<256x16xbf16>
    %cst_19 = arith.constant dense<0.000000e+00> : vector<256x16xf32>
    %26 = tpu.matmul %11, %25, %cst_19 {dimension_numbers = #tpu.dot_dimension_numbers<[1], [0], [0], [1], [0, 0, 1, 1], [], []>} : vector<256x256xbf16>, vector<256x16xbf16>, vector<256x16xf32> -> vector<256x16xf32>
    %c0_20 = arith.constant 0 : index
    %c0_21 = arith.constant 0 : index
    %27 = vector.load %arg8[%c0_20, %c0_21] : memref<1x16xf32, #tpu.memory_space<vmem>>, vector<1x16xf32>
    %28 = vector.broadcast %27 : vector<1x16xf32> to vector<256x16xf32>
    %29 = arith.addf %26, %28 : vector<256x16xf32>
    %cst_22 = arith.constant 0.000000e+00 : f32
    %30 = vector.broadcast %cst_22 : f32 to vector<256x16xf32>
    %31 = arith.cmpf ogt, %29, %30 : vector<256x16xf32>
    %cst_23 = arith.constant 1.000000e-01 : f32
    %32 = vector.broadcast %cst_23 : f32 to vector<256x16xf32>
    %33 = arith.mulf %32, %29 : vector<256x16xf32>
    %34 = arith.select %31, %29, %33 : vector<256x16xi1>, vector<256x16xf32>
    %c0_24 = arith.constant 0 : index
    %c0_25 = arith.constant 0 : index
    %35 = vector.load %arg9[%c0_24, %c0_25] : memref<256x16xbf16, #tpu.memory_space<vmem>>, vector<256x16xbf16>
    %cst_26 = arith.constant dense<0.000000e+00> : vector<256x16xf32>
    %36 = tpu.matmul %14, %35, %cst_26 {dimension_numbers = #tpu.dot_dimension_numbers<[1], [0], [0], [1], [0, 0, 1, 1], [], []>} : vector<256x256xbf16>, vector<256x16xbf16>, vector<256x16xf32> -> vector<256x16xf32>
    %c0_27 = arith.constant 0 : index
    %c0_28 = arith.constant 0 : index
    %37 = vector.load %arg10[%c0_27, %c0_28] : memref<1x16xf32, #tpu.memory_space<vmem>>, vector<1x16xf32>
    %38 = vector.broadcast %37 : vector<1x16xf32> to vector<256x16xf32>
    %39 = arith.addf %36, %38 : vector<256x16xf32>
    %cst_29 = arith.constant 0.000000e+00 : f32
    %40 = vector.broadcast %cst_29 : f32 to vector<256x16xf32>
    %41 = arith.cmpf ogt, %39, %40 : vector<256x16xf32>
    %cst_30 = arith.constant 1.000000e-01 : f32
    %42 = vector.broadcast %cst_30 : f32 to vector<256x16xf32>
    %43 = arith.mulf %42, %39 : vector<256x16xf32>
    %44 = arith.select %41, %39, %43 : vector<256x16xi1>, vector<256x16xf32>
    %c0_31 = arith.constant 0 : index
    %c0_32 = arith.constant 0 : index
    %45 = vector.load %arg11[%c0_31, %c0_32] : memref<16x3xf32, #tpu.memory_space<vmem>>, vector<16x3xf32>
    %cst_33 = arith.constant dense<0.000000e+00> : vector<256x3xf32>
    %46 = tpu.matmul %24, %45, %cst_33 {dimension_numbers = #tpu.dot_dimension_numbers<[1], [0], [0], [1], [0, 0, 1, 1], [], []>} : vector<256x16xf32>, vector<16x3xf32>, vector<256x3xf32> -> vector<256x3xf32>
    %c0_34 = arith.constant 0 : index
    %c0_35 = arith.constant 0 : index
    %47 = vector.load %arg12[%c0_34, %c0_35] : memref<16x3xf32, #tpu.memory_space<vmem>>, vector<16x3xf32>
    %cst_36 = arith.constant dense<0.000000e+00> : vector<256x3xf32>
    %48 = tpu.matmul %34, %47, %cst_36 {dimension_numbers = #tpu.dot_dimension_numbers<[1], [0], [0], [1], [0, 0, 1, 1], [], []>} : vector<256x16xf32>, vector<16x3xf32>, vector<256x3xf32> -> vector<256x3xf32>
    %49 = arith.addf %46, %48 : vector<256x3xf32>
    %c0_37 = arith.constant 0 : index
    %c0_38 = arith.constant 0 : index
    %50 = vector.load %arg13[%c0_37, %c0_38] : memref<16x3xf32, #tpu.memory_space<vmem>>, vector<16x3xf32>
    %cst_39 = arith.constant dense<0.000000e+00> : vector<256x3xf32>
    %51 = tpu.matmul %44, %50, %cst_39 {dimension_numbers = #tpu.dot_dimension_numbers<[1], [0], [0], [1], [0, 0, 1, 1], [], []>} : vector<256x16xf32>, vector<16x3xf32>, vector<256x3xf32> -> vector<256x3xf32>
    %52 = arith.addf %49, %51 : vector<256x3xf32>
    %c0_40 = arith.constant 0 : index
    %c0_41 = arith.constant 0 : index
    %53 = vector.load %arg14[%c0_40, %c0_41] : memref<1x3xf32, #tpu.memory_space<vmem>>, vector<1x3xf32>
    %54 = vector.broadcast %53 : vector<1x3xf32> to vector<256x3xf32>
    %55 = arith.addf %52, %54 : vector<256x3xf32>
    %cst_42 = arith.constant dense<0xFF800000> : vector<256xf32>
    %56 = vector.multi_reduction <maximumf>, %55, %cst_42 [1] : vector<256x3xf32> to vector<256xf32>
    %57 = vector.shape_cast %56 : vector<256xf32> to vector<256x1xf32>
    %58 = vector.broadcast %57 : vector<256x1xf32> to vector<256x3xf32>
    %59 = arith.subf %55, %58 : vector<256x3xf32>
    %60 = math.exp %59 : vector<256x3xf32>
    %cst_43 = arith.constant dense<0.000000e+00> : vector<256xf32>
    %61 = vector.multi_reduction <add>, %60, %cst_43 [1] : vector<256x3xf32> to vector<256xf32>
    %62 = vector.shape_cast %61 : vector<256xf32> to vector<256x1xf32>
    %63 = tpu.reciprocal %62 {approx = true} : vector<256x1xf32> -> vector<256x1xf32>
    %64 = vector.broadcast %63 : vector<256x1xf32> to vector<256x3xf32>
    %65 = arith.mulf %60, %64 : vector<256x3xf32>
    %66 = arith.extf %5 : vector<256x256xbf16> to vector<256x256xf32>
    %67 = vector.extract_strided_slice %65 {offsets = [0, 0], sizes = [256, 1], strides = [1, 1]} : vector<256x3xf32> to vector<256x1xf32>
    %68 = vector.broadcast %67 : vector<256x1xf32> to vector<256x256xf32>
    %69 = arith.mulf %66, %68 : vector<256x256xf32>
    %70 = arith.extf %11 : vector<256x256xbf16> to vector<256x256xf32>
    %71 = vector.extract_strided_slice %65 {offsets = [0, 1], sizes = [256, 1], strides = [1, 1]} : vector<256x3xf32> to vector<256x1xf32>
    %72 = vector.broadcast %71 : vector<256x1xf32> to vector<256x256xf32>
    %73 = arith.mulf %70, %72 : vector<256x256xf32>
    %74 = arith.addf %69, %73 : vector<256x256xf32>
    %75 = arith.extf %14 : vector<256x256xbf16> to vector<256x256xf32>
    %76 = vector.extract_strided_slice %65 {offsets = [0, 2], sizes = [256, 1], strides = [1, 1]} : vector<256x3xf32> to vector<256x1xf32>
    %77 = vector.broadcast %76 : vector<256x1xf32> to vector<256x256xf32>
    %78 = arith.mulf %75, %77 : vector<256x256xf32>
    %79 = arith.addf %74, %78 : vector<256x256xf32>
    %80 = vector.shape_cast %79 : vector<256x256xf32> to vector<16x16x256xf32>
    %81 = arith.truncf %80 : vector<16x16x256xf32> to vector<16x16x256xbf16>
    %c0_44 = arith.constant 0 : index
    %c0_45 = arith.constant 0 : index
    %c0_46 = arith.constant 0 : index
    %c0_47 = arith.constant 0 : index
    %82 = vector.load %arg15[%c0_44, %c0_45, %c0_46, %c0_47] : memref<1x16x16x256xbf16, #tpu.memory_space<vmem>>, vector<1x16x16x256xbf16>
    %83 = vector.shape_cast %82 : vector<1x16x16x256xbf16> to vector<16x16x256xbf16>
    %84 = vector.shape_cast %81 : vector<16x16x256xbf16> to vector<1x16x16x256xbf16>
    tpu.vector_store %arg15[%c0_44, %c0_45, %c0_46, %c0_47], %84 {strides = array<i32>} : memref<1x16x16x256xbf16, #tpu.memory_space<vmem>>, vector<1x16x16x256xbf16>,
    return
  }
  func.func @transform_0(%arg0: i32, %arg1: i32) -> (i32, i32, i32, i32) {
    %c0_i32 = arith.constant 0 : i32
    %c0_i32_0 = arith.constant 0 : i32
    %c0_i32_1 = arith.constant 0 : i32
    return %arg0, %arg1, %c0_i32, %c0_i32_0 : i32, i32, i32, i32
  }
  func.func @transform_1(%arg0: i32, %arg1: i32) -> (i32, i32, i32, i32) {
    %c0_i32 = arith.constant 0 : i32
    %c0_i32_0 = arith.constant 0 : i32
    %c0_i32_1 = arith.constant 0 : i32
    return %arg0, %arg1, %c0_i32, %c0_i32_0 : i32, i32, i32, i32
  }
  func.func @transform_2(%arg0: i32, %arg1: i32) -> (i32, i32, i32, i32) {
    %c0_i32 = arith.constant 0 : i32
    %c0_i32_0 = arith.constant 0 : i32
    %c0_i32_1 = arith.constant 0 : i32
    return %arg0, %arg1, %c0_i32, %c0_i32_0 : i32, i32, i32, i32
  }
  func.func @transform_3(%arg0: i32, %arg1: i32) -> (i32, i32) {
    %c0_i32 = arith.constant 0 : i32
    %c0_i32_0 = arith.constant 0 : i32
    %c0_i32_1 = arith.constant 0 : i32
    return %c0_i32, %c0_i32_0 : i32, i32
  }
  func.func @transform_4(%arg0: i32, %arg1: i32) -> (i32, i32) {
    %c0_i32 = arith.constant 0 : i32
    %c0_i32_0 = arith.constant 0 : i32
    %c0_i32_1 = arith.constant 0 : i32
    return %c0_i32, %c0_i32_0 : i32, i32
  }
  func.func @transform_5(%arg0: i32, %arg1: i32) -> (i32, i32) {
    %c0_i32 = arith.constant 0 : i32
    %c0_i32_0 = arith.constant 0 : i32
    %c0_i32_1 = arith.constant 0 : i32
    return %c0_i32, %c0_i32_0 : i32, i32
  }
  func.func @transform_6(%arg0: i32, %arg1: i32) -> (i32, i32) {
    %c0_i32 = arith.constant 0 : i32
    %c0_i32_0 = arith.constant 0 : i32
    %c0_i32_1 = arith.constant 0 : i32
    return %c0_i32, %c0_i32_0 : i32, i32
  }
  func.func @transform_7(%arg0: i32, %arg1: i32) -> (i32, i32) {
    %c0_i32 = arith.constant 0 : i32
    %c0_i32_0 = arith.constant 0 : i32
    %c0_i32_1 = arith.constant 0 : i32
    return %c0_i32, %c0_i32_0 : i32, i32
  }
  func.func @transform_8(%arg0: i32, %arg1: i32) -> (i32, i32) {
    %c0_i32 = arith.constant 0 : i32
    %c0_i32_0 = arith.constant 0 : i32
    %c0_i32_1 = arith.constant 0 : i32
    return %c0_i32, %c0_i32_0 : i32, i32
  }
  func.func @transform_9(%arg0: i32, %arg1: i32) -> (i32, i32) {
    %c0_i32 = arith.constant 0 : i32
    %c0_i32_0 = arith.constant 0 : i32
    %c0_i32_1 = arith.constant 0 : i32
    return %c0_i32, %c0_i32_0 : i32, i32
  }
  func.func @transform_10(%arg0: i32, %arg1: i32) -> (i32, i32) {
    %c0_i32 = arith.constant 0 : i32
    %c0_i32_0 = arith.constant 0 : i32
    %c0_i32_1 = arith.constant 0 : i32
    return %c0_i32, %c0_i32_0 : i32, i32
  }
  func.func @transform_11(%arg0: i32, %arg1: i32) -> (i32, i32) {
    %c0_i32 = arith.constant 0 : i32
    %c0_i32_0 = arith.constant 0 : i32
    %c0_i32_1 = arith.constant 0 : i32
    return %c0_i32, %c0_i32_0 : i32, i32
  }
  func.func @transform_12(%arg0: i32, %arg1: i32) -> (i32, i32) {
    %c0_i32 = arith.constant 0 : i32
    %c0_i32_0 = arith.constant 0 : i32
    %c0_i32_1 = arith.constant 0 : i32
    return %c0_i32, %c0_i32_0 : i32, i32
  }
  func.func @transform_13(%arg0: i32, %arg1: i32) -> (i32, i32, i32, i32) {
    %c0_i32 = arith.constant 0 : i32
    %c0_i32_0 = arith.constant 0 : i32
    %c0_i32_1 = arith.constant 0 : i32
    return %arg0, %arg1, %c0_i32, %c0_i32_0 : i32, i32, i32, i32
  }
}

module attributes {stable_mosaic.version = 11 : i64} {
  func.func @_conv3x3_kernel(%arg0: i32, %arg1: i32, %arg2: i32, %arg3: memref<1x18x18x256xbf16, #tpu.memory_space<vmem>>, %arg4: memref<3x3x256x128xbf16, #tpu.memory_space<vmem>>, %arg5: memref<1x128xf32, #tpu.memory_space<vmem>>, %arg6: memref<1x16x16x128xf32, #tpu.memory_space<vmem>>, %arg7: memref<256x128xf32, #tpu.memory_space<vmem>>) attributes {dimension_semantics = [#tpu.dimension_semantics<parallel>, #tpu.dimension_semantics<parallel>, #tpu.dimension_semantics<arbitrary>], iteration_bounds = array<i64: 2, 2, 1>, scalar_prefetch = 0 : i64, scratch_operands = 1 : i64, tpu.core_type = #tpu.core_type<tc>, window_params = [{transform_indices = @transform_0, window_bounds = array<i64: 1, 18, 18, 256>}, {transform_indices = @transform_1, window_bounds = array<i64: 3, 3, 256, 128>}, {transform_indices = @transform_2, window_bounds = array<i64: 1, 128>}, {transform_indices = @transform_3, window_bounds = array<i64: 1, 16, 16, 128>}]} {
    %c16_i32 = arith.constant 16 : i32
    %0 = arith.muli %arg2, %c16_i32 : i32
    %cst = arith.constant 0.000000e+00 : f32
    %1 = vector.broadcast %cst : f32 to vector<256x128xf32>
    %c0 = arith.constant 0 : index
    %c0_0 = arith.constant 0 : index
    %2 = vector.load %arg7[%c0, %c0_0] : memref<256x128xf32, #tpu.memory_space<vmem>>, vector<256x128xf32>
    tpu.vector_store %arg7[%c0, %c0_0], %1 {strides = array<i32>} : memref<256x128xf32, #tpu.memory_space<vmem>>, vector<256x128xf32>,
    %c0_i32 = arith.constant 0 : i32
    %3 = arith.addi %0, %c0_i32 : i32
    %c0_1 = arith.constant 0 : index
    %4 = arith.index_cast %3 : i32 to index
    %c0_2 = arith.constant 0 : index
    %c0_3 = arith.constant 0 : index
    %5 = vector.load %arg3[%c0_1, %4, %c0_2, %c0_3] : memref<1x18x18x256xbf16, #tpu.memory_space<vmem>>, vector<1x16x18x256xbf16>
    %6 = vector.shape_cast %5 : vector<1x16x18x256xbf16> to vector<16x18x256xbf16>
    %7 = vector.extract_strided_slice %6 {offsets = [0, 0, 0], sizes = [16, 16, 256], strides = [1, 1, 1]} : vector<16x18x256xbf16> to vector<16x16x256xbf16>
    %8 = vector.shape_cast %7 : vector<16x16x256xbf16> to vector<256x256xbf16>
    %c0_4 = arith.constant 0 : index
    %c0_5 = arith.constant 0 : index
    %9 = vector.load %arg7[%c0_4, %c0_5] : memref<256x128xf32, #tpu.memory_space<vmem>>, vector<256x128xf32>
    %c0_6 = arith.constant 0 : index
    %c0_7 = arith.constant 0 : index
    %c0_8 = arith.constant 0 : index
    %c0_9 = arith.constant 0 : index
    %10 = vector.load %arg4[%c0_6, %c0_7, %c0_8, %c0_9] : memref<3x3x256x128xbf16, #tpu.memory_space<vmem>>, vector<1x1x256x128xbf16>
    %11 = vector.shape_cast %10 : vector<1x1x256x128xbf16> to vector<256x128xbf16>
    %cst_10 = arith.constant dense<0.000000e+00> : vector<256x128xf32>
    %12 = tpu.matmul %8, %11, %cst_10 {dimension_numbers = #tpu.dot_dimension_numbers<[1], [0], [0], [1], [0, 0, 1, 1], [], []>} : vector<256x256xbf16>, vector<256x128xbf16>, vector<256x128xf32> -> vector<256x128xf32>
    %13 = arith.addf %9, %12 : vector<256x128xf32>
    %c0_11 = arith.constant 0 : index
    %c0_12 = arith.constant 0 : index
    %14 = vector.load %arg7[%c0_11, %c0_12] : memref<256x128xf32, #tpu.memory_space<vmem>>, vector<256x128xf32>
    tpu.vector_store %arg7[%c0_11, %c0_12], %13 {strides = array<i32>} : memref<256x128xf32, #tpu.memory_space<vmem>>, vector<256x128xf32>,
    %15 = vector.extract_strided_slice %6 {offsets = [0, 1, 0], sizes = [16, 16, 256], strides = [1, 1, 1]} : vector<16x18x256xbf16> to vector<16x16x256xbf16>
    %16 = vector.shape_cast %15 : vector<16x16x256xbf16> to vector<256x256xbf16>
    %c0_13 = arith.constant 0 : index
    %c0_14 = arith.constant 0 : index
    %17 = vector.load %arg7[%c0_13, %c0_14] : memref<256x128xf32, #tpu.memory_space<vmem>>, vector<256x128xf32>
    %c0_15 = arith.constant 0 : index
    %c1 = arith.constant 1 : index
    %c0_16 = arith.constant 0 : index
    %c0_17 = arith.constant 0 : index
    %18 = vector.load %arg4[%c0_15, %c1, %c0_16, %c0_17] : memref<3x3x256x128xbf16, #tpu.memory_space<vmem>>, vector<1x1x256x128xbf16>
    %19 = vector.shape_cast %18 : vector<1x1x256x128xbf16> to vector<256x128xbf16>
    %cst_18 = arith.constant dense<0.000000e+00> : vector<256x128xf32>
    %20 = tpu.matmul %16, %19, %cst_18 {dimension_numbers = #tpu.dot_dimension_numbers<[1], [0], [0], [1], [0, 0, 1, 1], [], []>} : vector<256x256xbf16>, vector<256x128xbf16>, vector<256x128xf32> -> vector<256x128xf32>
    %21 = arith.addf %17, %20 : vector<256x128xf32>
    %c0_19 = arith.constant 0 : index
    %c0_20 = arith.constant 0 : index
    %22 = vector.load %arg7[%c0_19, %c0_20] : memref<256x128xf32, #tpu.memory_space<vmem>>, vector<256x128xf32>
    tpu.vector_store %arg7[%c0_19, %c0_20], %21 {strides = array<i32>} : memref<256x128xf32, #tpu.memory_space<vmem>>, vector<256x128xf32>,
    %23 = vector.extract_strided_slice %6 {offsets = [0, 2, 0], sizes = [16, 16, 256], strides = [1, 1, 1]} : vector<16x18x256xbf16> to vector<16x16x256xbf16>
    %24 = vector.shape_cast %23 : vector<16x16x256xbf16> to vector<256x256xbf16>
    %c0_21 = arith.constant 0 : index
    %c0_22 = arith.constant 0 : index
    %25 = vector.load %arg7[%c0_21, %c0_22] : memref<256x128xf32, #tpu.memory_space<vmem>>, vector<256x128xf32>
    %c0_23 = arith.constant 0 : index
    %c2 = arith.constant 2 : index
    %c0_24 = arith.constant 0 : index
    %c0_25 = arith.constant 0 : index
    %26 = vector.load %arg4[%c0_23, %c2, %c0_24, %c0_25] : memref<3x3x256x128xbf16, #tpu.memory_space<vmem>>, vector<1x1x256x128xbf16>
    %27 = vector.shape_cast %26 : vector<1x1x256x128xbf16> to vector<256x128xbf16>
    %cst_26 = arith.constant dense<0.000000e+00> : vector<256x128xf32>
    %28 = tpu.matmul %24, %27, %cst_26 {dimension_numbers = #tpu.dot_dimension_numbers<[1], [0], [0], [1], [0, 0, 1, 1], [], []>} : vector<256x256xbf16>, vector<256x128xbf16>, vector<256x128xf32> -> vector<256x128xf32>
    %29 = arith.addf %25, %28 : vector<256x128xf32>
    %c0_27 = arith.constant 0 : index
    %c0_28 = arith.constant 0 : index
    %30 = vector.load %arg7[%c0_27, %c0_28] : memref<256x128xf32, #tpu.memory_space<vmem>>, vector<256x128xf32>
    tpu.vector_store %arg7[%c0_27, %c0_28], %29 {strides = array<i32>} : memref<256x128xf32, #tpu.memory_space<vmem>>, vector<256x128xf32>,
    %c1_i32 = arith.constant 1 : i32
    %31 = arith.addi %0, %c1_i32 : i32
    %c0_29 = arith.constant 0 : index
    %32 = arith.index_cast %31 : i32 to index
    %c0_30 = arith.constant 0 : index
    %c0_31 = arith.constant 0 : index
    %33 = vector.load %arg3[%c0_29, %32, %c0_30, %c0_31] : memref<1x18x18x256xbf16, #tpu.memory_space<vmem>>, vector<1x16x18x256xbf16>
    %34 = vector.shape_cast %33 : vector<1x16x18x256xbf16> to vector<16x18x256xbf16>
    %35 = vector.extract_strided_slice %34 {offsets = [0, 0, 0], sizes = [16, 16, 256], strides = [1, 1, 1]} : vector<16x18x256xbf16> to vector<16x16x256xbf16>
    %36 = vector.shape_cast %35 : vector<16x16x256xbf16> to vector<256x256xbf16>
    %c0_32 = arith.constant 0 : index
    %c0_33 = arith.constant 0 : index
    %37 = vector.load %arg7[%c0_32, %c0_33] : memref<256x128xf32, #tpu.memory_space<vmem>>, vector<256x128xf32>
    %c1_34 = arith.constant 1 : index
    %c0_35 = arith.constant 0 : index
    %c0_36 = arith.constant 0 : index
    %c0_37 = arith.constant 0 : index
    %38 = vector.load %arg4[%c1_34, %c0_35, %c0_36, %c0_37] : memref<3x3x256x128xbf16, #tpu.memory_space<vmem>>, vector<1x1x256x128xbf16>
    %39 = vector.shape_cast %38 : vector<1x1x256x128xbf16> to vector<256x128xbf16>
    %cst_38 = arith.constant dense<0.000000e+00> : vector<256x128xf32>
    %40 = tpu.matmul %36, %39, %cst_38 {dimension_numbers = #tpu.dot_dimension_numbers<[1], [0], [0], [1], [0, 0, 1, 1], [], []>} : vector<256x256xbf16>, vector<256x128xbf16>, vector<256x128xf32> -> vector<256x128xf32>
    %41 = arith.addf %37, %40 : vector<256x128xf32>
    %c0_39 = arith.constant 0 : index
    %c0_40 = arith.constant 0 : index
    %42 = vector.load %arg7[%c0_39, %c0_40] : memref<256x128xf32, #tpu.memory_space<vmem>>, vector<256x128xf32>
    tpu.vector_store %arg7[%c0_39, %c0_40], %41 {strides = array<i32>} : memref<256x128xf32, #tpu.memory_space<vmem>>, vector<256x128xf32>,
    %43 = vector.extract_strided_slice %34 {offsets = [0, 1, 0], sizes = [16, 16, 256], strides = [1, 1, 1]} : vector<16x18x256xbf16> to vector<16x16x256xbf16>
    %44 = vector.shape_cast %43 : vector<16x16x256xbf16> to vector<256x256xbf16>
    %c0_41 = arith.constant 0 : index
    %c0_42 = arith.constant 0 : index
    %45 = vector.load %arg7[%c0_41, %c0_42] : memref<256x128xf32, #tpu.memory_space<vmem>>, vector<256x128xf32>
    %c1_43 = arith.constant 1 : index
    %c1_44 = arith.constant 1 : index
    %c0_45 = arith.constant 0 : index
    %c0_46 = arith.constant 0 : index
    %46 = vector.load %arg4[%c1_43, %c1_44, %c0_45, %c0_46] : memref<3x3x256x128xbf16, #tpu.memory_space<vmem>>, vector<1x1x256x128xbf16>
    %47 = vector.shape_cast %46 : vector<1x1x256x128xbf16> to vector<256x128xbf16>
    %cst_47 = arith.constant dense<0.000000e+00> : vector<256x128xf32>
    %48 = tpu.matmul %44, %47, %cst_47 {dimension_numbers = #tpu.dot_dimension_numbers<[1], [0], [0], [1], [0, 0, 1, 1], [], []>} : vector<256x256xbf16>, vector<256x128xbf16>, vector<256x128xf32> -> vector<256x128xf32>
    %49 = arith.addf %45, %48 : vector<256x128xf32>
    %c0_48 = arith.constant 0 : index
    %c0_49 = arith.constant 0 : index
    %50 = vector.load %arg7[%c0_48, %c0_49] : memref<256x128xf32, #tpu.memory_space<vmem>>, vector<256x128xf32>
    tpu.vector_store %arg7[%c0_48, %c0_49], %49 {strides = array<i32>} : memref<256x128xf32, #tpu.memory_space<vmem>>, vector<256x128xf32>,
    %51 = vector.extract_strided_slice %34 {offsets = [0, 2, 0], sizes = [16, 16, 256], strides = [1, 1, 1]} : vector<16x18x256xbf16> to vector<16x16x256xbf16>
    %52 = vector.shape_cast %51 : vector<16x16x256xbf16> to vector<256x256xbf16>
    %c0_50 = arith.constant 0 : index
    %c0_51 = arith.constant 0 : index
    %53 = vector.load %arg7[%c0_50, %c0_51] : memref<256x128xf32, #tpu.memory_space<vmem>>, vector<256x128xf32>
    %c1_52 = arith.constant 1 : index
    %c2_53 = arith.constant 2 : index
    %c0_54 = arith.constant 0 : index
    %c0_55 = arith.constant 0 : index
    %54 = vector.load %arg4[%c1_52, %c2_53, %c0_54, %c0_55] : memref<3x3x256x128xbf16, #tpu.memory_space<vmem>>, vector<1x1x256x128xbf16>
    %55 = vector.shape_cast %54 : vector<1x1x256x128xbf16> to vector<256x128xbf16>
    %cst_56 = arith.constant dense<0.000000e+00> : vector<256x128xf32>
    %56 = tpu.matmul %52, %55, %cst_56 {dimension_numbers = #tpu.dot_dimension_numbers<[1], [0], [0], [1], [0, 0, 1, 1], [], []>} : vector<256x256xbf16>, vector<256x128xbf16>, vector<256x128xf32> -> vector<256x128xf32>
    %57 = arith.addf %53, %56 : vector<256x128xf32>
    %c0_57 = arith.constant 0 : index
    %c0_58 = arith.constant 0 : index
    %58 = vector.load %arg7[%c0_57, %c0_58] : memref<256x128xf32, #tpu.memory_space<vmem>>, vector<256x128xf32>
    tpu.vector_store %arg7[%c0_57, %c0_58], %57 {strides = array<i32>} : memref<256x128xf32, #tpu.memory_space<vmem>>, vector<256x128xf32>,
    %c2_i32 = arith.constant 2 : i32
    %59 = arith.addi %0, %c2_i32 : i32
    %c0_59 = arith.constant 0 : index
    %60 = arith.index_cast %59 : i32 to index
    %c0_60 = arith.constant 0 : index
    %c0_61 = arith.constant 0 : index
    %61 = vector.load %arg3[%c0_59, %60, %c0_60, %c0_61] : memref<1x18x18x256xbf16, #tpu.memory_space<vmem>>, vector<1x16x18x256xbf16>
    %62 = vector.shape_cast %61 : vector<1x16x18x256xbf16> to vector<16x18x256xbf16>
    %63 = vector.extract_strided_slice %62 {offsets = [0, 0, 0], sizes = [16, 16, 256], strides = [1, 1, 1]} : vector<16x18x256xbf16> to vector<16x16x256xbf16>
    %64 = vector.shape_cast %63 : vector<16x16x256xbf16> to vector<256x256xbf16>
    %c0_62 = arith.constant 0 : index
    %c0_63 = arith.constant 0 : index
    %65 = vector.load %arg7[%c0_62, %c0_63] : memref<256x128xf32, #tpu.memory_space<vmem>>, vector<256x128xf32>
    %c2_64 = arith.constant 2 : index
    %c0_65 = arith.constant 0 : index
    %c0_66 = arith.constant 0 : index
    %c0_67 = arith.constant 0 : index
    %66 = vector.load %arg4[%c2_64, %c0_65, %c0_66, %c0_67] : memref<3x3x256x128xbf16, #tpu.memory_space<vmem>>, vector<1x1x256x128xbf16>
    %67 = vector.shape_cast %66 : vector<1x1x256x128xbf16> to vector<256x128xbf16>
    %cst_68 = arith.constant dense<0.000000e+00> : vector<256x128xf32>
    %68 = tpu.matmul %64, %67, %cst_68 {dimension_numbers = #tpu.dot_dimension_numbers<[1], [0], [0], [1], [0, 0, 1, 1], [], []>} : vector<256x256xbf16>, vector<256x128xbf16>, vector<256x128xf32> -> vector<256x128xf32>
    %69 = arith.addf %65, %68 : vector<256x128xf32>
    %c0_69 = arith.constant 0 : index
    %c0_70 = arith.constant 0 : index
    %70 = vector.load %arg7[%c0_69, %c0_70] : memref<256x128xf32, #tpu.memory_space<vmem>>, vector<256x128xf32>
    tpu.vector_store %arg7[%c0_69, %c0_70], %69 {strides = array<i32>} : memref<256x128xf32, #tpu.memory_space<vmem>>, vector<256x128xf32>,
    %71 = vector.extract_strided_slice %62 {offsets = [0, 1, 0], sizes = [16, 16, 256], strides = [1, 1, 1]} : vector<16x18x256xbf16> to vector<16x16x256xbf16>
    %72 = vector.shape_cast %71 : vector<16x16x256xbf16> to vector<256x256xbf16>
    %c0_71 = arith.constant 0 : index
    %c0_72 = arith.constant 0 : index
    %73 = vector.load %arg7[%c0_71, %c0_72] : memref<256x128xf32, #tpu.memory_space<vmem>>, vector<256x128xf32>
    %c2_73 = arith.constant 2 : index
    %c1_74 = arith.constant 1 : index
    %c0_75 = arith.constant 0 : index
    %c0_76 = arith.constant 0 : index
    %74 = vector.load %arg4[%c2_73, %c1_74, %c0_75, %c0_76] : memref<3x3x256x128xbf16, #tpu.memory_space<vmem>>, vector<1x1x256x128xbf16>
    %75 = vector.shape_cast %74 : vector<1x1x256x128xbf16> to vector<256x128xbf16>
    %cst_77 = arith.constant dense<0.000000e+00> : vector<256x128xf32>
    %76 = tpu.matmul %72, %75, %cst_77 {dimension_numbers = #tpu.dot_dimension_numbers<[1], [0], [0], [1], [0, 0, 1, 1], [], []>} : vector<256x256xbf16>, vector<256x128xbf16>, vector<256x128xf32> -> vector<256x128xf32>
    %77 = arith.addf %73, %76 : vector<256x128xf32>
    %c0_78 = arith.constant 0 : index
    %c0_79 = arith.constant 0 : index
    %78 = vector.load %arg7[%c0_78, %c0_79] : memref<256x128xf32, #tpu.memory_space<vmem>>, vector<256x128xf32>
    tpu.vector_store %arg7[%c0_78, %c0_79], %77 {strides = array<i32>} : memref<256x128xf32, #tpu.memory_space<vmem>>, vector<256x128xf32>,
    %79 = vector.extract_strided_slice %62 {offsets = [0, 2, 0], sizes = [16, 16, 256], strides = [1, 1, 1]} : vector<16x18x256xbf16> to vector<16x16x256xbf16>
    %80 = vector.shape_cast %79 : vector<16x16x256xbf16> to vector<256x256xbf16>
    %c0_80 = arith.constant 0 : index
    %c0_81 = arith.constant 0 : index
    %81 = vector.load %arg7[%c0_80, %c0_81] : memref<256x128xf32, #tpu.memory_space<vmem>>, vector<256x128xf32>
    %c2_82 = arith.constant 2 : index
    %c2_83 = arith.constant 2 : index
    %c0_84 = arith.constant 0 : index
    %c0_85 = arith.constant 0 : index
    %82 = vector.load %arg4[%c2_82, %c2_83, %c0_84, %c0_85] : memref<3x3x256x128xbf16, #tpu.memory_space<vmem>>, vector<1x1x256x128xbf16>
    %83 = vector.shape_cast %82 : vector<1x1x256x128xbf16> to vector<256x128xbf16>
    %cst_86 = arith.constant dense<0.000000e+00> : vector<256x128xf32>
    %84 = tpu.matmul %80, %83, %cst_86 {dimension_numbers = #tpu.dot_dimension_numbers<[1], [0], [0], [1], [0, 0, 1, 1], [], []>} : vector<256x256xbf16>, vector<256x128xbf16>, vector<256x128xf32> -> vector<256x128xf32>
    %85 = arith.addf %81, %84 : vector<256x128xf32>
    %c0_87 = arith.constant 0 : index
    %c0_88 = arith.constant 0 : index
    %86 = vector.load %arg7[%c0_87, %c0_88] : memref<256x128xf32, #tpu.memory_space<vmem>>, vector<256x128xf32>
    tpu.vector_store %arg7[%c0_87, %c0_88], %85 {strides = array<i32>} : memref<256x128xf32, #tpu.memory_space<vmem>>, vector<256x128xf32>,
    %c0_89 = arith.constant 0 : index
    %c0_90 = arith.constant 0 : index
    %87 = vector.load %arg7[%c0_89, %c0_90] : memref<256x128xf32, #tpu.memory_space<vmem>>, vector<256x128xf32>
    %c0_91 = arith.constant 0 : index
    %c0_92 = arith.constant 0 : index
    %88 = vector.load %arg5[%c0_91, %c0_92] : memref<1x128xf32, #tpu.memory_space<vmem>>, vector<1x128xf32>
    %89 = vector.broadcast %88 : vector<1x128xf32> to vector<256x128xf32>
    %90 = arith.addf %87, %89 : vector<256x128xf32>
    %cst_93 = arith.constant 0.000000e+00 : f32
    %91 = vector.broadcast %cst_93 : f32 to vector<256x128xf32>
    %92 = arith.cmpf ogt, %90, %91 : vector<256x128xf32>
    %cst_94 = arith.constant 1.000000e-01 : f32
    %93 = vector.broadcast %cst_94 : f32 to vector<256x128xf32>
    %94 = arith.mulf %93, %90 : vector<256x128xf32>
    %95 = arith.select %92, %90, %94 : vector<256x128xi1>, vector<256x128xf32>
    %96 = vector.shape_cast %95 : vector<256x128xf32> to vector<16x16x128xf32>
    %c0_95 = arith.constant 0 : index
    %c0_96 = arith.constant 0 : index
    %c0_97 = arith.constant 0 : index
    %c0_98 = arith.constant 0 : index
    %97 = vector.load %arg6[%c0_95, %c0_96, %c0_97, %c0_98] : memref<1x16x16x128xf32, #tpu.memory_space<vmem>>, vector<1x16x16x128xf32>
    %98 = vector.shape_cast %97 : vector<1x16x16x128xf32> to vector<16x16x128xf32>
    %99 = vector.shape_cast %96 : vector<16x16x128xf32> to vector<1x16x16x128xf32>
    tpu.vector_store %arg6[%c0_95, %c0_96, %c0_97, %c0_98], %99 {strides = array<i32>} : memref<1x16x16x128xf32, #tpu.memory_space<vmem>>, vector<1x16x16x128xf32>,
    return
  }
  func.func @transform_0(%arg0: i32, %arg1: i32, %arg2: i32) -> (i32, i32, i32, i32) {
    %c0_i32 = arith.constant 0 : i32
    %c0_i32_0 = arith.constant 0 : i32
    %c0_i32_1 = arith.constant 0 : i32
    %c0_i32_2 = arith.constant 0 : i32
    return %arg0, %c0_i32, %c0_i32_0, %c0_i32_1 : i32, i32, i32, i32
  }
  func.func @transform_1(%arg0: i32, %arg1: i32, %arg2: i32) -> (i32, i32, i32, i32) {
    %c0_i32 = arith.constant 0 : i32
    %c0_i32_0 = arith.constant 0 : i32
    %c0_i32_1 = arith.constant 0 : i32
    %c0_i32_2 = arith.constant 0 : i32
    return %c0_i32, %c0_i32_0, %c0_i32_1, %arg1 : i32, i32, i32, i32
  }
  func.func @transform_2(%arg0: i32, %arg1: i32, %arg2: i32) -> (i32, i32) {
    %c0_i32 = arith.constant 0 : i32
    %c0_i32_0 = arith.constant 0 : i32
    return %c0_i32, %arg1 : i32, i32
  }
  func.func @transform_3(%arg0: i32, %arg1: i32, %arg2: i32) -> (i32, i32, i32, i32) {
    %c0_i32 = arith.constant 0 : i32
    %c0_i32_0 = arith.constant 0 : i32
    return %arg0, %arg2, %c0_i32, %arg1 : i32, i32, i32, i32
  }
}

</mosaic_0001>

<bundles_post_ra>
// kernel: asff_level2_forward.3
= control target key start
LH: loop header
LB: loop body
LE: loop exit
PB: predicated region body
PF: predicated region fallthrough
CT: control target
= control target key end

     0   :  { %8 = vsyncpa [#allocation3], 0  ;;  %s988_s0 = inlined_call_operand.vmem [shape: bf16[32,512], index: 0, kind: input, shape index: {}]   ;;  %s989_s1 = inlined_call_operand.hbm [shape: bf16[512,256], index: 1, kind: input, shape index: {}]   ;;  %s990_s2 = inlined_call_operand.hbm [shape: f32[1,256], index: 2, kind: input, shape index: {}]   ;;  %s991_s3 = inlined_call_operand.vmem [shape: bf16[32,256], index: 3, kind: output, shape index: {}]  }
   0x1   :  { %9 = vsyncpa [#allocation5], 0  ;;  %s904_s12 = smov [#allocation2]   ;;  %s856_s16 = scalar_lea.hbm %s989_s1, 8192 }
   0x2   :  { %s17_s13 = sshll.u32 %s904_s12, 4  ;;  %p857_p0 = scmp.ne.s32.totalorder %s989_s1, %s856_s16  ;;  %s18_s13 = int_to_ptr.vmem [resolvable:$true] %s17_s13 }
   0x3   :  { %p860_p1 = scmp.lt.u32.totalorder %s856_s16, %s989_s1 }
   0x5   :  { %p862_p2 = pnand %p860_p1, %p857_p0 }
   0x7   :  { %865 = shalt.err (!%p862_p2)
}
   0x8   :  { %s866_s21 = scalar_lea.vmem %s18_s13, 8192  ;;  %p871_p4 = scmp.lt.s32.totalorder %s18_s13, %s18_s13 }
   0x9   :  { %p867_p3 = scmp.ne.s32.totalorder %s18_s13, %s866_s21  ;;  %p872_p5 = scmp.lt.s32.totalorder %s866_s21, %s866_s21 }
   0xb   :  { %p873_p6 = por %p872_p5, %p871_p4 }
   0xd   :  { %p874_p7 = pnand %p873_p6, %p867_p3 }
   0xf   :  { %877 = shalt.err (!%p874_p7)
}
  0x10   :  { %s905_s22 = smov 128   ;;  %s906_s23 = smov 8  }
  0x11   :  { %23 = dma.hbm_to_vmem [thread:$0]  %s989_s1, 8192, %s18_s13, [#allocation3], %s905_s22, %s905_s22, %s906_s23  }
  0x12   :  { %s907_s26 = smov [#allocation4]   ;;  %s878_s30 = scalar_lea.hbm %s990_s2, 32 }
  0x13   :  { %s30_s27 = sshll.u32 %s907_s26, 4  ;;  %p879_p8 = scmp.ne.s32.totalorder %s990_s2, %s878_s30  ;;  %s31_s27 = int_to_ptr.vmem [resolvable:$true] %s30_s27 }
  0x14   :  { %p882_p9 = scmp.lt.u32.totalorder %s878_s30, %s990_s2 }
  0x16   :  { %p884_p10 = pnand %p882_p9, %p879_p8 }
  0x18   :  { %887 = shalt.err (!%p884_p10)
}
  0x19   :  { %s888_s8 = scalar_lea.vmem %s31_s27, 32  ;;  %p893_p12 = scmp.lt.s32.totalorder %s31_s27, %s31_s27 }
  0x1a   :  { %p889_p11 = scmp.ne.s32.totalorder %s31_s27, %s888_s8  ;;  %p894_p13 = scmp.lt.s32.totalorder %s888_s8, %s888_s8 }
  0x1c   :  { %p895_p0 = por %p894_p13, %p893_p12 }
  0x1e   :  { %p896_p1 = pnand %p895_p0, %p889_p11 }
  0x20   :  { %899 = shalt.err (!%p896_p1)
}
  0x21   :  { %33 = dma.hbm_to_vmem [thread:$0]  %s990_s2, 32, %s31_s27, [#allocation5]  }
  0x22   :  { %900 = dma.done.wait [#allocation3], 8192  }
  0x23   :  { %901 = vsyncadd [#allocation3], 4294959104 }
  0x24   :  { %902 = dma.done.wait [#allocation5], 32  }
  0x25   :  { %903 = vsyncadd [#allocation5], 4294967264  ;;  %v748_v0 = vld [vmem:[#allocation2 + $0x4] ss:$8 sps:$4 sm:$0xff]   ;;  %v752_v2 = vld [vmem:[#allocation2] ss:$8 sps:$4 sm:$0xff]  }
  0x26   :  { %v750_v1 = vld [vmem:[#allocation2 + $0x104] ss:$8 sps:$4 sm:$0xff]   ;;  %484 = vmatprep.subr.bf16.mxu1 %v748_v0  ;;  %v753_v3 = vld [vmem:[#allocation2 + $0x100] ss:$8 sps:$4 sm:$0xff]   ;;  %v754_v4 = vld [vmem:[#allocation2 + $0x14] ss:$8 sps:$4 sm:$0xff]  }
  0x27   :  { %537 = vmatprep.subr.bf16.mxu0 %v750_v1  ;;  %485 = vmatpush1.bf16.msra.mxu1 %v752_v2  ;;  %v756_v5 = vld [vmem:[#allocation2 + $0x114] ss:$8 sps:$4 sm:$0xff]   ;;  %v758_v6 = vld [vmem:[#allocation2 + $0x10] ss:$8 sps:$4 sm:$0xff]   ;;  %v760_v8 = vld [vmem:[#allocation2 + $0x24] ss:$8 sps:$4 sm:$0xff]  }
  0x28   :  { %538 = vmatpush1.bf16.msra.mxu0 %v753_v3  ;;  %486 = vmatprep.subr.bf16.mxu1 %v754_v4  ;;  %v759_v7 = vld [vmem:[#allocation2 + $0x110] ss:$8 sps:$4 sm:$0xff]   ;;  %v762_v9 = vld [vmem:[#allocation2 + $0x124] ss:$8 sps:$4 sm:$0xff]   ;;  %v764_v10 = vld [vmem:[#allocation2 + $0x20] ss:$8 sps:$4 sm:$0xff]  }
  0x29   :  { %539 = vmatprep.subr.bf16.mxu0 %v756_v5  ;;  %v765_v11 = vld [vmem:[#allocation2 + $0x120] ss:$8 sps:$4 sm:$0xff]   ;;  %v766_v12 = vld [vmem:[#allocation2 + $0x34] ss:$8 sps:$4 sm:$0xff]   ;;  %v770_v14 = vld [vmem:[#allocation2 + $0x30] ss:$8 sps:$4 sm:$0xff]  }
  0x2a   :  { %v768_v13 = vld [vmem:[#allocation2 + $0x134] ss:$8 sps:$4 sm:$0xff]   ;;  %v771_v15 = vld [vmem:[#allocation2 + $0x130] ss:$8 sps:$4 sm:$0xff]   ;;  %v772_v16 = vld [vmem:[#allocation2 + $0x44] ss:$8 sps:$4 sm:$0xff]  }
  0x2b   :  { %487 = vmatpush1.bf16.msra.mxu1 %v758_v6  ;;  %v774_v17 = vld [vmem:[#allocation2 + $0x144] ss:$8 sps:$4 sm:$0xff]   ;;  %v776_v18 = vld [vmem:[#allocation2 + $0x40] ss:$8 sps:$4 sm:$0xff]   ;;  %v778_v20 = vld [vmem:[#allocation2 + $0x54] ss:$8 sps:$4 sm:$0xff]  }
  0x2c   :  { %540 = vmatpush1.bf16.msra.mxu0 %v759_v7  ;;  %488 = vmatprep.subr.bf16.mxu1 %v760_v8  ;;  %v777_v19 = vld [vmem:[#allocation2 + $0x140] ss:$8 sps:$4 sm:$0xff]   ;;  %v780_v21 = vld [vmem:[#allocation2 + $0x154] ss:$8 sps:$4 sm:$0xff]   ;;  %v782_v22 = vld [vmem:[#allocation2 + $0x50] ss:$8 sps:$4 sm:$0xff]   ;;  %v114_v8 = vlaneseq }
  0x2d   :  { %541 = vmatprep.subr.bf16.mxu0 %v762_v9  ;;  %v783_v23 = vld [vmem:[#allocation2 + $0x150] ss:$8 sps:$4 sm:$0xff]   ;;  %v784_v24 = vld [vmem:[#allocation2 + $0x64] ss:$8 sps:$4 sm:$0xff]   ;;  %v788_v26 = vld [vmem:[#allocation2 + $0x60] ss:$8 sps:$4 sm:$0xff]  }
  0x2e   :  { %v786_v25 = vld [vmem:[#allocation2 + $0x164] ss:$8 sps:$4 sm:$0xff]   ;;  %v789_v27 = vld [vmem:[#allocation2 + $0x160] ss:$8 sps:$4 sm:$0xff]   ;;  %v790_v28 = vld [vmem:[#allocation2 + $0x74] ss:$8 sps:$4 sm:$0xff]  }
  0x2f   :  { %489 = vmatpush1.bf16.msra.mxu1 %v764_v10  ;;  %v792_v29 = vld [vmem:[#allocation2 + $0x174] ss:$8 sps:$4 sm:$0xff]   ;;  %v794_v30 = vld [vmem:[#allocation2 + $0x70] ss:$8 sps:$4 sm:$0xff]   ;;  %v796_v32 = vld [vmem:[#allocation2 + $0x84] ss:$8 sps:$4 sm:$0xff]  }
  0x30   :  { %542 = vmatpush1.bf16.msra.mxu0 %v765_v11  ;;  %490 = vmatprep.subr.bf16.mxu1 %v766_v12  ;;  %v795_v31 = vld [vmem:[#allocation2 + $0x170] ss:$8 sps:$4 sm:$0xff]   ;;  %v798_v33 = vld [vmem:[#allocation2 + $0x184] ss:$8 sps:$4 sm:$0xff]   ;;  %v800_v34 = vld [vmem:[#allocation2 + $0x80] ss:$8 sps:$4 sm:$0xff]  }
  0x31   :  { %543 = vmatprep.subr.bf16.mxu0 %v768_v13  ;;  %v801_v35 = vld [vmem:[#allocation2 + $0x180] ss:$8 sps:$4 sm:$0xff]   ;;  %v802_v36 = vld [vmem:[#allocation2 + $0x94] ss:$8 sps:$4 sm:$0xff]   ;;  %v806_v38 = vld [vmem:[#allocation2 + $0x90] ss:$8 sps:$4 sm:$0xff]  }
  0x32   :  { %v804_v37 = vld [vmem:[#allocation2 + $0x194] ss:$8 sps:$4 sm:$0xff]   ;;  %v807_v39 = vld [vmem:[#allocation2 + $0x190] ss:$8 sps:$4 sm:$0xff]   ;;  %v808_v40 = vld [vmem:[#allocation2 + $0xa4] ss:$8 sps:$4 sm:$0xff]  }
  0x33   :  { %491 = vmatpush1.bf16.msra.mxu1 %v770_v14  ;;  %v810_v41 = vld [vmem:[#allocation2 + $0x1a4] ss:$8 sps:$4 sm:$0xff]   ;;  %v812_v42 = vld [vmem:[#allocation2 + $0xa0] ss:$8 sps:$4 sm:$0xff]   ;;  %v814_v44 = vld [vmem:[#allocation2 + $0xb4] ss:$8 sps:$4 sm:$0xff]  }
  0x34   :  { %544 = vmatpush1.bf16.msra.mxu0 %v771_v15  ;;  %492 = vmatprep.subr.bf16.mxu1 %v772_v16  ;;  %v813_v43 = vld [vmem:[#allocation2 + $0x1a0] ss:$8 sps:$4 sm:$0xff]   ;;  %v816_v45 = vld [vmem:[#allocation2 + $0x1b4] ss:$8 sps:$4 sm:$0xff]   ;;  %v818_v46 = vld [vmem:[#allocation2 + $0xb0] ss:$8 sps:$4 sm:$0xff]  }
  0x35   :  { %545 = vmatprep.subr.bf16.mxu0 %v774_v17  ;;  %v819_v47 = vld [vmem:[#allocation2 + $0x1b0] ss:$8 sps:$4 sm:$0xff]   ;;  %v820_v48 = vld [vmem:[#allocation2 + $0xc4] ss:$8 sps:$4 sm:$0xff]   ;;  %v824_v52 = vld [vmem:[#allocation2 + $0xc0] ss:$8 sps:$4 sm:$0xff]  }
  0x36   :  { %v846_v49 = vld [vmem:[%s988_s0 + $0x4] ss:$16 sps:$4 sm:$0xff]   ;;  %v849_v51 = vld [vmem:[%s988_s0 + $0xc] ss:$16 sps:$4 sm:$0xff]   ;;  %v825_v53 = vld [vmem:[#allocation2 + $0x1c0] ss:$8 sps:$4 sm:$0xff]  }
  0x37   :  { %493 = vmatpush1.bf16.msra.mxu1 %v776_v18  ;;  %v822_v50 = vld [vmem:[#allocation2 + $0x1c4] ss:$8 sps:$4 sm:$0xff]   ;;  %516 = vmatprep.mubr.bf16.mxu1 %v846_v49  ;;  %v826_v54 = vld [vmem:[#allocation2 + $0xd4] ss:$8 sps:$4 sm:$0xff]   ;;  %v830_v56 = vld [vmem:[#allocation2 + $0xd0] ss:$8 sps:$4 sm:$0xff]  }
  0x38   :  { %546 = vmatpush1.bf16.msra.mxu0 %v777_v19  ;;  %494 = vmatprep.subr.bf16.mxu1 %v778_v20  ;;  %v828_v55 = vld [vmem:[#allocation2 + $0x1d4] ss:$8 sps:$4 sm:$0xff]   ;;  %v831_v57 = vld [vmem:[#allocation2 + $0x1d0] ss:$8 sps:$4 sm:$0xff]   ;;  %v832_v58 = vld [vmem:[#allocation2 + $0xe4] ss:$8 sps:$4 sm:$0xff]  }
  0x39   :  { %547 = vmatprep.subr.bf16.mxu0 %v780_v21  ;;  %569 = vmatprep.mubr.bf16.mxu0 %v849_v51  ;;  %v834_v59 = vld [vmem:[#allocation2 + $0x1e4] ss:$8 sps:$4 sm:$0xff]   ;;  %v836_v60 = vld [vmem:[#allocation2 + $0xe0] ss:$8 sps:$4 sm:$0xff]   ;;  %v838_v62 = vld [vmem:[#allocation2 + $0xf4] ss:$8 sps:$4 sm:$0xff]  }
  0x3a   :  { %v837_v61 = vld [vmem:[#allocation2 + $0x1e0] ss:$8 sps:$4 sm:$0xff]   ;;  %v840_v63 = vld [vmem:[#allocation2 + $0x1f4] ss:$8 sps:$4 sm:$0xff]   ;;  %v842_v0 = vld [vmem:[#allocation2 + $0xf0] ss:$8 sps:$4 sm:$0xff]  }
  0x3b   :  { %495 = vmatpush1.bf16.msra.mxu1 %v782_v22  ;;  %v843_v1 = vld [vmem:[#allocation2 + $0x1f0] ss:$8 sps:$4 sm:$0xff]   ;;  %v850_v4 = vld [vmem:[%s988_s0 + $0x24] ss:$16 sps:$4 sm:$0xff]   ;;  %v852_v5 = vld [vmem:[%s988_s0 + $0x2c] ss:$16 sps:$4 sm:$0xff]  }
  0x3c   :  { %548 = vmatpush1.bf16.msra.mxu0 %v783_v23  ;;  %496 = vmatprep.subr.bf16.mxu1 %v784_v24  ;;  %v844_v2 = vld [vmem:[%s988_s0] ss:$16 sps:$4 sm:$0xff]   ;;  %v847_v3 = vld [vmem:[%s988_s0 + $0x8] ss:$16 sps:$4 sm:$0xff]   ;;  %v115_v9 = vshrl.u32 %v114_v8, 7 }
  0x3d   :  { %549 = vmatprep.subr.bf16.mxu0 %v786_v25  ;;  %v854_v6 = vld [vmem:[%s988_s0 + $0x20] ss:$16 sps:$4 sm:$0xff]   ;;  %v855_v7 = vld [vmem:[%s988_s0 + $0x28] ss:$16 sps:$4 sm:$0xff]  }
  0x3e   :  { %v116_v10 = vsub.s32 0, %v115_v9  ;;  %v112_v11 = vld [vmem:[#allocation4] sm:$0x3]  ;;  %v120_v12 = vsub.s32 1, %v115_v9 }
  0x3f   :  { %497 = vmatpush1.bf16.msra.mxu1 %v788_v26 }
  0x40   :  { %550 = vmatpush1.bf16.msra.mxu0 %v789_v27  ;;  %498 = vmatprep.subr.bf16.mxu1 %v790_v28  ;;  %v117_v13 = vrot.slane %v112_v11, %v116_v10  ;;  %v121_v14 = vrot.slane %v112_v11, %v120_v12 }
  0x41   :  { %551 = vmatprep.subr.bf16.mxu0 %v792_v29 }
  0x43   :  { %499 = vmatpush1.bf16.msra.mxu1 %v794_v30 }
  0x44   :  { %552 = vmatpush1.bf16.msra.mxu0 %v795_v31  ;;  %500 = vmatprep.subr.bf16.mxu1 %v796_v32 }
  0x45   :  { %553 = vmatprep.subr.bf16.mxu0 %v798_v33 }
  0x47   :  { %501 = vmatpush1.bf16.msra.mxu1 %v800_v34 }
  0x48   :  { %554 = vmatpush1.bf16.msra.mxu0 %v801_v35  ;;  %502 = vmatprep.subr.bf16.mxu1 %v802_v36 }
  0x49   :  { %555 = vmatprep.subr.bf16.mxu0 %v804_v37 }
  0x4b   :  { %503 = vmatpush1.bf16.msra.mxu1 %v806_v38 }
  0x4c   :  { %556 = vmatpush1.bf16.msra.mxu0 %v807_v39  ;;  %504 = vmatprep.subr.bf16.mxu1 %v808_v40 }
  0x4d   :  { %557 = vmatprep.subr.bf16.mxu0 %v810_v41 }
  0x4f   :  { %505 = vmatpush1.bf16.msra.mxu1 %v812_v42 }
  0x50   :  { %558 = vmatpush1.bf16.msra.mxu0 %v813_v43  ;;  %506 = vmatprep.subr.bf16.mxu1 %v814_v44 }
  0x51   :  { %559 = vmatprep.subr.bf16.mxu0 %v816_v45 }
  0x53   :  { %507 = vmatpush1.bf16.msra.mxu1 %v818_v46 }
  0x54   :  { %560 = vmatpush1.bf16.msra.mxu0 %v819_v47  ;;  %508 = vmatprep.subr.bf16.mxu1 %v820_v48 }
  0x55   :  { %561 = vmatprep.subr.bf16.mxu0 %v822_v50 }
  0x57   :  { %509 = vmatpush1.bf16.msra.mxu1 %v824_v52 }
  0x58   :  { %562 = vmatpush1.bf16.msra.mxu0 %v825_v53  ;;  %510 = vmatprep.subr.bf16.mxu1 %v826_v54 }
  0x59   :  { %563 = vmatprep.subr.bf16.mxu0 %v828_v55 }
  0x5b   :  { %511 = vmatpush1.bf16.msra.mxu1 %v830_v56 }
  0x5c   :  { %564 = vmatpush1.bf16.msra.mxu0 %v831_v57  ;;  %512 = vmatprep.subr.bf16.mxu1 %v832_v58 }
  0x5d   :  { %565 = vmatprep.subr.bf16.mxu0 %v834_v59 }
  0x5f   :  { %513 = vmatpush1.bf16.msra.mxu1 %v836_v60 }
  0x60   :  { %566 = vmatpush1.bf16.msra.mxu0 %v837_v61  ;;  %514 = vmatprep.subr.bf16.mxu1 %v838_v62 }
  0x61   :  { %567 = vmatprep.subr.bf16.mxu0 %v840_v63 }
  0x63   :  { %515 = vmatpush1.bf16.msra.mxu1 %v842_v0 }
  0x64   :  { %568 = vmatpush1.bf16.msra.mxu0 %v843_v1 }
  0x66   :  { %517 = vmatmul.mubr.bf16.vlgmr.msra.gmra.mrb[0].mxu1 %v844_v2 }
  0x67   :  { %570 = vmatmul.mubr.bf16.vlgmr.msra.gmra.mrb[0].mxu0 %v847_v3  ;;  %526 = vmatprep.mubr.bf16.mxu1 %v850_v4 }
  0x68   :  { %579 = vmatprep.mubr.bf16.mxu0 %v852_v5 }
  0x6e   :  { %527 = vmatmul.mubr.bf16.gmra.mrb[4].mxu1 %v854_v6 }
  0x6f   :  { %580 = vmatmul.mubr.bf16.gmra.mrb[4].mxu0 %v855_v7 }
 0x139   :  { %v518_v15 = vpop.f32.mrb[0].mxu1 }
 0x13a   :  { %v571_v16 = vpop.f32.mrb[0].mxu0  ;;  %v519_v17 = vadd.f32 %v518_v15, %v117_v13  ;;  %v520_v18 = vpop.f32.mrb[1].mxu1 }
 0x13b   :  { %v573_v19 = vpop.f32.mrb[1].mxu0  ;;  %v521_v20 = vadd.f32 %v520_v18, %v121_v14  ;;  %v522_v21 = vpop.f32.mrb[2].mxu1 }
 0x13c   :  { %v575_v22 = vpop.f32.mrb[2].mxu0  ;;  %v572_v23 = vadd.f32 %v571_v16, %v519_v17  ;;  %v523_v24 = vadd.f32 %v522_v21, %v117_v13  ;;  %v524_v25 = vpop.f32.mrb[3].mxu1 }
 0x13d   :  { %v577_v26 = vpop.f32.mrb[3].mxu0  ;;  %v574_v27 = vadd.f32 %v573_v19, %v521_v20  ;;  %v525_v28 = vadd.f32 %v524_v25, %v121_v14 }
 0x13e   :  { %vm590_vm0 = vcmp.gt.f32.partialorder %v572_v23, 0.0  ;;  %v598_v29 = vmul.f32 0.1, %v572_v23  ;;  %v576_v30 = vadd.f32 %v575_v22, %v523_v24 }
 0x13f   :  { %vm591_vm1 = vcmp.gt.f32.partialorder %v574_v27, 0.0  ;;  %v599_v31 = vmul.f32 0.1, %v574_v27  ;;  %v578_v32 = vadd.f32 %v577_v26, %v525_v28 }
 0x140   :  { %v606_v33 = vsel %vm590_vm0, %v572_v23, %v598_v29  ;;  %vm592_vm2 = vcmp.gt.f32.partialorder %v576_v30, 0.0  ;;  %v600_v34 = vmul.f32 0.1, %v576_v30 }
 0x141   :  { %v607_v35 = vsel %vm591_vm1, %v574_v27, %v599_v31  ;;  %vm593_vm3 = vcmp.gt.f32.partialorder %v578_v32, 0.0  ;;  %v601_v36 = vmul.f32 0.1, %v578_v32  ;;  %v528_v37 = vpop.f32.mrb[4].mxu1 }
 0x142   :  { %v581_v38 = vpop.f32.mrb[4].mxu0  ;;  %v724_v39 = vpack.c.bf16 %v607_v35, %v606_v33  ;;  %v608_v40 = vsel %vm592_vm2, %v576_v30, %v600_v34  ;;  %v529_v41 = vadd.f32 %v528_v37, %v117_v13  ;;  %v530_v42 = vpop.f32.mrb[5].mxu1 }
 0x143   :  { %v583_v43 = vpop.f32.mrb[5].mxu0  ;;  %v609_v44 = vsel %vm593_vm3, %v578_v32, %v601_v36  ;;  %v531_v45 = vadd.f32 %v530_v42, %v121_v14  ;;  %v532_v46 = vpop.f32.mrb[6].mxu1 }
 0x144   :  { %v585_v47 = vpop.f32.mrb[6].mxu0  ;;  %638 = vst [vmem:[%s991_s3] sm:$0xff] %v724_v39  ;;  %v725_v48 = vpack.c.bf16 %v609_v44, %v608_v40  ;;  %v582_v49 = vadd.f32 %v581_v38, %v529_v41  ;;  %v533_v50 = vadd.f32 %v532_v46, %v117_v13  ;;  %v534_v51 = vpop.f32.mrb[7].mxu1 }
 0x145   :  { %v587_v52 = vpop.f32.mrb[7].mxu0  ;;  %v584_v53 = vadd.f32 %v583_v43, %v531_v45  ;;  %v535_v54 = vadd.f32 %v534_v51, %v121_v14 }
 0x146   :  { %639 = vst [vmem:[%s991_s3 + $0x8] sm:$0xff] %v725_v48  ;;  %vm594_vm4 = vcmp.gt.f32.partialorder %v582_v49, 0.0  ;;  %v602_v55 = vmul.f32 0.1, %v582_v49  ;;  %v586_v56 = vadd.f32 %v585_v47, %v533_v50 }
 0x147   :  { %vm595_vm5 = vcmp.gt.f32.partialorder %v584_v53, 0.0  ;;  %v603_v57 = vmul.f32 0.1, %v584_v53  ;;  %v588_v58 = vadd.f32 %v587_v52, %v535_v54 }
 0x148   :  { %v610_v59 = vsel %vm594_vm4, %v582_v49, %v602_v55  ;;  %vm596_vm6 = vcmp.gt.f32.partialorder %v586_v56, 0.0  ;;  %v604_v60 = vmul.f32 0.1, %v586_v56 }
 0x149   :  { %v611_v61 = vsel %vm595_vm5, %v584_v53, %v603_v57  ;;  %vm597_vm7 = vcmp.gt.f32.partialorder %v588_v58, 0.0  ;;  %v605_v62 = vmul.f32 0.1, %v588_v58 }
 0x14a   :  { %v726_v63 = vpack.c.bf16 %v611_v61, %v610_v59  ;;  %v612_v0 = vsel %vm596_vm6, %v586_v56, %v604_v60 }
 0x14b   :  { %v613_v1 = vsel %vm597_vm7, %v588_v58, %v605_v62 }
 0x14c   :  { %640 = vst [vmem:[%s991_s3 + $0x10] sm:$0xff] %v726_v63  ;;  %v727_v2 = vpack.c.bf16 %v613_v1, %v612_v0 }
 0x14e   :  { %641 = vst [vmem:[%s991_s3 + $0x18] sm:$0xff] %v727_v2 }
 0x14f   :  { %646 = vsyncpa [#allocation3], 1 }
 0x150   :  { %647 = vsyncpa [#allocation5], 1 }

// kernel: asff_level2_forward.4
= control target key start
LH: loop header
LB: loop body
LE: loop exit
PB: predicated region body
PF: predicated region fallthrough
CT: control target
= control target key end

     0   :  { %s6159_s25 = smov 0   ;;  %s6161_s26 = smov 0   ;;  %s7845_s0 = inlined_call_operand.vmem [shape: bf16[2,4,16,256], index: 0, kind: input, shape index: {}]   ;;  %s7846_s1 = inlined_call_operand.vmem [shape: bf16[2,8,16,256], index: 1, kind: input, shape index: {}]   ;;  %s7847_s2 = inlined_call_operand.vmem [shape: bf16[2,16,16,256], index: 2, kind: input, shape index: {}]   ;;  %s7848_s3 = inlined_call_operand.vmem [shape: bf16[256,16], index: 3, kind: input, shape index: {}]   ;;  %s7849_s4 = inlined_call_operand.vmem [shape: f32[1,16], index: 4, kind: input, shape index: {}]   ;;  %s7850_s5 = inlined_call_operand.vmem [shape: bf16[256,16], index: 5, kind: input, shape index: {}]   ;;  %s7851_s6 = inlined_call_operand.vmem [shape: f32[1,16], index: 6, kind: input, shape index: {}]   ;;  %s7852_s7 = inlined_call_operand.vmem [shape: bf16[256,16], index: 7, kind: input, shape index: {}]   ;;  %s7853_s8 = inlined_call_operand.vmem [shape: f32[1,16], index: 8, kind: input, shape index: {}]   ;;  %s7854_s9 = inlined_call_operand.vmem [shape: f32[16,3], index: 9, kind: input, shape index: {}]   ;;  %s7855_s10 = inlined_call_operand.vmem [shape: f32[16,3], index: 10, kind: input, shape index: {}]   ;;  %s7856_s11 = inlined_call_operand.vmem [shape: f32[16,3], index: 11, kind: input, shape index: {}]   ;;  %s7857_s12 = inlined_call_operand.vmem [shape: f32[1,3], index: 12, kind: input, shape index: {}]   ;;  %s7858_s13 = inlined_call_operand.vmem [shape: bf16[2,16,16,256], index: 13, kind: output, shape index: {}]  }
   0x1   :  { %s6163_s27 = smov 0  }
   0x2 LB: > { %s35_s28 = sadd.s32 1, %s6080_s26  ;;  %p4684_p0 = scmp.ge.s32.totalorder %s6084_s27, 1  ;;  %s6084_s27 = sphi %s6163_s27, %s23_s27   ;;  %s6080_s26 = sphi %s6161_s26, %s7882_s26   ;;  %s6076_s25 = sphi %s6159_s25, %s7881_s25  }
   0x3   : > { %p37_p1 = scmp.ge.s32.totalorder %s35_s28, 2  ;;  %p445_p2 = scmp.lt.s32.totalorder %s6084_s27, 3 }
   0x5   : > { %s7884_s28 = smov (%p37_p1, %s35_s28), 0  ;;  %p446_p3 = pnand %p4684_p0, %p445_p2 }
   0x7   : > { %449 = sbr.rel (%p446_p3) target bundleno = 1455 (0x5af), region = 72 }
   0xe   : > { %v5774_v0 = vld [vmem:[%s7848_s3 + $0x40] sm:$0xff]   ;;  %v5776_v2 = vld [vmem:[%s7848_s3 + $0x48] sm:$0xff]   ;;  %p520_p4 = scmp.lt.s32.totalorder %s6076_s25, 1  ;;  %v5778_v4 = vld [vmem:[%s7848_s3 + $0x50] sm:$0xff]   ;;  %vm2080_vm1 = vcmask 130048  }
   0xf   : > { %v5775_v1 = vld [vmem:[%s7848_s3] sm:$0xff]   ;;  %4967 = vmatprep.subr.bf16.mxu0 %v5774_v0  ;;  %v5777_v3 = vld [vmem:[%s7848_s3 + $0x8] sm:$0xff]   ;;  %v5779_v5 = vld [vmem:[%s7848_s3 + $0x10] sm:$0xff]  }
  0x10   : > { %4968 = vmatpush3.bf16.msra.mxu0 %v5775_v1  ;;  %s7886_s25 = smov (!%p520_p4, %s6076_s25), 1  ;;  %v5780_v6 = vld [vmem:[%s7848_s3 + $0x58] sm:$0xff]   ;;  %v5782_v8 = vld [vmem:[%s7848_s3 + $0x60] sm:$0xff]   ;;  %v5784_v10 = vld [vmem:[%s7848_s3 + $0x68] sm:$0xff]  }
  0x11   : > { %4969 = vmatprep.subr.bf16.mxu0 %v5776_v2  ;;  %s4931_s30 = sshll.u32 %s7886_s25, 6  ;;  %v5781_v7 = vld [vmem:[%s7848_s3 + $0x18] sm:$0xff]   ;;  %v5783_v9 = vld [vmem:[%s7848_s3 + $0x20] sm:$0xff]   ;;  %v5785_v13 = vld [vmem:[%s7848_s3 + $0x28] sm:$0xff]   ;;  %s4932_s29 = sshll.u32 %s7886_s25, 7 }
  0x12   : > { %s6210_s20 = scalar_lea.vmem %s7845_s0, %s4931_s30  ;;  %v5792_v15 = vld [vmem:[%s7850_s5 + $0x40] sm:$0xff]   ;;  %v5794_v17 = vld [vmem:[%s7850_s5 + $0x48] sm:$0xff]   ;;  %v5786_v18 = vld [vmem:[%s7848_s3 + $0x70] sm:$0xff]   ;;  %s6269_s19 = scalar_lea.vmem %s7846_s1, %s4932_s29 }
  0x13   : > { %v564_v11 = vld [vmem:[%s6210_s20] sm:$0xff]  ;;  %v565_v12 = vld [vmem:[%s6210_s20 + $0x8] sm:$0xff]  ;;  %5573 = vmatprep.subr.bf16.mxu1 %v5792_v15  ;;  %v5798_v20 = vld [vmem:[%s7850_s5 + $0x50] sm:$0xff]   ;;  %s4933_s24 = sshll.u32 %s7886_s25, 8 }
  0x14   : > { %4970 = vmatpush3.bf16.msra.mxu0 %v5777_v3  ;;  %v6223_v14 = vcombine.high %v564_v11, %v565_v12  ;;  %v5793_v16 = vld [vmem:[%s7850_s5] sm:$0xff]   ;;  %v5795_v19 = vld [vmem:[%s7850_s5 + $0x8] sm:$0xff]   ;;  %v5787_v21 = vld [vmem:[%s7848_s3 + $0x30] sm:$0xff]   ;;  %v4694_v27 = vcombine.low %v564_v11, %v565_v12  ;;  %s6362_s18 = scalar_lea.vmem %s7847_s2, %s4933_s24  ;;  %s7395_s22 = scalar_lea.vmem %s7858_s13, %s4933_s24 }
  0x15   : > { %4971 = vmatprep.subr.bf16.mxu0 %v5778_v4  ;;  %5581 = vmatpush3.bf16.msra.mxu1 %v5793_v16  ;;  %v5788_v22 = vld [vmem:[%s7848_s3 + $0x78] sm:$0xff]   ;;  %v5799_v23 = vld [vmem:[%s7850_s5 + $0x10] sm:$0xff]   ;;  %v5804_v28 = vld [vmem:[%s7850_s5 + $0x60] sm:$0xff]  }
  0x16   : > { %827 = vmatprep.mubr.bf16.mxu0 %v6223_v14  ;;  %5574 = vmatprep.subr.bf16.mxu1 %v5794_v17  ;;  %v5800_v24 = vld [vmem:[%s7850_s5 + $0x58] sm:$0xff]   ;;  %v5805_v29 = vld [vmem:[%s7850_s5 + $0x20] sm:$0xff]   ;;  %v5806_v30 = vld [vmem:[%s7850_s5 + $0x68] sm:$0xff]  }
  0x17   : > { %v5789_v25 = vld [vmem:[%s7848_s3 + $0x38] sm:$0xff]   ;;  %v576_v31 = vld [vmem:[%s6269_s19 + $0x20] sm:$0xff]  ;;  %v577_v32 = vld [vmem:[%s6269_s19 + $0x28] sm:$0xff] }
  0x18   : > { %4972 = vmatpush3.bf16.msra.mxu0 %v5779_v5  ;;  %v5801_v26 = vld [vmem:[%s7850_s5 + $0x18] sm:$0xff]   ;;  %v5807_v33 = vld [vmem:[%s7850_s5 + $0x28] sm:$0xff]   ;;  %v5810_v34 = vld [vmem:[%s7850_s5 + $0x70] sm:$0xff]   ;;  %v4724_v35 = vcombine.high %v576_v31, %v577_v32  ;;  %v4723_v39 = vcombine.low %v576_v31, %v577_v32 }
  0x19   : > { %4973 = vmatprep.subr.bf16.mxu0 %v5780_v6  ;;  %5582 = vmatpush3.bf16.msra.mxu1 %v5795_v19  ;;  %v5811_v36 = vld [vmem:[%s7850_s5 + $0x30] sm:$0xff]   ;;  %v5812_v37 = vld [vmem:[%s7850_s5 + $0x78] sm:$0xff]   ;;  %v5828_v46 = vld [vmem:[%s7852_s7 + $0x40] sm:$0xff]  }
  0x1a   : > { %5575 = vmatprep.subr.bf16.mxu1 %v5798_v20  ;;  %1331 = vmatprep.mubr.bf16.mxu1 %v4724_v35  ;;  %v5813_v38 = vld [vmem:[%s7850_s5 + $0x38] sm:$0xff]   ;;  %v566_v40 = vld [vmem:[%s6210_s20 + $0x10] sm:$0xff]  ;;  %v580_v49 = vld [vmem:[%s6269_s19 + $0x40] sm:$0xff] }
  0x1b   : > { %v567_v41 = vld [vmem:[%s6210_s20 + $0x18] sm:$0xff]  ;;  %v578_v42 = vld [vmem:[%s6269_s19 + $0x30] sm:$0xff]  ;;  %v581_v50 = vld [vmem:[%s6269_s19 + $0x48] sm:$0xff] }
  0x1c   : > { %4974 = vmatpush3.bf16.msra.mxu0 %v5781_v7  ;;  %v579_v43 = vld [vmem:[%s6269_s19 + $0x38] sm:$0xff]  ;;  %v4697_v44 = vcombine.high %v566_v40, %v567_v41  ;;  %v4696_v47 = vcombine.low %v566_v40, %v567_v41  ;;  %v4728_v51 = vcombine.high %v580_v49, %v581_v50  ;;  %v4727_v52 = vcombine.low %v580_v49, %v581_v50  ;;  %v568_v53 = vld [vmem:[%s6210_s20 + $0x20] sm:$0xff]  ;;  %v569_v54 = vld [vmem:[%s6210_s20 + $0x28] sm:$0xff] }
  0x1d   : > { %4975 = vmatprep.subr.bf16.mxu0 %v5782_v8  ;;  %5583 = vmatpush3.bf16.msra.mxu1 %v5799_v23  ;;  %v4726_v45 = vcombine.high %v578_v42, %v579_v43  ;;  %v4725_v48 = vcombine.low %v578_v42, %v579_v43  ;;  %v582_v55 = vld [vmem:[%s6269_s19 + $0x50] sm:$0xff]  ;;  %v583_v56 = vld [vmem:[%s6269_s19 + $0x58] sm:$0xff]  ;;  %v4699_v57 = vcombine.high %v568_v53, %v569_v54  ;;  %v584_v61 = vld [vmem:[%s6269_s19 + $0x60] sm:$0xff] }
  0x1e   : > { %5576 = vmatprep.subr.bf16.mxu1 %v5800_v24  ;;  %v4730_v58 = vcombine.high %v582_v55, %v583_v56  ;;  %v4698_v59 = vcombine.low %v568_v53, %v569_v54  ;;  %v4729_v60 = vcombine.low %v582_v55, %v583_v56  ;;  %v585_v62 = vld [vmem:[%s6269_s19 + $0x68] sm:$0xff]  ;;  %v570_v1 = vld [vmem:[%s6210_s20 + $0x30] sm:$0xff]  ;;  %v571_v2 = vld [vmem:[%s6210_s20 + $0x38] sm:$0xff] }
  0x1f   : > { %v4732_v63 = vcombine.high %v584_v61, %v585_v62  ;;  %v4731_v0 = vcombine.low %v584_v61, %v585_v62  ;;  %v586_v3 = vld [vmem:[%s6269_s19 + $0x70] sm:$0xff]  ;;  %v587_v4 = vld [vmem:[%s6269_s19 + $0x78] sm:$0xff]  ;;  %v4701_v5 = vcombine.high %v570_v1, %v571_v2  ;;  %v4700_v7 = vcombine.low %v570_v1, %v571_v2  ;;  %v588_v32 = vld [vmem:[%s6362_s18] sm:$0xff] }
  0x20   : > { %4976 = vmatpush3.bf16.msra.mxu0 %v5783_v9  ;;  %v4734_v6 = vcombine.high %v586_v3, %v587_v4  ;;  %v4733_v8 = vcombine.low %v586_v3, %v587_v4  ;;  %v572_v9 = vld [vmem:[%s6269_s19] sm:$0xff]  ;;  %v5842_v31 = vld [vmem:[%s7852_s7 + $0x70] sm:$0xff]   ;;  %v593_v43 = vld [vmem:[%s6362_s18 + $0x28] sm:$0xff] }
  0x21   : > { %4977 = vmatprep.subr.bf16.mxu0 %v5784_v10  ;;  %5584 = vmatpush3.bf16.msra.mxu1 %v5801_v26  ;;  %v573_v10 = vld [vmem:[%s6269_s19 + $0x8] sm:$0xff]  ;;  %v592_v42 = vld [vmem:[%s6362_s18 + $0x20] sm:$0xff]  ;;  %v598_v54 = vld [vmem:[%s6362_s18 + $0x50] sm:$0xff] }
  0x22   : > { %5577 = vmatprep.subr.bf16.mxu1 %v5804_v28  ;;  %v4720_v11 = vcombine.high %v572_v9, %v573_v10  ;;  %v4719_v12 = vcombine.low %v572_v9, %v573_v10  ;;  %v596_v50 = vld [vmem:[%s6362_s18 + $0x40] sm:$0xff]  ;;  %v599_v55 = vld [vmem:[%s6362_s18 + $0x58] sm:$0xff]  ;;  %v602_v62 = vld [vmem:[%s6362_s18 + $0x70] sm:$0xff] }
  0x23   : > { %v604_v2 = vld [vmem:[%s6362_s18 + $0x80] sm:$0xff]  ;;  %v605_v3 = vld [vmem:[%s6362_s18 + $0x88] sm:$0xff] }
  0x24   : > { %4978 = vmatpush3.bf16.msra.mxu0 %v5785_v13  ;;  %v5829_v13 = vld [vmem:[%s7852_s7] sm:$0xff]   ;;  %v4769_v9 = vcombine.high %v604_v2, %v605_v3 }
  0x25   : > { %4979 = vmatprep.subr.bf16.mxu0 %v5786_v18  ;;  %5585 = vmatpush3.bf16.msra.mxu1 %v5805_v29  ;;  %v5832_v18 = vld [vmem:[%s7852_s7 + $0x50] sm:$0xff]  }
  0x26   : > { %5578 = vmatprep.subr.bf16.mxu1 %v5806_v30 }
  0x28   : > { %4980 = vmatpush3.bf16.msra.mxu0 %v5787_v21  ;;  %v5836_v21 = vld [vmem:[%s7852_s7 + $0x58] sm:$0xff]  }
  0x29   : > { %4981 = vmatprep.subr.bf16.mxu0 %v5788_v22  ;;  %5586 = vmatpush3.bf16.msra.mxu1 %v5807_v33  ;;  %v5837_v22 = vld [vmem:[%s7852_s7 + $0x18] sm:$0xff]  }
  0x2a   : > { %5579 = vmatprep.subr.bf16.mxu1 %v5810_v34 }
  0x2c   : > { %4982 = vmatpush3.bf16.msra.mxu0 %v5789_v25  ;;  %v2079_v25 = vld [vmem:[%s7855_s10 + $0x8] sm:$0xff] }
  0x2d   : > { %5079 = vmatprep.subr.bf16.mxu0 %v5792_v15  ;;  %5587 = vmatpush3.bf16.msra.mxu1 %v5811_v36  ;;  %v5831_v15 = vld [vmem:[%s7852_s7 + $0x8] sm:$0xff]  }
  0x2e   : > { %5580 = vmatprep.subr.bf16.mxu1 %v5812_v37 }
  0x2f   : > { %828 = vmatmul.mubr.bf16.vlgmr.msra.gmra.mrb[0].mxu0 %v4694_v27 }
  0x30   : > { %5080 = vmatpush3.bf16.msra.mxu0 %v5793_v16  ;;  %835 = vmatprep.mubr.bf16.mxu0 %v6223_v14  ;;  %v574_v16 = vld [vmem:[%s6269_s19 + $0x10] sm:$0xff] }
  0x31   : > { %5081 = vmatprep.subr.bf16.mxu0 %v5794_v17  ;;  %5588 = vmatpush3.bf16.msra.mxu1 %v5813_v38  ;;  %v575_v17 = vld [vmem:[%s6269_s19 + $0x18] sm:$0xff] }
  0x34   : > { %5082 = vmatpush3.bf16.msra.mxu0 %v5795_v19  ;;  %1332 = vmatmul.mubr.bf16.vlgmr.msra.gmra.mrb[0].mxu1 %v4723_v39  ;;  %v4722_v19 = vcombine.high %v574_v16, %v575_v17 }
  0x35   : > { %5083 = vmatprep.subr.bf16.mxu0 %v5798_v20  ;;  %1339 = vmatprep.mubr.bf16.mxu1 %v4724_v35  ;;  %v5833_v20 = vld [vmem:[%s7852_s7 + $0x10] sm:$0xff]  }
  0x37   : > { %836 = vmatmul.mubr.bf16.gmra.mrb[4].mxu0 %v4694_v27 }
  0x38   : > { %843 = vmatprep.mubr.bf16.mxu0 %v6223_v14  ;;  %5084 = vmatpush3.bf16.msra.mxu0 %v5799_v23  ;;  %v5838_v23 = vld [vmem:[%s7852_s7 + $0x60] sm:$0xff]  }
  0x39   : > { %5085 = vmatprep.subr.bf16.mxu0 %v5800_v24  ;;  %v2078_v24 = vld [vmem:[%s7855_s10] sm:$0xff] }
  0x3c   : > { %5086 = vmatpush3.bf16.msra.mxu0 %v5801_v26  ;;  %1340 = vmatmul.mubr.bf16.gmra.mrb[4].mxu1 %v4723_v39  ;;  %v4721_v26 = vcombine.low %v574_v16, %v575_v17  ;;  %v591_v39 = vld [vmem:[%s6362_s18 + $0x18] sm:$0xff]  ;;  %v4768_v16 = vcombine.low %v604_v2, %v605_v3 }
  0x3d   : > { %5087 = vmatprep.subr.bf16.mxu0 %v5804_v28  ;;  %1347 = vmatprep.mubr.bf16.mxu1 %v4726_v45  ;;  %v5839_v28 = vld [vmem:[%s7852_s7 + $0x20] sm:$0xff]  }
  0x3f   : > { %844 = vmatmul.mubr.bf16.gmra.mrb[8].mxu0 %v4694_v27 }
  0x40   : > { %851 = vmatprep.mubr.bf16.mxu0 %v6223_v14  ;;  %5088 = vmatpush3.bf16.msra.mxu0 %v5805_v29  ;;  %v5830_v14 = vld [vmem:[%s7852_s7 + $0x48] sm:$0xff]  }
  0x41   : > { %5089 = vmatprep.subr.bf16.mxu0 %v5806_v30  ;;  %v5840_v29 = vld [vmem:[%s7852_s7 + $0x68] sm:$0xff]  }
  0x42   : > { %v5841_v30 = vld [vmem:[%s7852_s7 + $0x28] sm:$0xff]  }
  0x44   : > { %5090 = vmatpush3.bf16.msra.mxu0 %v5807_v33  ;;  %1348 = vmatmul.mubr.bf16.gmra.mrb[8].mxu1 %v4725_v48  ;;  %v589_v33 = vld [vmem:[%s6362_s18 + $0x8] sm:$0xff] }
  0x45   : > { %5091 = vmatprep.subr.bf16.mxu0 %v5810_v34  ;;  %1355 = vmatprep.mubr.bf16.mxu1 %v4726_v45  ;;  %v5843_v34 = vld [vmem:[%s7852_s7 + $0x30] sm:$0xff]   ;;  %v4753_v35 = vcombine.high %v588_v32, %v589_v33  ;;  %v4752_v40 = vcombine.low %v588_v32, %v589_v33  ;;  %v4757_v45 = vcombine.high %v592_v42, %v593_v43 }
  0x47   : > { %852 = vmatmul.mubr.bf16.gmra.mrb[12].mxu0 %v4694_v27  ;;  %v5561_v27 = vpack.c.bf16 %v2079_v25, %v2078_v24 }
  0x48   : > { %859 = vmatprep.mubr.bf16.mxu0 %v4697_v44  ;;  %5092 = vmatpush3.bf16.msra.mxu0 %v5811_v36  ;;  %v5844_v36 = vld [vmem:[%s7852_s7 + $0x78] sm:$0xff]  }
  0x49   : > { %5093 = vmatprep.subr.bf16.mxu0 %v5812_v37  ;;  %5562 = vmatprep.subr.bf16.mxu1 %v5561_v27  ;;  %v5845_v37 = vld [vmem:[%s7852_s7 + $0x38] sm:$0xff]  }
  0x4a   : > { %5564 = vmatpush3.bf16.msra.mxu1 %v5561_v27 }
  0x4c   : > { %5094 = vmatpush3.bf16.msra.mxu0 %v5813_v38  ;;  %1356 = vmatmul.mubr.bf16.gmra.mrb[12].mxu1 %v4725_v48  ;;  %v590_v38 = vld [vmem:[%s6362_s18 + $0x10] sm:$0xff]  ;;  %v4756_v48 = vcombine.low %v592_v42, %v593_v43 }
  0x4d   : > { %5191 = vmatprep.subr.bf16.mxu0 %v5828_v46  ;;  %1363 = vmatprep.mubr.bf16.mxu1 %v4728_v51  ;;  %v4755_v41 = vcombine.high %v590_v38, %v591_v39  ;;  %v594_v46 = vld [vmem:[%s6362_s18 + $0x30] sm:$0xff] }
  0x4f   : > { %860 = vmatmul.mubr.bf16.gmra.mrb[16].mxu0 %v4696_v47 }
  0x50   : > { %867 = vmatprep.mubr.bf16.mxu0 %v4697_v44 }
  0x54   : > { %1364 = vmatmul.mubr.bf16.gmra.mrb[16].mxu1 %v4727_v52 }
  0x55   : > { %1371 = vmatprep.mubr.bf16.mxu1 %v4728_v51  ;;  %v597_v51 = vld [vmem:[%s6362_s18 + $0x48] sm:$0xff] }
  0x56   : > { %v4761_v53 = vcombine.high %v596_v50, %v597_v51  ;;  %v4760_v56 = vcombine.low %v596_v50, %v597_v51 }
  0x57   : > { %868 = vmatmul.mubr.bf16.gmra.mrb[20].mxu0 %v4696_v47 }
  0x58   : > { %875 = vmatprep.mubr.bf16.mxu0 %v4697_v44 }
  0x5c   : > { %1372 = vmatmul.mubr.bf16.gmra.mrb[20].mxu1 %v4727_v52 }
  0x5d   : > { %1379 = vmatprep.mubr.bf16.mxu1 %v4730_v58 }
  0x5f   : > { %876 = vmatmul.mubr.bf16.gmra.mrb[24].mxu0 %v4696_v47 }
  0x60   : > { %883 = vmatprep.mubr.bf16.mxu0 %v4697_v44  ;;  %v4754_v44 = vcombine.low %v590_v38, %v591_v39  ;;  %v610_v38 = vld [vmem:[%s6362_s18 + $0xb0] sm:$0xff]  ;;  %v611_v39 = vld [vmem:[%s6362_s18 + $0xb8] sm:$0xff] }
  0x64   : > { %1380 = vmatmul.mubr.bf16.gmra.mrb[24].mxu1 %v4729_v60 }
  0x65   : > { %1387 = vmatprep.mubr.bf16.mxu1 %v4730_v58  ;;  %v600_v58 = vld [vmem:[%s6362_s18 + $0x60] sm:$0xff] }
  0x67   : > { %884 = vmatmul.mubr.bf16.gmra.mrb[28].mxu0 %v4696_v47  ;;  %v595_v47 = vld [vmem:[%s6362_s18 + $0x38] sm:$0xff] }
  0x68   : > { %891 = vmatprep.mubr.bf16.mxu0 %v4699_v57  ;;  %v4759_v49 = vcombine.high %v594_v46, %v595_v47  ;;  %v4758_v52 = vcombine.low %v594_v46, %v595_v47  ;;  %v4775_v47 = vcombine.high %v610_v38, %v611_v39 }
  0x6c   : > { %1388 = vmatmul.mubr.bf16.gmra.mrb[28].mxu1 %v4729_v60  ;;  %v4762_v60 = vcombine.low %v598_v54, %v599_v55 }
  0x6d   : > { %1395 = vmatprep.mubr.bf16.mxu1 %v4732_v63 }
  0x6f   : > { %892 = vmatmul.mubr.bf16.gmra.mrb[32].mxu0 %v4698_v59 }
  0x70   : > { %899 = vmatprep.mubr.bf16.mxu0 %v4699_v57 }
  0x74   : > { %1396 = vmatmul.mubr.bf16.gmra.mrb[32].mxu1 %v4731_v0 }
  0x75   : > { %1403 = vmatprep.mubr.bf16.mxu1 %v4732_v63  ;;  %v603_v63 = vld [vmem:[%s6362_s18 + $0x78] sm:$0xff] }
  0x76   : > { %v4767_v1 = vcombine.high %v602_v62, %v603_v63 }
  0x77   : > { %900 = vmatmul.mubr.bf16.gmra.mrb[36].mxu0 %v4698_v59 }
  0x78   : > { %907 = vmatprep.mubr.bf16.mxu0 %v4699_v57 }
  0x7c   : > { %1404 = vmatmul.mubr.bf16.gmra.mrb[36].mxu1 %v4731_v0 }
  0x7d   : > { %1411 = vmatprep.mubr.bf16.mxu1 %v4734_v6 }
  0x7f   : > { %908 = vmatmul.mubr.bf16.gmra.mrb[40].mxu0 %v4698_v59 }
  0x80   : > { %915 = vmatprep.mubr.bf16.mxu0 %v4699_v57  ;;  %v4763_v57 = vcombine.high %v598_v54, %v599_v55 }
  0x84   : > { %1412 = vmatmul.mubr.bf16.gmra.mrb[40].mxu1 %v4733_v8 }
  0x85   : > { %1419 = vmatprep.mubr.bf16.mxu1 %v4734_v6  ;;  %v4766_v6 = vcombine.low %v602_v62, %v603_v63 }
  0x87   : > { %916 = vmatmul.mubr.bf16.gmra.mrb[44].mxu0 %v4698_v59  ;;  %v601_v59 = vld [vmem:[%s6362_s18 + $0x68] sm:$0xff] }
  0x88   : > { %923 = vmatprep.mubr.bf16.mxu0 %v4701_v5  ;;  %v4765_v61 = vcombine.high %v600_v58, %v601_v59  ;;  %v4764_v0 = vcombine.low %v600_v58, %v601_v59  ;;  %v613_v58 = vld [vmem:[%s6362_s18 + $0xc8] sm:$0xff] }
  0x8c   : > { %1420 = vmatmul.mubr.bf16.gmra.mrb[44].mxu1 %v4733_v8 }
  0x8f   : > { %924 = vmatmul.mubr.bf16.gmra.mrb[48].mxu0 %v4700_v7 }
  0x90   : > { %931 = vmatprep.mubr.bf16.mxu0 %v4701_v5 }
  0x97   : > { %932 = vmatmul.mubr.bf16.gmra.mrb[52].mxu0 %v4700_v7 }
  0x98   : > { %939 = vmatprep.mubr.bf16.mxu0 %v4701_v5 }
  0x9f   : > { %940 = vmatmul.mubr.bf16.gmra.mrb[56].mxu0 %v4700_v7 }
  0xa0   : > { %947 = vmatprep.mubr.bf16.mxu0 %v4701_v5 }
  0xa7   : > { %948 = vmatmul.mubr.bf16.gmra.mrb[60].mxu0 %v4700_v7 }
  0xa8   : > { %1299 = vmatprep.mubr.bf16.mxu0 %v4720_v11 }
  0xaf   : > { %1300 = vmatmul.mubr.bf16.vlgmr.msra.gmra.mrb[64].mxu0 %v4719_v12 }
  0xb0   : > { %1307 = vmatprep.mubr.bf16.mxu0 %v4720_v11  ;;  %5192 = vmatpush3.bf16.msra.mxu0 %v5829_v13  ;;  %v607_v13 = vld [vmem:[%s6362_s18 + $0x98] sm:$0xff] }
  0xb1   : > { %5193 = vmatprep.subr.bf16.mxu0 %v5830_v14 }
  0xb4   : > { %5194 = vmatpush3.bf16.msra.mxu0 %v5831_v15 }
  0xb5   : > { %5195 = vmatprep.subr.bf16.mxu0 %v5832_v18 }
  0xb7   : > { %1308 = vmatmul.mubr.bf16.gmra.mrb[68].mxu0 %v4719_v12  ;;  %v606_v12 = vld [vmem:[%s6362_s18 + $0x90] sm:$0xff] }
  0xb8   : > { %1315 = vmatprep.mubr.bf16.mxu0 %v4722_v19  ;;  %5196 = vmatpush3.bf16.msra.mxu0 %v5833_v20 }
  0xb9   : > { %5197 = vmatprep.subr.bf16.mxu0 %v5836_v21 }
  0xbc   : > { %5198 = vmatpush3.bf16.msra.mxu0 %v5837_v22  ;;  %v608_v22 = vld [vmem:[%s6362_s18 + $0xa0] sm:$0xff] }
  0xbd   : > { %5199 = vmatprep.subr.bf16.mxu0 %v5838_v23  ;;  %v609_v23 = vld [vmem:[%s6362_s18 + $0xa8] sm:$0xff] }
  0xbe   : > { %v4772_v43 = vcombine.low %v608_v22, %v609_v23 }
  0xbf   : > { %1316 = vmatmul.mubr.bf16.gmra.mrb[72].mxu0 %v4721_v26 }
  0xc0   : > { %1323 = vmatprep.mubr.bf16.mxu0 %v4722_v19  ;;  %5200 = vmatpush3.bf16.msra.mxu0 %v5839_v28  ;;  %v4771_v19 = vcombine.high %v606_v12, %v607_v13 }
  0xc1   : > { %5201 = vmatprep.subr.bf16.mxu0 %v5840_v29  ;;  %v4773_v29 = vcombine.high %v608_v22, %v609_v23 }
  0xc4   : > { %5202 = vmatpush3.bf16.msra.mxu0 %v5841_v30 }
  0xc5   : > { %5203 = vmatprep.subr.bf16.mxu0 %v5842_v31 }
  0xc7   : > { %1324 = vmatmul.mubr.bf16.gmra.mrb[76].mxu0 %v4721_v26  ;;  %v4770_v26 = vcombine.low %v606_v12, %v607_v13  ;;  %v615_v12 = vld [vmem:[%s6362_s18 + $0xd8] sm:$0xff] }
  0xc8   : > { %5204 = vmatpush3.bf16.msra.mxu0 %v5843_v34  ;;  %1851 = vmatprep.mubr.bf16.mxu0 %v4753_v35 }
  0xc9   : > { %5205 = vmatprep.subr.bf16.mxu0 %v5844_v36 }
  0xcc   : > { %5206 = vmatpush3.bf16.msra.mxu0 %v5845_v37 }
  0xcf   : > { %1852 = vmatmul.mubr.bf16.vlgmr.msra.gmra.mrb[80].mxu0 %v4752_v40 }
  0xd0   : > { %1859 = vmatprep.mubr.bf16.mxu0 %v4755_v41  ;;  %v2076_v41 = vld [vmem:[%s7854_s9] sm:$0xff] }
  0xd7   : > { %1860 = vmatmul.mubr.bf16.gmra.mrb[84].mxu0 %v4754_v44  ;;  %v2077_v44 = vld [vmem:[%s7854_s9 + $0x8] sm:$0xff] }
  0xd8   : > { %1867 = vmatprep.mubr.bf16.mxu0 %v4757_v45 }
  0xdf   : > { %1868 = vmatmul.mubr.bf16.gmra.mrb[88].mxu0 %v4756_v48 }
  0xe0   : > { %1875 = vmatprep.mubr.bf16.mxu0 %v4759_v49  ;;  %v6427_v49 = vpack.c.bf16 %v2077_v44, %v2076_v41 }
  0xe2   : > { %5566 = vmatprep.subr.bf16.mxu1 %v6427_v49 }
  0xe7   : > { %1876 = vmatmul.mubr.bf16.gmra.mrb[92].mxu0 %v4758_v52 }
  0xe8   : > { %1883 = vmatprep.mubr.bf16.mxu0 %v4761_v53 }
  0xef   : > { %1884 = vmatmul.mubr.bf16.gmra.mrb[96].mxu0 %v4760_v56 }
  0xf0   : > { %1891 = vmatprep.mubr.bf16.mxu0 %v4763_v57  ;;  %v612_v57 = vld [vmem:[%s6362_s18 + $0xc0] sm:$0xff] }
  0xf7   : > { %1892 = vmatmul.mubr.bf16.gmra.mrb[100].mxu0 %v4762_v60 }
  0xf8   : > { %1899 = vmatprep.mubr.bf16.mxu0 %v4765_v61  ;;  %v4774_v61 = vcombine.low %v610_v38, %v611_v39 }
  0xff   : > { %1900 = vmatmul.mubr.bf16.gmra.mrb[104].mxu0 %v4764_v0  ;;  %v4777_v0 = vcombine.high %v612_v57, %v613_v58 }
 0x100   : > { %1907 = vmatprep.mubr.bf16.mxu0 %v4767_v1 }
 0x102   : > { %v4983_v4 = vpop.f32.mrb[0].mxu0 }
 0x103   : > { %v4984_v5 = vpop.f32.mrb[1].mxu0 }
 0x104   : > { %v6397_v7 = vadd.f32 %v4984_v5, %v4983_v4  ;;  %v4986_v8 = vpop.f32.mrb[2].mxu0 }
 0x105   : > { %v4987_v10 = vpop.f32.mrb[3].mxu0 }
 0x106   : > { %v6399_v11 = vadd.f32 %v4987_v10, %v4986_v8  ;;  %v614_v10 = vld [vmem:[%s6362_s18 + $0xd0] sm:$0xff] }
 0x107   : > { %1908 = vmatmul.mubr.bf16.gmra.mrb[108].mxu0 %v4766_v6  ;;  %v5119_v30 = vpop.f32.mrb[0].mxu1 }
 0x108   : > { %1915 = vmatprep.mubr.bf16.mxu0 %v4769_v9  ;;  %v5120_v32 = vpop.f32.mrb[1].mxu1 }
 0x109   : > { %v6413_v34 = vadd.f32 %v5120_v32, %v5119_v30  ;;  %v5122_v35 = vpop.f32.mrb[2].mxu1  ;;  %v616_v30 = vld [vmem:[%s6362_s18 + $0xe0] sm:$0xff] }
 0x10a   : > { %v4989_v14 = vpop.f32.mrb[4].mxu0  ;;  %v5123_v36 = vpop.f32.mrb[3].mxu1 }
 0x10b   : > { %v4990_v15 = vpop.f32.mrb[5].mxu0  ;;  %v6415_v37 = vadd.f32 %v5123_v36, %v5122_v35  ;;  %v4778_v36 = vcombine.low %v614_v10, %v615_v12 }
 0x10c   : > { %v6403_v17 = vadd.f32 %v4990_v15, %v4989_v14  ;;  %v4992_v18 = vpop.f32.mrb[6].mxu0  ;;  %v4776_v15 = vcombine.low %v612_v57, %v613_v58 }
 0x10d   : > { %v4993_v20 = vpop.f32.mrb[7].mxu0 }
 0x10e   : > { %v6405_v21 = vadd.f32 %v4993_v20, %v4992_v18 }
 0x10f   : > { %1916 = vmatmul.mubr.bf16.gmra.mrb[112].mxu0 %v4768_v16  ;;  %v5125_v48 = vpop.f32.mrb[4].mxu1 }
 0x110   : > { %1923 = vmatprep.mubr.bf16.mxu0 %v4771_v19  ;;  %v5126_v51 = vpop.f32.mrb[5].mxu1  ;;  %v4779_v19 = vcombine.high %v614_v10, %v615_v12 }
 0x111   : > { %v6431_v53 = vadd.f32 %v5126_v51, %v5125_v48  ;;  %v5128_v54 = vpop.f32.mrb[6].mxu1  ;;  %v618_v51 = vld [vmem:[%s6362_s18 + $0xf0] sm:$0xff] }
 0x112   : > { %v4995_v24 = vpop.f32.mrb[8].mxu0  ;;  %v5129_v55 = vpop.f32.mrb[7].mxu1 }
 0x113   : > { %v4996_v25 = vpop.f32.mrb[9].mxu0  ;;  %v6434_v56 = vadd.f32 %v5129_v55, %v5128_v54  ;;  %v619_v54 = vld [vmem:[%s6362_s18 + $0xf8] sm:$0xff] }
 0x114   : > { %v6409_v27 = vadd.f32 %v4996_v25, %v4995_v24  ;;  %v4998_v28 = vpop.f32.mrb[10].mxu0 }
 0x115   : > { %v4999_v31 = vpop.f32.mrb[11].mxu0 }
 0x116   : > { %v6411_v33 = vadd.f32 %v4999_v31, %v4998_v28  ;;  %v617_v31 = vld [vmem:[%s6362_s18 + $0xe8] sm:$0xff] }
 0x117   : > { %1924 = vmatmul.mubr.bf16.gmra.mrb[116].mxu0 %v4770_v26  ;;  %v5131_v1 = vpop.f32.mrb[8].mxu1  ;;  %v4780_v58 = vcombine.low %v616_v30, %v617_v31 }
 0x118   : > { %1931 = vmatprep.mubr.bf16.mxu0 %v4773_v29  ;;  %v5132_v3 = vpop.f32.mrb[9].mxu1 }
 0x119   : > { %v6442_v5 = vadd.f32 %v5132_v3, %v5131_v1  ;;  %v5134_v6 = vpop.f32.mrb[10].mxu1 }
 0x11a   : > { %v5001_v40 = vpop.f32.mrb[12].mxu0  ;;  %v5135_v8 = vpop.f32.mrb[11].mxu1 }
 0x11b   : > { %v5002_v42 = vpop.f32.mrb[13].mxu0  ;;  %v6444_v9 = vadd.f32 %v5135_v8, %v5134_v6 }
 0x11c   : > { %v6425_v45 = vadd.f32 %v5002_v42, %v5001_v40  ;;  %v5004_v46 = vpop.f32.mrb[14].mxu0  ;;  %v4781_v40 = vcombine.high %v616_v30, %v617_v31 }
 0x11d   : > { %v5005_v50 = vpop.f32.mrb[15].mxu0 }
 0x11e   : > { %v6429_v52 = vadd.f32 %v5005_v50, %v5004_v46 }
 0x11f   : > { %1932 = vmatmul.mubr.bf16.gmra.mrb[120].mxu0 %v4772_v43  ;;  %v5137_v20 = vpop.f32.mrb[12].mxu1 }
 0x120   : > { %1939 = vmatprep.mubr.bf16.mxu0 %v4775_v47  ;;  %v5138_v23 = vpop.f32.mrb[13].mxu1 }
 0x121   : > { %v6452_v25 = vadd.f32 %v5138_v23, %v5137_v20  ;;  %v5140_v26 = vpop.f32.mrb[14].mxu1 }
 0x122   : > { %v5007_v59 = vpop.f32.mrb[16].mxu0  ;;  %v5141_v28 = vpop.f32.mrb[15].mxu1 }
 0x123   : > { %v5008_v60 = vpop.f32.mrb[17].mxu0  ;;  %v6454_v29 = vadd.f32 %v5141_v28, %v5140_v26 }
 0x124   : > { %v6438_v62 = vadd.f32 %v5008_v60, %v5007_v59  ;;  %v5010_v63 = vpop.f32.mrb[18].mxu0 }
 0x125   : > { %v5011_v2 = vpop.f32.mrb[19].mxu0 }
 0x126   : > { %v6440_v4 = vadd.f32 %v5011_v2, %v5010_v63 }
 0x127   : > { %1940 = vmatmul.mubr.bf16.gmra.mrb[124].mxu0 %v4774_v61  ;;  %v5143_v41 = vpop.f32.mrb[16].mxu1  ;;  %v4783_v61 = vcombine.high %v618_v51, %v619_v54 }
 0x128   : > { %1947 = vmatprep.mubr.bf16.mxu0 %v4777_v0  ;;  %v5144_v43 = vpop.f32.mrb[17].mxu1 }
 0x129   : > { %v6462_v46 = vadd.f32 %v5144_v43, %v5143_v41  ;;  %v5146_v47 = vpop.f32.mrb[18].mxu1 }
 0x12a   : > { %v5013_v13 = vpop.f32.mrb[20].mxu0  ;;  %v5147_v48 = vpop.f32.mrb[19].mxu1 }
 0x12b   : > { %v5014_v14 = vpop.f32.mrb[21].mxu0  ;;  %v6464_v50 = vadd.f32 %v5147_v48, %v5146_v47 }
 0x12c   : > { %v6448_v16 = vadd.f32 %v5014_v14, %v5013_v13  ;;  %v5016_v18 = vpop.f32.mrb[22].mxu0  ;;  %v4782_v14 = vcombine.low %v618_v51, %v619_v54 }
 0x12d   : > { %v5017_v22 = vpop.f32.mrb[23].mxu0 }
 0x12e   : > { %v6450_v24 = vadd.f32 %v5017_v22, %v5016_v18 }
 0x12f   : > { %1948 = vmatmul.mubr.bf16.gmra.mrb[128].mxu0 %v4776_v15  ;;  %v5149_v63 = vpop.f32.mrb[20].mxu1 }
 0x130   : > { %1955 = vmatprep.mubr.bf16.mxu0 %v4779_v19  ;;  %v5150_v1 = vpop.f32.mrb[21].mxu1 }
 0x131   : > { %v6472_v3 = vadd.f32 %v5150_v1, %v5149_v63  ;;  %v5152_v6 = vpop.f32.mrb[22].mxu1 }
 0x132   : > { %v5019_v32 = vpop.f32.mrb[24].mxu0  ;;  %v5153_v8 = vpop.f32.mrb[23].mxu1 }
 0x133   : > { %v5020_v35 = vpop.f32.mrb[25].mxu0  ;;  %v6474_v10 = vadd.f32 %v5153_v8, %v5152_v6 }
 0x134   : > { %v6458_v38 = vadd.f32 %v5020_v35, %v5019_v32  ;;  %v5022_v39 = vpop.f32.mrb[26].mxu0 }
 0x135   : > { %v5023_v42 = vpop.f32.mrb[27].mxu0 }
 0x136   : > { %v6460_v44 = vadd.f32 %v5023_v42, %v5022_v39 }
 0x137   : > { %1956 = vmatmul.mubr.bf16.gmra.mrb[132].mxu0 %v4778_v36  ;;  %v5155_v19 = vpop.f32.mrb[24].mxu1 }
 0x138   : > { %1963 = vmatprep.mubr.bf16.mxu0 %v4781_v40  ;;  %v5156_v22 = vpop.f32.mrb[25].mxu1 }
 0x139   : > { %v6480_v26 = vadd.f32 %v5156_v22, %v5155_v19  ;;  %v5158_v28 = vpop.f32.mrb[26].mxu1 }
 0x13a   : > { %v5025_v55 = vpop.f32.mrb[28].mxu0  ;;  %v5159_v30 = vpop.f32.mrb[27].mxu1 }
 0x13b   : > { %v5026_v57 = vpop.f32.mrb[29].mxu0  ;;  %v6482_v31 = vadd.f32 %v5159_v30, %v5158_v28 }
 0x13c   : > { %v6468_v59 = vadd.f32 %v5026_v57, %v5025_v55  ;;  %v5028_v60 = vpop.f32.mrb[30].mxu0 }
 0x13d   : > { %v5029_v0 = vpop.f32.mrb[31].mxu0 }
 0x13e   : > { %v6470_v2 = vadd.f32 %v5029_v0, %v5028_v60 }
 0x13f   : > { %1964 = vmatmul.mubr.bf16.gmra.mrb[136].mxu0 %v4780_v58  ;;  %v5161_v40 = vpop.f32.mrb[28].mxu1 }
 0x140   : > { %1971 = vmatprep.mubr.bf16.mxu0 %v4783_v61  ;;  %v5162_v42 = vpop.f32.mrb[29].mxu1 }
 0x141   : > { %v6488_v47 = vadd.f32 %v5162_v42, %v5161_v40  ;;  %v5164_v48 = vpop.f32.mrb[30].mxu1 }
 0x142   : > { %v5031_v12 = vpop.f32.mrb[32].mxu0  ;;  %v5165_v51 = vpop.f32.mrb[31].mxu1 }
 0x143   : > { %v5032_v13 = vpop.f32.mrb[33].mxu0  ;;  %v6490_v54 = vadd.f32 %v5165_v51, %v5164_v48 }
 0x144   : > { %v6476_v15 = vadd.f32 %v5032_v13, %v5031_v12  ;;  %v5034_v18 = vpop.f32.mrb[34].mxu0 }
 0x145   : > { %v5035_v20 = vpop.f32.mrb[35].mxu0 }
 0x146   : > { %v6478_v23 = vadd.f32 %v5035_v20, %v5034_v18 }
 0x147   : > { %1972 = vmatmul.mubr.bf16.gmra.mrb[140].mxu0 %v4782_v14  ;;  %v5167_v61 = vpop.f32.mrb[32].mxu1 }
 0x148   : > { %v5168_v0 = vpop.f32.mrb[33].mxu1 }
 0x149   : > { %v6496_v6 = vadd.f32 %v5168_v0, %v5167_v61  ;;  %v5170_v8 = vpop.f32.mrb[34].mxu1 }
 0x14a   : > { %v5037_v32 = vpop.f32.mrb[36].mxu0  ;;  %v5171_v12 = vpop.f32.mrb[35].mxu1 }
 0x14b   : > { %v5038_v35 = vpop.f32.mrb[37].mxu0  ;;  %v6498_v13 = vadd.f32 %v5171_v12, %v5170_v8 }
 0x14c   : > { %v6484_v36 = vadd.f32 %v5038_v35, %v5037_v32  ;;  %v5040_v39 = vpop.f32.mrb[38].mxu0 }
 0x14d   : > { %v5041_v41 = vpop.f32.mrb[39].mxu0 }
 0x14e   : > { %v6486_v43 = vadd.f32 %v5041_v41, %v5040_v39 }
 0x14f   : > { %v5173_v22 = vpop.f32.mrb[36].mxu1 }
 0x150   : > { %v5174_v30 = vpop.f32.mrb[37].mxu1 }
 0x151   : > { %v6504_v35 = vadd.f32 %v5174_v30, %v5173_v22  ;;  %v5176_v39 = vpop.f32.mrb[38].mxu1 }
 0x152   : > { %v5043_v55 = vpop.f32.mrb[40].mxu0  ;;  %v5177_v40 = vpop.f32.mrb[39].mxu1 }
 0x153   : > { %v5044_v57 = vpop.f32.mrb[41].mxu0  ;;  %v6506_v41 = vadd.f32 %v5177_v40, %v5176_v39 }
 0x154   : > { %v6492_v58 = vadd.f32 %v5044_v57, %v5043_v55  ;;  %v5046_v60 = vpop.f32.mrb[42].mxu0 }
 0x155   : > { %v5047_v63 = vpop.f32.mrb[43].mxu0 }
 0x156   : > { %v6494_v1 = vadd.f32 %v5047_v63, %v5046_v60 }
 0x157   : > { %v5179_v57 = vpop.f32.mrb[40].mxu1 }
 0x158   : > { %7859 = vst [vmem:[#allocation2_spill] sm:$0xff] %v6494_v1  ;;  %v5180_v61 = vpop.f32.mrb[41].mxu1 }
 0x159   : > { %v6512_v0 = vadd.f32 %v5180_v61, %v5179_v57  ;;  %v5182_v8 = vpop.f32.mrb[42].mxu1 }
 0x15a   : > { %v5049_v14 = vpop.f32.mrb[44].mxu0  ;;  %v5183_v12 = vpop.f32.mrb[43].mxu1 }
 0x15b   : > { %v5050_v18 = vpop.f32.mrb[45].mxu0 }
 0x15c   : > { %v6500_v19 = vadd.f32 %v5050_v18, %v5049_v14  ;;  %v5052_v20 = vpop.f32.mrb[46].mxu0  ;;  %v6514_v14 = vadd.f32 %v5183_v12, %v5182_v8 }
 0x15d   : > { %v5053_v28 = vpop.f32.mrb[47].mxu0 }
 0x15e   : > { %7860 = vst [vmem:[#allocation3_spill] sm:$0xff] %v6500_v19  ;;  %v6502_v32 = vadd.f32 %v5053_v28, %v5052_v20 }
 0x15f   : > { %v5185_v30 = vpop.f32.mrb[44].mxu1 }
 0x160   : > { %7861 = vst [vmem:[#allocation4_spill] sm:$0xff] %v6502_v32  ;;  %v5186_v40 = vpop.f32.mrb[45].mxu1 }
 0x162   : > { %v5055_v42 = vpop.f32.mrb[48].mxu0 }
 0x163   : > { %v5056_v48 = vpop.f32.mrb[49].mxu0 }
 0x164   : > { %v6508_v51 = vadd.f32 %v5056_v48, %v5055_v42  ;;  %v5058_v55 = vpop.f32.mrb[50].mxu0  ;;  %v6520_v48 = vadd.f32 %v5186_v40, %v5185_v30 }
 0x165   : > { %v5059_v60 = vpop.f32.mrb[51].mxu0 }
 0x166   : > { %7862 = vst [vmem:[#allocation5_spill] sm:$0xff] %v6508_v51  ;;  %v6510_v63 = vadd.f32 %v5059_v60, %v5058_v55  ;;  %v5188_v55 = vpop.f32.mrb[46].mxu1 }
 0x167   : > { %v5189_v60 = vpop.f32.mrb[47].mxu1 }
 0x168   : > { %7863 = vst [vmem:[#allocation6_spill] sm:$0xff] %v6510_v63  ;;  %v6522_v57 = vadd.f32 %v5189_v60, %v5188_v55 }
 0x16a   : > { %v5061_v18 = vpop.f32.mrb[52].mxu0 }
 0x16b   : > { %v5062_v20 = vpop.f32.mrb[53].mxu0 }
 0x16c   : > { %v6516_v22 = vadd.f32 %v5062_v20, %v5061_v18  ;;  %v5064_v28 = vpop.f32.mrb[54].mxu0 }
 0x16d   : > { %v5065_v39 = vpop.f32.mrb[55].mxu0 }
 0x16e   : > { %7864 = vst [vmem:[#allocation7_spill] sm:$0xff] %v6516_v22  ;;  %v6518_v42 = vadd.f32 %v5065_v39, %v5064_v28 }
 0x170   : > { %7865 = vst [vmem:[#allocation8_spill] sm:$0xff] %v6518_v42 }
 0x172   : > { %v5067_v61 = vpop.f32.mrb[56].mxu0 }
 0x173   : > { %v5068_v63 = vpop.f32.mrb[57].mxu0 }
 0x174   : > { %v6524_v8 = vadd.f32 %v5068_v63, %v5067_v61  ;;  %v5070_v12 = vpop.f32.mrb[58].mxu0  ;;  %v6535_v63 = vld [vmem:[%s7851_s6] ss:$0 sm:$0xff] }
 0x175   : > { %v5071_v51 = vpop.f32.mrb[59].mxu0 }
 0x176   : > { %7866 = vst [vmem:[#allocation9_spill] sm:$0xff] %v6524_v8  ;;  %v6526_v18 = vadd.f32 %v5071_v51, %v5070_v12 }
 0x178   : > { %7867 = vst [vmem:[#allocation10_spill] sm:$0xff] %v6526_v18 }
 0x17a   : > { %v5073_v20 = vpop.f32.mrb[60].mxu0 }
 0x17b   : > { %v5074_v22 = vpop.f32.mrb[61].mxu0 }
 0x17c   : > { %v6528_v32 = vadd.f32 %v5074_v22, %v5073_v20  ;;  %v5076_v28 = vpop.f32.mrb[62].mxu0  ;;  %v2723_v20 = vld [vmem:[%s7856_s11] sm:$0xff] }
 0x17d   : > { %v5077_v39 = vpop.f32.mrb[63].mxu0 }
 0x17e   : > { %7868 = vst [vmem:[#allocation11_spill] sm:$0xff] %v6528_v32  ;;  %v6530_v30 = vadd.f32 %v5077_v39, %v5076_v28 }
 0x180   : > { %7869 = vst [vmem:[#allocation12_spill] sm:$0xff] %v6530_v30 }
 0x182   : > { %v5095_v40 = vpop.f32.mrb[64].mxu0 }
 0x183   : > { %v5096_v42 = vpop.f32.mrb[65].mxu0 }
 0x184   : > { %v5097_v55 = vadd.f32 %v5096_v42, %v5095_v40  ;;  %v5098_v60 = vpop.f32.mrb[66].mxu0  ;;  %v2724_v42 = vld [vmem:[%s7856_s11 + $0x8] sm:$0xff] }
 0x185   : > { %v5099_v61 = vpop.f32.mrb[67].mxu0 }
 0x186   : > { %v1302_v51 = vadd.f32 %v5097_v55, %v6535_v63  ;;  %v5100_v12 = vadd.f32 %v5099_v61, %v5098_v60  ;;  %v6546_v55 = vpack.c.bf16 %v2724_v42, %v2723_v20 }
 0x188   : > { %v1460_v18 = vmul.f32 0.1, %v1302_v51  ;;  %v1305_v22 = vadd.f32 %v5100_v12, %v6535_v63  ;;  %vm1428_vm0 = vcmp.gt.f32.partialorder %v1302_v51, 0.0 }
 0x18a   : > { %vm1429_vm2 = vcmp.gt.f32.partialorder %v1305_v22, 0.0  ;;  %v1461_v28 = vmul.f32 0.1, %v1305_v22  ;;  %v5101_v39 = vpop.f32.mrb[68].mxu0  ;;  %v1492_v40 = vsel %vm1428_vm0, %v1302_v51, %v1460_v18 }
 0x18b   : > { %v5102_v30 = vpop.f32.mrb[69].mxu0  ;;  %5409 = vmatprep.mubr.msk.f32.mxu1 %vm2080_vm1, %v1492_v40 }
 0x18c   : > { %v1493_v60 = vsel %vm1429_vm2, %v1305_v22, %v1461_v28  ;;  %v5103_v61 = vadd.f32 %v5102_v30, %v5101_v39  ;;  %v5104_v12 = vpop.f32.mrb[70].mxu0 }
 0x18d   : > { %v5105_v32 = vpop.f32.mrb[71].mxu0  ;;  %5410 = vmatmul.mubr.msk.f32.vlgmr.msra.gmra.mrb[48].mxu1 %vm2080_vm1, %v1493_v60 }
 0x18e   : > { %v1310_v8 = vadd.f32 %v5103_v61, %v6535_v63  ;;  %v5106_v19 = vadd.f32 %v5105_v32, %v5104_v12  ;;  %5568 = vmatpush3.bf16.msra.mxu1 %v6427_v49 }
 0x18f   : > { %5570 = vmatprep.subr.bf16.mxu1 %v6546_v55 }
 0x190   : > { %v1462_v1 = vmul.f32 0.1, %v1310_v8  ;;  %v1313_v18 = vadd.f32 %v5106_v19, %v6535_v63  ;;  %vm1430_vm3 = vcmp.gt.f32.partialorder %v1310_v8, 0.0 }
 0x192   : > { %v1463_v51 = vmul.f32 0.1, %v1313_v18  ;;  %v5107_v20 = vpop.f32.mrb[72].mxu0  ;;  %v1494_v42 = vsel %vm1430_vm3, %v1310_v8, %v1462_v1  ;;  %vm1431_vm4 = vcmp.gt.f32.partialorder %v1313_v18, 0.0 }
 0x193   : > { %v5108_v30 = vpop.f32.mrb[73].mxu0  ;;  %5412 = vmatprep.mubr.msk.f32.mxu1 %vm2080_vm1, %v1494_v42 }
 0x194   : > { %v5109_v22 = vadd.f32 %v5108_v30, %v5107_v20  ;;  %v5110_v28 = vpop.f32.mrb[74].mxu0  ;;  %v1495_v39 = vsel %vm1431_vm4, %v1313_v18, %v1463_v51  ;;  %v1334_v51 = vadd.f32 %v6413_v34, %v6535_v63 }
 0x195   : > { %v5111_v40 = vpop.f32.mrb[75].mxu0  ;;  %5413 = vmatmul.mubr.msk.f32.gmra.mrb[50].mxu1 %vm2080_vm1, %v1495_v39  ;;  %v1337_v39 = vadd.f32 %v6415_v37, %v6535_v63  ;;  %v1345_v37 = vadd.f32 %v6434_v56, %v6535_v63  ;;  %v1353_v56 = vadd.f32 %v6444_v9, %v6535_v63 }
 0x196   : > { %v1318_v49 = vadd.f32 %v5109_v22, %v6535_v63  ;;  %v5112_v32 = vadd.f32 %v5111_v40, %v5110_v28  ;;  %vm1436_vm9 = vcmp.gt.f32.partialorder %v1334_v51, 0.0 }
 0x197   : > { %vm1437_vm10 = vcmp.gt.f32.partialorder %v1337_v39, 0.0  ;;  %vm1439_vm12 = vcmp.gt.f32.partialorder %v1345_v37, 0.0  ;;  %vm1441_vm14 = vcmp.gt.f32.partialorder %v1353_v56, 0.0 }
 0x198   : > { %v1464_v60 = vmul.f32 0.1, %v1318_v49  ;;  %v1321_v19 = vadd.f32 %v5112_v32, %v6535_v63  ;;  %vm1432_vm5 = vcmp.gt.f32.partialorder %v1318_v49, 0.0  ;;  %v1468_v32 = vmul.f32 0.1, %v1334_v51 }
 0x19a   : > { %v1465_v61 = vmul.f32 0.1, %v1321_v19  ;;  %v5113_v12 = vpop.f32.mrb[76].mxu0  ;;  %v1496_v1 = vsel %vm1432_vm5, %v1318_v49, %v1464_v60  ;;  %vm1433_vm6 = vcmp.gt.f32.partialorder %v1321_v19, 0.0  ;;  %v1342_v60 = vadd.f32 %v6431_v53, %v6535_v63 }
 0x19b   : > { %v5114_v8 = vpop.f32.mrb[77].mxu0  ;;  %5415 = vmatprep.mubr.msk.f32.mxu1 %vm2080_vm1, %v1496_v1  ;;  %v1469_v1 = vmul.f32 0.1, %v1337_v39  ;;  %v1350_v53 = vadd.f32 %v6442_v5, %v6535_v63 }
 0x19c   : > { %v5115_v20 = vadd.f32 %v5114_v8, %v5113_v12  ;;  %v5116_v42 = vpop.f32.mrb[78].mxu0  ;;  %v1497_v18 = vsel %vm1433_vm6, %v1321_v19, %v1465_v61  ;;  %vm1438_vm11 = vcmp.gt.f32.partialorder %v1342_v60, 0.0 }
 0x19d   : > { %v5117_v30 = vpop.f32.mrb[79].mxu0  ;;  %5416 = vmatmul.mubr.msk.f32.gmra.mrb[52].mxu1 %vm2080_vm1, %v1497_v18  ;;  %v1470_v18 = vmul.f32 0.1, %v1342_v60  ;;  %vm1440_vm13 = vcmp.gt.f32.partialorder %v1350_v53, 0.0 }
 0x19e   : > { %v1326_v22 = vadd.f32 %v5115_v20, %v6535_v63  ;;  %v5118_v28 = vadd.f32 %v5117_v30, %v5116_v42  ;;  %v1500_v30 = vsel %vm1436_vm9, %v1334_v51, %v1468_v32 }
 0x19f   : > { %v1502_v5 = vsel %vm1438_vm11, %v1342_v60, %v1470_v18 }
 0x1a0   : > { %v1466_v40 = vmul.f32 0.1, %v1326_v22  ;;  %v1329_v49 = vadd.f32 %v5118_v28, %v6535_v63  ;;  %vm1434_vm7 = vcmp.gt.f32.partialorder %v1326_v22, 0.0 }
 0x1a2   : > { %v1467_v19 = vmul.f32 0.1, %v1329_v49  ;;  %v1498_v61 = vsel %vm1434_vm7, %v1326_v22, %v1466_v40  ;;  %vm1435_vm8 = vcmp.gt.f32.partialorder %v1329_v49, 0.0  ;;  %v5207_v34 = vpop.f32.mrb[80].mxu0  ;;  %v1471_v40 = vmul.f32 0.1, %v1345_v37 }
 0x1a3   : > { %5418 = vmatprep.mubr.msk.f32.mxu1 %vm2080_vm1, %v1498_v61  ;;  %v5208_v12 = vpop.f32.mrb[81].mxu0  ;;  %v1358_v61 = vadd.f32 %v6452_v25, %v6535_v63  ;;  %v1366_v25 = vadd.f32 %v6462_v46, %v6535_v63 }
 0x1a4   : > { %v1499_v8 = vsel %vm1435_vm8, %v1329_v49, %v1467_v19  ;;  %v6570_v20 = vadd.f32 %v5208_v12, %v5207_v34  ;;  %v5210_v42 = vpop.f32.mrb[82].mxu0  ;;  %v1501_v49 = vsel %vm1437_vm10, %v1337_v39, %v1469_v1  ;;  %v1472_v19 = vmul.f32 0.1, %v1350_v53 }
 0x1a5   : > { %5419 = vmatmul.mubr.msk.f32.gmra.mrb[54].mxu1 %vm2080_vm1, %v1499_v8  ;;  %v5211_v22 = vpop.f32.mrb[83].mxu0  ;;  %v1473_v34 = vmul.f32 0.1, %v1353_v56  ;;  %v1361_v12 = vadd.f32 %v6454_v29, %v6535_v63  ;;  %v1503_v8 = vsel %vm1439_vm12, %v1345_v37, %v1471_v40  ;;  %v1474_v1 = vmul.f32 0.1, %v1358_v61 }
 0x1a6   : > { %5421 = vmatprep.mubr.msk.f32.mxu1 %vm2080_vm1, %v1500_v30  ;;  %v6576_v28 = vadd.f32 %v5211_v22, %v5210_v42  ;;  %v1504_v60 = vsel %vm1440_vm13, %v1350_v53, %v1472_v19  ;;  %vm1442_vm15 = vcmp.gt.f32.partialorder %v1358_v61, 0.0  ;;  %v1369_v29 = vadd.f32 %v6464_v50, %v6535_v63 }
 0x1a7   : > { %v1475_v30 = vmul.f32 0.1, %v1361_v12  ;;  %v1505_v37 = vsel %vm1441_vm14, %v1353_v56, %v1473_v34  ;;  %v1476_v22 = vmul.f32 0.1, %v1366_v25  ;;  %v1374_v40 = vadd.f32 %v6472_v3, %v6535_v63 }
 0x1a8   : > { %v1506_v46 = vsel %vm1442_vm15, %v1358_v61, %v1474_v1  ;;  %vm1443_vm0 = vcmp.gt.f32.partialorder %v1361_v12, 0.0  ;;  %vm1444_vm2 = vcmp.gt.f32.partialorder %v1366_v25, 0.0  ;;  %v1477_v19 = vmul.f32 0.1, %v1369_v29 }
 0x1a9   : > { %5422 = vmatmul.mubr.msk.f32.gmra.mrb[56].mxu1 %vm2080_vm1, %v1501_v49  ;;  %v1382_v3 = vadd.f32 %v6480_v26, %v6535_v63  ;;  %v1508_v61 = vsel %vm1444_vm2, %v1366_v25, %v1476_v22  ;;  %vm1445_vm3 = vcmp.gt.f32.partialorder %v1369_v29, 0.0  ;;  %vm1446_vm4 = vcmp.gt.f32.partialorder %v1374_v40, 0.0 }
 0x1aa   : > { %5424 = vmatprep.mubr.msk.f32.mxu1 %vm2080_vm1, %v1502_v5  ;;  %v5213_v51 = vpop.f32.mrb[84].mxu0  ;;  %v1377_v5 = vadd.f32 %v6474_v10, %v6535_v63  ;;  %v1385_v10 = vadd.f32 %v6482_v31, %v6535_v63 }
 0x1ab   : > { %v5214_v32 = vpop.f32.mrb[85].mxu0  ;;  %v1480_v1 = vmul.f32 0.1, %v1382_v3  ;;  %vm1448_vm6 = vcmp.gt.f32.partialorder %v1382_v3, 0.0 }
 0x1ac   : > { %v6586_v9 = vadd.f32 %v5214_v32, %v5213_v51  ;;  %v5216_v39 = vpop.f32.mrb[86].mxu0  ;;  %v1507_v51 = vsel %vm1443_vm0, %v1361_v12, %v1475_v30  ;;  %v1478_v32 = vmul.f32 0.1, %v1374_v40  ;;  %v1509_v12 = vsel %vm1445_vm3, %v1369_v29, %v1477_v19 }
 0x1ad   : > { %5425 = vmatmul.mubr.msk.f32.gmra.mrb[58].mxu1 %vm2080_vm1, %v1503_v8  ;;  %v5217_v42 = vpop.f32.mrb[87].mxu0  ;;  %vm1447_vm5 = vcmp.gt.f32.partialorder %v1377_v5, 0.0  ;;  %v1481_v30 = vmul.f32 0.1, %v1385_v10  ;;  %vm1449_vm7 = vcmp.gt.f32.partialorder %v1385_v10, 0.0 }
 0x1ae   : > { %5427 = vmatprep.mubr.msk.f32.mxu1 %vm2080_vm1, %v1504_v60  ;;  %v6592_v18 = vadd.f32 %v5217_v42, %v5216_v39  ;;  %v1479_v39 = vmul.f32 0.1, %v1377_v5  ;;  %v1390_v60 = vadd.f32 %v6488_v47, %v6535_v63  ;;  %v1510_v26 = vsel %vm1446_vm4, %v1374_v40, %v1478_v32 }
 0x1af   : > { %v1398_v47 = vadd.f32 %v6496_v6, %v6535_v63  ;;  %v1512_v40 = vsel %vm1448_vm6, %v1382_v3, %v1480_v1 }
 0x1b0   : > { %v1511_v22 = vsel %vm1447_vm5, %v1377_v5, %v1479_v39  ;;  %vm1450_vm8 = vcmp.gt.f32.partialorder %v1390_v60, 0.0  ;;  %v1513_v5 = vsel %vm1449_vm7, %v1385_v10, %v1481_v30 }
 0x1b1   : > { %5428 = vmatmul.mubr.msk.f32.gmra.mrb[60].mxu1 %vm2080_vm1, %v1505_v37  ;;  %v1393_v37 = vadd.f32 %v6490_v54, %v6535_v63  ;;  %v1401_v54 = vadd.f32 %v6498_v13, %v6535_v63  ;;  %vm1452_vm10 = vcmp.gt.f32.partialorder %v1398_v47, 0.0 }
 0x1b2   : > { %5430 = vmatprep.mubr.msk.f32.mxu1 %vm2080_vm1, %v1506_v46  ;;  %v5219_v53 = vpop.f32.mrb[88].mxu0  ;;  %v1482_v46 = vmul.f32 0.1, %v1390_v60 }
 0x1b3   : > { %v5220_v49 = vpop.f32.mrb[89].mxu0  ;;  %v1483_v19 = vmul.f32 0.1, %v1393_v37  ;;  %vm1451_vm9 = vcmp.gt.f32.partialorder %v1393_v37, 0.0  ;;  %vm1453_vm11 = vcmp.gt.f32.partialorder %v1401_v54, 0.0 }
 0x1b4   : > { %v6602_v50 = vadd.f32 %v5220_v49, %v5219_v53  ;;  %v5222_v56 = vpop.f32.mrb[90].mxu0  ;;  %v1514_v6 = vsel %vm1450_vm8, %v1390_v60, %v1482_v46 }
 0x1b5   : > { %5431 = vmatmul.mubr.msk.f32.gmra.mrb[62].mxu1 %vm2080_vm1, %v1507_v51  ;;  %v5223_v34 = vpop.f32.mrb[91].mxu0  ;;  %v1484_v51 = vmul.f32 0.1, %v1398_v47  ;;  %v1515_v39 = vsel %vm1451_vm9, %v1393_v37, %v1483_v19  ;;  %v1422_v37 = vadd.f32 %v6520_v48, %v6535_v63 }
 0x1b6   : > { %5433 = vmatprep.mubr.msk.f32.mxu1 %vm2080_vm1, %v1508_v61  ;;  %v6608_v8 = vadd.f32 %v5223_v34, %v5222_v56  ;;  %v1406_v56 = vadd.f32 %v6504_v35, %v6535_v63  ;;  %v1485_v61 = vmul.f32 0.1, %v1401_v54  ;;  %v1409_v34 = vadd.f32 %v6506_v41, %v6535_v63 }
 0x1b7   : > { %v1414_v35 = vadd.f32 %v6512_v0, %v6535_v63  ;;  %v1516_v1 = vsel %vm1452_vm10, %v1398_v47, %v1484_v51  ;;  %v1417_v41 = vadd.f32 %v6514_v14, %v6535_v63  ;;  %v1425_v47 = vadd.f32 %v6522_v57, %v6535_v63 }
 0x1b8   : > { %vm1454_vm12 = vcmp.gt.f32.partialorder %v1406_v56, 0.0  ;;  %vm1455_vm13 = vcmp.gt.f32.partialorder %v1409_v34, 0.0  ;;  %vm1458_vm0 = vcmp.gt.f32.partialorder %v1422_v37, 0.0 }
 0x1b9   : > { %5434 = vmatmul.mubr.msk.f32.gmra.mrb[64].mxu1 %vm2080_vm1, %v1509_v12  ;;  %v1486_v12 = vmul.f32 0.1, %v1406_v56  ;;  %v1488_v30 = vmul.f32 0.1, %v1414_v35  ;;  %vm1456_vm14 = vcmp.gt.f32.partialorder %v1414_v35, 0.0  ;;  %vm1457_vm15 = vcmp.gt.f32.partialorder %v1417_v41, 0.0 }
 0x1ba   : > { %5436 = vmatprep.mubr.msk.f32.mxu1 %vm2080_vm1, %v1510_v26  ;;  %v5225_v25 = vpop.f32.mrb[92].mxu0  ;;  %v1489_v14 = vmul.f32 0.1, %v1417_v41  ;;  %v1491_v63 = vmul.f32 0.1, %v1425_v47  ;;  %vm1459_vm2 = vcmp.gt.f32.partialorder %v1425_v47, 0.0 }
 0x1bb   : > { %v5226_v42 = vpop.f32.mrb[93].mxu0  ;;  %v1518_v0 = vsel %vm1454_vm12, %v1406_v56, %v1486_v12 }
 0x1bc   : > { %v6618_v31 = vadd.f32 %v5226_v42, %v5225_v25  ;;  %v5228_v29 = vpop.f32.mrb[94].mxu0  ;;  %v1487_v25 = vmul.f32 0.1, %v1409_v34  ;;  %v1517_v42 = vsel %vm1453_vm11, %v1401_v54, %v1485_v61  ;;  %v1490_v54 = vmul.f32 0.1, %v1422_v37 }
 0x1bd   : > { %5437 = vmatmul.mubr.msk.f32.gmra.mrb[66].mxu1 %vm2080_vm1, %v1511_v22  ;;  %v5229_v53 = vpop.f32.mrb[95].mxu0  ;;  %v6650_v22 = vld [vmem:[%s7849_s4] ss:$0 sm:$0xff] }
 0x1be   : > { %5439 = vmatprep.mubr.msk.f32.mxu1 %vm2080_vm1, %v1512_v40  ;;  %v6624_v49 = vadd.f32 %v5229_v53, %v5228_v29  ;;  %v1519_v40 = vsel %vm1455_vm13, %v1409_v34, %v1487_v25  ;;  %v830_v19 = vadd.f32 %v6397_v7, %v6650_v22  ;;  %v833_v57 = vadd.f32 %v6399_v11, %v6650_v22 }
 0x1bf   : > { %v838_v7 = vadd.f32 %v6403_v17, %v6650_v22  ;;  %v1523_v11 = vsel %vm1459_vm2, %v1425_v47, %v1491_v63  ;;  %v846_v17 = vadd.f32 %v6409_v27, %v6650_v22  ;;  %v857_v47 = vadd.f32 %v6429_v52, %v6650_v22 }
 0x1c0   : > { %vm956_vm3 = vcmp.gt.f32.partialorder %v830_v19, 0.0  ;;  %vm957_vm4 = vcmp.gt.f32.partialorder %v833_v57, 0.0  ;;  %v865_v52 = vadd.f32 %v6440_v4, %v6650_v22 }
 0x1c1   : > { %5440 = vmatmul.mubr.msk.f32.gmra.mrb[68].mxu1 %vm2080_vm1, %v1513_v5  ;;  %v1520_v5 = vsel %vm1456_vm14, %v1414_v35, %v1488_v30  ;;  %vm958_vm5 = vcmp.gt.f32.partialorder %v838_v7, 0.0  ;;  %v849_v30 = vadd.f32 %v6411_v33, %v6650_v22  ;;  %vm960_vm7 = vcmp.gt.f32.partialorder %v846_v17, 0.0 }
 0x1c2   : > { %5442 = vmatprep.mubr.msk.f32.mxu1 %vm2080_vm1, %v1514_v6  ;;  %v5231_v32 = vpop.f32.mrb[96].mxu0  ;;  %v1521_v6 = vsel %vm1457_vm15, %v1417_v41, %v1489_v14  ;;  %vm963_vm10 = vcmp.gt.f32.partialorder %v857_v47, 0.0  ;;  %vm965_vm12 = vcmp.gt.f32.partialorder %v865_v52, 0.0 }
 0x1c3   : > { %v5232_v3 = vpop.f32.mrb[97].mxu0  ;;  %v993_v14 = vmul.f32 0.1, %v849_v30  ;;  %vm961_vm8 = vcmp.gt.f32.partialorder %v849_v30, 0.0 }
 0x1c4   : > { %v6634_v13 = vadd.f32 %v5232_v3, %v5231_v32  ;;  %v5234_v10 = vpop.f32.mrb[98].mxu0  ;;  %v988_v32 = vmul.f32 0.1, %v830_v19  ;;  %v1522_v3 = vsel %vm1458_vm0, %v1422_v37, %v1490_v54  ;;  %v992_v37 = vmul.f32 0.1, %v846_v17 }
 0x1c5   : > { %5443 = vmatmul.mubr.msk.f32.gmra.mrb[70].mxu1 %vm2080_vm1, %v1515_v39  ;;  %v5235_v60 = vpop.f32.mrb[99].mxu0  ;;  %v989_v39 = vmul.f32 0.1, %v833_v57 }
 0x1c6   : > { %5445 = vmatprep.mubr.msk.f32.mxu1 %vm2080_vm1, %v1516_v1  ;;  %v6640_v26 = vadd.f32 %v5235_v60, %v5234_v10  ;;  %v841_v10 = vadd.f32 %v6405_v21, %v6650_v22  ;;  %v990_v1 = vmul.f32 0.1, %v838_v7  ;;  %v1020_v60 = vsel %vm956_vm3, %v830_v19, %v988_v32 }
 0x1c7   : > { %v862_v19 = vadd.f32 %v6438_v62, %v6650_v22  ;;  %v1024_v54 = vsel %vm960_vm7, %v846_v17, %v992_v37 }
 0x1c8   : > { %v991_v21 = vmul.f32 0.1, %v841_v10  ;;  %v1022_v27 = vsel %vm958_vm5, %v838_v7, %v990_v1  ;;  %vm959_vm6 = vcmp.gt.f32.partialorder %v841_v10, 0.0 }
 0x1c9   : > { %5446 = vmatmul.mubr.msk.f32.gmra.mrb[72].mxu1 %vm2080_vm1, %v1517_v42  ;;  %v1021_v42 = vsel %vm957_vm4, %v833_v57, %v989_v39  ;;  %v1025_v57 = vsel %vm961_vm8, %v849_v30, %v993_v14  ;;  %v996_v63 = vmul.f32 0.1, %v862_v19  ;;  %vm964_vm11 = vcmp.gt.f32.partialorder %v862_v19, 0.0 }
 0x1ca   : > { %5448 = vmatprep.mubr.msk.f32.mxu1 %vm2080_vm1, %v1518_v0  ;;  %v5237_v29 = vpop.f32.mrb[100].mxu0  ;;  %v854_v0 = vadd.f32 %v6425_v45, %v6650_v22  ;;  %v1023_v33 = vsel %vm959_vm6, %v841_v10, %v991_v21 }
 0x1cb   : > { %v5238_v46 = vpop.f32.mrb[101].mxu0 }
 0x1cc   : > { %v6655_v48 = vadd.f32 %v5238_v46, %v5237_v29  ;;  %v5240_v53 = vpop.f32.mrb[102].mxu0  ;;  %v994_v45 = vmul.f32 0.1, %v854_v0  ;;  %vm962_vm9 = vcmp.gt.f32.partialorder %v854_v0, 0.0 }
 0x1cd   : > { %5449 = vmatmul.mubr.msk.f32.gmra.mrb[74].mxu1 %vm2080_vm1, %v1519_v40  ;;  %v5241_v51 = vpop.f32.mrb[103].mxu0 }
 0x1ce   : > { %5451 = vmatprep.mubr.msk.f32.mxu1 %vm2080_vm1, %v1520_v5  ;;  %v6661_v56 = vadd.f32 %v5241_v51, %v5240_v53  ;;  %v995_v51 = vmul.f32 0.1, %v857_v47  ;;  %v1026_v62 = vsel %vm962_vm9, %v854_v0, %v994_v45  ;;  %v889_v0 = vadd.f32 %v6470_v2, %v6650_v22 }
 0x1cf   : > { %v897_v2 = vadd.f32 %v6478_v23, %v6650_v22 }
 0x1d0   : > { %vm971_vm3 = vcmp.gt.f32.partialorder %v889_v0, 0.0 }
 0x1d1   : > { %5452 = vmatmul.mubr.msk.f32.gmra.mrb[76].mxu1 %vm2080_vm1, %v1521_v6  ;;  %v870_v6 = vadd.f32 %v6448_v16, %v6650_v22  ;;  %v878_v16 = vadd.f32 %v6458_v38, %v6650_v22  ;;  %vm973_vm5 = vcmp.gt.f32.partialorder %v897_v2, 0.0 }
 0x1d2   : > { %5454 = vmatprep.mubr.msk.f32.mxu1 %vm2080_vm1, %v1522_v3  ;;  %v5243_v61 = vpop.f32.mrb[104].mxu0  ;;  %v997_v3 = vmul.f32 0.1, %v865_v52 }
 0x1d3   : > { %v5244_v34 = vpop.f32.mrb[105].mxu0  ;;  %v998_v10 = vmul.f32 0.1, %v870_v6  ;;  %vm966_vm13 = vcmp.gt.f32.partialorder %v870_v6, 0.0  ;;  %vm968_vm15 = vcmp.gt.f32.partialorder %v878_v16, 0.0 }
 0x1d4   : > { %v6671_v12 = vadd.f32 %v5244_v34, %v5243_v61  ;;  %v5246_v35 = vpop.f32.mrb[106].mxu0  ;;  %v873_v61 = vadd.f32 %v6450_v24, %v6650_v22  ;;  %v1027_v34 = vsel %vm963_vm10, %v857_v47, %v995_v51  ;;  %v881_v24 = vadd.f32 %v6460_v44, %v6650_v22 }
 0x1d5   : > { %5455 = vmatmul.mubr.msk.f32.gmra.mrb[78].mxu1 %vm2080_vm1, %v1523_v11  ;;  %v5247_v25 = vpop.f32.mrb[107].mxu0  ;;  %v1028_v11 = vsel %vm964_vm11, %v862_v19, %v996_v63  ;;  %v1030_v38 = vsel %vm966_vm13, %v870_v6, %v998_v10 }
 0x1d6   : > { %5461 = vmatprep.mubr.msk.f32.mxu1 %vm2080_vm1, %v1020_v60  ;;  %v6677_v41 = vadd.f32 %v5247_v25, %v5246_v35  ;;  %v999_v17 = vmul.f32 0.1, %v873_v61  ;;  %v1029_v60 = vsel %vm965_vm12, %v865_v52, %v997_v3  ;;  %v1000_v25 = vmul.f32 0.1, %v878_v16 }
 0x1d7   : > { %vm967_vm14 = vcmp.gt.f32.partialorder %v873_v61, 0.0  ;;  %v1001_v37 = vmul.f32 0.1, %v881_v24  ;;  %vm969_vm0 = vcmp.gt.f32.partialorder %v881_v24, 0.0  ;;  %v1005_v52 = vmul.f32 0.1, %v897_v2 }
 0x1d8   : > { %v1032_v14 = vsel %vm968_vm15, %v878_v16, %v1000_v25  ;;  %v7871_v16 = vld [vmem:[#allocation3_spill] sm:$0xff] }
 0x1d9   : > { %5462 = vmatmul.mubr.msk.f32.vlgmr.msra.gmra.mrb[48].mxu1 %vm2080_vm1, %v1021_v42  ;;  %v886_v42 = vadd.f32 %v6468_v59, %v6650_v22  ;;  %v894_v59 = vadd.f32 %v6476_v15, %v6650_v22  ;;  %v1033_v45 = vsel %vm969_vm0, %v881_v24, %v1001_v37  ;;  %v7873_v37 = vld [vmem:[#allocation5_spill] sm:$0xff] }
 0x1da   : > { %5464 = vmatprep.mubr.msk.f32.mxu1 %vm2080_vm1, %v1022_v27  ;;  %5572 = vmatpush3.bf16.msra.mxu1 %v6546_v55  ;;  %v5249_v29 = vpop.f32.mrb[108].mxu0  ;;  %v1031_v27 = vsel %vm967_vm14, %v873_v61, %v999_v17 }
 0x1db   : > { %v5250_v46 = vpop.f32.mrb[109].mxu0  ;;  %vm970_vm2 = vcmp.gt.f32.partialorder %v886_v42, 0.0  ;;  %v1004_v19 = vmul.f32 0.1, %v894_v59  ;;  %vm972_vm4 = vcmp.gt.f32.partialorder %v894_v59, 0.0 }
 0x1dc   : > { %v6688_v40 = vadd.f32 %v5250_v46, %v5249_v29  ;;  %v5252_v53 = vpop.f32.mrb[110].mxu0  ;;  %v1002_v46 = vmul.f32 0.1, %v886_v42 }
 0x1dd   : > { %5465 = vmatmul.mubr.msk.f32.gmra.mrb[50].mxu1 %vm2080_vm1, %v1023_v33  ;;  %v5253_v55 = vpop.f32.mrb[111].mxu0 }
 0x1de   : > { %5467 = vmatprep.mubr.msk.f32.mxu1 %vm2080_vm1, %v1024_v54  ;;  %v6694_v5 = vadd.f32 %v5253_v55, %v5252_v53  ;;  %v1003_v53 = vmul.f32 0.1, %v889_v0  ;;  %v902_v54 = vadd.f32 %v6484_v36, %v6650_v22  ;;  %v1034_v15 = vsel %vm970_vm2, %v886_v42, %v1002_v46 }
 0x1df   : > { %v910_v36 = vadd.f32 %v6492_v58, %v6650_v22 }
 0x1e0   : > { %v1035_v63 = vsel %vm971_vm3, %v889_v0, %v1003_v53  ;;  %vm974_vm6 = vcmp.gt.f32.partialorder %v902_v54, 0.0  ;;  %v926_v0 = vadd.f32 %v7873_v37, %v6650_v22 }
 0x1e1   : > { %5468 = vmatmul.mubr.msk.f32.gmra.mrb[52].mxu1 %vm2080_vm1, %v1025_v57  ;;  %v905_v57 = vadd.f32 %v6486_v43, %v6650_v22  ;;  %v7870_v43 = vld [vmem:[#allocation2_spill] sm:$0xff]  ;;  %v1008_v10 = vmul.f32 0.1, %v910_v36  ;;  %vm976_vm8 = vcmp.gt.f32.partialorder %v910_v36, 0.0 }
 0x1e2   : > { %5470 = vmatprep.mubr.msk.f32.mxu1 %vm2080_vm1, %v1026_v62  ;;  %v5255_v32 = vpop.f32.mrb[112].mxu0  ;;  %v1006_v62 = vmul.f32 0.1, %v902_v54  ;;  %vm980_vm12 = vcmp.gt.f32.partialorder %v926_v0, 0.0 }
 0x1e3   : > { %v5256_v7 = vpop.f32.mrb[113].mxu0  ;;  %v1007_v61 = vmul.f32 0.1, %v905_v57  ;;  %vm975_vm7 = vcmp.gt.f32.partialorder %v905_v57, 0.0 }
 0x1e4   : > { %v6704_v4 = vadd.f32 %v5256_v7, %v5255_v32  ;;  %v5258_v39 = vpop.f32.mrb[114].mxu0  ;;  %v1036_v32 = vsel %vm972_vm4, %v894_v59, %v1004_v19  ;;  %v1038_v58 = vsel %vm974_vm6, %v902_v54, %v1006_v62 }
 0x1e5   : > { %5471 = vmatmul.mubr.msk.f32.gmra.mrb[54].mxu1 %vm2080_vm1, %v1027_v34  ;;  %v5259_v35 = vpop.f32.mrb[115].mxu0  ;;  %v913_v34 = vadd.f32 %v7870_v43, %v6650_v22  ;;  %v1039_v42 = vsel %vm975_vm7, %v905_v57, %v1007_v61 }
 0x1e6   : > { %5473 = vmatprep.mubr.msk.f32.mxu1 %vm2080_vm1, %v1028_v11  ;;  %v6710_v1 = vadd.f32 %v5259_v35, %v5258_v39  ;;  %v1037_v39 = vsel %vm973_vm5, %v897_v2, %v1005_v52  ;;  %v918_v11 = vadd.f32 %v7871_v16, %v6650_v22  ;;  %v1012_v2 = vmul.f32 0.1, %v926_v0  ;;  %v7876_v52 = vld [vmem:[#allocation8_spill] sm:$0xff] }
 0x1e7   : > { %v1009_v24 = vmul.f32 0.1, %v913_v34  ;;  %vm977_vm9 = vcmp.gt.f32.partialorder %v913_v34, 0.0  ;;  %v937_v57 = vadd.f32 %v7876_v52, %v6650_v22 }
 0x1e8   : > { %vm978_vm10 = vcmp.gt.f32.partialorder %v918_v11, 0.0  ;;  %v1044_v61 = vsel %vm980_vm12, %v926_v0, %v1012_v2 }
 0x1e9   : > { %5474 = vmatmul.mubr.msk.f32.gmra.mrb[56].mxu1 %vm2080_vm1, %v1029_v60  ;;  %v7872_v60 = vld [vmem:[#allocation4_spill] sm:$0xff]  ;;  %v1041_v53 = vsel %vm977_vm9, %v913_v34, %v1009_v24  ;;  %vm983_vm15 = vcmp.gt.f32.partialorder %v937_v57, 0.0 }
 0x1ea   : > { %5476 = vmatprep.mubr.msk.f32.mxu1 %vm2080_vm1, %v1030_v38  ;;  %v5261_v21 = vpop.f32.mrb[116].mxu0  ;;  %v921_v25 = vadd.f32 %v7872_v60, %v6650_v22  ;;  %v6785_v60 = vld [vmem:[%s7853_s8] ss:$0 sm:$0xff] }
 0x1eb   : > { %v5262_v30 = vpop.f32.mrb[117].mxu0 }
 0x1ec   : > { %v6720_v44 = vadd.f32 %v5262_v30, %v5261_v21  ;;  %v5264_v29 = vpop.f32.mrb[118].mxu0  ;;  %v1010_v30 = vmul.f32 0.1, %v918_v11  ;;  %v1011_v59 = vmul.f32 0.1, %v921_v25  ;;  %vm979_vm11 = vcmp.gt.f32.partialorder %v921_v25, 0.0 }
 0x1ed   : > { %5477 = vmatmul.mubr.msk.f32.gmra.mrb[58].mxu1 %vm2080_vm1, %v1031_v27  ;;  %v5265_v47 = vpop.f32.mrb[119].mxu0  ;;  %v1040_v27 = vsel %vm976_vm8, %v910_v36, %v1008_v10  ;;  %v7878_v10 = vld [vmem:[#allocation10_spill] sm:$0xff] }
 0x1ee   : > { %5479 = vmatprep.mubr.msk.f32.mxu1 %vm2080_vm1, %v1032_v14  ;;  %v6726_v33 = vadd.f32 %v5265_v47, %v5264_v29  ;;  %v7874_v14 = vld [vmem:[#allocation6_spill] sm:$0xff]  ;;  %v1042_v54 = vsel %vm978_vm10, %v918_v11, %v1010_v30  ;;  %v945_v16 = vadd.f32 %v7878_v10, %v6650_v22  ;;  %v7880_v30 = vld [vmem:[#allocation12_spill] sm:$0xff] }
 0x1ef   : > { %v929_v47 = vadd.f32 %v7874_v14, %v6650_v22  ;;  %v953_v37 = vadd.f32 %v7880_v30, %v6650_v22  ;;  %v1854_v14 = vadd.f32 %v6570_v20, %v6785_v60 }
 0x1f0   : > { %vm985_vm2 = vcmp.gt.f32.partialorder %v945_v16, 0.0 }
 0x1f1   : > { %5480 = vmatmul.mubr.msk.f32.gmra.mrb[60].mxu1 %vm2080_vm1, %v1033_v45  ;;  %v7875_v45 = vld [vmem:[#allocation7_spill] sm:$0xff]  ;;  %vm981_vm13 = vcmp.gt.f32.partialorder %v929_v47, 0.0  ;;  %vm987_vm4 = vcmp.gt.f32.partialorder %v953_v37, 0.0  ;;  %vm1980_vm5 = vcmp.gt.f32.partialorder %v1854_v14, 0.0 }
 0x1f2   : > { %5482 = vmatprep.mubr.msk.f32.mxu1 %vm2080_vm1, %v1034_v15  ;;  %v5267_v55 = vpop.f32.mrb[120].mxu0  ;;  %v934_v19 = vadd.f32 %v7875_v45, %v6650_v22  ;;  %v1019_v45 = vmul.f32 0.1, %v953_v37 }
 0x1f3   : > { %v5268_v51 = vpop.f32.mrb[121].mxu0 }
 0x1f4   : > { %v6736_v23 = vadd.f32 %v5268_v51, %v5267_v55  ;;  %v5270_v6 = vpop.f32.mrb[122].mxu0  ;;  %v1013_v51 = vmul.f32 0.1, %v929_v47  ;;  %v1014_v36 = vmul.f32 0.1, %v934_v19  ;;  %vm982_vm14 = vcmp.gt.f32.partialorder %v934_v19, 0.0 }
 0x1f5   : > { %5483 = vmatmul.mubr.msk.f32.gmra.mrb[62].mxu1 %vm2080_vm1, %v1035_v63  ;;  %v5271_v7 = vpop.f32.mrb[123].mxu0  ;;  %v1043_v63 = vsel %vm979_vm11, %v921_v25, %v1011_v59 }
 0x1f6   : > { %5485 = vmatprep.mubr.msk.f32.mxu1 %vm2080_vm1, %v1036_v32  ;;  %v6742_v3 = vadd.f32 %v5271_v7, %v5270_v6  ;;  %v7877_v32 = vld [vmem:[#allocation9_spill] sm:$0xff]  ;;  %v1045_v11 = vsel %vm981_vm13, %v929_v47, %v1013_v51  ;;  %v1046_v24 = vsel %vm982_vm14, %v934_v19, %v1014_v36  ;;  %v1857_v19 = vadd.f32 %v6576_v28, %v6785_v60 }
 0x1f7   : > { %v942_v7 = vadd.f32 %v7877_v32, %v6650_v22  ;;  %v1051_v28 = vsel %vm987_vm4, %v953_v37, %v1019_v45  ;;  %v1902_v45 = vadd.f32 %v6671_v12, %v6785_v60 }
 0x1f8   : > { %vm1981_vm7 = vcmp.gt.f32.partialorder %v1857_v19, 0.0 }
 0x1f9   : > { %5486 = vmatmul.mubr.msk.f32.gmra.mrb[64].mxu1 %vm2080_vm1, %v1037_v39  ;;  %v1015_v39 = vmul.f32 0.1, %v937_v57  ;;  %vm984_vm0 = vcmp.gt.f32.partialorder %v942_v7, 0.0 }
 0x1fa   : > { %5488 = vmatprep.mubr.msk.f32.mxu1 %vm2080_vm1, %v1038_v58  ;;  %v5273_v35 = vpop.f32.mrb[124].mxu0  ;;  %v1016_v58 = vmul.f32 0.1, %v942_v7 }
 0x1fb   : > { %v5274_v17 = vpop.f32.mrb[125].mxu0  ;;  %v1047_v0 = vsel %vm983_vm15, %v937_v57, %v1015_v39  ;;  %v1878_v39 = vadd.f32 %v6618_v31, %v6785_v60 }
 0x1fc   : > { %v6752_v38 = vadd.f32 %v5274_v17, %v5273_v35  ;;  %v5276_v21 = vpop.f32.mrb[126].mxu0  ;;  %v7879_v35 = vld [vmem:[#allocation11_spill] sm:$0xff]  ;;  %v1048_v47 = vsel %vm984_vm0, %v942_v7, %v1016_v58  ;;  %v1881_v58 = vadd.f32 %v6624_v49, %v6785_v60  ;;  %v1889_v49 = vadd.f32 %v6640_v26, %v6785_v60 }
 0x1fd   : > { %5489 = vmatmul.mubr.msk.f32.gmra.mrb[66].mxu1 %vm2080_vm1, %v1039_v42  ;;  %v5277_v29 = vpop.f32.mrb[127].mxu0  ;;  %v950_v17 = vadd.f32 %v7879_v35, %v6650_v22  ;;  %v1862_v22 = vadd.f32 %v6586_v9, %v6785_v60  ;;  %v1870_v9 = vadd.f32 %v6602_v50, %v6785_v60  ;;  %vm1986_vm11 = vcmp.gt.f32.partialorder %v1878_v39, 0.0 }
 0x1fe   : > { %5491 = vmatprep.mubr.msk.f32.mxu1 %vm2080_vm1, %v1040_v27  ;;  %v6758_v46 = vadd.f32 %v5277_v29, %v5276_v21  ;;  %v1017_v21 = vmul.f32 0.1, %v945_v16  ;;  %v2019_v37 = vmul.f32 0.1, %v1881_v58  ;;  %vm1987_vm12 = vcmp.gt.f32.partialorder %v1881_v58, 0.0 }
 0x1ff   : > { %v1018_v59 = vmul.f32 0.1, %v950_v17  ;;  %vm986_vm3 = vcmp.gt.f32.partialorder %v950_v17, 0.0  ;;  %v2014_v52 = vmul.f32 0.1, %v1862_v22  ;;  %vm1982_vm6 = vcmp.gt.f32.partialorder %v1862_v22, 0.0 }
 0x200   : > { %v2016_v50 = vmul.f32 0.1, %v1870_v9  ;;  %vm1984_vm9 = vcmp.gt.f32.partialorder %v1870_v9, 0.0  ;;  %vm1989_vm14 = vcmp.gt.f32.partialorder %v1889_v49, 0.0 }
 0x201   : > { %5492 = vmatmul.mubr.msk.f32.gmra.mrb[68].mxu1 %vm2080_vm1, %v1041_v53  ;;  %v1050_v20 = vsel %vm986_vm3, %v950_v17, %v1018_v59  ;;  %v2046_v10 = vsel %vm1982_vm6, %v1862_v22, %v2014_v52  ;;  %v2018_v17 = vmul.f32 0.1, %v1878_v39  ;;  %v1894_v59 = vadd.f32 %v6655_v48, %v6785_v60 }
 0x202   : > { %5494 = vmatprep.mubr.msk.f32.mxu1 %vm2080_vm1, %v1042_v54  ;;  %v5279_v15 = vpop.f32.mrb[128].mxu0  ;;  %v1049_v54 = vsel %vm985_vm2, %v945_v16, %v1017_v21  ;;  %v2051_v22 = vsel %vm1987_vm12, %v1881_v58, %v2019_v37  ;;  %vm1992_vm2 = vcmp.gt.f32.partialorder %v1902_v45, 0.0  ;;  %v1945_v58 = vadd.f32 %v6758_v46, %v6785_v60 }
 0x203   : > { %v5280_v55 = vpop.f32.mrb[129].mxu0  ;;  %v2022_v26 = vmul.f32 0.1, %v1894_v59  ;;  %vm1990_vm15 = vcmp.gt.f32.partialorder %v1894_v59, 0.0 }
 0x204   : > { %v6768_v6 = vadd.f32 %v5280_v55, %v5279_v15  ;;  %v5282_v62 = vpop.f32.mrb[130].mxu0  ;;  %v2012_v15 = vmul.f32 0.1, %v1854_v14  ;;  %v1865_v55 = vadd.f32 %v6592_v18, %v6785_v60  ;;  %v1873_v18 = vadd.f32 %v6608_v8, %v6785_v60 }
 0x205   : > { %5495 = vmatmul.mubr.msk.f32.gmra.mrb[70].mxu1 %vm2080_vm1, %v1043_v63  ;;  %v5283_v43 = vpop.f32.mrb[131].mxu0  ;;  %v2013_v63 = vmul.f32 0.1, %v1857_v19 }
 0x206   : > { %5497 = vmatprep.mubr.msk.f32.mxu1 %vm2080_vm1, %v1044_v61  ;;  %v6774_v34 = vadd.f32 %v5283_v43, %v5282_v62  ;;  %v2044_v32 = vsel %vm1980_vm5, %v1854_v14, %v2012_v15  ;;  %v2015_v61 = vmul.f32 0.1, %v1865_v55  ;;  %vm1983_vm8 = vcmp.gt.f32.partialorder %v1865_v55, 0.0 }
 0x207   : > { %v2045_v16 = vsel %vm1981_vm7, %v1857_v19, %v2013_v63  ;;  %vm1985_vm10 = vcmp.gt.f32.partialorder %v1873_v18, 0.0  ;;  %v2050_v14 = vsel %vm1986_vm11, %v1878_v39, %v2018_v17  ;;  %v1921_v63 = vadd.f32 %v6710_v1, %v6785_v60 }
 0x208   : > { %v2047_v35 = vsel %vm1983_vm8, %v1865_v55, %v2015_v61  ;;  %v2054_v55 = vsel %vm1990_vm15, %v1894_v59, %v2022_v26  ;;  %v1934_v1 = vadd.f32 %v6736_v23, %v6785_v60  ;;  %v1937_v39 = vadd.f32 %v6742_v3, %v6785_v60 }
 0x209   : > { %5498 = vmatmul.mubr.msk.f32.gmra.mrb[72].mxu1 %vm2080_vm1, %v1045_v11  ;;  %v2017_v11 = vmul.f32 0.1, %v1873_v18  ;;  %vm1997_vm7 = vcmp.gt.f32.partialorder %v1921_v63, 0.0  ;;  %v1950_v3 = vadd.f32 %v6768_v6, %v6785_v60 }
 0x20a   : > { %5500 = vmatprep.mubr.msk.f32.mxu1 %vm2080_vm1, %v1046_v24  ;;  %v5285_v25 = vpop.f32.mrb[132].mxu0  ;;  %v1886_v24 = vadd.f32 %v6634_v13, %v6785_v60  ;;  %v2033_v23 = vmul.f32 0.1, %v1937_v39  ;;  %vm2001_vm11 = vcmp.gt.f32.partialorder %v1937_v39, 0.0 }
 0x20b   : > { %v5286_v42 = vpop.f32.mrb[133].mxu0 }
 0x20c   : > { %v6789_v27 = vadd.f32 %v5286_v42, %v5285_v25  ;;  %v5288_v29 = vpop.f32.mrb[134].mxu0  ;;  %v2048_v25 = vsel %vm1984_vm9, %v1870_v9, %v2016_v50  ;;  %v2020_v13 = vmul.f32 0.1, %v1886_v24  ;;  %vm1988_vm13 = vcmp.gt.f32.partialorder %v1886_v24, 0.0 }
 0x20d   : > { %5501 = vmatmul.mubr.msk.f32.gmra.mrb[74].mxu1 %vm2080_vm1, %v1047_v0  ;;  %v5289_v53 = vpop.f32.mrb[135].mxu0  ;;  %v2049_v0 = vsel %vm1985_vm10, %v1873_v18, %v2017_v11  ;;  %vm2000_vm10 = vcmp.gt.f32.partialorder %v1934_v1, 0.0 }
 0x20e   : > { %5503 = vmatprep.mubr.msk.f32.mxu1 %vm2080_vm1, %v1048_v47  ;;  %v6795_v2 = vadd.f32 %v5289_v53, %v5288_v29  ;;  %v2021_v47 = vmul.f32 0.1, %v1889_v49  ;;  %v1897_v53 = vadd.f32 %v6661_v56, %v6785_v60  ;;  %v2052_v19 = vsel %vm1988_vm13, %v1886_v24, %v2020_v13 }
 0x20f   : > { %v1910_v56 = vadd.f32 %v6688_v40, %v6785_v60  ;;  %v1953_v24 = vadd.f32 %v6774_v34, %v6785_v60  ;;  %v1958_v46 = vadd.f32 %v6789_v27, %v6785_v60  ;;  %vm2003_vm13 = vcmp.gt.f32.partialorder %v1945_v58, 0.0 }
 0x210   : > { %v2023_v48 = vmul.f32 0.1, %v1897_v53  ;;  %v2053_v15 = vsel %vm1989_vm14, %v1889_v49, %v2021_v47  ;;  %vm1991_vm0 = vcmp.gt.f32.partialorder %v1897_v53, 0.0  ;;  %vm2004_vm14 = vcmp.gt.f32.partialorder %v1950_v3, 0.0 }
 0x211   : > { %5504 = vmatmul.mubr.msk.f32.gmra.mrb[76].mxu1 %vm2080_vm1, %v1049_v54  ;;  %v1905_v54 = vadd.f32 %v6677_v41, %v6785_v60  ;;  %v2026_v9 = vmul.f32 0.1, %v1910_v56  ;;  %v1918_v41 = vadd.f32 %v6704_v4, %v6785_v60  ;;  %vm1994_vm4 = vcmp.gt.f32.partialorder %v1910_v56, 0.0 }
 0x212   : > { %5506 = vmatprep.mubr.msk.f32.mxu1 %vm2080_vm1, %v1050_v20  ;;  %v5291_v51 = vpop.f32.mrb[136].mxu0  ;;  %v2024_v20 = vmul.f32 0.1, %v1902_v45  ;;  %v2055_v52 = vsel %vm1991_vm0, %v1897_v53, %v2023_v48  ;;  %v2029_v4 = vmul.f32 0.1, %v1921_v63  ;;  %vm2005_vm15 = vcmp.gt.f32.partialorder %v1953_v24, 0.0 }
 0x213   : > { %v5292_v57 = vpop.f32.mrb[137].mxu0  ;;  %v2025_v12 = vmul.f32 0.1, %v1905_v54  ;;  %vm1993_vm3 = vcmp.gt.f32.partialorder %v1905_v54, 0.0  ;;  %vm1996_vm6 = vcmp.gt.f32.partialorder %v1918_v41, 0.0  ;;  %vm2006_vm0 = vcmp.gt.f32.partialorder %v1958_v46, 0.0 }
 0x214   : > { %v6807_v62 = vadd.f32 %v5292_v57, %v5291_v51  ;;  %v5294_v36 = vpop.f32.mrb[138].mxu0  ;;  %v1913_v51 = vadd.f32 %v6694_v5, %v6785_v60  ;;  %v2056_v57 = vsel %vm1992_vm2, %v1902_v45, %v2024_v20  ;;  %v1926_v5 = vadd.f32 %v6720_v44, %v6785_v60 }
 0x215   : > { %5507 = vmatmul.mubr.msk.f32.gmra.mrb[78].mxu1 %vm2080_vm1, %v1051_v28  ;;  %v5295_v7 = vpop.f32.mrb[139].mxu0  ;;  %v2057_v28 = vsel %vm1993_vm3, %v1905_v54, %v2025_v12  ;;  %v2037_v6 = vmul.f32 0.1, %v1953_v24  ;;  %v2038_v49 = vmul.f32 0.1, %v1958_v46 }
 0x216   : > { %5513 = vmatprep.mubr.msk.f32.mxu1 %vm2080_vm1, %v2044_v32  ;;  %v6813_v43 = vadd.f32 %v5295_v7, %v5294_v36  ;;  %v2027_v40 = vmul.f32 0.1, %v1913_v51  ;;  %v2028_v36 = vmul.f32 0.1, %v1918_v41  ;;  %v2058_v32 = vsel %vm1994_vm4, %v1910_v56, %v2026_v9 }
 0x217   : > { %vm1995_vm5 = vcmp.gt.f32.partialorder %v1913_v51, 0.0  ;;  %v1929_v7 = vadd.f32 %v6726_v33, %v6785_v60  ;;  %v2030_v18 = vmul.f32 0.1, %v1926_v5  ;;  %vm1998_vm8 = vcmp.gt.f32.partialorder %v1926_v5, 0.0 }
 0x218   : > { %v2059_v61 = vsel %vm1995_vm5, %v1913_v51, %v2027_v40  ;;  %v2060_v50 = vsel %vm1996_vm6, %v1918_v41, %v2028_v36  ;;  %v1942_v33 = vadd.f32 %v6752_v38, %v6785_v60  ;;  %v2035_v38 = vmul.f32 0.1, %v1945_v58 }
 0x219   : > { %5514 = vmatmul.mubr.msk.f32.vlgmr.msra.gmra.mrb[48].mxu1 %vm2080_vm1, %v2045_v16  ;;  %v2031_v44 = vmul.f32 0.1, %v1929_v7  ;;  %v2032_v16 = vmul.f32 0.1, %v1934_v1  ;;  %v2062_v11 = vsel %vm1998_vm8, %v1926_v5, %v2030_v18  ;;  %vm1999_vm9 = vcmp.gt.f32.partialorder %v1929_v7, 0.0 }
 0x21a   : > { %5516 = vmatprep.mubr.msk.f32.mxu1 %vm2080_vm1, %v2046_v10  ;;  %v5297_v8 = vpop.f32.mrb[140].mxu0  ;;  %v2061_v10 = vsel %vm1997_vm7, %v1921_v63, %v2029_v4  ;;  %vm2002_vm12 = vcmp.gt.f32.partialorder %v1942_v33, 0.0  ;;  %v2067_v37 = vsel %vm2003_vm13, %v1945_v58, %v2035_v38  ;;  %v1966_v34 = vadd.f32 %v6807_v62, %v6785_v60 }
 0x21b   : > { %v5298_v31 = vpop.f32.mrb[141].mxu0  ;;  %v2064_v17 = vsel %vm2000_vm10, %v1934_v1, %v2032_v16  ;;  %v1969_v13 = vadd.f32 %v6813_v43, %v6785_v60  ;;  %v2069_v59 = vsel %vm2005_vm15, %v1953_v24, %v2037_v6  ;;  %v2070_v47 = vsel %vm2006_vm0, %v1958_v46, %v2038_v49 }
 0x21c   : > { %v6823_v42 = vadd.f32 %v5298_v31, %v5297_v8  ;;  %v5300_v21 = vpop.f32.mrb[142].mxu0  ;;  %v2034_v8 = vmul.f32 0.1, %v1942_v33  ;;  %v2036_v31 = vmul.f32 0.1, %v1950_v3  ;;  %vm2008_vm3 = vcmp.gt.f32.partialorder %v1966_v34, 0.0 }
 0x21d   : > { %5517 = vmatmul.mubr.msk.f32.gmra.mrb[50].mxu1 %vm2080_vm1, %v2047_v35  ;;  %v5301_v30 = vpop.f32.mrb[143].mxu0  ;;  %v2063_v35 = vsel %vm1999_vm9, %v1929_v7, %v2031_v44  ;;  %v2041_v62 = vmul.f32 0.1, %v1969_v13  ;;  %vm2009_vm4 = vcmp.gt.f32.partialorder %v1969_v13, 0.0  ;;  %vm3117_vm7 = vcmask 23552  }
 0x21e   : > { %5519 = vmatprep.mubr.msk.f32.mxu1 %vm2080_vm1, %v2048_v25  ;;  %v6829_v29 = vadd.f32 %v5301_v30, %v5300_v21  ;;  %v2065_v25 = vsel %vm2001_vm11, %v1937_v39, %v2033_v23  ;;  %v2066_v21 = vsel %vm2002_vm12, %v1942_v33, %v2034_v8  ;;  %v1961_v30 = vadd.f32 %v6795_v2, %v6785_v60 }
 0x21f   : > { %v1974_v2 = vadd.f32 %v6823_v42, %v6785_v60  ;;  %v2073_v42 = vsel %vm2009_vm4, %v1969_v13, %v2041_v62 }
 0x220   : > { %v2039_v27 = vmul.f32 0.1, %v1961_v30  ;;  %vm2007_vm2 = vcmp.gt.f32.partialorder %v1961_v30, 0.0  ;;  %v1977_v53 = vadd.f32 %v6829_v29, %v6785_v60  ;;  %v6905_v60 = vld [vmem:[%s7857_s12] ss:$0 sm:$0xff] }
 0x221   : > { %5520 = vmatmul.mubr.msk.f32.gmra.mrb[52].mxu1 %vm2080_vm1, %v2049_v0  ;;  %v2068_v0 = vsel %vm2004_vm14, %v1950_v3, %v2036_v31  ;;  %v2042_v26 = vmul.f32 0.1, %v1974_v2  ;;  %vm2010_vm5 = vcmp.gt.f32.partialorder %v1974_v2, 0.0 }
 0x222   : > { %5522 = vmatprep.mubr.msk.f32.mxu1 %vm2080_vm1, %v2050_v14  ;;  %v2040_v14 = vmul.f32 0.1, %v1966_v34  ;;  %v2043_v43 = vmul.f32 0.1, %v1977_v53  ;;  %vm2011_vm6 = vcmp.gt.f32.partialorder %v1977_v53, 0.0 }
 0x224   : > { %v2072_v45 = vsel %vm2008_vm3, %v1966_v34, %v2040_v14  ;;  %v2075_v48 = vsel %vm2011_vm6, %v1977_v53, %v2043_v43 }
 0x225   : > { %5523 = vmatmul.mubr.msk.f32.gmra.mrb[54].mxu1 %vm2080_vm1, %v2051_v22  ;;  %v2071_v22 = vsel %vm2007_vm2, %v1961_v30, %v2039_v27 }
 0x226   : > { %5525 = vmatprep.mubr.msk.f32.mxu1 %vm2080_vm1, %v2052_v19  ;;  %v2074_v19 = vsel %vm2010_vm5, %v1974_v2, %v2042_v26 }
 0x229   : > { %5526 = vmatmul.mubr.msk.f32.gmra.mrb[56].mxu1 %vm2080_vm1, %v2053_v15 }
 0x22a   : > { %5528 = vmatprep.mubr.msk.f32.mxu1 %vm2080_vm1, %v2054_v55 }
 0x22d   : > { %5529 = vmatmul.mubr.msk.f32.gmra.mrb[58].mxu1 %vm2080_vm1, %v2055_v52 }
 0x22e   : > { %5531 = vmatprep.mubr.msk.f32.mxu1 %vm2080_vm1, %v2056_v57 }
 0x231   : > { %5532 = vmatmul.mubr.msk.f32.gmra.mrb[60].mxu1 %vm2080_vm1, %v2057_v28 }
 0x232   : > { %5534 = vmatprep.mubr.msk.f32.mxu1 %vm2080_vm1, %v2058_v32 }
 0x235   : > { %5535 = vmatmul.mubr.msk.f32.gmra.mrb[62].mxu1 %vm2080_vm1, %v2059_v61 }
 0x236   : > { %5537 = vmatprep.mubr.msk.f32.mxu1 %vm2080_vm1, %v2060_v50 }
 0x239   : > { %5538 = vmatmul.mubr.msk.f32.gmra.mrb[64].mxu1 %vm2080_vm1, %v2061_v10 }
 0x23a   : > { %5540 = vmatprep.mubr.msk.f32.mxu1 %vm2080_vm1, %v2062_v11 }
 0x23d   : > { %5541 = vmatmul.mubr.msk.f32.gmra.mrb[66].mxu1 %vm2080_vm1, %v2063_v35 }
 0x23e   : > { %5543 = vmatprep.mubr.msk.f32.mxu1 %vm2080_vm1, %v2064_v17 }
 0x241   : > { %5544 = vmatmul.mubr.msk.f32.gmra.mrb[68].mxu1 %vm2080_vm1, %v2065_v25 }
 0x242   : > { %5546 = vmatprep.mubr.msk.f32.mxu1 %vm2080_vm1, %v2066_v21 }
 0x245   : > { %5547 = vmatmul.mubr.msk.f32.gmra.mrb[70].mxu1 %vm2080_vm1, %v2067_v37 }
 0x246   : > { %5549 = vmatprep.mubr.msk.f32.mxu1 %vm2080_vm1, %v2068_v0 }
 0x249   : > { %5550 = vmatmul.mubr.msk.f32.gmra.mrb[72].mxu1 %vm2080_vm1, %v2069_v59 }
 0x24a   : > { %5552 = vmatprep.mubr.msk.f32.mxu1 %vm2080_vm1, %v2070_v47 }
 0x24d   : > { %5553 = vmatmul.mubr.msk.f32.gmra.mrb[74].mxu1 %vm2080_vm1, %v2071_v22 }
 0x24e   : > { %5555 = vmatprep.mubr.msk.f32.mxu1 %vm2080_vm1, %v2072_v45 }
 0x251   : > { %5556 = vmatmul.mubr.msk.f32.gmra.mrb[76].mxu1 %vm2080_vm1, %v2073_v42 }
 0x252   : > { %5558 = vmatprep.mubr.msk.f32.mxu1 %vm2080_vm1, %v2074_v19 }
 0x255   : > { %5559 = vmatmul.mubr.msk.f32.gmra.mrb[78].mxu1 %vm2080_vm1, %v2075_v48 }
 0x2ec   : > { %v5515_v29 = vpop.f32.mrb[48].mxu1 }
 0x2ed   : > { %v6908_v54 = vadd.f32 %v5515_v29, %v6905_v60  ;;  %v2887_v15 = vpop.f32.mrb[49].mxu1 }
 0x2ee   : > { %v6911_v20 = vadd.f32 %v6905_v60, %v2887_v15 }
 0x2ef   : > { %v3121_v56 = vsel %vm3117_vm7, %v6908_v54, -inf }
 0x2f0   : > { %3122 = vmax.xlane.f32.xlu0 %v3121_v56  ;;  %v5518_v55 = vpop.f32.mrb[50].mxu1  ;;  %v3118_v9 = vsel %vm3117_vm7, %v6911_v20, -inf }
 0x2f1   : > { %v6916_v12 = vadd.f32 %v5518_v55, %v6905_v60  ;;  %v2897_v51 = vpop.f32.mrb[51].mxu1 }
 0x2f2   : > { %v6919_v52 = vadd.f32 %v6905_v60, %v2897_v51 }
 0x2f3   : > { %v3127_v41 = vsel %vm3117_vm7, %v6916_v12, -inf }
 0x2f4   : > { %3119 = vmax.xlane.f32.xlu0 %v3118_v9  ;;  %3128 = vmax.xlane.f32.xlu1 %v3127_v41  ;;  %v5521_v57 = vpop.f32.mrb[52].mxu1  ;;  %v3124_v36 = vsel %vm3117_vm7, %v6919_v52, -inf }
 0x2f5   : > { %v2907_v40 = vpop.f32.mrb[53].mxu1  ;;  %v6929_v28 = vadd.f32 %v5521_v57, %v6905_v60 }
 0x2f6   : > { %v6926_v63 = vadd.f32 %v6905_v60, %v2907_v40 }
 0x2f7   : > { %v3133_v18 = vsel %vm3117_vm7, %v6929_v28, -inf }
 0x2f8   : > { %3125 = vmax.xlane.f32.xlu1 %v3124_v36  ;;  %v5524_v5 = vpop.f32.mrb[54].mxu1  ;;  %v3130_v32 = vsel %vm3117_vm7, %v6926_v63, -inf }
 0x2f9   : > { %3131 = vmax.xlane.f32.xlu0 %v3130_v32  ;;  %v2917_v4 = vpop.f32.mrb[55].mxu1  ;;  %v6939_v61 = vadd.f32 %v5524_v5, %v6905_v60 }
 0x2fa   : > { %v6936_v7 = vadd.f32 %v6905_v60, %v2917_v4 }
 0x2fb   : > { %v3139_v16 = vsel %vm3117_vm7, %v6939_v61, -inf }
 0x2fc   : > { %3134 = vmax.xlane.f32.xlu1 %v3133_v18  ;;  %v5527_v1 = vpop.f32.mrb[56].mxu1  ;;  %v3136_v50 = vsel %vm3117_vm7, %v6936_v7, -inf }
 0x2fd   : > { %3137 = vmax.xlane.f32.xlu0 %v3136_v50  ;;  %v2927_v44 = vpop.f32.mrb[57].mxu1  ;;  %v6949_v10 = vadd.f32 %v5527_v1, %v6905_v60 }
 0x2fe   : > { %v6946_v39 = vadd.f32 %v6905_v60, %v2927_v44 }
 0x2ff   : > { %v3145_v8 = vsel %vm3117_vm7, %v6949_v10, -inf }
 0x300   : > { %3140 = vmax.xlane.f32.xlu1 %v3139_v16  ;;  %v5530_v33 = vpop.f32.mrb[58].mxu1  ;;  %v3142_v11 = vsel %vm3117_vm7, %v6946_v39, -inf }
 0x301   : > { %3143 = vmax.xlane.f32.xlu0 %v3142_v11  ;;  %v2937_v23 = vpop.f32.mrb[59].mxu1  ;;  %v6959_v35 = vadd.f32 %v5530_v33, %v6905_v60 }
 0x302   : > { %v6956_v58 = vadd.f32 %v6905_v60, %v2937_v23 }
 0x303   : > { %v3151_v31 = vsel %vm3117_vm7, %v6959_v35, -inf }
 0x304   : > { %3146 = vmax.xlane.f32.xlu1 %v3145_v8  ;;  %v5533_v3 = vpop.f32.mrb[60].mxu1  ;;  %v3148_v17 = vsel %vm3117_vm7, %v6956_v58, -inf }
 0x305   : > { %3149 = vmax.xlane.f32.xlu0 %v3148_v17  ;;  %v2947_v38 = vpop.f32.mrb[61].mxu1  ;;  %v6969_v25 = vadd.f32 %v5533_v3, %v6905_v60 }
 0x306   : > { %v6966_v24 = vadd.f32 %v6905_v60, %v2947_v38 }
 0x307   : > { %v3157_v49 = vsel %vm3117_vm7, %v6969_v25, -inf }
 0x308   : > { %3152 = vmax.xlane.f32.xlu1 %v3151_v31  ;;  %v5536_v46 = vpop.f32.mrb[62].mxu1  ;;  %v3154_v21 = vsel %vm3117_vm7, %v6966_v24, -inf }
 0x309   : > { %3155 = vmax.xlane.f32.xlu0 %v3154_v21  ;;  %v2957_v6 = vpop.f32.mrb[63].mxu1  ;;  %v6979_v37 = vadd.f32 %v5536_v46, %v6905_v60 }
 0x30a   : > { %v6976_v30 = vadd.f32 %v6905_v60, %v2957_v6 }
 0x30b   : > { %v3163_v14 = vsel %vm3117_vm7, %v6979_v37, -inf }
 0x30c   : > { %3158 = vmax.xlane.f32.xlu1 %v3157_v49  ;;  %v5539_v34 = vpop.f32.mrb[64].mxu1  ;;  %v3160_v0 = vsel %vm3117_vm7, %v6976_v30, -inf }
 0x30d   : > { %3161 = vmax.xlane.f32.xlu0 %v3160_v0  ;;  %v2967_v27 = vpop.f32.mrb[65].mxu1  ;;  %v6989_v59 = vadd.f32 %v5539_v34, %v6905_v60 }
 0x30e   : > { %v6986_v13 = vadd.f32 %v6905_v60, %v2967_v27 }
 0x30f   : > { %v3169_v26 = vsel %vm3117_vm7, %v6989_v59, -inf }
 0x310   : > { %3164 = vmax.xlane.f32.xlu1 %v3163_v14  ;;  %v5542_v2 = vpop.f32.mrb[66].mxu1  ;;  %v3166_v47 = vsel %vm3117_vm7, %v6986_v13, -inf }
 0x311   : > { %3167 = vmax.xlane.f32.xlu0 %v3166_v47  ;;  %v2977_v62 = vpop.f32.mrb[67].mxu1  ;;  %v6999_v22 = vadd.f32 %v5542_v2, %v6905_v60 }
 0x312   : > { %v6996_v53 = vadd.f32 %v6905_v60, %v2977_v62 }
 0x313   : > { %v3175_v29 = vsel %vm3117_vm7, %v6999_v22, -inf }
 0x314   : > { %3170 = vmax.xlane.f32.xlu1 %v3169_v26  ;;  %v5545_v45 = vpop.f32.mrb[68].mxu1  ;;  %v3172_v43 = vsel %vm3117_vm7, %v6996_v53, -inf }
 0x315   : > { %3173 = vmax.xlane.f32.xlu0 %v3172_v43  ;;  %v2987_v42 = vpop.f32.mrb[69].mxu1  ;;  %v7009_v48 = vadd.f32 %v5545_v45, %v6905_v60 }
 0x316   : > { %v7006_v19 = vadd.f32 %v6905_v60, %v2987_v42 }
 0x317   : > { %v3181_v41 = vsel %vm3117_vm7, %v7009_v48, -inf }
 0x318   : > { %3176 = vmax.xlane.f32.xlu1 %v3175_v29  ;;  %v5548_v15 = vpop.f32.mrb[70].mxu1  ;;  %v3178_v56 = vsel %vm3117_vm7, %v7006_v19, -inf }
 0x319   : > { %3179 = vmax.xlane.f32.xlu0 %v3178_v56  ;;  %v2997_v55 = vpop.f32.mrb[71].mxu1  ;;  %v7019_v9 = vadd.f32 %v5548_v15, %v6905_v60 }
 0x31a   : > { %v7016_v51 = vadd.f32 %v6905_v60, %v2997_v55 }
 0x31b   : > { %v3187_v4 = vsel %vm3117_vm7, %v7019_v9, -inf }
 0x31c   : > { %3182 = vmax.xlane.f32.xlu1 %v3181_v41  ;;  %v5551_v57 = vpop.f32.mrb[72].mxu1  ;;  %v3184_v40 = vsel %vm3117_vm7, %v7016_v51, -inf }
 0x31d   : > { %3185 = vmax.xlane.f32.xlu0 %v3184_v40  ;;  %v3007_v36 = vpop.f32.mrb[73].mxu1  ;;  %v7029_v32 = vadd.f32 %v5551_v57, %v6905_v60 }
 0x31e   : > { %v7026_v5 = vadd.f32 %v6905_v60, %v3007_v36 }
 0x31f   : > { %v3193_v33 = vsel %vm3117_vm7, %v7029_v32, -inf }
 0x320   : > { %3188 = vmax.xlane.f32.xlu1 %v3187_v4  ;;  %v5554_v18 = vpop.f32.mrb[74].mxu1  ;;  %v3190_v1 = vsel %vm3117_vm7, %v7026_v5, -inf }
 0x321   : > { %3191 = vmax.xlane.f32.xlu0 %v3190_v1  ;;  %v3017_v50 = vpop.f32.mrb[75].mxu1  ;;  %v7039_v16 = vadd.f32 %v5554_v18, %v6905_v60 }
 0x322   : > { %v7036_v44 = vadd.f32 %v6905_v60, %v3017_v50 }
 0x323   : > { %v3199_v38 = vsel %vm3117_vm7, %v7039_v16, -inf }
 0x324   : > { %3194 = vmax.xlane.f32.xlu1 %v3193_v33  ;;  %v5557_v11 = vpop.f32.mrb[76].mxu1  ;;  %v3196_v23 = vsel %vm3117_vm7, %v7036_v44, -inf }
 0x325   : > { %3197 = vmax.xlane.f32.xlu0 %v3196_v23  ;;  %v3027_v8 = vpop.f32.mrb[77].mxu1  ;;  %v7049_v17 = vadd.f32 %v5557_v11, %v6905_v60 }
 0x326   : > { %v7046_v3 = vadd.f32 %v6905_v60, %v3027_v8 }
 0x327   : > { %v3205_v34 = vsel %vm3117_vm7, %v7049_v17, -inf }
 0x328   : > { %3200 = vmax.xlane.f32.xlu1 %v3199_v38  ;;  %v5560_v31 = vpop.f32.mrb[78].mxu1  ;;  %v3202_v46 = vsel %vm3117_vm7, %v7046_v3, -inf }
 0x329   : > { %v7056_v21 = vadd.f32 %v5560_v31, %v6905_v60  ;;  %3203 = vmax.xlane.f32.xlu0 %v3202_v46  ;;  %v3037_v6 = vpop.f32.mrb[79].mxu1 }
 0x32a   : > { %v7059_v49 = vadd.f32 %v6905_v60, %v3037_v6 }
 0x32b   : > { %v3211_v27 = vsel %vm3117_vm7, %v7056_v21, -inf }
 0x32c   : > { %3206 = vmax.xlane.f32.xlu1 %v3205_v34  ;;  %v3208_v0 = vsel %vm3117_vm7, %v7059_v49, -inf }
 0x32d   : > { %3209 = vmax.xlane.f32.xlu0 %v3208_v0 }
 0x330   : > { %3212 = vmax.xlane.f32.xlu1 %v3211_v27 }
 0x37d   : > { %v3123_v14 = vpop.xlane.xlu0 %3122 }
 0x37e   : > { %v3215_v2 = vsub.f32 %v6908_v54, %v3123_v14 }
 0x380   : > { %v3248_v47 = vmul.f32 1.442695, %v3215_v2 }
 0x381   : > { %v3120_v62 = vpop.xlane.xlu0 %3119  ;;  %v3129_v26 = vpop.xlane.xlu1 %3128 }
 0x382   : > { %5878 = vpow2.f32 %v3248_v47  ;;  %v3214_v60 = vsub.f32 %v6911_v20, %v3120_v62  ;;  %v3217_v45 = vsub.f32 %v6916_v12, %v3129_v26 }
 0x384   : > { %v3246_v43 = vmul.f32 1.442695, %v3214_v60  ;;  %v3252_v42 = vmul.f32 1.442695, %v3217_v45 }
 0x385   : > { %v3126_v29 = vpop.xlane.xlu1 %3125 }
 0x386   : > { %5880 = vpow2.f32 %v3246_v43  ;;  %v3216_v15 = vsub.f32 %v6919_v52, %v3126_v29  ;;  %v3132_v56 = vpop.xlane.xlu0 %3131 }
 0x387   : > { %5882 = vpow2.f32 %v3252_v42  ;;  %v3218_v55 = vsub.f32 %v6926_v63, %v3132_v56 }
 0x388   : > { %v3250_v41 = vmul.f32 1.442695, %v3216_v15 }
 0x389   : > { %v3254_v54 = vmul.f32 1.442695, %v3218_v55  ;;  %v3135_v57 = vpop.xlane.xlu1 %3134 }
 0x38a   : > { %5884 = vpow2.f32 %v3250_v41  ;;  %v3219_v40 = vsub.f32 %v6929_v28, %v3135_v57  ;;  %v3138_v36 = vpop.xlane.xlu0 %3137 }
 0x38b   : > { %v3220_v20 = vsub.f32 %v6936_v7, %v3138_v36  ;;  %5886 = vpow2.f32 %v3254_v54 }
 0x38c   : > { %v7074_v12 = vpop.eup %5878  ;;  %v3256_v4 = vmul.f32 1.442695, %v3219_v40 }
 0x38d   : > { %v3258_v18 = vmul.f32 1.442695, %v3220_v20  ;;  %v3141_v1 = vpop.xlane.xlu1 %3140  ;;  %v3313_v52 = vsel %vm3117_vm7, %v7074_v12, 0.0 }
 0x38e   : > { %5888 = vpow2.f32 %v3256_v4  ;;  %v3221_v63 = vsub.f32 %v6939_v61, %v3141_v1  ;;  %v3144_v50 = vpop.xlane.xlu0 %3143  ;;  %3314 = vadd.xlane.f32.xlu1 %v3313_v52 }
 0x38f   : > { %v3222_v33 = vsub.f32 %v6946_v39, %v3144_v50  ;;  %5890 = vpow2.f32 %v3258_v18 }
 0x390   : > { %v7080_v28 = vpop.eup %5880  ;;  %v3260_v7 = vmul.f32 1.442695, %v3221_v63 }
 0x391   : > { %v7082_v11 = vpop.eup %5882  ;;  %v3262_v23 = vmul.f32 1.442695, %v3222_v33  ;;  %v3147_v8 = vpop.xlane.xlu1 %3146  ;;  %v3310_v38 = vsel %vm3117_vm7, %v7080_v28, 0.0 }
 0x392   : > { %5892 = vpow2.f32 %v3260_v7  ;;  %v3223_v31 = vsub.f32 %v6949_v10, %v3147_v8  ;;  %v3150_v46 = vpop.xlane.xlu0 %3149  ;;  %v3319_v61 = vsel %vm3117_vm7, %v7082_v11, 0.0  ;;  %3311 = vadd.xlane.f32.xlu0 %v3310_v38 }
 0x393   : > { %v3224_v39 = vsub.f32 %v6956_v58, %v3150_v46  ;;  %3320 = vadd.xlane.f32.xlu1 %v3319_v61  ;;  %5894 = vpow2.f32 %v3262_v23 }
 0x394   : > { %v7090_v6 = vpop.eup %5884  ;;  %v3264_v34 = vmul.f32 1.442695, %v3223_v31 }
 0x395   : > { %v3266_v0 = vmul.f32 1.442695, %v3224_v39  ;;  %v3153_v27 = vpop.xlane.xlu1 %3152  ;;  %v3316_v14 = vsel %vm3117_vm7, %v7090_v6, 0.0  ;;  %v7094_v2 = vpop.eup %5886 }
 0x396   : > { %5896 = vpow2.f32 %v3264_v34  ;;  %v3225_v10 = vsub.f32 %v6959_v35, %v3153_v27  ;;  %v3156_v47 = vpop.xlane.xlu0 %3155  ;;  %3317 = vadd.xlane.f32.xlu0 %v3316_v14  ;;  %v3322_v42 = vsel %vm3117_vm7, %v7094_v2, 0.0 }
 0x397   : > { %v3226_v62 = vsub.f32 %v6966_v24, %v3156_v47  ;;  %5898 = vpow2.f32 %v3266_v0 }
 0x398   : > { %v7098_v58 = vpop.eup %5888  ;;  %v3268_v26 = vmul.f32 1.442695, %v3225_v10 }
 0x399   : > { %v3270_v60 = vmul.f32 1.442695, %v3226_v62  ;;  %v3159_v45 = vpop.xlane.xlu1 %3158  ;;  %v3325_v43 = vsel %vm3117_vm7, %v7098_v58, 0.0  ;;  %v7104_v29 = vpop.eup %5890 }
 0x39a   : > { %5900 = vpow2.f32 %v3268_v26  ;;  %v3227_v35 = vsub.f32 %v6969_v25, %v3159_v45  ;;  %v3162_v15 = vpop.xlane.xlu0 %3161  ;;  %3326 = vadd.xlane.f32.xlu1 %v3325_v43  ;;  %3323 = vadd.xlane.f32.xlu0 %v3322_v42  ;;  %v3328_v40 = vsel %vm3117_vm7, %v7104_v29, 0.0  ;;  %v6086_v26 = vmov 1  }
 0x39b   : > { %v3228_v24 = vsub.f32 %v6976_v30, %v3162_v15  ;;  %5902 = vpow2.f32 %v3270_v60  ;;  %5681 = vset.pattern.permute.xlu0 %v6086_v26 }
 0x39c   : > { %v7108_v56 = vpop.eup %5892  ;;  %v3272_v55 = vmul.f32 1.442695, %v3227_v35 }
 0x39d   : > { %v3274_v41 = vmul.f32 1.442695, %v3228_v24  ;;  %v3165_v54 = vpop.xlane.xlu1 %3164  ;;  %v3331_v57 = vsel %vm3117_vm7, %v7108_v56, 0.0  ;;  %v7114_v36 = vpop.eup %5894 }
 0x39e   : > { %5904 = vpow2.f32 %v3272_v55  ;;  %v3229_v25 = vsub.f32 %v6979_v37, %v3165_v54  ;;  %v3168_v20 = vpop.xlane.xlu0 %3167  ;;  %3332 = vadd.xlane.f32.xlu1 %v3331_v57  ;;  %3329 = vadd.xlane.f32.xlu0 %v3328_v40  ;;  %v3334_v50 = vsel %vm3117_vm7, %v7114_v36, 0.0 }
 0x39f   : > { %v3230_v30 = vsub.f32 %v6986_v13, %v3168_v20  ;;  %5906 = vpow2.f32 %v3274_v41 }
 0x3a0   : > { %v7118_v4 = vpop.eup %5896  ;;  %v3276_v18 = vmul.f32 1.442695, %v3229_v25 }
 0x3a1   : > { %v3278_v1 = vmul.f32 1.442695, %v3230_v30  ;;  %v3171_v52 = vpop.xlane.xlu1 %3170  ;;  %v3337_v63 = vsel %vm3117_vm7, %v7118_v4, 0.0  ;;  %v7124_v33 = vpop.eup %5898 }
 0x3a2   : > { %5908 = vpow2.f32 %v3276_v18  ;;  %v3231_v37 = vsub.f32 %v6989_v59, %v3171_v52  ;;  %v3174_v7 = vpop.xlane.xlu0 %3173  ;;  %3338 = vadd.xlane.f32.xlu1 %v3337_v63  ;;  %3335 = vadd.xlane.f32.xlu0 %v3334_v50  ;;  %v3340_v61 = vsel %vm3117_vm7, %v7124_v33, 0.0 }
 0x3a3   : > { %v3232_v13 = vsub.f32 %v6996_v53, %v3174_v7  ;;  %5910 = vpow2.f32 %v3278_v1 }
 0x3a4   : > { %v7128_v23 = vpop.eup %5900  ;;  %v3280_v8 = vmul.f32 1.442695, %v3231_v37 }
 0x3a5   : > { %v3282_v38 = vmul.f32 1.442695, %v3232_v13  ;;  %v3177_v31 = vpop.xlane.xlu1 %3176  ;;  %v3343_v46 = vsel %vm3117_vm7, %v7128_v23, 0.0  ;;  %v7134_v39 = vpop.eup %5902 }
 0x3a6   : > { %5912 = vpow2.f32 %v3280_v8  ;;  %v3233_v59 = vsub.f32 %v6999_v22, %v3177_v31  ;;  %v3180_v34 = vpop.xlane.xlu0 %3179  ;;  %3344 = vadd.xlane.f32.xlu1 %v3343_v46  ;;  %3341 = vadd.xlane.f32.xlu0 %v3340_v61  ;;  %v3346_v62 = vsel %vm3117_vm7, %v7134_v39, 0.0  ;;  %v6087_v22 = vmov 0  }
 0x3a7   : > { %v3234_v53 = vsub.f32 %v7006_v19, %v3180_v34  ;;  %5914 = vpow2.f32 %v3282_v38  ;;  %5680 = vset.pattern.permute.xlu1 %v6087_v22 }
 0x3a8   : > { %v7138_v0 = vpop.eup %5904  ;;  %v3284_v27 = vmul.f32 1.442695, %v3233_v59 }
 0x3a9   : > { %v3286_v14 = vmul.f32 1.442695, %v3234_v53  ;;  %v3183_v10 = vpop.xlane.xlu1 %3182  ;;  %v3349_v47 = vsel %vm3117_vm7, %v7138_v0, 0.0  ;;  %v7146_v60 = vpop.eup %5906 }
 0x3aa   : > { %5916 = vpow2.f32 %v3284_v27  ;;  %v3235_v19 = vsub.f32 %v7009_v48, %v3183_v10  ;;  %v3186_v45 = vpop.xlane.xlu0 %3185  ;;  %3350 = vadd.xlane.f32.xlu1 %v3349_v47  ;;  %3347 = vadd.xlane.f32.xlu0 %v3346_v62  ;;  %v3352_v41 = vsel %vm3117_vm7, %v7146_v60, 0.0 }
 0x3ab   : > { %v3236_v43 = vsub.f32 %v7016_v51, %v3186_v45  ;;  %5918 = vpow2.f32 %v3286_v14 }
 0x3ac   : > { %v7150_v42 = vpop.eup %5908  ;;  %v3288_v35 = vmul.f32 1.442695, %v3235_v19 }
 0x3ad   : > { %v3290_v15 = vmul.f32 1.442695, %v3236_v43  ;;  %v3189_v24 = vpop.xlane.xlu1 %3188  ;;  %v3355_v55 = vsel %vm3117_vm7, %v7150_v42, 0.0  ;;  %v7156_v54 = vpop.eup %5910 }
 0x3ae   : > { %5920 = vpow2.f32 %v3288_v35  ;;  %v3237_v48 = vsub.f32 %v7019_v9, %v3189_v24  ;;  %v3192_v57 = vpop.xlane.xlu0 %3191  ;;  %3356 = vadd.xlane.f32.xlu1 %v3355_v55  ;;  %3353 = vadd.xlane.f32.xlu0 %v3352_v41  ;;  %v3358_v1 = vsel %vm3117_vm7, %v7156_v54, 0.0 }
 0x3af   : > { %v3238_v51 = vsub.f32 %v7026_v5, %v3192_v57  ;;  %5922 = vpow2.f32 %v3290_v15 }
 0x3b0   : > { %v7160_v40 = vpop.eup %5912  ;;  %v3292_v25 = vmul.f32 1.442695, %v3237_v48 }
 0x3b1   : > { %v3294_v20 = vmul.f32 1.442695, %v3238_v51  ;;  %v3195_v30 = vpop.xlane.xlu1 %3194  ;;  %v3361_v18 = vsel %vm3117_vm7, %v7160_v40, 0.0  ;;  %v7166_v52 = vpop.eup %5914 }
 0x3b2   : > { %5924 = vpow2.f32 %v3292_v25  ;;  %v3239_v9 = vsub.f32 %v7029_v32, %v3195_v30  ;;  %v3198_v63 = vpop.xlane.xlu0 %3197  ;;  %3362 = vadd.xlane.f32.xlu1 %v3361_v18  ;;  %3359 = vadd.xlane.f32.xlu0 %v3358_v1  ;;  %v3364_v38 = vsel %vm3117_vm7, %v7166_v52, 0.0 }
 0x3b3   : > { %v3240_v5 = vsub.f32 %v7036_v44, %v3198_v63  ;;  %5926 = vpow2.f32 %v3294_v20 }
 0x3b4   : > { %v7170_v50 = vpop.eup %5916  ;;  %v3296_v37 = vmul.f32 1.442695, %v3239_v9 }
 0x3b5   : > { %v3298_v7 = vmul.f32 1.442695, %v3240_v5  ;;  %v3201_v13 = vpop.xlane.xlu1 %3200  ;;  %v3367_v8 = vsel %vm3117_vm7, %v7170_v50, 0.0  ;;  %v7176_v31 = vpop.eup %5918 }
 0x3b6   : > { %5928 = vpow2.f32 %v3296_v37  ;;  %v3241_v32 = vsub.f32 %v7039_v16, %v3201_v13  ;;  %v3204_v46 = vpop.xlane.xlu0 %3203  ;;  %3368 = vadd.xlane.f32.xlu1 %v3367_v8  ;;  %3365 = vadd.xlane.f32.xlu0 %v3364_v38  ;;  %v3370_v14 = vsel %vm3117_vm7, %v7176_v31, 0.0 }
 0x3b7   : > { %v3242_v44 = vsub.f32 %v7046_v3, %v3204_v46  ;;  %5930 = vpow2.f32 %v3298_v7 }
 0x3b8   : > { %v7180_v61 = vpop.eup %5920  ;;  %v3300_v59 = vmul.f32 1.442695, %v3241_v32 }
 0x3b9   : > { %v3302_v34 = vmul.f32 1.442695, %v3242_v44  ;;  %v3207_v53 = vpop.xlane.xlu1 %3206  ;;  %v3373_v27 = vsel %vm3117_vm7, %v7180_v61, 0.0  ;;  %v7186_v10 = vpop.eup %5922 }
 0x3ba   : > { %5932 = vpow2.f32 %v3300_v59  ;;  %v3243_v16 = vsub.f32 %v7049_v17, %v3207_v53  ;;  %3374 = vadd.xlane.f32.xlu1 %v3373_v27  ;;  %3371 = vadd.xlane.f32.xlu0 %v3370_v14  ;;  %v3210_v3 = vpop.xlane.xlu0 %3209  ;;  %v3376_v15 = vsel %vm3117_vm7, %v7186_v10, 0.0  ;;  %v6088_v53 = vmov 2  }
 0x3bb   : > { %v3244_v47 = vsub.f32 %v7059_v49, %v3210_v3  ;;  %5934 = vpow2.f32 %v3302_v34 }
 0x3bc   : > { %v7190_v62 = vpop.eup %5924  ;;  %v3304_v19 = vmul.f32 1.442695, %v3243_v16 }
 0x3bd   : > { %v3306_v45 = vmul.f32 1.442695, %v3244_v47  ;;  %v3213_v43 = vpop.xlane.xlu1 %3212  ;;  %v3379_v35 = vsel %vm3117_vm7, %v7190_v62, 0.0  ;;  %v7196_v24 = vpop.eup %5926 }
 0x3be   : > { %5936 = vpow2.f32 %v3304_v19  ;;  %v3245_v17 = vsub.f32 %v7056_v21, %v3213_v43  ;;  %3380 = vadd.xlane.f32.xlu1 %v3379_v35  ;;  %3377 = vadd.xlane.f32.xlu0 %v3376_v15  ;;  %v3382_v48 = vsel %vm3117_vm7, %v7196_v24, 0.0 }
 0x3bf   : > { %5938 = vpow2.f32 %v3306_v45 }
 0x3c0   : > { %v7199_v49 = vpop.eup %5928  ;;  %v3308_v55 = vmul.f32 1.442695, %v3245_v17 }
 0x3c1   : > { %v3385_v41 = vsel %vm3117_vm7, %v7199_v49, 0.0  ;;  %v7205_v57 = vpop.eup %5930 }
 0x3c2   : > { %5940 = vpow2.f32 %v3308_v55  ;;  %3386 = vadd.xlane.f32.xlu1 %v3385_v41  ;;  %3383 = vadd.xlane.f32.xlu0 %v3382_v48  ;;  %v3388_v25 = vsel %vm3117_vm7, %v7205_v57, 0.0 }
 0x3c4   : > { %v7207_v51 = vpop.eup %5932 }
 0x3c5   : > { %v3391_v21 = vsel %vm3117_vm7, %v7207_v51, 0.0  ;;  %v7213_v20 = vpop.eup %5934 }
 0x3c6   : > { %3392 = vadd.xlane.f32.xlu1 %v3391_v21  ;;  %3389 = vadd.xlane.f32.xlu0 %v3388_v25  ;;  %v3394_v1 = vsel %vm3117_vm7, %v7213_v20, 0.0 }
 0x3c8   : > { %v7215_v30 = vpop.eup %5936 }
 0x3c9   : > { %v3397_v18 = vsel %vm3117_vm7, %v7215_v30, 0.0  ;;  %v7221_v9 = vpop.eup %5938 }
 0x3ca   : > { %3398 = vadd.xlane.f32.xlu1 %v3397_v18  ;;  %3395 = vadd.xlane.f32.xlu0 %v3394_v1  ;;  %v3400_v37 = vsel %vm3117_vm7, %v7221_v9, 0.0 }
 0x3cc   : > { %v7223_v63 = vpop.eup %5940 }
 0x3cd   : > { %v3403_v5 = vsel %vm3117_vm7, %v7223_v63, 0.0 }
 0x3ce   : > { %3404 = vadd.xlane.f32.xlu1 %v3403_v5  ;;  %3401 = vadd.xlane.f32.xlu0 %v3400_v37 }
 0x41b   : > { %v3315_v7 = vpop.xlane.xlu1 %3314 }
 0x41c   : > { %5942 = vrcp.f32 %v3315_v7 }
 0x41f   : > { %v3312_v13 = vpop.xlane.xlu0 %3311 }
 0x420   : > { %5944 = vrcp.f32 %v3312_v13  ;;  %v3321_v8 = vpop.xlane.xlu1 %3320 }
 0x421   : > { %5946 = vrcp.f32 %v3321_v8 }
 0x423   : > { %v3318_v46 = vpop.xlane.xlu0 %3317 }
 0x426   : > { %v5943_v38 = vpop.eup %5942 }
 0x427   : > { %v3439_v32 = vmul.f32 %v5943_v38, %v7074_v12  ;;  %v3327_v44 = vpop.xlane.xlu1 %3326  ;;  %v3324_v27 = vpop.xlane.xlu0 %3323 }
 0x428   : > { %5948 = vrcp.f32 %v3327_v44 }
 0x429   : > { %3493 = vperm.xlu1 %5680, %v3439_v32   ;;  %3747 = vperm.xlu0 %5681, %v3439_v32   ;;  %5950 = vrcp.f32 %v3324_v27 }
 0x42a   : > { %v5945_v59 = vpop.eup %5944  ;;  %5952 = vrcp.f32 %v3318_v46 }
 0x42b   : > { %v3438_v34 = vmul.f32 %v5945_v59, %v7080_v28  ;;  %v5947_v14 = vpop.eup %5946  ;;  %v3333_v12 = vpop.xlane.xlu1 %3332 }
 0x42c   : > { %v3441_v28 = vmul.f32 %v5947_v14, %v7082_v11  ;;  %5954 = vrcp.f32 %v3333_v12  ;;  %v3330_v3 = vpop.xlane.xlu0 %3329 }
 0x42d   : > { %5682 = vset.pattern.permute.xlu1 %v6088_v53  ;;  %5683 = vset.pattern.permute.xlu0 %v6087_v22  ;;  %5956 = vrcp.f32 %v3330_v3 }
 0x42e   : > { %4067 = vperm.xlu1 %5682, %v3439_v32   ;;  %3488 = vperm.xlu0 %5683, %v3438_v34  }
 0x42f   : > { %v3339_v43 = vpop.xlane.xlu1 %3338 }
 0x430   : > { %5958 = vrcp.f32 %v3339_v43  ;;  %v3336_v55 = vpop.xlane.xlu0 %3335 }
 0x431   : > { %5960 = vrcp.f32 %v3336_v55 }
 0x432   : > { %5684 = vset.pattern.permute.xlu1 %v6086_v26  ;;  %5685 = vset.pattern.permute.xlu0 %v6088_v53  ;;  %v5949_v16 = vpop.eup %5948 }
 0x433   : > { %3743 = vperm.xlu1 %5684, %v3438_v34   ;;  %4063 = vperm.xlu0 %5685, %v3438_v34   ;;  %v3443_v47 = vmul.f32 %v5949_v16, %v7098_v58  ;;  %v5951_v19 = vpop.eup %5950 }
 0x434   : > { %v5953_v45 = vpop.eup %5952  ;;  %v3442_v35 = vmul.f32 %v5951_v19, %v7094_v2  ;;  %v3342_v48 = vpop.xlane.xlu0 %3341 }
 0x435   : > { %v3440_v15 = vmul.f32 %v5953_v45, %v7090_v6  ;;  %v3345_v6 = vpop.xlane.xlu1 %3344 }
 0x436   : > { %v5955_v11 = vpop.eup %5954  ;;  %5962 = vrcp.f32 %v3345_v6  ;;  %v7358_v6 = vld [vmem:[%s6269_s19 + $0x8] sm:$0xff] }
 0x437   : > { %5686 = vset.pattern.permute.xlu1 %v6087_v22  ;;  %4075 = vperm.xlu0 %5685, %v3441_v28   ;;  %v3445_v58 = vmul.f32 %v5955_v11, %v7108_v56  ;;  %v5957_v17 = vpop.eup %5956  ;;  %5964 = vrcp.f32 %v3342_v48 }
 0x438   : > { %3503 = vperm.xlu1 %5686, %v3441_v28   ;;  %v3444_v2 = vmul.f32 %v5957_v17, %v7104_v29  ;;  %v3348_v1 = vpop.xlane.xlu0 %3347 }
 0x439   : > { %v3351_v25 = vpop.xlane.xlu1 %3350 }
 0x43a   : > { %v5959_v41 = vpop.eup %5958  ;;  %5966 = vrcp.f32 %v3351_v25  ;;  %v6008_v25 = vld [vmem:[%s6362_s18 + $0x8] sm:$0xff] }
 0x43b   : > { %4083 = vperm.xlu0 %5685, %v3443_v47   ;;  %v3447_v56 = vmul.f32 %v5959_v41, %v7118_v4  ;;  %v5961_v29 = vpop.eup %5960  ;;  %5968 = vrcp.f32 %v3348_v1 }
 0x43c   : > { %5687 = vset.pattern.permute.xlu1 %v6086_v26  ;;  %v3446_v21 = vmul.f32 %v5961_v29, %v7114_v36  ;;  %v3354_v13 = vpop.xlane.xlu0 %3353  ;;  %v3713_v29 = vunpack.c.h.bf16 %v7358_v6 }
 0x43d   : > { %3755 = vperm.xlu1 %5687, %v3441_v28   ;;  %v3357_v37 = vpop.xlane.xlu1 %3356 }
 0x43e   : > { %5970 = vrcp.f32 %v3357_v37 }
 0x43f   : > { %5694 = vset.pattern.permute.xlu0 %v6086_v26  ;;  %5972 = vrcp.f32 %v3354_v13 }
 0x440   : > { %3759 = vperm.xlu0 %5694, %v3442_v35   ;;  %v5963_v4 = vpop.eup %5962  ;;  %v3360_v32 = vpop.xlane.xlu0 %3359 }
 0x441   : > { %5688 = vset.pattern.permute.xlu1 %v6087_v22  ;;  %v3449_v18 = vmul.f32 %v5963_v4, %v7128_v23  ;;  %v5965_v36 = vpop.eup %5964  ;;  %v3363_v38 = vpop.xlane.xlu1 %3362 }
 0x442   : > { %3498 = vperm.xlu1 %5688, %v3440_v15   ;;  %v7263_v5 = vmul.f32 %v5965_v36, %v7124_v33  ;;  %5974 = vrcp.f32 %v3363_v38  ;;  %v4001_v36 = vunpack.c.h.bf16 %v6008_v25 }
 0x443   : > { %5976 = vrcp.f32 %v3360_v32  ;;  %v6009_v32 = vld [vmem:[%s6210_s20] sm:$0xff] }
 0x444   : > { %5698 = vset.pattern.permute.xlu0 %v6088_v53  ;;  %v5967_v23 = vpop.eup %5966  ;;  %v3366_v44 = vpop.xlane.xlu0 %3365 }
 0x445   : > { %4091 = vperm.xlu0 %5698, %v3445_v58   ;;  %v7269_v7 = vmul.f32 %v5967_v23, %v7138_v0  ;;  %v5969_v33 = vpop.eup %5968 }
 0x446   : > { %5689 = vset.pattern.permute.xlu1 %v6086_v26  ;;  %v7278_v0 = vmul.f32 %v5969_v33, %v7134_v39  ;;  %v3369_v39 = vpop.xlane.xlu1 %3368 }
 0x447   : > { %3751 = vperm.xlu1 %5689, %v3440_v15   ;;  %5978 = vrcp.f32 %v3369_v39  ;;  %v7381_v39 = vunpack.c.h.bf16 %v6009_v32 }
 0x448   : > { %v5971_v8 = vpop.eup %5970  ;;  %v3372_v14 = vpop.xlane.xlu0 %3371  ;;  %5980 = vrcp.f32 %v3366_v44  ;;  %v7385_v44 = vld [vmem:[%s6269_s19] sm:$0xff] }
 0x449   : > { %5700 = vset.pattern.permute.xlu0 %v6086_v26  ;;  %v7284_v46 = vmul.f32 %v5971_v8, %v7150_v42  ;;  %v5973_v59 = vpop.eup %5972 }
 0x44a   : > { %3767 = vperm.xlu0 %5700, %v3444_v2   ;;  %v7293_v42 = vmul.f32 %v5973_v59, %v7146_v60  ;;  %v3375_v27 = vpop.xlane.xlu1 %3374  ;;  %v3710_v59 = vunpack.c.l.bf16 %v7385_v44 }
 0x44b   : > { %5690 = vset.pattern.permute.xlu1 %v6088_v53  ;;  %5982 = vrcp.f32 %v3375_v27 }
 0x44c   : > { %4071 = vperm.xlu1 %5690, %v3440_v15   ;;  %v5975_v34 = vpop.eup %5974  ;;  %v7303_v28 = vpop.xlane.xlu0 %3377  ;;  %5984 = vrcp.f32 %v3372_v14 }
 0x44d   : > { %v7299_v12 = vmul.f32 %v5975_v34, %v7160_v40  ;;  %v5977_v16 = vpop.eup %5976  ;;  %v3711_v34 = vunpack.c.h.bf16 %v7385_v44 }
 0x44e   : > { %5702 = vset.pattern.permute.xlu0 %v6087_v22  ;;  %v3381_v60 = vpop.xlane.xlu1 %3380 }
 0x44f   : > { %3533 = vperm.xlu0 %5702, %v3447_v56   ;;  %5986 = vrcp.f32 %v3381_v60  ;;  %v6011_v60 = vld [vmem:[%s6362_s18] sm:$0xff] }
 0x450   : > { %5691 = vset.pattern.permute.xlu1 %v6087_v22  ;;  %v7312_v3 = vpop.xlane.xlu0 %3383  ;;  %5988 = vrcp.f32 %v7303_v28 }
 0x451   : > { %3513 = vperm.xlu1 %5691, %v3443_v47   ;;  %v5979_v19 = vpop.eup %5978 }
 0x452   : > { %v7310_v40 = vpop.xlane.xlu1 %3386  ;;  %v5981_v15 = vpop.eup %5980 }
 0x453   : > { %5704 = vset.pattern.permute.xlu0 %v6088_v53  ;;  %5990 = vrcp.f32 %v7310_v40 }
 0x454   : > { %4099 = vperm.xlu0 %5704, %v3447_v56   ;;  %v7324_v43 = vpop.xlane.xlu0 %3389  ;;  %5992 = vrcp.f32 %v7312_v3 }
 0x455   : > { %5692 = vset.pattern.permute.xlu1 %v6086_v26 }
 0x456   : > { %3763 = vperm.xlu1 %5692, %v3443_v47   ;;  %v7316_v47 = vmul.f32 %v5977_v16, %v7156_v54  ;;  %v7322_v45 = vpop.xlane.xlu1 %3392  ;;  %v3998_v16 = vunpack.c.l.bf16 %v6011_v60 }
 0x457   : > { %5994 = vrcp.f32 %v7322_v45 }
 0x458   : > { %5706 = vset.pattern.permute.xlu0 %v6086_v26  ;;  %v7335_v11 = vpop.xlane.xlu0 %3395  ;;  %5996 = vrcp.f32 %v7324_v43 }
 0x459   : > { %3775 = vperm.xlu0 %5706, %v3446_v21  }
 0x45a   : > { %5693 = vset.pattern.permute.xlu1 %v6087_v22  ;;  %v7333_v54 = vpop.xlane.xlu1 %3398 }
 0x45b   : > { %3508 = vperm.xlu1 %5693, %v3442_v35   ;;  %5998 = vrcp.f32 %v7333_v54 }
 0x45c   : > { %v7347_v55 = vpop.xlane.xlu0 %3401  ;;  %6000 = vrcp.f32 %v7335_v11 }
 0x45d   : > { %5708 = vset.pattern.permute.xlu0 %v6087_v22 }
 0x45e   : > { %3543 = vperm.xlu0 %5708, %v3449_v18   ;;  %v7345_v17 = vpop.xlane.xlu1 %3404 }
 0x45f   : > { %5695 = vset.pattern.permute.xlu1 %v6088_v53  ;;  %6002 = vrcp.f32 %v7345_v17 }
 0x460   : > { %4079 = vperm.xlu1 %5695, %v3442_v35   ;;  %v7327_v35 = vmul.f32 %v5979_v19, %v7170_v50  ;;  %v7342_v50 = vmul.f32 %v5981_v15, %v7166_v52  ;;  %v3999_v19 = vunpack.c.h.bf16 %v6011_v60  ;;  %6004 = vrcp.f32 %v7347_v55 }
 0x462   : > { %5710 = vset.pattern.permute.xlu0 %v6088_v53 }
 0x463   : > { %4107 = vperm.xlu0 %5710, %v3449_v18  }
 0x464   : > { %5696 = vset.pattern.permute.xlu1 %v6087_v22 }
 0x465   : > { %3523 = vperm.xlu1 %5696, %v3445_v58  }
 0x467   : > { %5712 = vset.pattern.permute.xlu0 %v6086_v26 }
 0x468   : > { %3783 = vperm.xlu0 %5712, %v7263_v5  }
 0x469   : > { %5697 = vset.pattern.permute.xlu1 %v6086_v26 }
 0x46a   : > { %3771 = vperm.xlu1 %5697, %v3445_v58   ;;  %v5983_v58 = vpop.eup %5982 }
 0x46b   : > { %v7363_v48 = vmul.f32 %v5983_v58, %v7180_v61  ;;  %v5985_v33 = vpop.eup %5984 }
 0x46c   : > { %5714 = vset.pattern.permute.xlu0 %v6087_v22  ;;  %v7399_v15 = vmul.f32 %v5985_v33, %v7176_v31 }
 0x46d   : > { %3553 = vperm.xlu0 %5714, %v7269_v7  }
 0x46e   : > { %5699 = vset.pattern.permute.xlu1 %v6087_v22 }
 0x46f   : > { %3518 = vperm.xlu1 %5699, %v3444_v2  }
 0x471   : > { %5716 = vset.pattern.permute.xlu0 %v6088_v53 }
 0x472   : > { %4115 = vperm.xlu0 %5716, %v7269_v7  }
 0x473   : > { %5701 = vset.pattern.permute.xlu1 %v6088_v53 }
 0x474   : > { %4087 = vperm.xlu1 %5701, %v3444_v2   ;;  %v6006_v2 = vld [vmem:[%s6210_s20 + $0x8] sm:$0xff] }
 0x475   : > { %v7353_v41 = vunpack.c.l.bf16 %v6006_v2  ;;  %v7355_v52 = vunpack.c.h.bf16 %v6006_v2 }
 0x476   : > { %5718 = vset.pattern.permute.xlu0 %v6086_v26 }
 0x477   : > { %3791 = vperm.xlu0 %5718, %v7278_v0  }
 0x478   : > { %5703 = vset.pattern.permute.xlu1 %v6086_v26 }
 0x479   : > { %3779 = vperm.xlu1 %5703, %v3447_v56   ;;  %v3712_v56 = vunpack.c.l.bf16 %v7358_v6 }
 0x47b   : > { %5720 = vset.pattern.permute.xlu0 %v6087_v22 }
 0x47c   : > { %3563 = vperm.xlu0 %5720, %v7284_v46  }
 0x47d   : > { %5705 = vset.pattern.permute.xlu1 %v6087_v22 }
 0x47e   : > { %3528 = vperm.xlu1 %5705, %v3446_v21  }
 0x480   : > { %5722 = vset.pattern.permute.xlu0 %v6088_v53 }
 0x481   : > { %4123 = vperm.xlu0 %5722, %v7284_v46  }
 0x482   : > { %5707 = vset.pattern.permute.xlu1 %v6088_v53 }
 0x483   : > { %4095 = vperm.xlu1 %5707, %v3446_v21  }
 0x485   : > { %5724 = vset.pattern.permute.xlu0 %v6086_v26 }
 0x486   : > { %3799 = vperm.xlu0 %5724, %v7293_v42  }
 0x487   : > { %5709 = vset.pattern.permute.xlu1 %v6086_v26 }
 0x488   : > { %3787 = vperm.xlu1 %5709, %v3449_v18   ;;  %v4000_v18 = vunpack.c.l.bf16 %v6008_v25 }
 0x48a   : > { %5726 = vset.pattern.permute.xlu0 %v6087_v22 }
 0x48b   : > { %3573 = vperm.xlu0 %5726, %v7299_v12  }
 0x48c   : > { %5711 = vset.pattern.permute.xlu1 %v6087_v22 }
 0x48d   : > { %3538 = vperm.xlu1 %5711, %v7263_v5  }
 0x48f   : > { %5728 = vset.pattern.permute.xlu0 %v6088_v53 }
 0x490   : > { %4131 = vperm.xlu0 %5728, %v7299_v12  }
 0x491   : > { %5713 = vset.pattern.permute.xlu1 %v6088_v53 }
 0x492   : > { %4103 = vperm.xlu1 %5713, %v7263_v5  }
 0x494   : > { %5730 = vset.pattern.permute.xlu0 %v6086_v26 }
 0x495   : > { %3807 = vperm.xlu0 %5730, %v7316_v47  }
 0x496   : > { %5715 = vset.pattern.permute.xlu1 %v6086_v26 }
 0x497   : > { %3795 = vperm.xlu1 %5715, %v7269_v7  }
 0x499   : > { %5732 = vset.pattern.permute.xlu0 %v6087_v22 }
 0x49a   : > { %3583 = vperm.xlu0 %5732, %v7327_v35  }
 0x49b   : > { %5717 = vset.pattern.permute.xlu1 %v6087_v22 }
 0x49c   : > { %3548 = vperm.xlu1 %5717, %v7278_v0  }
 0x49e   : > { %5734 = vset.pattern.permute.xlu0 %v6088_v53 }
 0x49f   : > { %4139 = vperm.xlu0 %5734, %v7327_v35  }
 0x4a0   : > { %5719 = vset.pattern.permute.xlu1 %v6088_v53 }
 0x4a1   : > { %4111 = vperm.xlu1 %5719, %v7278_v0  }
 0x4a3   : > { %5736 = vset.pattern.permute.xlu0 %v6086_v26 }
 0x4a4   : > { %3815 = vperm.xlu0 %5736, %v7342_v50  }
 0x4a5   : > { %5721 = vset.pattern.permute.xlu1 %v6086_v26 }
 0x4a6   : > { %3803 = vperm.xlu1 %5721, %v7284_v46   ;;  %v7379_v46 = vunpack.c.l.bf16 %v6009_v32 }
 0x4a8   : > { %v3494_v21 = vpop.permute.xlu1 %3493  ;;  %5738 = vset.pattern.permute.xlu0 %v6087_v22  ;;  %v3748_v4 = vpop.permute.xlu0 %3747 }
 0x4a9   : > { %3593 = vperm.xlu0 %5738, %v7363_v48   ;;  %v3648_v1 = vmul.f32 %v3494_v21, %v7353_v41  ;;  %v3649_v5 = vmul.f32 %v3494_v21, %v7355_v52  ;;  %v3872_v23 = vmul.f32 %v3748_v4, %v3712_v56  ;;  %v3873_v61 = vmul.f32 %v3748_v4, %v3713_v29  ;;  %v5987_v21 = vpop.eup %5986 }
 0x4aa   : > { %5723 = vset.pattern.permute.xlu1 %v6087_v22 }
 0x4ab   : > { %3558 = vperm.xlu1 %5723, %v7293_v42   ;;  %v3936_v13 = vadd.f32 %v3872_v23, %v3648_v1  ;;  %v3937_v0 = vadd.f32 %v3873_v61, %v3649_v5  ;;  %v7414_v61 = vmul.f32 %v5987_v21, %v7190_v62 }
 0x4ad   : > { %v4068_v37 = vpop.permute.xlu1 %4067  ;;  %5740 = vset.pattern.permute.xlu0 %v6088_v53  ;;  %v3489_v7 = vpop.permute.xlu0 %3488 }
 0x4ae   : > { %v4192_v8 = vmul.f32 %v4068_v37, %v4000_v18  ;;  %v4193_v38 = vmul.f32 %v4068_v37, %v4001_v36  ;;  %4147 = vperm.xlu0 %5740, %v7363_v48   ;;  %v3646_v4 = vmul.f32 %v3489_v7, %v7379_v46  ;;  %v3647_v25 = vmul.f32 %v3489_v7, %v7381_v39 }
 0x4af   : > { %5725 = vset.pattern.permute.xlu1 %v6088_v53 }
 0x4b0   : > { %v4256_v27 = vadd.f32 %v4192_v8, %v3936_v13  ;;  %v4257_v14 = vadd.f32 %v4193_v38, %v3937_v0  ;;  %4119 = vperm.xlu1 %5725, %v7293_v42   ;;  %v5989_v38 = vpop.eup %5988 }
 0x4b1   : > { %v7438_v21 = vmul.f32 %v5989_v38, %v7186_v10 }
 0x4b2   : > { %v4936_v58 = vpack.c.bf16 %v4257_v14, %v4256_v27  ;;  %v3744_v2 = vpop.permute.xlu1 %3743  ;;  %5742 = vset.pattern.permute.xlu0 %v6086_v26  ;;  %v4064_v42 = vpop.permute.xlu0 %4063 }
 0x4b3   : > { %v3870_v18 = vmul.f32 %v3744_v2, %v3710_v59  ;;  %v3871_v36 = vmul.f32 %v3744_v2, %v3711_v34  ;;  %3823 = vperm.xlu0 %5742, %v7399_v15   ;;  %v4190_v1 = vmul.f32 %v4064_v42, %v3998_v16  ;;  %v4191_v5 = vmul.f32 %v4064_v42, %v3999_v19 }
 0x4b4   : > { %4511 = vst [vmem:[%s7395_s22 + $0x8] sm:$0xff] %v4936_v58  ;;  %5727 = vset.pattern.permute.xlu1 %v6086_v26 }
 0x4b5   : > { %v3934_v31 = vadd.f32 %v3870_v18, %v3646_v4  ;;  %v3935_v28 = vadd.f32 %v3871_v36, %v3647_v25  ;;  %3811 = vperm.xlu1 %5727, %v7299_v12   ;;  %v6012_v12 = vld [vmem:[%s6362_s18 + $0x18] sm:$0xff] }
 0x4b6   : > { %v4076_v23 = vpop.permute.xlu0 %4075  ;;  %v4004_v62 = vunpack.c.l.bf16 %v6012_v12  ;;  %v4005_v8 = vunpack.c.h.bf16 %v6012_v12 }
 0x4b7   : > { %v4254_v37 = vadd.f32 %v4190_v1, %v3934_v31  ;;  %v4255_v7 = vadd.f32 %v4191_v5, %v3935_v28  ;;  %v3504_v33 = vpop.permute.xlu1 %3503  ;;  %5744 = vset.pattern.permute.xlu0 %v6087_v22 }
 0x4b8   : > { %3603 = vperm.xlu0 %5744, %v7414_v61   ;;  %v3652_v27 = vmul.f32 %v3504_v33, %v7353_v41  ;;  %v3653_v40 = vmul.f32 %v3504_v33, %v7355_v52  ;;  %v4196_v16 = vmul.f32 %v4076_v23, %v4004_v62  ;;  %v4197_v19 = vmul.f32 %v4076_v23, %v4005_v8 }
 0x4b9   : > { %v4935_v13 = vpack.c.bf16 %v4255_v7, %v4254_v37  ;;  %5729 = vset.pattern.permute.xlu1 %v6087_v22 }
 0x4ba   : > { %3568 = vperm.xlu1 %5729, %v7316_v47   ;;  %v7421_v0 = vpop.permute.xlu0 %4083 }
 0x4bb   : > { %4510 = vst [vmem:[%s7395_s22] sm:$0xff] %v4935_v13 }
 0x4bc   : > { %v3756_v32 = vpop.permute.xlu1 %3755  ;;  %5746 = vset.pattern.permute.xlu0 %v6088_v53 }
 0x4bd   : > { %v3876_v14 = vmul.f32 %v3756_v32, %v3712_v56  ;;  %v3877_v60 = vmul.f32 %v3756_v32, %v3713_v29  ;;  %4155 = vperm.xlu0 %5746, %v7414_v61   ;;  %v5991_v29 = vpop.eup %5990  ;;  %v7480_v32 = vld [vmem:[%s6269_s19 + $0x18] sm:$0xff] }
 0x4be   : > { %5731 = vset.pattern.permute.xlu1 %v6088_v53  ;;  %v7449_v10 = vmul.f32 %v5991_v29, %v7199_v49  ;;  %v7507_v29 = vld [vmem:[%s6269_s19 + $0x10] sm:$0xff] }
 0x4bf   : > { %v3940_v58 = vadd.f32 %v3876_v14, %v3652_v27  ;;  %v3941_v2 = vadd.f32 %v3877_v60, %v3653_v40  ;;  %4127 = vperm.xlu1 %5731, %v7316_v47   ;;  %v7435_v42 = vpop.permute.xlu0 %3759  ;;  %v3717_v27 = vunpack.c.h.bf16 %v7480_v32  ;;  %v6015_v40 = vld [vmem:[%s6362_s18 + $0x28] sm:$0xff] }
 0x4c0   : > { %v4008_v14 = vunpack.c.l.bf16 %v6015_v40  ;;  %v4009_v60 = vunpack.c.h.bf16 %v6015_v40 }
 0x4c1   : > { %v4260_v56 = vadd.f32 %v4196_v16, %v3940_v58  ;;  %v4261_v4 = vadd.f32 %v4197_v19, %v3941_v2  ;;  %v3499_v6 = vpop.permute.xlu1 %3498  ;;  %5748 = vset.pattern.permute.xlu0 %v6086_v26 }
 0x4c2   : > { %3831 = vperm.xlu0 %5748, %v7438_v21   ;;  %v3650_v1 = vmul.f32 %v3499_v6, %v7379_v46  ;;  %v3651_v45 = vmul.f32 %v3499_v6, %v7381_v39  ;;  %v4201_v54 = vmul.f32 %v7421_v0, %v4009_v60 }
 0x4c3   : > { %v4938_v25 = vpack.c.bf16 %v4261_v4, %v4260_v56  ;;  %5733 = vset.pattern.permute.xlu1 %v6086_v26 }
 0x4c4   : > { %3819 = vperm.xlu1 %5733, %v7327_v35   ;;  %v7445_v47 = vpop.permute.xlu0 %4091  ;;  %v6013_v35 = vld [vmem:[%s6362_s18 + $0x10] sm:$0xff] }
 0x4c5   : > { %4513 = vst [vmem:[%s7395_s22 + $0x18] sm:$0xff] %v4938_v25  ;;  %v4002_v31 = vunpack.c.l.bf16 %v6013_v35  ;;  %v4003_v28 = vunpack.c.h.bf16 %v6013_v35  ;;  %v3714_v25 = vunpack.c.l.bf16 %v7507_v29 }
 0x4c6   : > { %v3752_v18 = vpop.permute.xlu1 %3751  ;;  %5750 = vset.pattern.permute.xlu0 %v6087_v22 }
 0x4c7   : > { %3613 = vperm.xlu0 %5750, %v7449_v10   ;;  %v3874_v3 = vmul.f32 %v3752_v18, %v3710_v59  ;;  %v3875_v36 = vmul.f32 %v3752_v18, %v3711_v34  ;;  %v5993_v59 = vpop.eup %5992  ;;  %v3715_v18 = vunpack.c.h.bf16 %v7507_v29 }
 0x4c8   : > { %5735 = vset.pattern.permute.xlu1 %v6087_v22  ;;  %v7472_v12 = vmul.f32 %v5993_v59, %v7196_v24  ;;  %v5995_v38 = vpop.eup %5994 }
 0x4c9   : > { %3578 = vperm.xlu1 %5735, %v7342_v50   ;;  %v7461_v49 = vpop.permute.xlu0 %3767  ;;  %v3938_v23 = vadd.f32 %v3874_v3, %v3650_v1  ;;  %v3939_v44 = vadd.f32 %v3875_v36, %v3651_v45  ;;  %v7489_v43 = vmul.f32 %v5995_v38, %v7207_v51  ;;  %v4200_v51 = vmul.f32 %v7421_v0, %v4008_v14  ;;  %v6017_v0 = vld [vmem:[%s6362_s18 + $0x20] sm:$0xff] }
 0x4ca   : > { %v4007_v59 = vunpack.c.h.bf16 %v6017_v0 }
 0x4cb   : > { %v4072_v5 = vpop.permute.xlu1 %4071  ;;  %5752 = vset.pattern.permute.xlu0 %v6088_v53 }
 0x4cc   : > { %v4194_v34 = vmul.f32 %v4072_v5, %v4002_v31  ;;  %v4195_v37 = vmul.f32 %v4072_v5, %v4003_v28  ;;  %4163 = vperm.xlu0 %5752, %v7449_v10   ;;  %v5997_v31 = vpop.eup %5996  ;;  %v4006_v28 = vunpack.c.l.bf16 %v6017_v0 }
 0x4cd   : > { %5737 = vset.pattern.permute.xlu1 %v6088_v53 }
 0x4ce   : > { %v4258_v7 = vadd.f32 %v4194_v34, %v3938_v23  ;;  %v4259_v33 = vadd.f32 %v4195_v37, %v3939_v44  ;;  %4135 = vperm.xlu1 %5737, %v7342_v50   ;;  %v7469_v13 = vpop.permute.xlu0 %3533  ;;  %v3716_v50 = vunpack.c.l.bf16 %v7480_v32  ;;  %v3878_v44 = vmul.f32 %v7435_v42, %v3714_v25 }
 0x4cf   : > { %v3879_v34 = vmul.f32 %v7435_v42, %v3715_v18  ;;  %v7528_v37 = vmul.f32 %v5997_v31, %v7205_v57 }
 0x4d0   : > { %v4937_v62 = vpack.c.bf16 %v4259_v33, %v4258_v7  ;;  %v3514_v8 = vpop.permute.xlu1 %3513  ;;  %5754 = vset.pattern.permute.xlu0 %v6086_v26  ;;  %v5999_v7 = vpop.eup %5998 }
 0x4d1   : > { %3839 = vperm.xlu0 %5754, %v7472_v12   ;;  %v3656_v19 = vmul.f32 %v3514_v8, %v7353_v41  ;;  %v3657_v58 = vmul.f32 %v3514_v8, %v7355_v52  ;;  %v7538_v11 = vmul.f32 %v5999_v7, %v7215_v30 }
 0x4d2   : > { %4512 = vst [vmem:[%s7395_s22 + $0x10] sm:$0xff] %v4937_v62  ;;  %5739 = vset.pattern.permute.xlu1 %v6086_v26 }
 0x4d3   : > { %3827 = vperm.xlu1 %5739, %v7363_v48   ;;  %v7485_v24 = vpop.permute.xlu0 %4099 }
 0x4d5   : > { %v3764_v16 = vpop.permute.xlu1 %3763  ;;  %5756 = vset.pattern.permute.xlu0 %v6087_v22 }
 0x4d6   : > { %v3880_v48 = vmul.f32 %v3764_v16, %v3716_v50  ;;  %v3881_v2 = vmul.f32 %v3764_v16, %v3717_v27  ;;  %3623 = vperm.xlu0 %5756, %v7489_v43   ;;  %v6018_v16 = vld [vmem:[%s6362_s18 + $0x38] sm:$0xff] }
 0x4d7   : > { %5741 = vset.pattern.permute.xlu1 %v6087_v22 }
 0x4d8   : > { %v3944_v56 = vadd.f32 %v3880_v48, %v3656_v19  ;;  %v3945_v4 = vadd.f32 %v3881_v2, %v3657_v58  ;;  %3588 = vperm.xlu1 %5741, %v7399_v15   ;;  %v7504_v6 = vpop.permute.xlu0 %3775  ;;  %v4013_v19 = vunpack.c.h.bf16 %v6018_v16  ;;  %v6001_v58 = vpop.eup %6000 }
 0x4da   : > { %v4264_v3 = vadd.f32 %v4200_v51, %v3944_v56  ;;  %v4265_v36 = vadd.f32 %v4201_v54, %v3945_v4  ;;  %v3509_v35 = vpop.permute.xlu1 %3508  ;;  %5758 = vset.pattern.permute.xlu0 %v6088_v53  ;;  %v4205_v56 = vmul.f32 %v7445_v47, %v4013_v19 }
 0x4db   : > { %4171 = vperm.xlu0 %5758, %v7489_v43   ;;  %v3654_v45 = vmul.f32 %v3509_v35, %v7379_v46  ;;  %v3655_v5 = vmul.f32 %v3509_v35, %v7381_v39  ;;  %v6019_v35 = vld [vmem:[%s6362_s18 + $0x30] sm:$0xff] }
 0x4dc   : > { %v4940_v1 = vpack.c.bf16 %v4265_v36, %v4264_v3  ;;  %5743 = vset.pattern.permute.xlu1 %v6088_v53 }
 0x4dd   : > { %4143 = vperm.xlu1 %5743, %v7399_v15   ;;  %v7518_v23 = vpop.permute.xlu0 %3543  ;;  %v3942_v15 = vadd.f32 %v3878_v44, %v3654_v45  ;;  %v3943_v62 = vadd.f32 %v3879_v34, %v3655_v5 }
 0x4de   : > { %4515 = vst [vmem:[%s7395_s22 + $0x28] sm:$0xff] %v4940_v1  ;;  %v3883_v1 = vmul.f32 %v7461_v49, %v3715_v18 }
 0x4df   : > { %v4080_v33 = vpop.permute.xlu1 %4079  ;;  %5760 = vset.pattern.permute.xlu0 %v6086_v26 }
 0x4e0   : > { %v4198_v8 = vmul.f32 %v4080_v33, %v4006_v28  ;;  %v4199_v38 = vmul.f32 %v4080_v33, %v4007_v59  ;;  %3847 = vperm.xlu0 %5760, %v7528_v37   ;;  %v3882_v28 = vmul.f32 %v7461_v49, %v3714_v25  ;;  %v6020_v25 = vld [vmem:[%s6210_s20 + $0x18] sm:$0xff] }
 0x4e1   : > { %5745 = vset.pattern.permute.xlu1 %v6086_v26  ;;  %v7587_v29 = vunpack.c.l.bf16 %v6020_v25  ;;  %v7589_v49 = vunpack.c.h.bf16 %v6020_v25 }
 0x4e2   : > { %v4262_v42 = vadd.f32 %v4198_v8, %v3942_v15  ;;  %v4263_v40 = vadd.f32 %v4199_v38, %v3943_v62  ;;  %3835 = vperm.xlu1 %5745, %v7414_v61   ;;  %v7535_v57 = vpop.permute.xlu0 %4107  ;;  %v4012_v61 = vunpack.c.l.bf16 %v6018_v16  ;;  %v6022_v62 = vld [vmem:[%s6362_s18 + $0x48] sm:$0xff] }
 0x4e3   : > { %v4016_v8 = vunpack.c.l.bf16 %v6022_v62  ;;  %v4017_v38 = vunpack.c.h.bf16 %v6022_v62  ;;  %v3665_v16 = vmul.f32 %v7469_v13, %v7589_v49  ;;  %v3669_v62 = vmul.f32 %v7518_v23, %v7589_v49 }
 0x4e4   : > { %v4939_v14 = vpack.c.bf16 %v4263_v40, %v4262_v42  ;;  %v3524_v60 = vpop.permute.xlu1 %3523  ;;  %5762 = vset.pattern.permute.xlu0 %v6087_v22  ;;  %v4204_v55 = vmul.f32 %v7445_v47, %v4012_v61  ;;  %v4010_v47 = vunpack.c.l.bf16 %v6019_v35 }
 0x4e5   : > { %3633 = vperm.xlu0 %5762, %v7538_v11   ;;  %v3660_v17 = vmul.f32 %v3524_v60, %v7353_v41  ;;  %v3661_v2 = vmul.f32 %v3524_v60, %v7355_v52  ;;  %v7563_v41 = vmul.f32 %v6001_v58, %v7213_v20  ;;  %v4011_v20 = vunpack.c.h.bf16 %v6019_v35 }
 0x4e6   : > { %4514 = vst [vmem:[%s7395_s22 + $0x20] sm:$0xff] %v4939_v14  ;;  %5747 = vset.pattern.permute.xlu1 %v6087_v22  ;;  %v3664_v60 = vmul.f32 %v7469_v13, %v7587_v29  ;;  %v4209_v13 = vmul.f32 %v7485_v24, %v4017_v38 }
 0x4e7   : > { %3598 = vperm.xlu1 %5747, %v7438_v21   ;;  %v7548_v30 = vpop.permute.xlu0 %3783 }
 0x4e9   : > { %v3772_v48 = vpop.permute.xlu1 %3771  ;;  %5764 = vset.pattern.permute.xlu0 %v6088_v53 }
 0x4ea   : > { %v3884_v51 = vmul.f32 %v3772_v48, %v3716_v50  ;;  %v3885_v54 = vmul.f32 %v3772_v48, %v3717_v27  ;;  %4179 = vperm.xlu0 %5764, %v7538_v11   ;;  %v6003_v27 = vpop.eup %6002 }
 0x4eb   : > { %5749 = vset.pattern.permute.xlu1 %v6088_v53 }
 0x4ec   : > { %v3948_v4 = vadd.f32 %v3884_v51, %v3660_v17  ;;  %v3949_v3 = vadd.f32 %v3885_v54, %v3661_v2  ;;  %4151 = vperm.xlu1 %5749, %v7438_v21   ;;  %v7566_v36 = vpop.permute.xlu0 %3553  ;;  %v4208_v17 = vmul.f32 %v7485_v24, %v4016_v8 }
 0x4ee   : > { %v4268_v52 = vadd.f32 %v4204_v55, %v3948_v4  ;;  %v4269_v50 = vadd.f32 %v4205_v56, %v3949_v3  ;;  %v3519_v32 = vpop.permute.xlu1 %3518  ;;  %5766 = vset.pattern.permute.xlu0 %v6086_v26  ;;  %v6024_v55 = vld [vmem:[%s6269_s19 + $0x20] sm:$0xff] }
 0x4ef   : > { %3855 = vperm.xlu0 %5766, %v7563_v41   ;;  %v3658_v0 = vmul.f32 %v3519_v32, %v7379_v46  ;;  %v3659_v21 = vmul.f32 %v3519_v32, %v7381_v39  ;;  %v7582_v46 = vmul.f32 %v6003_v27, %v7223_v63  ;;  %v6005_v39 = vpop.eup %6004  ;;  %v7595_v63 = vld [vmem:[%s6269_s19 + $0x28] sm:$0xff]  ;;  %v3718_v56 = vunpack.c.l.bf16 %v6024_v55  ;;  %v6025_v32 = vld [vmem:[%s6362_s18 + $0x40] sm:$0xff] }
 0x4f0   : > { %v4942_v31 = vpack.c.bf16 %v4269_v50, %v4268_v52  ;;  %5751 = vset.pattern.permute.xlu1 %v6086_v26  ;;  %v3720_v34 = vunpack.c.l.bf16 %v7595_v63  ;;  %v3721_v7 = vunpack.c.h.bf16 %v7595_v63  ;;  %v7602_v42 = vmul.f32 %v6005_v39, %v7221_v9  ;;  %v6023_v9 = vld [vmem:[%s6210_s20 + $0x10] sm:$0xff] }
 0x4f1   : > { %3843 = vperm.xlu1 %5751, %v7449_v10   ;;  %v3946_v5 = vadd.f32 %v3882_v28, %v3658_v0  ;;  %v3947_v10 = vadd.f32 %v3883_v1, %v3659_v21  ;;  %v7591_v18 = vpop.permute.xlu0 %4115  ;;  %v7617_v58 = vunpack.c.l.bf16 %v6023_v9  ;;  %v7619_v48 = vunpack.c.h.bf16 %v6023_v9 }
 0x4f2   : > { %4517 = vst [vmem:[%s7395_s22 + $0x38] sm:$0xff] %v4942_v31  ;;  %v3719_v4 = vunpack.c.h.bf16 %v6024_v55  ;;  %v4014_v27 = vunpack.c.l.bf16 %v6025_v32  ;;  %v3886_v31 = vmul.f32 %v7504_v6, %v3718_v56 }
 0x4f3   : > { %v4088_v45 = vpop.permute.xlu1 %4087  ;;  %5768 = vset.pattern.permute.xlu0 %v6087_v22 }
 0x4f4   : > { %v4202_v59 = vmul.f32 %v4088_v45, %v4010_v47  ;;  %v4203_v44 = vmul.f32 %v4088_v45, %v4011_v20  ;;  %3643 = vperm.xlu0 %5768, %v7582_v46   ;;  %v3887_v0 = vmul.f32 %v7504_v6, %v3719_v4 }
 0x4f5   : > { %5753 = vset.pattern.permute.xlu1 %v6087_v22 }
 0x4f6   : > { %v4266_v33 = vadd.f32 %v4202_v59, %v3946_v5  ;;  %v4267_v15 = vadd.f32 %v4203_v44, %v3947_v10  ;;  %3608 = vperm.xlu1 %5753, %v7472_v12   ;;  %v7623_v2 = vpop.permute.xlu0 %3791 }
 0x4f8   : > { %v4941_v40 = vpack.c.bf16 %v4267_v15, %v4266_v33  ;;  %v3780_v14 = vpop.permute.xlu1 %3779  ;;  %5771 = vset.pattern.permute.xlu0 %v6086_v26  ;;  %v3668_v15 = vmul.f32 %v7518_v23, %v7587_v29 }
 0x4f9   : > { %v3888_v61 = vmul.f32 %v3780_v14, %v3720_v34  ;;  %v3889_v19 = vmul.f32 %v3780_v14, %v3721_v7  ;;  %3863 = vperm.xlu0 %5771, %v7602_v42  }
 0x4fa   : > { %4516 = vst [vmem:[%s7395_s22 + $0x30] sm:$0xff] %v4941_v40  ;;  %5755 = vset.pattern.permute.xlu1 %v6088_v53 }
 0x4fb   : > { %v3952_v51 = vadd.f32 %v3888_v61, %v3664_v60  ;;  %v3953_v54 = vadd.f32 %v3889_v19, %v3665_v16  ;;  %4159 = vperm.xlu1 %5755, %v7472_v12   ;;  %v4015_v12 = vunpack.c.h.bf16 %v6025_v32  ;;  %v7637_v21 = vpop.permute.xlu0 %3563 }
 0x4fd   : > { %v4272_v3 = vadd.f32 %v4208_v17, %v3952_v51  ;;  %v4273_v52 = vadd.f32 %v4209_v13, %v3953_v54  ;;  %v3529_v50 = vpop.permute.xlu1 %3528  ;;  %5773 = vset.pattern.permute.xlu0 %v6088_v53  ;;  %v3891_v51 = vmul.f32 %v7548_v30, %v3719_v4 }
 0x4fe   : > { %4187 = vperm.xlu0 %5773, %v7582_v46   ;;  %v3662_v35 = vmul.f32 %v3529_v50, %v7617_v58  ;;  %v3663_v47 = vmul.f32 %v3529_v50, %v7619_v48 }
 0x4ff   : > { %v4944_v24 = vpack.c.bf16 %v4273_v52, %v4272_v3  ;;  %5757 = vset.pattern.permute.xlu1 %v6086_v26 }
 0x500   : > { %3851 = vperm.xlu1 %5757, %v7489_v43   ;;  %v3950_v28 = vadd.f32 %v3886_v31, %v3662_v35  ;;  %v3951_v1 = vadd.f32 %v3887_v0, %v3663_v47  ;;  %v6026_v43 = vld [vmem:[%s6362_s18 + $0x58] sm:$0xff]  ;;  %v7642_v25 = vpop.permute.xlu0 %4123  ;;  %v3672_v0 = vmul.f32 %v7566_v36, %v7587_v29 }
 0x501   : > { %4519 = vst [vmem:[%s7395_s22 + $0x48] sm:$0xff] %v4944_v24  ;;  %v4020_v59 = vunpack.c.l.bf16 %v6026_v43  ;;  %v4021_v44 = vunpack.c.h.bf16 %v6026_v43 }
 0x502   : > { %v4096_v20 = vpop.permute.xlu1 %4095 }
 0x503   : > { %v4206_v39 = vmul.f32 %v4096_v20, %v4014_v27  ;;  %v4207_v45 = vmul.f32 %v4096_v20, %v4015_v12  ;;  %v4212_v40 = vmul.f32 %v7535_v57, %v4020_v59  ;;  %v4213_v14 = vmul.f32 %v7535_v57, %v4021_v44  ;;  %v6028_v27 = vld [vmem:[%s6269_s19 + $0x38] sm:$0xff]  ;;  %v6030_v59 = vld [vmem:[%s6269_s19 + $0x30] sm:$0xff] }
 0x504   : > { %5759 = vset.pattern.permute.xlu1 %v6087_v22  ;;  %v3724_v24 = vunpack.c.l.bf16 %v6028_v27  ;;  %v3725_v35 = vunpack.c.h.bf16 %v6028_v27  ;;  %v3673_v20 = vmul.f32 %v7566_v36, %v7589_v49  ;;  %v3722_v44 = vunpack.c.l.bf16 %v6030_v59 }
 0x505   : > { %v4270_v5 = vadd.f32 %v4206_v39, %v3950_v28  ;;  %v4271_v10 = vadd.f32 %v4207_v45, %v3951_v1  ;;  %3618 = vperm.xlu1 %5759, %v7528_v37   ;;  %v7657_v9 = vpop.permute.xlu0 %3799  ;;  %v3723_v36 = vunpack.c.h.bf16 %v6030_v59  ;;  %v6036_v59 = vld [vmem:[%s6362_s18 + $0x88] sm:$0xff] }
 0x507   : > { %v4943_v6 = vpack.c.bf16 %v4271_v10, %v4270_v5  ;;  %v3788_v33 = vpop.permute.xlu1 %3787 }
 0x508   : > { %v3892_v8 = vmul.f32 %v3788_v33, %v3720_v34  ;;  %v3893_v38 = vmul.f32 %v3788_v33, %v3721_v7  ;;  %v6027_v34 = vld [vmem:[%s6362_s18 + $0x50] sm:$0xff] }
 0x509   : > { %4518 = vst [vmem:[%s7395_s22 + $0x40] sm:$0xff] %v4943_v6  ;;  %5761 = vset.pattern.permute.xlu1 %v6088_v53  ;;  %v4018_v63 = vunpack.c.l.bf16 %v6027_v34  ;;  %v4019_v57 = vunpack.c.h.bf16 %v6027_v34 }
 0x50a   : > { %v3956_v60 = vadd.f32 %v3892_v8, %v3668_v15  ;;  %v3957_v16 = vadd.f32 %v3893_v38, %v3669_v62  ;;  %4167 = vperm.xlu1 %5761, %v7528_v37   ;;  %v3890_v37 = vmul.f32 %v7548_v30, %v3718_v56  ;;  %v7667_v32 = vpop.permute.xlu0 %3573  ;;  %v6029_v56 = vld [vmem:[%s6362_s18 + $0x68] sm:$0xff]  ;;  %v6031_v62 = vld [vmem:[%s6362_s18 + $0x60] sm:$0xff] }
 0x50b   : > { %v4024_v30 = vunpack.c.l.bf16 %v6029_v56  ;;  %v4025_v4 = vunpack.c.h.bf16 %v6029_v56  ;;  %v4022_v8 = vunpack.c.l.bf16 %v6031_v62 }
 0x50c   : > { %v4276_v61 = vadd.f32 %v4212_v40, %v3956_v60  ;;  %v4277_v23 = vadd.f32 %v4213_v14, %v3957_v16  ;;  %v3539_v19 = vpop.permute.xlu1 %3538  ;;  %v4023_v14 = vunpack.c.h.bf16 %v6031_v62  ;;  %v3895_v60 = vmul.f32 %v7623_v2, %v3723_v36 }
 0x50d   : > { %v3666_v17 = vmul.f32 %v3539_v19, %v7617_v58  ;;  %v3667_v13 = vmul.f32 %v3539_v19, %v7619_v48  ;;  %v4216_v39 = vmul.f32 %v7591_v18, %v4024_v30  ;;  %v4217_v45 = vmul.f32 %v7591_v18, %v4025_v4 }
 0x50e   : > { %v4946_v7 = vpack.c.bf16 %v4277_v23, %v4276_v61  ;;  %5763 = vset.pattern.permute.xlu1 %v6086_v26  ;;  %v3898_v30 = vmul.f32 %v7657_v9, %v3722_v44  ;;  %v3899_v4 = vmul.f32 %v7657_v9, %v3723_v36  ;;  %v4033_v36 = vunpack.c.h.bf16 %v6036_v59 }
 0x50f   : > { %3859 = vperm.xlu1 %5763, %v7538_v11   ;;  %v3954_v55 = vadd.f32 %v3890_v37, %v3666_v17  ;;  %v3955_v3 = vadd.f32 %v3891_v51, %v3667_v13  ;;  %v7681_v5 = vpop.permute.xlu0 %4131  ;;  %v3676_v51 = vmul.f32 %v7637_v21, %v7587_v29 }
 0x510   : > { %4521 = vst [vmem:[%s7395_s22 + $0x58] sm:$0xff] %v4946_v7 }
 0x511   : > { %v4104_v54 = vpop.permute.xlu1 %4103 }
 0x512   : > { %v4210_v52 = vmul.f32 %v4104_v54, %v4018_v63  ;;  %v4211_v50 = vmul.f32 %v4104_v54, %v4019_v57  ;;  %v3677_v54 = vmul.f32 %v7637_v21, %v7589_v49  ;;  %v6033_v49 = vld [vmem:[%s6362_s18 + $0x70] sm:$0xff] }
 0x513   : > { %5765 = vset.pattern.permute.xlu1 %v6087_v22  ;;  %v4026_v21 = vunpack.c.l.bf16 %v6033_v49 }
 0x514   : > { %v4274_v11 = vadd.f32 %v4210_v52, %v3954_v55  ;;  %v4275_v47 = vadd.f32 %v4211_v50, %v3955_v3  ;;  %3628 = vperm.xlu1 %5765, %v7563_v41   ;;  %v7692_v16 = vpop.permute.xlu0 %3807 }
 0x516   : > { %v4945_v12 = vpack.c.bf16 %v4275_v47, %v4274_v11  ;;  %v3796_v31 = vpop.permute.xlu1 %3795 }
 0x517   : > { %v3896_v28 = vmul.f32 %v3796_v31, %v3724_v24  ;;  %v3897_v1 = vmul.f32 %v3796_v31, %v3725_v35 }
 0x518   : > { %4520 = vst [vmem:[%s7395_s22 + $0x50] sm:$0xff] %v4945_v12  ;;  %5767 = vset.pattern.permute.xlu1 %v6088_v53 }
 0x519   : > { %v3960_v10 = vadd.f32 %v3896_v28, %v3672_v0  ;;  %v3961_v43 = vadd.f32 %v3897_v1, %v3673_v20  ;;  %4175 = vperm.xlu1 %5767, %v7563_v41   ;;  %v3894_v41 = vmul.f32 %v7623_v2, %v3722_v44  ;;  %v7698_v57 = vpop.permute.xlu0 %3583  ;;  %v6034_v28 = vld [vmem:[%s6210_s20 + $0x28] sm:$0xff]  ;;  %v4032_v44 = vunpack.c.l.bf16 %v6036_v59  ;;  %v6041_v59 = vld [vmem:[%s6362_s18 + $0x90] sm:$0xff] }
 0x51a   : > { %v7718_v1 = vunpack.c.l.bf16 %v6034_v28 }
 0x51b   : > { %v4280_v6 = vadd.f32 %v4216_v39, %v3960_v10  ;;  %v4281_v33 = vadd.f32 %v4217_v45, %v3961_v43  ;;  %v3549_v15 = vpop.permute.xlu1 %3548  ;;  %v7720_v39 = vunpack.c.h.bf16 %v6034_v28 }
 0x51c   : > { %v3670_v40 = vmul.f32 %v3549_v15, %v7617_v58  ;;  %v3671_v18 = vmul.f32 %v3549_v15, %v7619_v48  ;;  %v3680_v15 = vmul.f32 %v7667_v32, %v7718_v1 }
 0x51d   : > { %v4948_v38 = vpack.c.bf16 %v4281_v33, %v4280_v6  ;;  %5769 = vset.pattern.permute.xlu1 %v6086_v26  ;;  %v3681_v62 = vmul.f32 %v7667_v32, %v7720_v39 }
 0x51e   : > { %3867 = vperm.xlu1 %5769, %v7582_v46   ;;  %v3958_v23 = vadd.f32 %v3894_v41, %v3670_v40  ;;  %v3959_v19 = vadd.f32 %v3895_v60, %v3671_v18  ;;  %v6032_v46 = vld [vmem:[%s6362_s18 + $0x78] sm:$0xff]  ;;  %v7709_v56 = vpop.permute.xlu0 %4139  ;;  %v6037_v40 = vld [vmem:[%s6210_s20 + $0x20] sm:$0xff]  ;;  %v4224_v41 = vmul.f32 %v7681_v5, %v4032_v44  ;;  %v4225_v60 = vmul.f32 %v7681_v5, %v4033_v36 }
 0x51f   : > { %4523 = vst [vmem:[%s7395_s22 + $0x68] sm:$0xff] %v4948_v38  ;;  %v4028_v17 = vunpack.c.l.bf16 %v6032_v46  ;;  %v4029_v13 = vunpack.c.h.bf16 %v6032_v46  ;;  %v7732_v18 = vunpack.c.l.bf16 %v6037_v40  ;;  %v4034_v44 = vunpack.c.l.bf16 %v6041_v59 }
 0x520   : > { %v4112_v61 = vpop.permute.xlu1 %4111 }
 0x521   : > { %v4214_v34 = vmul.f32 %v4112_v61, %v4022_v8  ;;  %v4215_v63 = vmul.f32 %v4112_v61, %v4023_v14  ;;  %v4220_v3 = vmul.f32 %v7642_v25, %v4028_v17  ;;  %v4221_v52 = vmul.f32 %v7642_v25, %v4029_v13  ;;  %v6039_v17 = vld [vmem:[%s6362_s18 + $0x80] sm:$0xff] }
 0x522   : > { %5770 = vset.pattern.permute.xlu1 %v6087_v22  ;;  %v4027_v25 = vunpack.c.h.bf16 %v6033_v49  ;;  %v7734_v14 = vunpack.c.h.bf16 %v6037_v40  ;;  %v4030_v13 = vunpack.c.l.bf16 %v6039_v17  ;;  %v4031_v5 = vunpack.c.h.bf16 %v6039_v17  ;;  %v6040_v49 = vld [vmem:[%s6362_s18 + $0x98] sm:$0xff] }
 0x523   : > { %v4278_v26 = vadd.f32 %v4214_v34, %v3958_v23  ;;  %v4279_v7 = vadd.f32 %v4215_v63, %v3959_v19  ;;  %3638 = vperm.xlu1 %5770, %v7602_v42   ;;  %v6038_v34 = vld [vmem:[%s6269_s19 + $0x40] sm:$0xff] }
 0x524   : > { %v3726_v32 = vunpack.c.l.bf16 %v6038_v34  ;;  %v3727_v63 = vunpack.c.h.bf16 %v6038_v34 }
 0x525   : > { %v4947_v2 = vpack.c.bf16 %v4279_v7, %v4278_v26  ;;  %v3804_v37 = vpop.permute.xlu1 %3803 }
 0x526   : > { %v3900_v55 = vmul.f32 %v3804_v37, %v3724_v24  ;;  %v3901_v22 = vmul.f32 %v3804_v37, %v3725_v35 }
 0x527   : > { %4522 = vst [vmem:[%s7395_s22 + $0x60] sm:$0xff] %v4947_v2  ;;  %5772 = vset.pattern.permute.xlu1 %v6088_v53 }
 0x528   : > { %v3964_v50 = vadd.f32 %v3900_v55, %v3676_v51  ;;  %v3965_v27 = vadd.f32 %v3901_v22, %v3677_v54  ;;  %4183 = vperm.xlu1 %5772, %v7602_v42   ;;  %v3902_v54 = vmul.f32 %v7692_v16, %v3726_v32  ;;  %v3903_v55 = vmul.f32 %v7692_v16, %v3727_v63 }
 0x529   : > { %v3684_v16 = vmul.f32 %v7698_v57, %v7718_v1 }
 0x52a   : > { %v4284_v11 = vadd.f32 %v4220_v3, %v3964_v50  ;;  %v4285_v47 = vadd.f32 %v4221_v52, %v3965_v27  ;;  %v3559_v29 = vpop.permute.xlu1 %3558 }
 0x52b   : > { %v3674_v53 = vmul.f32 %v3559_v29, %v7617_v58  ;;  %v3675_v35 = vmul.f32 %v3559_v29, %v7619_v48  ;;  %v7722_v58 = vpop.permute.xlu0 %3815  ;;  %v6035_v48 = vld [vmem:[%s6269_s19 + $0x48] sm:$0xff] }
 0x52c   : > { %v4950_v24 = vpack.c.bf16 %v4285_v47, %v4284_v11  ;;  %v3728_v45 = vunpack.c.l.bf16 %v6035_v48  ;;  %v3729_v10 = vunpack.c.h.bf16 %v6035_v48 }
 0x52d   : > { %v3962_v12 = vadd.f32 %v3898_v30, %v3674_v53  ;;  %v3963_v31 = vadd.f32 %v3899_v4, %v3675_v35  ;;  %v3685_v30 = vmul.f32 %v7698_v57, %v7720_v39 }
 0x52e   : > { %4525 = vst [vmem:[%s7395_s22 + $0x78] sm:$0xff] %v4950_v24  ;;  %v4037_v24 = vunpack.c.h.bf16 %v6040_v49 }
 0x52f   : > { %v4120_v42 = vpop.permute.xlu1 %4119  ;;  %v7738_v61 = vpop.permute.xlu0 %3593 }
 0x530   : > { %v4218_v0 = vmul.f32 %v4120_v42, %v4026_v21  ;;  %v4219_v20 = vmul.f32 %v4120_v42, %v4027_v25  ;;  %v4036_v21 = vunpack.c.l.bf16 %v6040_v49 }
 0x532   : > { %v4282_v9 = vadd.f32 %v4218_v0, %v3962_v12  ;;  %v4283_v43 = vadd.f32 %v4219_v20, %v3963_v31  ;;  %v4228_v12 = vmul.f32 %v7709_v56, %v4036_v21  ;;  %v4229_v31 = vmul.f32 %v7709_v56, %v4037_v24 }
 0x533   : > { %v4148_v22 = vpop.permute.xlu0 %4147  ;;  %v3907_v56 = vmul.f32 %v7722_v58, %v3727_v63  ;;  %v3689_v63 = vmul.f32 %v7738_v61, %v7720_v39 }
 0x534   : > { %v4949_v6 = vpack.c.bf16 %v4283_v43, %v4282_v9  ;;  %v3812_v33 = vpop.permute.xlu1 %3811 }
 0x535   : > { %v3904_v8 = vmul.f32 %v3812_v33, %v3728_v45  ;;  %v3905_v38 = vmul.f32 %v3812_v33, %v3729_v10 }
 0x536   : > { %4524 = vst [vmem:[%s7395_s22 + $0x70] sm:$0xff] %v4949_v6  ;;  %v3906_v6 = vmul.f32 %v7722_v58, %v3726_v32  ;;  %v3688_v58 = vmul.f32 %v7738_v61, %v7718_v1 }
 0x537   : > { %v3968_v23 = vadd.f32 %v3904_v8, %v3680_v15  ;;  %v3969_v19 = vadd.f32 %v3905_v38, %v3681_v62  ;;  %v7748_v53 = vpop.permute.xlu0 %3823 }
 0x539   : > { %v4288_v26 = vadd.f32 %v4224_v41, %v3968_v23  ;;  %v4289_v7 = vadd.f32 %v4225_v60, %v3969_v19  ;;  %v3569_v46 = vpop.permute.xlu1 %3568  ;;  %v6042_v41 = vld [vmem:[%s6269_s19 + $0x58] sm:$0xff] }
 0x53a   : > { %v3678_v37 = vmul.f32 %v3569_v46, %v7732_v18  ;;  %v3679_v51 = vmul.f32 %v3569_v46, %v7734_v14  ;;  %v3732_v60 = vunpack.c.l.bf16 %v6042_v41  ;;  %v3733_v23 = vunpack.c.h.bf16 %v6042_v41 }
 0x53b   : > { %v4952_v2 = vpack.c.bf16 %v4289_v7, %v4288_v26  ;;  %v7757_v43 = vpop.permute.xlu0 %3603  ;;  %v6043_v26 = vld [vmem:[%s6362_s18 + $0xa8] sm:$0xff] }
 0x53c   : > { %v3966_v52 = vadd.f32 %v3902_v54, %v3678_v37  ;;  %v3967_v50 = vadd.f32 %v3903_v55, %v3679_v51  ;;  %v4040_v7 = vunpack.c.l.bf16 %v6043_v26  ;;  %v4041_v46 = vunpack.c.h.bf16 %v6043_v26 }
 0x53d   : > { %4527 = vst [vmem:[%s7395_s22 + $0x88] sm:$0xff] %v4952_v2 }
 0x53e   : > { %v4128_v3 = vpop.permute.xlu1 %4127  ;;  %v4232_v37 = vmul.f32 %v4148_v22, %v4040_v7  ;;  %v4233_v51 = vmul.f32 %v4148_v22, %v4041_v46 }
 0x53f   : > { %v4222_v27 = vmul.f32 %v4128_v3, %v4030_v13  ;;  %v4223_v11 = vmul.f32 %v4128_v3, %v4031_v5  ;;  %v4156_v40 = vpop.permute.xlu0 %4155  ;;  %v6044_v3 = vld [vmem:[%s6269_s19 + $0x50] sm:$0xff] }
 0x541   : > { %v4286_v47 = vadd.f32 %v4222_v27, %v3966_v52  ;;  %v4287_v29 = vadd.f32 %v4223_v11, %v3967_v50  ;;  %v3730_v52 = vunpack.c.l.bf16 %v6044_v3  ;;  %v3731_v50 = vunpack.c.h.bf16 %v6044_v3 }
 0x543   : > { %v4951_v35 = vpack.c.bf16 %v4287_v29, %v4286_v47  ;;  %v3820_v25 = vpop.permute.xlu1 %3819  ;;  %v3832_v5 = vpop.permute.xlu0 %3831  ;;  %v6045_v29 = vld [vmem:[%s6362_s18 + $0xa0] sm:$0xff]  ;;  %v3910_v22 = vmul.f32 %v7748_v53, %v3730_v52 }
 0x544   : > { %v3908_v4 = vmul.f32 %v3820_v25, %v3728_v45  ;;  %v3909_v42 = vmul.f32 %v3820_v25, %v3729_v10  ;;  %v4035_v10 = vunpack.c.h.bf16 %v6041_v59  ;;  %v4038_v49 = vunpack.c.l.bf16 %v6045_v29 }
 0x545   : > { %4526 = vst [vmem:[%s7395_s22 + $0x80] sm:$0xff] %v4951_v35  ;;  %v4039_v35 = vunpack.c.h.bf16 %v6045_v29  ;;  %v3911_v25 = vmul.f32 %v7748_v53, %v3731_v50  ;;  %v3692_v53 = vmul.f32 %v7757_v43, %v7718_v1 }
 0x546   : > { %v3972_v0 = vadd.f32 %v3908_v4, %v3684_v16  ;;  %v3973_v20 = vadd.f32 %v3909_v42, %v3685_v30 }
 0x547   : > { %v3614_v16 = vpop.permute.xlu0 %3613 }
 0x548   : > { %v4292_v28 = vadd.f32 %v4228_v12, %v3972_v0  ;;  %v4293_v48 = vadd.f32 %v4229_v31, %v3973_v20  ;;  %v3579_v9 = vpop.permute.xlu1 %3578 }
 0x549   : > { %v3682_v57 = vmul.f32 %v3579_v9, %v7732_v18  ;;  %v3683_v45 = vmul.f32 %v3579_v9, %v7734_v14 }
 0x54a   : > { %v4954_v36 = vpack.c.bf16 %v4293_v48, %v4292_v28  ;;  %v6046_v28 = vld [vmem:[%s6362_s18 + $0xb8] sm:$0xff] }
 0x54b   : > { %v3970_v15 = vadd.f32 %v3906_v6, %v3682_v57  ;;  %v3971_v62 = vadd.f32 %v3907_v56, %v3683_v45  ;;  %v4044_v48 = vunpack.c.l.bf16 %v6046_v28  ;;  %v4045_v9 = vunpack.c.h.bf16 %v6046_v28  ;;  %v4164_v59 = vpop.permute.xlu0 %4163 }
 0x54c   : > { %4529 = vst [vmem:[%s7395_s22 + $0x98] sm:$0xff] %v4954_v36  ;;  %v3693_v57 = vmul.f32 %v7757_v43, %v7720_v39 }
 0x54d   : > { %v4136_v33 = vpop.permute.xlu1 %4135  ;;  %v4236_v6 = vmul.f32 %v4156_v40, %v4044_v48  ;;  %v4237_v56 = vmul.f32 %v4156_v40, %v4045_v9 }
 0x54e   : > { %v4226_v8 = vmul.f32 %v4136_v33, %v4034_v44  ;;  %v4227_v38 = vmul.f32 %v4136_v33, %v4035_v10 }
 0x550   : > { %v4290_v19 = vadd.f32 %v4226_v8, %v3970_v15  ;;  %v4291_v34 = vadd.f32 %v4227_v38, %v3971_v62  ;;  %v3840_v41 = vpop.permute.xlu0 %3839 }
 0x552   : > { %v4953_v32 = vpack.c.bf16 %v4291_v34, %v4290_v19  ;;  %v3828_v17 = vpop.permute.xlu1 %3827  ;;  %v6047_v19 = vld [vmem:[%s6362_s18 + $0xb0] sm:$0xff] }
 0x553   : > { %v3912_v13 = vmul.f32 %v3828_v17, %v3732_v60  ;;  %v3913_v2 = vmul.f32 %v3828_v17, %v3733_v23  ;;  %v4042_v34 = vunpack.c.l.bf16 %v6047_v19  ;;  %v4043_v43 = vunpack.c.h.bf16 %v6047_v19 }
 0x554   : > { %4528 = vst [vmem:[%s7395_s22 + $0x90] sm:$0xff] %v4953_v32 }
 0x555   : > { %v3976_v54 = vadd.f32 %v3912_v13, %v3688_v58  ;;  %v3977_v55 = vadd.f32 %v3913_v2, %v3689_v63  ;;  %v6048_v58 = vld [vmem:[%s6210_s20 + $0x38] sm:$0xff]  ;;  %v3624_v2 = vpop.permute.xlu0 %3623 }
 0x556   : > { %v7790_v63 = vunpack.c.l.bf16 %v6048_v58  ;;  %v7792_v13 = vunpack.c.h.bf16 %v6048_v58 }
 0x557   : > { %v4296_v27 = vadd.f32 %v4232_v37, %v3976_v54  ;;  %v4297_v11 = vadd.f32 %v4233_v51, %v3977_v55  ;;  %v3589_v47 = vpop.permute.xlu1 %3588  ;;  %v6050_v54 = vld [vmem:[%s6362_s18 + $0xc8] sm:$0xff] }
 0x558   : > { %v3686_v61 = vmul.f32 %v3589_v47, %v7732_v18  ;;  %v3687_v24 = vmul.f32 %v3589_v47, %v7734_v14  ;;  %v4048_v55 = vunpack.c.l.bf16 %v6050_v54  ;;  %v4049_v3 = vunpack.c.h.bf16 %v6050_v54 }
 0x559   : > { %v4956_v21 = vpack.c.bf16 %v4297_v11, %v4296_v27  ;;  %v3696_v27 = vmul.f32 %v3614_v16, %v7790_v63  ;;  %v3697_v11 = vmul.f32 %v3614_v16, %v7792_v13 }
 0x55a   : > { %v3974_v4 = vadd.f32 %v3910_v22, %v3686_v61  ;;  %v3975_v42 = vadd.f32 %v3911_v25, %v3687_v24  ;;  %v4240_v24 = vmul.f32 %v4164_v59, %v4048_v55  ;;  %v4172_v22 = vpop.permute.xlu0 %4171 }
 0x55b   : > { %4531 = vst [vmem:[%s7395_s22 + $0xa8] sm:$0xff] %v4956_v21 }
 0x55c   : > { %v4144_v30 = vpop.permute.xlu1 %4143 }
 0x55d   : > { %v4230_v12 = vmul.f32 %v4144_v30, %v4038_v49  ;;  %v4231_v31 = vmul.f32 %v4144_v30, %v4039_v35  ;;  %v6051_v49 = vld [vmem:[%s6210_s20 + $0x30] sm:$0xff]  ;;  %v4241_v35 = vmul.f32 %v4164_v59, %v4049_v3 }
 0x55e   : > { %v7800_v21 = vunpack.c.l.bf16 %v6051_v49  ;;  %v7802_v61 = vunpack.c.h.bf16 %v6051_v49  ;;  %v6056_v49 = vld [vmem:[%s6269_s19 + $0x78] sm:$0xff] }
 0x55f   : > { %v4294_v0 = vadd.f32 %v4230_v12, %v3974_v4  ;;  %v4295_v20 = vadd.f32 %v4231_v31, %v3975_v42  ;;  %v6052_v4 = vld [vmem:[%s6269_s19 + $0x60] sm:$0xff] }
 0x560   : > { %v3734_v42 = vunpack.c.l.bf16 %v6052_v4  ;;  %v3735_v12 = vunpack.c.h.bf16 %v6052_v4 }
 0x561   : > { %v4955_v44 = vpack.c.bf16 %v4295_v20, %v4294_v0  ;;  %v3836_v36 = vpop.permute.xlu1 %3835  ;;  %v6053_v20 = vld [vmem:[%s6362_s18 + $0xc0] sm:$0xff] }
 0x562   : > { %v3916_v45 = vmul.f32 %v3836_v36, %v3732_v60  ;;  %v3917_v10 = vmul.f32 %v3836_v36, %v3733_v23  ;;  %v3914_v60 = vmul.f32 %v3832_v5, %v3730_v52  ;;  %v3915_v23 = vmul.f32 %v3832_v5, %v3731_v50 }
 0x563   : > { %4530 = vst [vmem:[%s7395_s22 + $0xa0] sm:$0xff] %v4955_v44  ;;  %v4046_v28 = vunpack.c.l.bf16 %v6053_v20  ;;  %v4047_v36 = vunpack.c.h.bf16 %v6053_v20  ;;  %v3918_v59 = vmul.f32 %v3840_v41, %v3734_v42 }
 0x564   : > { %v3980_v33 = vadd.f32 %v3916_v45, %v3692_v53  ;;  %v3981_v15 = vadd.f32 %v3917_v10, %v3693_v57  ;;  %v3919_v53 = vmul.f32 %v3840_v41, %v3735_v12  ;;  %v3848_v57 = vpop.permute.xlu0 %3847  ;;  %v3701_v41 = vmul.f32 %v3624_v2, %v7792_v13 }
 0x565   : > { %v3923_v3 = vmul.f32 %v3848_v57, %v3735_v12 }
 0x566   : > { %v4300_v62 = vadd.f32 %v4236_v6, %v3980_v33  ;;  %v4301_v8 = vadd.f32 %v4237_v56, %v3981_v15  ;;  %v3599_v38 = vpop.permute.xlu1 %3598 }
 0x567   : > { %v3690_v1 = vmul.f32 %v3599_v38, %v7732_v18  ;;  %v3691_v39 = vmul.f32 %v3599_v38, %v7734_v14  ;;  %v6049_v18 = vld [vmem:[%s6269_s19 + $0x68] sm:$0xff] }
 0x568   : > { %v4958_v26 = vpack.c.bf16 %v4301_v8, %v4300_v62  ;;  %v3736_v14 = vunpack.c.l.bf16 %v6049_v18  ;;  %v3737_v37 = vunpack.c.h.bf16 %v6049_v18  ;;  %v6054_v8 = vld [vmem:[%s6362_s18 + $0xd8] sm:$0xff] }
 0x569   : > { %v3978_v7 = vadd.f32 %v3914_v60, %v3690_v1  ;;  %v3979_v46 = vadd.f32 %v3915_v23, %v3691_v39  ;;  %v4052_v38 = vunpack.c.l.bf16 %v6054_v8  ;;  %v4053_v19 = vunpack.c.h.bf16 %v6054_v8 }
 0x56a   : > { %4533 = vst [vmem:[%s7395_s22 + $0xb8] sm:$0xff] %v4958_v26  ;;  %v3700_v39 = vmul.f32 %v3624_v2, %v7790_v63 }
 0x56b   : > { %v4152_v40 = vpop.permute.xlu1 %4151  ;;  %v4244_v23 = vmul.f32 %v4172_v22, %v4052_v38 }
 0x56c   : > { %v4234_v32 = vmul.f32 %v4152_v40, %v4042_v34  ;;  %v4235_v17 = vmul.f32 %v4152_v40, %v4043_v43  ;;  %v3634_v34 = vpop.permute.xlu0 %3633  ;;  %v4245_v40 = vmul.f32 %v4172_v22, %v4053_v19 }
 0x56d   : > { %v3704_v12 = vmul.f32 %v3634_v34, %v7790_v63 }
 0x56e   : > { %v4298_v51 = vadd.f32 %v4234_v32, %v3978_v7  ;;  %v4299_v5 = vadd.f32 %v4235_v17, %v3979_v46 }
 0x570   : > { %v4957_v52 = vpack.c.bf16 %v4299_v5, %v4298_v51  ;;  %v3844_v50 = vpop.permute.xlu1 %3843  ;;  %v4180_v18 = vpop.permute.xlu0 %4179  ;;  %v6055_v51 = vld [vmem:[%s6362_s18 + $0xd0] sm:$0xff] }
 0x571   : > { %v3920_v47 = vmul.f32 %v3844_v50, %v3736_v14  ;;  %v3921_v29 = vmul.f32 %v3844_v50, %v3737_v37  ;;  %v4050_v5 = vunpack.c.l.bf16 %v6055_v51 }
 0x572   : > { %4532 = vst [vmem:[%s7395_s22 + $0xb0] sm:$0xff] %v4957_v52 }
 0x573   : > { %v3984_v25 = vadd.f32 %v3920_v47, %v3696_v27  ;;  %v3985_v30 = vadd.f32 %v3921_v29, %v3697_v11 }
 0x574   : > { %v3856_v29 = vpop.permute.xlu0 %3855 }
 0x575   : > { %v4304_v31 = vadd.f32 %v4240_v24, %v3984_v25  ;;  %v4305_v16 = vadd.f32 %v4241_v35, %v3985_v30  ;;  %v3609_v0 = vpop.permute.xlu1 %3608  ;;  %v3740_v24 = vunpack.c.l.bf16 %v6056_v49  ;;  %v3741_v35 = vunpack.c.h.bf16 %v6056_v49  ;;  %v6057_v30 = vld [vmem:[%s6362_s18 + $0xe8] sm:$0xff] }
 0x576   : > { %v3694_v9 = vmul.f32 %v3609_v0, %v7800_v21  ;;  %v3695_v44 = vmul.f32 %v3609_v0, %v7802_v61  ;;  %v4056_v4 = vunpack.c.l.bf16 %v6057_v30  ;;  %v3705_v0 = vmul.f32 %v3634_v34, %v7792_v13 }
 0x577   : > { %v4960_v48 = vpack.c.bf16 %v4305_v16, %v4304_v31  ;;  %v4057_v31 = vunpack.c.h.bf16 %v6057_v30 }
 0x578   : > { %v3982_v10 = vadd.f32 %v3918_v59, %v3694_v9  ;;  %v3983_v6 = vadd.f32 %v3919_v53, %v3695_v44  ;;  %v3644_v44 = vpop.permute.xlu0 %3643  ;;  %v6058_v53 = vld [vmem:[%s6269_s19 + $0x70] sm:$0xff] }
 0x579   : > { %4535 = vst [vmem:[%s7395_s22 + $0xc8] sm:$0xff] %v4960_v48  ;;  %v4248_v48 = vmul.f32 %v4180_v18, %v4056_v4  ;;  %v4249_v9 = vmul.f32 %v4180_v18, %v4057_v31 }
 0x57a   : > { %v4160_v45 = vpop.permute.xlu1 %4159 }
 0x57b   : > { %v4238_v56 = vmul.f32 %v4160_v45, %v4046_v28  ;;  %v4239_v33 = vmul.f32 %v4160_v45, %v4047_v36  ;;  %v3739_v45 = vunpack.c.h.bf16 %v6058_v53 }
 0x57d   : > { %v4302_v15 = vadd.f32 %v4238_v56, %v3982_v10  ;;  %v4303_v62 = vadd.f32 %v4239_v33, %v3983_v6  ;;  %v6059_v33 = vld [vmem:[%s6362_s18 + $0xe0] sm:$0xff] }
 0x57e   : > { %v4055_v19 = vunpack.c.h.bf16 %v6059_v33 }
 0x57f   : > { %v4959_v26 = vpack.c.bf16 %v4303_v62, %v4302_v15  ;;  %v3852_v1 = vpop.permute.xlu1 %3851  ;;  %v4054_v15 = vunpack.c.l.bf16 %v6059_v33 }
 0x580   : > { %v3924_v43 = vmul.f32 %v3852_v1, %v3736_v14  ;;  %v3925_v60 = vmul.f32 %v3852_v1, %v3737_v37  ;;  %v4051_v14 = vunpack.c.h.bf16 %v6055_v51  ;;  %v3922_v37 = vmul.f32 %v3848_v57, %v3734_v42  ;;  %v3864_v1 = vpop.permute.xlu0 %3863 }
 0x581   : > { %4534 = vst [vmem:[%s7395_s22 + $0xc0] sm:$0xff] %v4959_v26  ;;  %v3738_v57 = vunpack.c.l.bf16 %v6058_v53  ;;  %v3927_v26 = vmul.f32 %v3856_v29, %v3739_v45 }
 0x582   : > { %v3988_v7 = vadd.f32 %v3924_v43, %v3700_v39  ;;  %v3989_v46 = vadd.f32 %v3925_v60, %v3701_v41 }
 0x583   : > { %v3926_v34 = vmul.f32 %v3856_v29, %v3738_v57 }
 0x584   : > { %v4308_v32 = vadd.f32 %v4244_v23, %v3988_v7  ;;  %v4309_v17 = vadd.f32 %v4245_v40, %v3989_v46  ;;  %v3619_v58 = vpop.permute.xlu1 %3618  ;;  %v6060_v46 = vld [vmem:[%s6362_s18 + $0xf8] sm:$0xff] }
 0x585   : > { %v3698_v55 = vmul.f32 %v3619_v58, %v7800_v21  ;;  %v3699_v2 = vmul.f32 %v3619_v58, %v7802_v61  ;;  %v4188_v58 = vpop.permute.xlu0 %4187 }
 0x586   : > { %v4962_v54 = vpack.c.bf16 %v4309_v17, %v4308_v32  ;;  %v4060_v32 = vunpack.c.l.bf16 %v6060_v46  ;;  %v4061_v17 = vunpack.c.h.bf16 %v6060_v46 }
 0x587   : > { %v3986_v50 = vadd.f32 %v3922_v37, %v3698_v55  ;;  %v3987_v27 = vadd.f32 %v3923_v3, %v3699_v2 }
 0x588   : > { %4537 = vst [vmem:[%s7395_s22 + $0xd8] sm:$0xff] %v4962_v54  ;;  %v3709_v54 = vmul.f32 %v3644_v44, %v7792_v13  ;;  %v4253_v37 = vmul.f32 %v4188_v58, %v4061_v17 }
 0x589   : > { %v4168_v52 = vpop.permute.xlu1 %4167 }
 0x58a   : > { %v4242_v11 = vmul.f32 %v4168_v52, %v4050_v5  ;;  %v4243_v47 = vmul.f32 %v4168_v52, %v4051_v14  ;;  %v3708_v5 = vmul.f32 %v3644_v44, %v7790_v63  ;;  %v4252_v14 = vmul.f32 %v4188_v58, %v4060_v32 }
 0x58c   : > { %v4306_v22 = vadd.f32 %v4242_v11, %v3986_v50  ;;  %v4307_v25 = vadd.f32 %v4243_v47, %v3987_v27  ;;  %v6061_v47 = vld [vmem:[%s6362_s18 + $0xf0] sm:$0xff] }
 0x58d   : > { %v4058_v29 = vunpack.c.l.bf16 %v6061_v47  ;;  %v4059_v13 = vunpack.c.h.bf16 %v6061_v47 }
 0x58e   : > { %v4961_v16 = vpack.c.bf16 %v4307_v25, %v4306_v22  ;;  %v3860_v42 = vpop.permute.xlu1 %3859 }
 0x58f   : > { %v3928_v20 = vmul.f32 %v3860_v42, %v3740_v24  ;;  %v3929_v28 = vmul.f32 %v3860_v42, %v3741_v35 }
 0x590   : > { %4536 = vst [vmem:[%s7395_s22 + $0xd0] sm:$0xff] %v4961_v16 }
 0x591   : > { %v3992_v36 = vadd.f32 %v3928_v20, %v3704_v12  ;;  %v3993_v59 = vadd.f32 %v3929_v28, %v3705_v0 }
 0x593   : > { %v4312_v10 = vadd.f32 %v4248_v48, %v3992_v36  ;;  %v4313_v6 = vadd.f32 %v4249_v9, %v3993_v59  ;;  %v3629_v56 = vpop.permute.xlu1 %3628 }
 0x594   : > { %v3702_v8 = vmul.f32 %v3629_v56, %v7800_v21  ;;  %v3703_v38 = vmul.f32 %v3629_v56, %v7802_v61 }
 0x595   : > { %v4964_v62 = vpack.c.bf16 %v4313_v6, %v4312_v10 }
 0x596   : > { %v3990_v41 = vadd.f32 %v3926_v34, %v3702_v8  ;;  %v3991_v43 = vadd.f32 %v3927_v26, %v3703_v38 }
 0x597   : > { %4539 = vst [vmem:[%s7395_s22 + $0xe8] sm:$0xff] %v4964_v62 }
 0x598   : > { %v4176_v39 = vpop.permute.xlu1 %4175 }
 0x599   : > { %v4246_v60 = vmul.f32 %v4176_v39, %v4054_v15  ;;  %v4247_v23 = vmul.f32 %v4176_v39, %v4055_v19 }
 0x59b   : > { %v4310_v40 = vadd.f32 %v4246_v60, %v3990_v41  ;;  %v4311_v7 = vadd.f32 %v4247_v23, %v3991_v43 }
 0x59d   : > { %v4963_v18 = vpack.c.bf16 %v4311_v7, %v4310_v40  ;;  %v3868_v51 = vpop.permute.xlu1 %3867 }
 0x59e   : > { %v3932_v55 = vmul.f32 %v3868_v51, %v3740_v24  ;;  %v3933_v2 = vmul.f32 %v3868_v51, %v3741_v35  ;;  %v3930_v24 = vmul.f32 %v3864_v1, %v3738_v57  ;;  %v3931_v35 = vmul.f32 %v3864_v1, %v3739_v45 }
 0x59f   : > { %4538 = vst [vmem:[%s7395_s22 + $0xe0] sm:$0xff] %v4963_v18 }
 0x5a0   : > { %v3996_v3 = vadd.f32 %v3932_v55, %v3708_v5  ;;  %v3997_v52 = vadd.f32 %v3933_v2, %v3709_v54 }
 0x5a2   : > { %v4316_v50 = vadd.f32 %v4252_v14, %v3996_v3  ;;  %v4317_v27 = vadd.f32 %v4253_v37, %v3997_v52  ;;  %v3639_v11 = vpop.permute.xlu1 %3638 }
 0x5a3   : > { %v3706_v22 = vmul.f32 %v3639_v11, %v7800_v21  ;;  %v3707_v63 = vmul.f32 %v3639_v11, %v7802_v61 }
 0x5a4   : > { %v4966_v49 = vpack.c.bf16 %v4317_v27, %v4316_v50 }
 0x5a5   : > { %v3994_v30 = vadd.f32 %v3930_v24, %v3706_v22  ;;  %v3995_v4 = vadd.f32 %v3931_v35, %v3707_v63 }
 0x5a6   : > { %4541 = vst [vmem:[%s7395_s22 + $0xf8] sm:$0xff] %v4966_v49 }
 0x5a7   : > { %v4184_v25 = vpop.permute.xlu1 %4183 }
 0x5a8   : > { %v4250_v31 = vmul.f32 %v4184_v25, %v4058_v29  ;;  %v4251_v16 = vmul.f32 %v4184_v25, %v4059_v13 }
 0x5aa   : > { %v4314_v42 = vadd.f32 %v4250_v31, %v3994_v30  ;;  %v4315_v12 = vadd.f32 %v4251_v16, %v3995_v4 }
 0x5ac   : > { %v4965_v0 = vpack.c.bf16 %v4315_v12, %v4314_v42 }
 0x5ae   : > { %4540 = vst [vmem:[%s7395_s22 + $0xf0] sm:$0xff] %v4965_v0 }
 0x5af PF: > { %s23_s27 = sadd.s32 1, %s6084_s27   ;;  %s7881_s25 = smov %s6080_s26 }
 0x5b0   : > { %p20_p5 = scmp.ge.s32.totalorder %s23_s27, 4   ;;  %s7882_s26 = smov %s7884_s28 }
 0x5b2   :  { %22 = sbr.rel (!%p20_p5) target bundleno = 2 (0x2), region = 108 }

// kernel: asff_level2_forward.5
= control target key start
LH: loop header
LB: loop body
LE: loop exit
PB: predicated region body
PF: predicated region fallthrough
CT: control target
= control target key end

     0   :  { %8 = vsyncpa [#allocation5], 0  ;;  %s14113_s0 = inlined_call_operand.vmem [shape: bf16[2,18,18,256], index: 0, kind: input, shape index: {}]   ;;  %s14114_s1 = inlined_call_operand.vmem [shape: bf16[3,3,256,256], index: 1, kind: input, shape index: {}]   ;;  %s14115_s2 = inlined_call_operand.vmem [shape: f32[1,256], index: 2, kind: input, shape index: {}]   ;;  %s14116_s3 = inlined_call_operand.hbm [shape: f32[2,16,16,256], index: 3, kind: output, shape index: {}]  }
   0x1   :  { %10 = vsyncpa [#allocation5 + $0x1], 0  ;;  %s10637_s12 = smov 0   ;;  %s10639_s13 = smov 0  }
   0x2   :  { %s10641_s14 = smov 0   ;;  %s10643_s15 = smov 0  }
   0x3   :  { %s10645_s16 = smov 0   ;;  %s10647_s17 = smov 0  }
   0x4   :  { %s10649_s18 = smov 0   ;;  %s10651_s19 = smov 0  }
   0x5   :  { %s10653_s20 = smov 0   ;;  %s10655_s21 = smov 0  }
   0x6 LB: > { %s8202_s22 = sadd.s32 4294967295, %s10611_s21   ;;  %s8203_s23 = sadd.s32 4294967294, %s10611_s21   ;;  %s10611_s21 = sphi %s10655_s21, %s16_s21   ;;  %s10607_s20 = sphi %s10653_s20, %s14250_s20   ;;  %s10603_s19 = sphi %s10651_s19, %s14249_s19   ;;  %s10599_s18 = sphi %s10649_s18, %s14248_s18   ;;  %s10595_s17 = sphi %s10647_s17, %s14247_s17   ;;  %s10591_s16 = sphi %s10645_s16, %s14246_s16   ;;  %s10587_s15 = sphi %s10643_s15, %s14245_s15   ;;  %s10583_s14 = sphi %s10641_s14, %s14244_s14   ;;  %s10579_s13 = sphi %s10639_s13, %s14243_s13   ;;  %s10575_s12 = sphi %s10637_s12, %s14242_s12  }
   0x7   : > { %s31_s24 = sadd.s32 1, %s10603_s19  ;;  %s35_s25 = sadd.s32 1, %s10607_s20 }
   0x8   : > { %p33_p0 = scmp.ge.s32.totalorder %s31_s24, 2  ;;  %s68_s26 = sadd.s32 1, %s10591_s16 }
   0x9   : > { %p75_p1 = scmp.ne.s32.totalorder %s10591_s16, %s10587_s15  ;;  %p76_p2 = scmp.eq.s32.totalorder %s10611_s21, 0 }
   0xa   : > { %s14252_s24 = smov (%p33_p0, %s31_s24), 0  ;;  %s14254_s25 = smov (!%p33_p0, %s35_s25), %s10607_s20 }
   0xb   : > { %s65_s27 = ssub.s32 %s10603_s19, %s14252_s24  ;;  %p10700_p3 = por %p76_p2, %p75_p1 }
   0xc   : > { %p37_p4 = scmp.ge.s32.totalorder %s14254_s25, 2  ;;  %p66_p5 = scmp.eq.s32.totalorder %s65_s27, 0 }
   0xd   : > { %s124_s29 = sadd.s32 1, %s10583_s14  ;;  %p134_p6 = scmp.ne.s32.totalorder %s10583_s14, %s10579_s13 }
   0xe   : > { %s14256_s25 = smov (%p37_p4, %s14254_s25), 0  ;;  %p135_p7 = scmp.eq.s32.totalorder %s8202_s22, 3 }
   0xf   : > { %s10710_s30 = scalar_select %p66_p5, %s10591_s16, %s68_s26  }
  0x10   : > { %s117_s4 = ssub.s32 %s10607_s20, %s14256_s25  ;;  %p140_p8 = scmp.ne.s32.totalorder %s10579_s13, %s10575_s12 }
  0x11   : > { %s121_s5 = sor.u32 %s117_s4, %s65_s27  ;;  %p10716_p10 = por %p135_p7, %p134_p6 }
  0x12   : > { %p122_p9 = scmp.eq.s32.totalorder %s121_s5, 0  ;;  %p141_p11 = scmp.eq.s32.totalorder %s8203_s23, 3 }
  0x13   : > { %p8205_p13 = scmp.ge.s32.totalorder %s10611_s21, 4 }
  0x14   : > { %s10721_s7 = scalar_select %p122_p9, %s10583_s14, %s124_s29  }
  0x15   : > { %p10723_p12 = por %p141_p11, %p140_p8  ;;  %157 = sbr.rel (%p8205_p13) target bundleno = 224 (0xe0), region = 16 }
  0x1c   : > { %168 = sbr.rel (!%p10700_p3) target bundleno = 224 (0xe0), region = 24  ;;  %s170_s9 = sand.u32 (%p10700_p3), 1, %s10591_s16  }
  0x1d   : > { %s8206_s10 = sshll.u32 (%p10700_p3), %s10603_s19, 2  ;;  %s10072_s11 = smul.u32 (%p10700_p3), 1152, %s170_s9 }
  0x1e   : > { %s10735_s23 = scalar_lea.vmem (%p10700_p3), %s14114_s1, %s8206_s10 }
  0x1f   : > { %v190_v0 = vld [vmem:[%s10735_s23] sm:$0xf] (%p10700_p3)  ;;  %v192_v1 = vld [vmem:[%s10735_s23 + $0x8] sm:$0xf] (%p10700_p3)  ;;  %v194_v2 = vld [vmem:[%s10735_s23 + $0x10] sm:$0xf] (%p10700_p3) }
  0x20   : > { %v196_v3 = vld [vmem:[%s10735_s23 + $0x18] sm:$0xf] (%p10700_p3)  ;;  %v198_v4 = vld [vmem:[%s10735_s23 + $0x20] sm:$0xf] (%p10700_p3)  ;;  %s10742_s27 = scalar_lea.vmem (%p10700_p3), [#allocation3], %s10072_s11 }
  0x21   : > { %191 = vst [vmem:[%s10742_s27] sm:$0xf] (%p10700_p3), %v190_v0  ;;  %193 = vst [vmem:[%s10742_s27 + $0x4] sm:$0xf] (%p10700_p3), %v192_v1  ;;  %v200_v5 = vld [vmem:[%s10735_s23 + $0x28] sm:$0xf] (%p10700_p3) }
  0x22   : > { %195 = vst [vmem:[%s10742_s27 + $0x8] sm:$0xf] (%p10700_p3), %v194_v2  ;;  %197 = vst [vmem:[%s10742_s27 + $0xc] sm:$0xf] (%p10700_p3), %v196_v3  ;;  %v202_v6 = vld [vmem:[%s10735_s23 + $0x30] sm:$0xf] (%p10700_p3) }
  0x23   : > { %199 = vst [vmem:[%s10742_s27 + $0x10] sm:$0xf] %v198_v4  ;;  %v204_v7 = vld [vmem:[%s10735_s23 + $0x38] sm:$0xf]  ;;  %201 = vst [vmem:[%s10742_s27 + $0x14] sm:$0xf] %v200_v5 }
  0x24   : > { %203 = vst [vmem:[%s10742_s27 + $0x18] sm:$0xf] %v202_v6  ;;  %205 = vst [vmem:[%s10742_s27 + $0x1c] sm:$0xf] %v204_v7  ;;  %v206_v8 = vld [vmem:[%s10735_s23 + $0x40] sm:$0xf] }
  0x25   : > { %v208_v9 = vld [vmem:[%s10735_s23 + $0x48] sm:$0xf]  ;;  %v210_v10 = vld [vmem:[%s10735_s23 + $0x50] sm:$0xf]  ;;  %207 = vst [vmem:[%s10742_s27 + $0x20] sm:$0xf] %v206_v8 }
  0x26   : > { %209 = vst [vmem:[%s10742_s27 + $0x24] sm:$0xf] %v208_v9  ;;  %211 = vst [vmem:[%s10742_s27 + $0x28] sm:$0xf] %v210_v10  ;;  %v212_v11 = vld [vmem:[%s10735_s23 + $0x58] sm:$0xf] }
  0x27   : > { %v214_v12 = vld [vmem:[%s10735_s23 + $0x60] sm:$0xf]  ;;  %v216_v13 = vld [vmem:[%s10735_s23 + $0x68] sm:$0xf]  ;;  %213 = vst [vmem:[%s10742_s27 + $0x2c] sm:$0xf] %v212_v11 }
  0x28   : > { %215 = vst [vmem:[%s10742_s27 + $0x30] sm:$0xf] %v214_v12  ;;  %217 = vst [vmem:[%s10742_s27 + $0x34] sm:$0xf] %v216_v13  ;;  %v218_v14 = vld [vmem:[%s10735_s23 + $0x70] sm:$0xf] }
  0x29   : > { %v220_v15 = vld [vmem:[%s10735_s23 + $0x78] sm:$0xf]  ;;  %v222_v16 = vld [vmem:[%s10735_s23 + $0x80] sm:$0xf]  ;;  %219 = vst [vmem:[%s10742_s27 + $0x38] sm:$0xf] %v218_v14 }
  0x2a   : > { %221 = vst [vmem:[%s10742_s27 + $0x3c] sm:$0xf] %v220_v15  ;;  %223 = vst [vmem:[%s10742_s27 + $0x40] sm:$0xf] %v222_v16  ;;  %v224_v17 = vld [vmem:[%s10735_s23 + $0x88] sm:$0xf] }
  0x2b   : > { %v226_v18 = vld [vmem:[%s10735_s23 + $0x90] sm:$0xf]  ;;  %v228_v19 = vld [vmem:[%s10735_s23 + $0x98] sm:$0xf]  ;;  %225 = vst [vmem:[%s10742_s27 + $0x44] sm:$0xf] %v224_v17 }
  0x2c   : > { %227 = vst [vmem:[%s10742_s27 + $0x48] sm:$0xf] %v226_v18  ;;  %229 = vst [vmem:[%s10742_s27 + $0x4c] sm:$0xf] %v228_v19  ;;  %v230_v20 = vld [vmem:[%s10735_s23 + $0xa0] sm:$0xf] }
  0x2d   : > { %v232_v21 = vld [vmem:[%s10735_s23 + $0xa8] sm:$0xf]  ;;  %v234_v22 = vld [vmem:[%s10735_s23 + $0xb0] sm:$0xf]  ;;  %231 = vst [vmem:[%s10742_s27 + $0x50] sm:$0xf] %v230_v20 }
  0x2e   : > { %233 = vst [vmem:[%s10742_s27 + $0x54] sm:$0xf] %v232_v21  ;;  %235 = vst [vmem:[%s10742_s27 + $0x58] sm:$0xf] %v234_v22  ;;  %v236_v23 = vld [vmem:[%s10735_s23 + $0xb8] sm:$0xf] }
  0x2f   : > { %v238_v24 = vld [vmem:[%s10735_s23 + $0xc0] sm:$0xf]  ;;  %v240_v25 = vld [vmem:[%s10735_s23 + $0xc8] sm:$0xf]  ;;  %237 = vst [vmem:[%s10742_s27 + $0x5c] sm:$0xf] %v236_v23 }
  0x30   : > { %239 = vst [vmem:[%s10742_s27 + $0x60] sm:$0xf] %v238_v24  ;;  %241 = vst [vmem:[%s10742_s27 + $0x64] sm:$0xf] %v240_v25  ;;  %v242_v26 = vld [vmem:[%s10735_s23 + $0xd0] sm:$0xf] }
  0x31   : > { %v244_v27 = vld [vmem:[%s10735_s23 + $0xd8] sm:$0xf]  ;;  %v246_v28 = vld [vmem:[%s10735_s23 + $0xe0] sm:$0xf]  ;;  %243 = vst [vmem:[%s10742_s27 + $0x68] sm:$0xf] %v242_v26 }
  0x32   : > { %245 = vst [vmem:[%s10742_s27 + $0x6c] sm:$0xf] %v244_v27  ;;  %247 = vst [vmem:[%s10742_s27 + $0x70] sm:$0xf] %v246_v28  ;;  %v248_v29 = vld [vmem:[%s10735_s23 + $0xe8] sm:$0xf] }
  0x33   : > { %v250_v30 = vld [vmem:[%s10735_s23 + $0xf0] sm:$0xf]  ;;  %v252_v31 = vld [vmem:[%s10735_s23 + $0xf8] sm:$0xf]  ;;  %249 = vst [vmem:[%s10742_s27 + $0x74] sm:$0xf] %v248_v29 }
  0x34   : > { %251 = vst [vmem:[%s10742_s27 + $0x78] sm:$0xf] %v250_v30  ;;  %253 = vst [vmem:[%s10742_s27 + $0x7c] sm:$0xf] %v252_v31  ;;  %v254_v32 = vld [vmem:[%s10735_s23 + $0x100] sm:$0xf] }
  0x35   : > { %v256_v33 = vld [vmem:[%s10735_s23 + $0x108] sm:$0xf]  ;;  %v258_v34 = vld [vmem:[%s10735_s23 + $0x110] sm:$0xf]  ;;  %255 = vst [vmem:[%s10742_s27 + $0x80] sm:$0xf] %v254_v32 }
  0x36   : > { %257 = vst [vmem:[%s10742_s27 + $0x84] sm:$0xf] %v256_v33  ;;  %259 = vst [vmem:[%s10742_s27 + $0x88] sm:$0xf] %v258_v34  ;;  %v260_v35 = vld [vmem:[%s10735_s23 + $0x118] sm:$0xf] }
  0x37   : > { %v262_v36 = vld [vmem:[%s10735_s23 + $0x120] sm:$0xf]  ;;  %v264_v37 = vld [vmem:[%s10735_s23 + $0x128] sm:$0xf]  ;;  %261 = vst [vmem:[%s10742_s27 + $0x8c] sm:$0xf] %v260_v35 }
  0x38   : > { %263 = vst [vmem:[%s10742_s27 + $0x90] sm:$0xf] %v262_v36  ;;  %265 = vst [vmem:[%s10742_s27 + $0x94] sm:$0xf] %v264_v37  ;;  %v266_v38 = vld [vmem:[%s10735_s23 + $0x130] sm:$0xf] }
  0x39   : > { %v268_v39 = vld [vmem:[%s10735_s23 + $0x138] sm:$0xf]  ;;  %v270_v40 = vld [vmem:[%s10735_s23 + $0x140] sm:$0xf]  ;;  %267 = vst [vmem:[%s10742_s27 + $0x98] sm:$0xf] %v266_v38 }
  0x3a   : > { %269 = vst [vmem:[%s10742_s27 + $0x9c] sm:$0xf] %v268_v39  ;;  %271 = vst [vmem:[%s10742_s27 + $0xa0] sm:$0xf] %v270_v40  ;;  %v272_v41 = vld [vmem:[%s10735_s23 + $0x148] sm:$0xf] }
  0x3b   : > { %v274_v42 = vld [vmem:[%s10735_s23 + $0x150] sm:$0xf]  ;;  %v276_v43 = vld [vmem:[%s10735_s23 + $0x158] sm:$0xf]  ;;  %273 = vst [vmem:[%s10742_s27 + $0xa4] sm:$0xf] %v272_v41 }
  0x3c   : > { %275 = vst [vmem:[%s10742_s27 + $0xa8] sm:$0xf] %v274_v42  ;;  %277 = vst [vmem:[%s10742_s27 + $0xac] sm:$0xf] %v276_v43  ;;  %v278_v44 = vld [vmem:[%s10735_s23 + $0x160] sm:$0xf] }
  0x3d   : > { %v280_v45 = vld [vmem:[%s10735_s23 + $0x168] sm:$0xf]  ;;  %v282_v46 = vld [vmem:[%s10735_s23 + $0x170] sm:$0xf]  ;;  %279 = vst [vmem:[%s10742_s27 + $0xb0] sm:$0xf] %v278_v44 }
  0x3e   : > { %281 = vst [vmem:[%s10742_s27 + $0xb4] sm:$0xf] %v280_v45  ;;  %283 = vst [vmem:[%s10742_s27 + $0xb8] sm:$0xf] %v282_v46  ;;  %v284_v47 = vld [vmem:[%s10735_s23 + $0x178] sm:$0xf] }
  0x3f   : > { %v286_v48 = vld [vmem:[%s10735_s23 + $0x180] sm:$0xf]  ;;  %v288_v49 = vld [vmem:[%s10735_s23 + $0x188] sm:$0xf]  ;;  %285 = vst [vmem:[%s10742_s27 + $0xbc] sm:$0xf] %v284_v47 }
  0x40   : > { %287 = vst [vmem:[%s10742_s27 + $0xc0] sm:$0xf] %v286_v48  ;;  %289 = vst [vmem:[%s10742_s27 + $0xc4] sm:$0xf] %v288_v49  ;;  %v290_v50 = vld [vmem:[%s10735_s23 + $0x190] sm:$0xf] }
  0x41   : > { %v292_v51 = vld [vmem:[%s10735_s23 + $0x198] sm:$0xf]  ;;  %v294_v52 = vld [vmem:[%s10735_s23 + $0x1a0] sm:$0xf]  ;;  %291 = vst [vmem:[%s10742_s27 + $0xc8] sm:$0xf] %v290_v50 }
  0x42   : > { %293 = vst [vmem:[%s10742_s27 + $0xcc] sm:$0xf] %v292_v51  ;;  %295 = vst [vmem:[%s10742_s27 + $0xd0] sm:$0xf] %v294_v52  ;;  %v296_v53 = vld [vmem:[%s10735_s23 + $0x1a8] sm:$0xf] }
  0x43   : > { %v298_v54 = vld [vmem:[%s10735_s23 + $0x1b0] sm:$0xf]  ;;  %v300_v55 = vld [vmem:[%s10735_s23 + $0x1b8] sm:$0xf]  ;;  %297 = vst [vmem:[%s10742_s27 + $0xd4] sm:$0xf] %v296_v53 }
  0x44   : > { %299 = vst [vmem:[%s10742_s27 + $0xd8] sm:$0xf] %v298_v54  ;;  %301 = vst [vmem:[%s10742_s27 + $0xdc] sm:$0xf] %v300_v55  ;;  %v302_v56 = vld [vmem:[%s10735_s23 + $0x1c0] sm:$0xf] }
  0x45   : > { %v304_v57 = vld [vmem:[%s10735_s23 + $0x1c8] sm:$0xf]  ;;  %v306_v58 = vld [vmem:[%s10735_s23 + $0x1d0] sm:$0xf]  ;;  %303 = vst [vmem:[%s10742_s27 + $0xe0] sm:$0xf] %v302_v56 }
  0x46   : > { %305 = vst [vmem:[%s10742_s27 + $0xe4] sm:$0xf] %v304_v57  ;;  %307 = vst [vmem:[%s10742_s27 + $0xe8] sm:$0xf] %v306_v58  ;;  %v308_v59 = vld [vmem:[%s10735_s23 + $0x1d8] sm:$0xf] }
  0x47   : > { %v310_v60 = vld [vmem:[%s10735_s23 + $0x1e0] sm:$0xf]  ;;  %v312_v61 = vld [vmem:[%s10735_s23 + $0x1e8] sm:$0xf]  ;;  %309 = vst [vmem:[%s10742_s27 + $0xec] sm:$0xf] %v308_v59 }
  0x48   : > { %311 = vst [vmem:[%s10742_s27 + $0xf0] sm:$0xf] %v310_v60  ;;  %313 = vst [vmem:[%s10742_s27 + $0xf4] sm:$0xf] %v312_v61  ;;  %v314_v62 = vld [vmem:[%s10735_s23 + $0x1f0] sm:$0xf] }
  0x49   : > { %v316_v63 = vld [vmem:[%s10735_s23 + $0x1f8] sm:$0xf]  ;;  %v318_v0 = vld [vmem:[%s10735_s23 + $0x200] sm:$0xf]  ;;  %315 = vst [vmem:[%s10742_s27 + $0xf8] sm:$0xf] %v314_v62 }
  0x4a   : > { %317 = vst [vmem:[%s10742_s27 + $0xfc] sm:$0xf] %v316_v63  ;;  %319 = vst [vmem:[%s10742_s27 + $0x100] sm:$0xf] %v318_v0  ;;  %v320_v1 = vld [vmem:[%s10735_s23 + $0x208] sm:$0xf] }
  0x4b   : > { %v322_v2 = vld [vmem:[%s10735_s23 + $0x210] sm:$0xf]  ;;  %v324_v3 = vld [vmem:[%s10735_s23 + $0x218] sm:$0xf]  ;;  %321 = vst [vmem:[%s10742_s27 + $0x104] sm:$0xf] %v320_v1 }
  0x4c   : > { %323 = vst [vmem:[%s10742_s27 + $0x108] sm:$0xf] %v322_v2  ;;  %325 = vst [vmem:[%s10742_s27 + $0x10c] sm:$0xf] %v324_v3  ;;  %v326_v4 = vld [vmem:[%s10735_s23 + $0x220] sm:$0xf] }
  0x4d   : > { %v328_v5 = vld [vmem:[%s10735_s23 + $0x228] sm:$0xf]  ;;  %v330_v6 = vld [vmem:[%s10735_s23 + $0x230] sm:$0xf]  ;;  %327 = vst [vmem:[%s10742_s27 + $0x110] sm:$0xf] %v326_v4 }
  0x4e   : > { %329 = vst [vmem:[%s10742_s27 + $0x114] sm:$0xf] %v328_v5  ;;  %331 = vst [vmem:[%s10742_s27 + $0x118] sm:$0xf] %v330_v6  ;;  %v332_v7 = vld [vmem:[%s10735_s23 + $0x238] sm:$0xf] }
  0x4f   : > { %v334_v8 = vld [vmem:[%s10735_s23 + $0x240] sm:$0xf]  ;;  %v336_v9 = vld [vmem:[%s10735_s23 + $0x248] sm:$0xf]  ;;  %333 = vst [vmem:[%s10742_s27 + $0x11c] sm:$0xf] %v332_v7 }
  0x50   : > { %335 = vst [vmem:[%s10742_s27 + $0x120] sm:$0xf] %v334_v8  ;;  %337 = vst [vmem:[%s10742_s27 + $0x124] sm:$0xf] %v336_v9  ;;  %v338_v10 = vld [vmem:[%s10735_s23 + $0x250] sm:$0xf] }
  0x51   : > { %v340_v11 = vld [vmem:[%s10735_s23 + $0x258] sm:$0xf]  ;;  %v342_v12 = vld [vmem:[%s10735_s23 + $0x260] sm:$0xf]  ;;  %339 = vst [vmem:[%s10742_s27 + $0x128] sm:$0xf] %v338_v10 }
  0x52   : > { %341 = vst [vmem:[%s10742_s27 + $0x12c] sm:$0xf] %v340_v11  ;;  %343 = vst [vmem:[%s10742_s27 + $0x130] sm:$0xf] %v342_v12  ;;  %v344_v13 = vld [vmem:[%s10735_s23 + $0x268] sm:$0xf] }
  0x53   : > { %v346_v14 = vld [vmem:[%s10735_s23 + $0x270] sm:$0xf]  ;;  %v348_v15 = vld [vmem:[%s10735_s23 + $0x278] sm:$0xf]  ;;  %345 = vst [vmem:[%s10742_s27 + $0x134] sm:$0xf] %v344_v13 }
  0x54   : > { %347 = vst [vmem:[%s10742_s27 + $0x138] sm:$0xf] %v346_v14  ;;  %349 = vst [vmem:[%s10742_s27 + $0x13c] sm:$0xf] %v348_v15  ;;  %v350_v16 = vld [vmem:[%s10735_s23 + $0x280] sm:$0xf] }
  0x55   : > { %v352_v17 = vld [vmem:[%s10735_s23 + $0x288] sm:$0xf]  ;;  %v354_v18 = vld [vmem:[%s10735_s23 + $0x290] sm:$0xf]  ;;  %351 = vst [vmem:[%s10742_s27 + $0x140] sm:$0xf] %v350_v16 }
  0x56   : > { %353 = vst [vmem:[%s10742_s27 + $0x144] sm:$0xf] %v352_v17  ;;  %355 = vst [vmem:[%s10742_s27 + $0x148] sm:$0xf] %v354_v18  ;;  %v356_v19 = vld [vmem:[%s10735_s23 + $0x298] sm:$0xf] }
  0x57   : > { %v358_v20 = vld [vmem:[%s10735_s23 + $0x2a0] sm:$0xf]  ;;  %v360_v21 = vld [vmem:[%s10735_s23 + $0x2a8] sm:$0xf]  ;;  %357 = vst [vmem:[%s10742_s27 + $0x14c] sm:$0xf] %v356_v19 }
  0x58   : > { %359 = vst [vmem:[%s10742_s27 + $0x150] sm:$0xf] %v358_v20  ;;  %361 = vst [vmem:[%s10742_s27 + $0x154] sm:$0xf] %v360_v21  ;;  %v362_v22 = vld [vmem:[%s10735_s23 + $0x2b0] sm:$0xf] }
  0x59   : > { %v364_v23 = vld [vmem:[%s10735_s23 + $0x2b8] sm:$0xf]  ;;  %v366_v24 = vld [vmem:[%s10735_s23 + $0x2c0] sm:$0xf]  ;;  %363 = vst [vmem:[%s10742_s27 + $0x158] sm:$0xf] %v362_v22 }
  0x5a   : > { %365 = vst [vmem:[%s10742_s27 + $0x15c] sm:$0xf] %v364_v23  ;;  %367 = vst [vmem:[%s10742_s27 + $0x160] sm:$0xf] %v366_v24  ;;  %v368_v25 = vld [vmem:[%s10735_s23 + $0x2c8] sm:$0xf] }
  0x5b   : > { %v370_v26 = vld [vmem:[%s10735_s23 + $0x2d0] sm:$0xf]  ;;  %v372_v27 = vld [vmem:[%s10735_s23 + $0x2d8] sm:$0xf]  ;;  %369 = vst [vmem:[%s10742_s27 + $0x164] sm:$0xf] %v368_v25 }
  0x5c   : > { %371 = vst [vmem:[%s10742_s27 + $0x168] sm:$0xf] %v370_v26  ;;  %373 = vst [vmem:[%s10742_s27 + $0x16c] sm:$0xf] %v372_v27  ;;  %v374_v28 = vld [vmem:[%s10735_s23 + $0x2e0] sm:$0xf] }
  0x5d   : > { %v376_v29 = vld [vmem:[%s10735_s23 + $0x2e8] sm:$0xf]  ;;  %v378_v30 = vld [vmem:[%s10735_s23 + $0x2f0] sm:$0xf]  ;;  %375 = vst [vmem:[%s10742_s27 + $0x170] sm:$0xf] %v374_v28 }
  0x5e   : > { %377 = vst [vmem:[%s10742_s27 + $0x174] sm:$0xf] %v376_v29  ;;  %379 = vst [vmem:[%s10742_s27 + $0x178] sm:$0xf] %v378_v30  ;;  %v380_v31 = vld [vmem:[%s10735_s23 + $0x2f8] sm:$0xf] }
  0x5f   : > { %v382_v32 = vld [vmem:[%s10735_s23 + $0x300] sm:$0xf]  ;;  %v384_v33 = vld [vmem:[%s10735_s23 + $0x308] sm:$0xf]  ;;  %381 = vst [vmem:[%s10742_s27 + $0x17c] sm:$0xf] %v380_v31 }
  0x60   : > { %383 = vst [vmem:[%s10742_s27 + $0x180] sm:$0xf] %v382_v32  ;;  %385 = vst [vmem:[%s10742_s27 + $0x184] sm:$0xf] %v384_v33  ;;  %v386_v34 = vld [vmem:[%s10735_s23 + $0x310] sm:$0xf] }
  0x61   : > { %v388_v35 = vld [vmem:[%s10735_s23 + $0x318] sm:$0xf]  ;;  %v390_v36 = vld [vmem:[%s10735_s23 + $0x320] sm:$0xf]  ;;  %387 = vst [vmem:[%s10742_s27 + $0x188] sm:$0xf] %v386_v34 }
  0x62   : > { %389 = vst [vmem:[%s10742_s27 + $0x18c] sm:$0xf] %v388_v35  ;;  %391 = vst [vmem:[%s10742_s27 + $0x190] sm:$0xf] %v390_v36  ;;  %v392_v37 = vld [vmem:[%s10735_s23 + $0x328] sm:$0xf] }
  0x63   : > { %v394_v38 = vld [vmem:[%s10735_s23 + $0x330] sm:$0xf]  ;;  %v396_v39 = vld [vmem:[%s10735_s23 + $0x338] sm:$0xf]  ;;  %393 = vst [vmem:[%s10742_s27 + $0x194] sm:$0xf] %v392_v37 }
  0x64   : > { %395 = vst [vmem:[%s10742_s27 + $0x198] sm:$0xf] %v394_v38  ;;  %397 = vst [vmem:[%s10742_s27 + $0x19c] sm:$0xf] %v396_v39  ;;  %v398_v40 = vld [vmem:[%s10735_s23 + $0x340] sm:$0xf] }
  0x65   : > { %v400_v41 = vld [vmem:[%s10735_s23 + $0x348] sm:$0xf]  ;;  %v402_v42 = vld [vmem:[%s10735_s23 + $0x350] sm:$0xf]  ;;  %399 = vst [vmem:[%s10742_s27 + $0x1a0] sm:$0xf] %v398_v40 }
  0x66   : > { %401 = vst [vmem:[%s10742_s27 + $0x1a4] sm:$0xf] %v400_v41  ;;  %403 = vst [vmem:[%s10742_s27 + $0x1a8] sm:$0xf] %v402_v42  ;;  %v404_v43 = vld [vmem:[%s10735_s23 + $0x358] sm:$0xf] }
  0x67   : > { %v406_v44 = vld [vmem:[%s10735_s23 + $0x360] sm:$0xf]  ;;  %v408_v45 = vld [vmem:[%s10735_s23 + $0x368] sm:$0xf]  ;;  %405 = vst [vmem:[%s10742_s27 + $0x1ac] sm:$0xf] %v404_v43 }
  0x68   : > { %407 = vst [vmem:[%s10742_s27 + $0x1b0] sm:$0xf] %v406_v44  ;;  %409 = vst [vmem:[%s10742_s27 + $0x1b4] sm:$0xf] %v408_v45  ;;  %v410_v46 = vld [vmem:[%s10735_s23 + $0x370] sm:$0xf] }
  0x69   : > { %v412_v47 = vld [vmem:[%s10735_s23 + $0x378] sm:$0xf]  ;;  %v414_v48 = vld [vmem:[%s10735_s23 + $0x380] sm:$0xf]  ;;  %411 = vst [vmem:[%s10742_s27 + $0x1b8] sm:$0xf] %v410_v46 }
  0x6a   : > { %413 = vst [vmem:[%s10742_s27 + $0x1bc] sm:$0xf] %v412_v47  ;;  %415 = vst [vmem:[%s10742_s27 + $0x1c0] sm:$0xf] %v414_v48  ;;  %v416_v49 = vld [vmem:[%s10735_s23 + $0x388] sm:$0xf] }
  0x6b   : > { %v418_v50 = vld [vmem:[%s10735_s23 + $0x390] sm:$0xf]  ;;  %v420_v51 = vld [vmem:[%s10735_s23 + $0x398] sm:$0xf]  ;;  %417 = vst [vmem:[%s10742_s27 + $0x1c4] sm:$0xf] %v416_v49 }
  0x6c   : > { %419 = vst [vmem:[%s10742_s27 + $0x1c8] sm:$0xf] %v418_v50  ;;  %421 = vst [vmem:[%s10742_s27 + $0x1cc] sm:$0xf] %v420_v51  ;;  %v422_v52 = vld [vmem:[%s10735_s23 + $0x3a0] sm:$0xf] }
  0x6d   : > { %v424_v53 = vld [vmem:[%s10735_s23 + $0x3a8] sm:$0xf]  ;;  %v426_v54 = vld [vmem:[%s10735_s23 + $0x3b0] sm:$0xf]  ;;  %423 = vst [vmem:[%s10742_s27 + $0x1d0] sm:$0xf] %v422_v52 }
  0x6e   : > { %425 = vst [vmem:[%s10742_s27 + $0x1d4] sm:$0xf] %v424_v53  ;;  %427 = vst [vmem:[%s10742_s27 + $0x1d8] sm:$0xf] %v426_v54  ;;  %v428_v55 = vld [vmem:[%s10735_s23 + $0x3b8] sm:$0xf] }
  0x6f   : > { %v430_v56 = vld [vmem:[%s10735_s23 + $0x3c0] sm:$0xf]  ;;  %v432_v57 = vld [vmem:[%s10735_s23 + $0x3c8] sm:$0xf]  ;;  %429 = vst [vmem:[%s10742_s27 + $0x1dc] sm:$0xf] %v428_v55 }
  0x70   : > { %431 = vst [vmem:[%s10742_s27 + $0x1e0] sm:$0xf] %v430_v56  ;;  %433 = vst [vmem:[%s10742_s27 + $0x1e4] sm:$0xf] %v432_v57  ;;  %v434_v58 = vld [vmem:[%s10735_s23 + $0x3d0] sm:$0xf] }
  0x71   : > { %v436_v59 = vld [vmem:[%s10735_s23 + $0x3d8] sm:$0xf]  ;;  %v438_v60 = vld [vmem:[%s10735_s23 + $0x3e0] sm:$0xf]  ;;  %435 = vst [vmem:[%s10742_s27 + $0x1e8] sm:$0xf] %v434_v58 }
  0x72   : > { %437 = vst [vmem:[%s10742_s27 + $0x1ec] sm:$0xf] %v436_v59  ;;  %439 = vst [vmem:[%s10742_s27 + $0x1f0] sm:$0xf] %v438_v60  ;;  %v440_v61 = vld [vmem:[%s10735_s23 + $0x3e8] sm:$0xf] }
  0x73   : > { %v442_v62 = vld [vmem:[%s10735_s23 + $0x3f0] sm:$0xf]  ;;  %v444_v63 = vld [vmem:[%s10735_s23 + $0x3f8] sm:$0xf]  ;;  %441 = vst [vmem:[%s10742_s27 + $0x1f4] sm:$0xf] %v440_v61 }
  0x74   : > { %443 = vst [vmem:[%s10742_s27 + $0x1f8] sm:$0xf] %v442_v62  ;;  %445 = vst [vmem:[%s10742_s27 + $0x1fc] sm:$0xf] %v444_v63  ;;  %v446_v0 = vld [vmem:[%s10735_s23 + $0x400] sm:$0xf] }
  0x75   : > { %v448_v1 = vld [vmem:[%s10735_s23 + $0x408] sm:$0xf]  ;;  %v450_v2 = vld [vmem:[%s10735_s23 + $0x410] sm:$0xf]  ;;  %447 = vst [vmem:[%s10742_s27 + $0x200] sm:$0xf] %v446_v0 }
  0x76   : > { %449 = vst [vmem:[%s10742_s27 + $0x204] sm:$0xf] %v448_v1  ;;  %451 = vst [vmem:[%s10742_s27 + $0x208] sm:$0xf] %v450_v2  ;;  %v452_v3 = vld [vmem:[%s10735_s23 + $0x418] sm:$0xf] }
  0x77   : > { %v454_v4 = vld [vmem:[%s10735_s23 + $0x420] sm:$0xf]  ;;  %v456_v5 = vld [vmem:[%s10735_s23 + $0x428] sm:$0xf]  ;;  %453 = vst [vmem:[%s10742_s27 + $0x20c] sm:$0xf] %v452_v3 }
  0x78   : > { %455 = vst [vmem:[%s10742_s27 + $0x210] sm:$0xf] %v454_v4  ;;  %457 = vst [vmem:[%s10742_s27 + $0x214] sm:$0xf] %v456_v5  ;;  %v458_v6 = vld [vmem:[%s10735_s23 + $0x430] sm:$0xf] }
  0x79   : > { %v460_v7 = vld [vmem:[%s10735_s23 + $0x438] sm:$0xf]  ;;  %v462_v8 = vld [vmem:[%s10735_s23 + $0x440] sm:$0xf]  ;;  %459 = vst [vmem:[%s10742_s27 + $0x218] sm:$0xf] %v458_v6 }
  0x7a   : > { %461 = vst [vmem:[%s10742_s27 + $0x21c] sm:$0xf] %v460_v7  ;;  %463 = vst [vmem:[%s10742_s27 + $0x220] sm:$0xf] %v462_v8  ;;  %v464_v9 = vld [vmem:[%s10735_s23 + $0x448] sm:$0xf] }
  0x7b   : > { %v466_v10 = vld [vmem:[%s10735_s23 + $0x450] sm:$0xf]  ;;  %v468_v11 = vld [vmem:[%s10735_s23 + $0x458] sm:$0xf]  ;;  %465 = vst [vmem:[%s10742_s27 + $0x224] sm:$0xf] %v464_v9 }
  0x7c   : > { %467 = vst [vmem:[%s10742_s27 + $0x228] sm:$0xf] %v466_v10  ;;  %469 = vst [vmem:[%s10742_s27 + $0x22c] sm:$0xf] %v468_v11  ;;  %v470_v12 = vld [vmem:[%s10735_s23 + $0x460] sm:$0xf] }
  0x7d   : > { %v472_v13 = vld [vmem:[%s10735_s23 + $0x468] sm:$0xf]  ;;  %v474_v14 = vld [vmem:[%s10735_s23 + $0x470] sm:$0xf]  ;;  %471 = vst [vmem:[%s10742_s27 + $0x230] sm:$0xf] %v470_v12 }
  0x7e   : > { %473 = vst [vmem:[%s10742_s27 + $0x234] sm:$0xf] %v472_v13  ;;  %475 = vst [vmem:[%s10742_s27 + $0x238] sm:$0xf] %v474_v14  ;;  %v476_v15 = vld [vmem:[%s10735_s23 + $0x478] sm:$0xf] }
  0x7f   : > { %v478_v16 = vld [vmem:[%s10735_s23 + $0x480] sm:$0xf]  ;;  %v480_v17 = vld [vmem:[%s10735_s23 + $0x488] sm:$0xf]  ;;  %477 = vst [vmem:[%s10742_s27 + $0x23c] sm:$0xf] %v476_v15 }
  0x80   : > { %479 = vst [vmem:[%s10742_s27 + $0x240] sm:$0xf] %v478_v16  ;;  %481 = vst [vmem:[%s10742_s27 + $0x244] sm:$0xf] %v480_v17  ;;  %v482_v18 = vld [vmem:[%s10735_s23 + $0x490] sm:$0xf] }
  0x81   : > { %v484_v19 = vld [vmem:[%s10735_s23 + $0x498] sm:$0xf]  ;;  %v486_v20 = vld [vmem:[%s10735_s23 + $0x4a0] sm:$0xf]  ;;  %483 = vst [vmem:[%s10742_s27 + $0x248] sm:$0xf] %v482_v18 }
  0x82   : > { %485 = vst [vmem:[%s10742_s27 + $0x24c] sm:$0xf] %v484_v19  ;;  %487 = vst [vmem:[%s10742_s27 + $0x250] sm:$0xf] %v486_v20  ;;  %v488_v21 = vld [vmem:[%s10735_s23 + $0x4a8] sm:$0xf] }
  0x83   : > { %v490_v22 = vld [vmem:[%s10735_s23 + $0x4b0] sm:$0xf]  ;;  %v492_v23 = vld [vmem:[%s10735_s23 + $0x4b8] sm:$0xf]  ;;  %489 = vst [vmem:[%s10742_s27 + $0x254] sm:$0xf] %v488_v21 }
  0x84   : > { %491 = vst [vmem:[%s10742_s27 + $0x258] sm:$0xf] %v490_v22  ;;  %493 = vst [vmem:[%s10742_s27 + $0x25c] sm:$0xf] %v492_v23  ;;  %v494_v24 = vld [vmem:[%s10735_s23 + $0x4c0] sm:$0xf] }
  0x85   : > { %v496_v25 = vld [vmem:[%s10735_s23 + $0x4c8] sm:$0xf]  ;;  %v498_v26 = vld [vmem:[%s10735_s23 + $0x4d0] sm:$0xf]  ;;  %495 = vst [vmem:[%s10742_s27 + $0x260] sm:$0xf] %v494_v24 }
  0x86   : > { %497 = vst [vmem:[%s10742_s27 + $0x264] sm:$0xf] %v496_v25  ;;  %499 = vst [vmem:[%s10742_s27 + $0x268] sm:$0xf] %v498_v26  ;;  %v500_v27 = vld [vmem:[%s10735_s23 + $0x4d8] sm:$0xf] }
  0x87   : > { %v502_v28 = vld [vmem:[%s10735_s23 + $0x4e0] sm:$0xf]  ;;  %v504_v29 = vld [vmem:[%s10735_s23 + $0x4e8] sm:$0xf]  ;;  %501 = vst [vmem:[%s10742_s27 + $0x26c] sm:$0xf] %v500_v27 }
  0x88   : > { %503 = vst [vmem:[%s10742_s27 + $0x270] sm:$0xf] %v502_v28  ;;  %505 = vst [vmem:[%s10742_s27 + $0x274] sm:$0xf] %v504_v29  ;;  %v506_v30 = vld [vmem:[%s10735_s23 + $0x4f0] sm:$0xf] }
  0x89   : > { %v508_v31 = vld [vmem:[%s10735_s23 + $0x4f8] sm:$0xf]  ;;  %v510_v32 = vld [vmem:[%s10735_s23 + $0x500] sm:$0xf]  ;;  %507 = vst [vmem:[%s10742_s27 + $0x278] sm:$0xf] %v506_v30 }
  0x8a   : > { %509 = vst [vmem:[%s10742_s27 + $0x27c] sm:$0xf] %v508_v31  ;;  %511 = vst [vmem:[%s10742_s27 + $0x280] sm:$0xf] %v510_v32  ;;  %v512_v33 = vld [vmem:[%s10735_s23 + $0x508] sm:$0xf] }
  0x8b   : > { %v514_v34 = vld [vmem:[%s10735_s23 + $0x510] sm:$0xf]  ;;  %v516_v35 = vld [vmem:[%s10735_s23 + $0x518] sm:$0xf]  ;;  %513 = vst [vmem:[%s10742_s27 + $0x284] sm:$0xf] %v512_v33 }
  0x8c   : > { %515 = vst [vmem:[%s10742_s27 + $0x288] sm:$0xf] %v514_v34  ;;  %517 = vst [vmem:[%s10742_s27 + $0x28c] sm:$0xf] %v516_v35  ;;  %v518_v36 = vld [vmem:[%s10735_s23 + $0x520] sm:$0xf] }
  0x8d   : > { %v520_v37 = vld [vmem:[%s10735_s23 + $0x528] sm:$0xf]  ;;  %v522_v38 = vld [vmem:[%s10735_s23 + $0x530] sm:$0xf]  ;;  %519 = vst [vmem:[%s10742_s27 + $0x290] sm:$0xf] %v518_v36 }
  0x8e   : > { %521 = vst [vmem:[%s10742_s27 + $0x294] sm:$0xf] %v520_v37  ;;  %523 = vst [vmem:[%s10742_s27 + $0x298] sm:$0xf] %v522_v38  ;;  %v524_v39 = vld [vmem:[%s10735_s23 + $0x538] sm:$0xf] }
  0x8f   : > { %v526_v40 = vld [vmem:[%s10735_s23 + $0x540] sm:$0xf]  ;;  %v528_v41 = vld [vmem:[%s10735_s23 + $0x548] sm:$0xf]  ;;  %525 = vst [vmem:[%s10742_s27 + $0x29c] sm:$0xf] %v524_v39 }
  0x90   : > { %527 = vst [vmem:[%s10742_s27 + $0x2a0] sm:$0xf] %v526_v40  ;;  %529 = vst [vmem:[%s10742_s27 + $0x2a4] sm:$0xf] %v528_v41  ;;  %v530_v42 = vld [vmem:[%s10735_s23 + $0x550] sm:$0xf] }
  0x91   : > { %v532_v43 = vld [vmem:[%s10735_s23 + $0x558] sm:$0xf]  ;;  %v534_v44 = vld [vmem:[%s10735_s23 + $0x560] sm:$0xf]  ;;  %531 = vst [vmem:[%s10742_s27 + $0x2a8] sm:$0xf] %v530_v42 }
  0x92   : > { %533 = vst [vmem:[%s10742_s27 + $0x2ac] sm:$0xf] %v532_v43  ;;  %535 = vst [vmem:[%s10742_s27 + $0x2b0] sm:$0xf] %v534_v44  ;;  %v536_v45 = vld [vmem:[%s10735_s23 + $0x568] sm:$0xf] }
  0x93   : > { %v538_v46 = vld [vmem:[%s10735_s23 + $0x570] sm:$0xf]  ;;  %v540_v47 = vld [vmem:[%s10735_s23 + $0x578] sm:$0xf]  ;;  %537 = vst [vmem:[%s10742_s27 + $0x2b4] sm:$0xf] %v536_v45 }
  0x94   : > { %539 = vst [vmem:[%s10742_s27 + $0x2b8] sm:$0xf] %v538_v46  ;;  %541 = vst [vmem:[%s10742_s27 + $0x2bc] sm:$0xf] %v540_v47  ;;  %v542_v48 = vld [vmem:[%s10735_s23 + $0x580] sm:$0xf] }
  0x95   : > { %v544_v49 = vld [vmem:[%s10735_s23 + $0x588] sm:$0xf]  ;;  %v546_v50 = vld [vmem:[%s10735_s23 + $0x590] sm:$0xf]  ;;  %543 = vst [vmem:[%s10742_s27 + $0x2c0] sm:$0xf] %v542_v48 }
  0x96   : > { %545 = vst [vmem:[%s10742_s27 + $0x2c4] sm:$0xf] %v544_v49  ;;  %547 = vst [vmem:[%s10742_s27 + $0x2c8] sm:$0xf] %v546_v50  ;;  %v548_v51 = vld [vmem:[%s10735_s23 + $0x598] sm:$0xf] }
  0x97   : > { %v550_v52 = vld [vmem:[%s10735_s23 + $0x5a0] sm:$0xf]  ;;  %v552_v53 = vld [vmem:[%s10735_s23 + $0x5a8] sm:$0xf]  ;;  %549 = vst [vmem:[%s10742_s27 + $0x2cc] sm:$0xf] %v548_v51 }
  0x98   : > { %551 = vst [vmem:[%s10742_s27 + $0x2d0] sm:$0xf] %v550_v52  ;;  %553 = vst [vmem:[%s10742_s27 + $0x2d4] sm:$0xf] %v552_v53  ;;  %v554_v54 = vld [vmem:[%s10735_s23 + $0x5b0] sm:$0xf] }
  0x99   : > { %v556_v55 = vld [vmem:[%s10735_s23 + $0x5b8] sm:$0xf]  ;;  %v558_v56 = vld [vmem:[%s10735_s23 + $0x5c0] sm:$0xf]  ;;  %555 = vst [vmem:[%s10742_s27 + $0x2d8] sm:$0xf] %v554_v54 }
  0x9a   : > { %557 = vst [vmem:[%s10742_s27 + $0x2dc] sm:$0xf] %v556_v55  ;;  %559 = vst [vmem:[%s10742_s27 + $0x2e0] sm:$0xf] %v558_v56  ;;  %v560_v57 = vld [vmem:[%s10735_s23 + $0x5c8] sm:$0xf] }
  0x9b   : > { %v562_v58 = vld [vmem:[%s10735_s23 + $0x5d0] sm:$0xf]  ;;  %v564_v59 = vld [vmem:[%s10735_s23 + $0x5d8] sm:$0xf]  ;;  %561 = vst [vmem:[%s10742_s27 + $0x2e4] sm:$0xf] %v560_v57 }
  0x9c   : > { %563 = vst [vmem:[%s10742_s27 + $0x2e8] sm:$0xf] %v562_v58  ;;  %565 = vst [vmem:[%s10742_s27 + $0x2ec] sm:$0xf] %v564_v59  ;;  %v566_v60 = vld [vmem:[%s10735_s23 + $0x5e0] sm:$0xf] }
  0x9d   : > { %v568_v61 = vld [vmem:[%s10735_s23 + $0x5e8] sm:$0xf]  ;;  %v570_v62 = vld [vmem:[%s10735_s23 + $0x5f0] sm:$0xf]  ;;  %567 = vst [vmem:[%s10742_s27 + $0x2f0] sm:$0xf] %v566_v60 }
  0x9e   : > { %569 = vst [vmem:[%s10742_s27 + $0x2f4] sm:$0xf] %v568_v61  ;;  %571 = vst [vmem:[%s10742_s27 + $0x2f8] sm:$0xf] %v570_v62  ;;  %v572_v63 = vld [vmem:[%s10735_s23 + $0x5f8] sm:$0xf] }
  0x9f   : > { %v574_v0 = vld [vmem:[%s10735_s23 + $0x600] sm:$0xf]  ;;  %v576_v1 = vld [vmem:[%s10735_s23 + $0x608] sm:$0xf]  ;;  %573 = vst [vmem:[%s10742_s27 + $0x2fc] sm:$0xf] %v572_v63 }
  0xa0   : > { %575 = vst [vmem:[%s10742_s27 + $0x300] sm:$0xf] %v574_v0  ;;  %577 = vst [vmem:[%s10742_s27 + $0x304] sm:$0xf] %v576_v1  ;;  %v578_v2 = vld [vmem:[%s10735_s23 + $0x610] sm:$0xf] }
  0xa1   : > { %v580_v3 = vld [vmem:[%s10735_s23 + $0x618] sm:$0xf]  ;;  %v582_v4 = vld [vmem:[%s10735_s23 + $0x620] sm:$0xf]  ;;  %579 = vst [vmem:[%s10742_s27 + $0x308] sm:$0xf] %v578_v2 }
  0xa2   : > { %581 = vst [vmem:[%s10742_s27 + $0x30c] sm:$0xf] %v580_v3  ;;  %583 = vst [vmem:[%s10742_s27 + $0x310] sm:$0xf] %v582_v4  ;;  %v584_v5 = vld [vmem:[%s10735_s23 + $0x628] sm:$0xf] }
  0xa3   : > { %v586_v6 = vld [vmem:[%s10735_s23 + $0x630] sm:$0xf]  ;;  %v588_v7 = vld [vmem:[%s10735_s23 + $0x638] sm:$0xf]  ;;  %585 = vst [vmem:[%s10742_s27 + $0x314] sm:$0xf] %v584_v5 }
  0xa4   : > { %587 = vst [vmem:[%s10742_s27 + $0x318] sm:$0xf] %v586_v6  ;;  %589 = vst [vmem:[%s10742_s27 + $0x31c] sm:$0xf] %v588_v7  ;;  %v590_v8 = vld [vmem:[%s10735_s23 + $0x640] sm:$0xf] }
  0xa5   : > { %v592_v9 = vld [vmem:[%s10735_s23 + $0x648] sm:$0xf]  ;;  %v594_v10 = vld [vmem:[%s10735_s23 + $0x650] sm:$0xf]  ;;  %591 = vst [vmem:[%s10742_s27 + $0x320] sm:$0xf] %v590_v8 }
  0xa6   : > { %593 = vst [vmem:[%s10742_s27 + $0x324] sm:$0xf] %v592_v9  ;;  %595 = vst [vmem:[%s10742_s27 + $0x328] sm:$0xf] %v594_v10  ;;  %v596_v11 = vld [vmem:[%s10735_s23 + $0x658] sm:$0xf] }
  0xa7   : > { %v598_v12 = vld [vmem:[%s10735_s23 + $0x660] sm:$0xf]  ;;  %v600_v13 = vld [vmem:[%s10735_s23 + $0x668] sm:$0xf]  ;;  %597 = vst [vmem:[%s10742_s27 + $0x32c] sm:$0xf] %v596_v11 }
  0xa8   : > { %599 = vst [vmem:[%s10742_s27 + $0x330] sm:$0xf] %v598_v12  ;;  %601 = vst [vmem:[%s10742_s27 + $0x334] sm:$0xf] %v600_v13  ;;  %v602_v14 = vld [vmem:[%s10735_s23 + $0x670] sm:$0xf] }
  0xa9   : > { %v604_v15 = vld [vmem:[%s10735_s23 + $0x678] sm:$0xf]  ;;  %v606_v16 = vld [vmem:[%s10735_s23 + $0x680] sm:$0xf]  ;;  %603 = vst [vmem:[%s10742_s27 + $0x338] sm:$0xf] %v602_v14 }
  0xaa   : > { %605 = vst [vmem:[%s10742_s27 + $0x33c] sm:$0xf] %v604_v15  ;;  %607 = vst [vmem:[%s10742_s27 + $0x340] sm:$0xf] %v606_v16  ;;  %v608_v17 = vld [vmem:[%s10735_s23 + $0x688] sm:$0xf] }
  0xab   : > { %v610_v18 = vld [vmem:[%s10735_s23 + $0x690] sm:$0xf]  ;;  %v612_v19 = vld [vmem:[%s10735_s23 + $0x698] sm:$0xf]  ;;  %609 = vst [vmem:[%s10742_s27 + $0x344] sm:$0xf] %v608_v17 }
  0xac   : > { %611 = vst [vmem:[%s10742_s27 + $0x348] sm:$0xf] %v610_v18  ;;  %613 = vst [vmem:[%s10742_s27 + $0x34c] sm:$0xf] %v612_v19  ;;  %v614_v20 = vld [vmem:[%s10735_s23 + $0x6a0] sm:$0xf] }
  0xad   : > { %v616_v21 = vld [vmem:[%s10735_s23 + $0x6a8] sm:$0xf]  ;;  %v618_v22 = vld [vmem:[%s10735_s23 + $0x6b0] sm:$0xf]  ;;  %615 = vst [vmem:[%s10742_s27 + $0x350] sm:$0xf] %v614_v20 }
  0xae   : > { %617 = vst [vmem:[%s10742_s27 + $0x354] sm:$0xf] %v616_v21  ;;  %619 = vst [vmem:[%s10742_s27 + $0x358] sm:$0xf] %v618_v22  ;;  %v620_v23 = vld [vmem:[%s10735_s23 + $0x6b8] sm:$0xf] }
  0xaf   : > { %v622_v24 = vld [vmem:[%s10735_s23 + $0x6c0] sm:$0xf]  ;;  %v624_v25 = vld [vmem:[%s10735_s23 + $0x6c8] sm:$0xf]  ;;  %621 = vst [vmem:[%s10742_s27 + $0x35c] sm:$0xf] %v620_v23 }
  0xb0   : > { %623 = vst [vmem:[%s10742_s27 + $0x360] sm:$0xf] %v622_v24  ;;  %625 = vst [vmem:[%s10742_s27 + $0x364] sm:$0xf] %v624_v25  ;;  %v626_v26 = vld [vmem:[%s10735_s23 + $0x6d0] sm:$0xf] }
  0xb1   : > { %v628_v27 = vld [vmem:[%s10735_s23 + $0x6d8] sm:$0xf]  ;;  %v630_v28 = vld [vmem:[%s10735_s23 + $0x6e0] sm:$0xf]  ;;  %627 = vst [vmem:[%s10742_s27 + $0x368] sm:$0xf] %v626_v26 }
  0xb2   : > { %629 = vst [vmem:[%s10742_s27 + $0x36c] sm:$0xf] %v628_v27  ;;  %631 = vst [vmem:[%s10742_s27 + $0x370] sm:$0xf] %v630_v28  ;;  %v632_v29 = vld [vmem:[%s10735_s23 + $0x6e8] sm:$0xf] }
  0xb3   : > { %v634_v30 = vld [vmem:[%s10735_s23 + $0x6f0] sm:$0xf]  ;;  %v636_v31 = vld [vmem:[%s10735_s23 + $0x6f8] sm:$0xf]  ;;  %633 = vst [vmem:[%s10742_s27 + $0x374] sm:$0xf] %v632_v29 }
  0xb4   : > { %635 = vst [vmem:[%s10742_s27 + $0x378] sm:$0xf] %v634_v30  ;;  %637 = vst [vmem:[%s10742_s27 + $0x37c] sm:$0xf] %v636_v31  ;;  %v638_v32 = vld [vmem:[%s10735_s23 + $0x700] sm:$0xf] }
  0xb5   : > { %v640_v33 = vld [vmem:[%s10735_s23 + $0x708] sm:$0xf]  ;;  %v642_v34 = vld [vmem:[%s10735_s23 + $0x710] sm:$0xf]  ;;  %639 = vst [vmem:[%s10742_s27 + $0x380] sm:$0xf] %v638_v32 }
  0xb6   : > { %641 = vst [vmem:[%s10742_s27 + $0x384] sm:$0xf] %v640_v33  ;;  %643 = vst [vmem:[%s10742_s27 + $0x388] sm:$0xf] %v642_v34  ;;  %v644_v35 = vld [vmem:[%s10735_s23 + $0x718] sm:$0xf] }
  0xb7   : > { %v646_v36 = vld [vmem:[%s10735_s23 + $0x720] sm:$0xf]  ;;  %v648_v37 = vld [vmem:[%s10735_s23 + $0x728] sm:$0xf]  ;;  %645 = vst [vmem:[%s10742_s27 + $0x38c] sm:$0xf] %v644_v35 }
  0xb8   : > { %647 = vst [vmem:[%s10742_s27 + $0x390] sm:$0xf] %v646_v36  ;;  %649 = vst [vmem:[%s10742_s27 + $0x394] sm:$0xf] %v648_v37  ;;  %v650_v38 = vld [vmem:[%s10735_s23 + $0x730] sm:$0xf] }
  0xb9   : > { %v652_v39 = vld [vmem:[%s10735_s23 + $0x738] sm:$0xf]  ;;  %v654_v40 = vld [vmem:[%s10735_s23 + $0x740] sm:$0xf]  ;;  %651 = vst [vmem:[%s10742_s27 + $0x398] sm:$0xf] %v650_v38 }
  0xba   : > { %653 = vst [vmem:[%s10742_s27 + $0x39c] sm:$0xf] %v652_v39  ;;  %655 = vst [vmem:[%s10742_s27 + $0x3a0] sm:$0xf] %v654_v40  ;;  %v656_v41 = vld [vmem:[%s10735_s23 + $0x748] sm:$0xf] }
  0xbb   : > { %v658_v42 = vld [vmem:[%s10735_s23 + $0x750] sm:$0xf]  ;;  %v660_v43 = vld [vmem:[%s10735_s23 + $0x758] sm:$0xf]  ;;  %657 = vst [vmem:[%s10742_s27 + $0x3a4] sm:$0xf] %v656_v41 }
  0xbc   : > { %659 = vst [vmem:[%s10742_s27 + $0x3a8] sm:$0xf] %v658_v42  ;;  %661 = vst [vmem:[%s10742_s27 + $0x3ac] sm:$0xf] %v660_v43  ;;  %v662_v44 = vld [vmem:[%s10735_s23 + $0x760] sm:$0xf] }
  0xbd   : > { %v664_v45 = vld [vmem:[%s10735_s23 + $0x768] sm:$0xf]  ;;  %v666_v46 = vld [vmem:[%s10735_s23 + $0x770] sm:$0xf]  ;;  %663 = vst [vmem:[%s10742_s27 + $0x3b0] sm:$0xf] %v662_v44 }
  0xbe   : > { %665 = vst [vmem:[%s10742_s27 + $0x3b4] sm:$0xf] %v664_v45  ;;  %667 = vst [vmem:[%s10742_s27 + $0x3b8] sm:$0xf] %v666_v46  ;;  %v668_v47 = vld [vmem:[%s10735_s23 + $0x778] sm:$0xf] }
  0xbf   : > { %v670_v48 = vld [vmem:[%s10735_s23 + $0x780] sm:$0xf]  ;;  %v672_v49 = vld [vmem:[%s10735_s23 + $0x788] sm:$0xf]  ;;  %669 = vst [vmem:[%s10742_s27 + $0x3bc] sm:$0xf] %v668_v47 }
  0xc0   : > { %671 = vst [vmem:[%s10742_s27 + $0x3c0] sm:$0xf] %v670_v48  ;;  %673 = vst [vmem:[%s10742_s27 + $0x3c4] sm:$0xf] %v672_v49  ;;  %v674_v50 = vld [vmem:[%s10735_s23 + $0x790] sm:$0xf] }
  0xc1   : > { %v676_v51 = vld [vmem:[%s10735_s23 + $0x798] sm:$0xf]  ;;  %v678_v52 = vld [vmem:[%s10735_s23 + $0x7a0] sm:$0xf]  ;;  %675 = vst [vmem:[%s10742_s27 + $0x3c8] sm:$0xf] %v674_v50 }
  0xc2   : > { %677 = vst [vmem:[%s10742_s27 + $0x3cc] sm:$0xf] %v676_v51  ;;  %679 = vst [vmem:[%s10742_s27 + $0x3d0] sm:$0xf] %v678_v52  ;;  %v680_v53 = vld [vmem:[%s10735_s23 + $0x7a8] sm:$0xf] }
  0xc3   : > { %v682_v54 = vld [vmem:[%s10735_s23 + $0x7b0] sm:$0xf]  ;;  %v684_v55 = vld [vmem:[%s10735_s23 + $0x7b8] sm:$0xf]  ;;  %681 = vst [vmem:[%s10742_s27 + $0x3d4] sm:$0xf] %v680_v53 }
  0xc4   : > { %683 = vst [vmem:[%s10742_s27 + $0x3d8] sm:$0xf] %v682_v54  ;;  %685 = vst [vmem:[%s10742_s27 + $0x3dc] sm:$0xf] %v684_v55  ;;  %v686_v56 = vld [vmem:[%s10735_s23 + $0x7c0] sm:$0xf] }
  0xc5   : > { %v688_v57 = vld [vmem:[%s10735_s23 + $0x7c8] sm:$0xf]  ;;  %v690_v58 = vld [vmem:[%s10735_s23 + $0x7d0] sm:$0xf]  ;;  %687 = vst [vmem:[%s10742_s27 + $0x3e0] sm:$0xf] %v686_v56 }
  0xc6   : > { %689 = vst [vmem:[%s10742_s27 + $0x3e4] sm:$0xf] %v688_v57  ;;  %691 = vst [vmem:[%s10742_s27 + $0x3e8] sm:$0xf] %v690_v58  ;;  %v692_v59 = vld [vmem:[%s10735_s23 + $0x7d8] sm:$0xf] }
  0xc7   : > { %v694_v60 = vld [vmem:[%s10735_s23 + $0x7e0] sm:$0xf]  ;;  %v696_v61 = vld [vmem:[%s10735_s23 + $0x7e8] sm:$0xf]  ;;  %693 = vst [vmem:[%s10742_s27 + $0x3ec] sm:$0xf] %v692_v59 }
  0xc8   : > { %695 = vst [vmem:[%s10742_s27 + $0x3f0] sm:$0xf] %v694_v60  ;;  %697 = vst [vmem:[%s10742_s27 + $0x3f4] sm:$0xf] %v696_v61  ;;  %v698_v62 = vld [vmem:[%s10735_s23 + $0x7f0] sm:$0xf] }
  0xc9   : > { %v700_v63 = vld [vmem:[%s10735_s23 + $0x7f8] sm:$0xf]  ;;  %v702_v0 = vld [vmem:[%s10735_s23 + $0x800] sm:$0xf]  ;;  %699 = vst [vmem:[%s10742_s27 + $0x3f8] sm:$0xf] %v698_v62 }
  0xca   : > { %701 = vst [vmem:[%s10742_s27 + $0x3fc] sm:$0xf] %v700_v63  ;;  %703 = vst [vmem:[%s10742_s27 + $0x400] sm:$0xf] %v702_v0  ;;  %v704_v1 = vld [vmem:[%s10735_s23 + $0x808] sm:$0xf] }
  0xcb   : > { %v706_v2 = vld [vmem:[%s10735_s23 + $0x810] sm:$0xf]  ;;  %v708_v3 = vld [vmem:[%s10735_s23 + $0x818] sm:$0xf]  ;;  %705 = vst [vmem:[%s10742_s27 + $0x404] sm:$0xf] %v704_v1 }
  0xcc   : > { %707 = vst [vmem:[%s10742_s27 + $0x408] sm:$0xf] %v706_v2  ;;  %709 = vst [vmem:[%s10742_s27 + $0x40c] sm:$0xf] %v708_v3  ;;  %v710_v4 = vld [vmem:[%s10735_s23 + $0x820] sm:$0xf] }
  0xcd   : > { %v712_v5 = vld [vmem:[%s10735_s23 + $0x828] sm:$0xf]  ;;  %v714_v6 = vld [vmem:[%s10735_s23 + $0x830] sm:$0xf]  ;;  %711 = vst [vmem:[%s10742_s27 + $0x410] sm:$0xf] %v710_v4 }
  0xce   : > { %713 = vst [vmem:[%s10742_s27 + $0x414] sm:$0xf] %v712_v5  ;;  %715 = vst [vmem:[%s10742_s27 + $0x418] sm:$0xf] %v714_v6  ;;  %v716_v7 = vld [vmem:[%s10735_s23 + $0x838] sm:$0xf] }
  0xcf   : > { %v718_v8 = vld [vmem:[%s10735_s23 + $0x840] sm:$0xf]  ;;  %v720_v9 = vld [vmem:[%s10735_s23 + $0x848] sm:$0xf]  ;;  %717 = vst [vmem:[%s10742_s27 + $0x41c] sm:$0xf] %v716_v7 }
  0xd0   : > { %719 = vst [vmem:[%s10742_s27 + $0x420] sm:$0xf] %v718_v8  ;;  %721 = vst [vmem:[%s10742_s27 + $0x424] sm:$0xf] %v720_v9  ;;  %v722_v10 = vld [vmem:[%s10735_s23 + $0x850] sm:$0xf] }
  0xd1   : > { %v724_v11 = vld [vmem:[%s10735_s23 + $0x858] sm:$0xf]  ;;  %v726_v12 = vld [vmem:[%s10735_s23 + $0x860] sm:$0xf]  ;;  %723 = vst [vmem:[%s10742_s27 + $0x428] sm:$0xf] %v722_v10 }
  0xd2   : > { %725 = vst [vmem:[%s10742_s27 + $0x42c] sm:$0xf] %v724_v11  ;;  %727 = vst [vmem:[%s10742_s27 + $0x430] sm:$0xf] %v726_v12  ;;  %v728_v13 = vld [vmem:[%s10735_s23 + $0x868] sm:$0xf] }
  0xd3   : > { %v730_v14 = vld [vmem:[%s10735_s23 + $0x870] sm:$0xf]  ;;  %v732_v15 = vld [vmem:[%s10735_s23 + $0x878] sm:$0xf]  ;;  %729 = vst [vmem:[%s10742_s27 + $0x434] sm:$0xf] %v728_v13 }
  0xd4   : > { %731 = vst [vmem:[%s10742_s27 + $0x438] sm:$0xf] %v730_v14  ;;  %733 = vst [vmem:[%s10742_s27 + $0x43c] sm:$0xf] %v732_v15  ;;  %v734_v16 = vld [vmem:[%s10735_s23 + $0x880] sm:$0xf] }
  0xd5   : > { %v736_v17 = vld [vmem:[%s10735_s23 + $0x888] sm:$0xf]  ;;  %v738_v18 = vld [vmem:[%s10735_s23 + $0x890] sm:$0xf]  ;;  %735 = vst [vmem:[%s10742_s27 + $0x440] sm:$0xf] %v734_v16 }
  0xd6   : > { %737 = vst [vmem:[%s10742_s27 + $0x444] sm:$0xf] %v736_v17  ;;  %739 = vst [vmem:[%s10742_s27 + $0x448] sm:$0xf] %v738_v18  ;;  %v740_v19 = vld [vmem:[%s10735_s23 + $0x898] sm:$0xf] }
  0xd7   : > { %v742_v20 = vld [vmem:[%s10735_s23 + $0x8a0] sm:$0xf]  ;;  %v744_v21 = vld [vmem:[%s10735_s23 + $0x8a8] sm:$0xf]  ;;  %741 = vst [vmem:[%s10742_s27 + $0x44c] sm:$0xf] %v740_v19 }
  0xd8   : > { %743 = vst [vmem:[%s10742_s27 + $0x450] sm:$0xf] %v742_v20  ;;  %745 = vst [vmem:[%s10742_s27 + $0x454] sm:$0xf] %v744_v21  ;;  %v746_v22 = vld [vmem:[%s10735_s23 + $0x8b0] sm:$0xf] }
  0xd9   : > { %v748_v23 = vld [vmem:[%s10735_s23 + $0x8b8] sm:$0xf]  ;;  %v750_v24 = vld [vmem:[%s10735_s23 + $0x8c0] sm:$0xf]  ;;  %747 = vst [vmem:[%s10742_s27 + $0x458] sm:$0xf] %v746_v22 }
  0xda   : > { %749 = vst [vmem:[%s10742_s27 + $0x45c] sm:$0xf] %v748_v23  ;;  %751 = vst [vmem:[%s10742_s27 + $0x460] sm:$0xf] %v750_v24  ;;  %v752_v25 = vld [vmem:[%s10735_s23 + $0x8c8] sm:$0xf] }
  0xdb   : > { %v754_v26 = vld [vmem:[%s10735_s23 + $0x8d0] sm:$0xf]  ;;  %v756_v27 = vld [vmem:[%s10735_s23 + $0x8d8] sm:$0xf]  ;;  %753 = vst [vmem:[%s10742_s27 + $0x464] sm:$0xf] %v752_v25 }
  0xdc   : > { %755 = vst [vmem:[%s10742_s27 + $0x468] sm:$0xf] %v754_v26  ;;  %757 = vst [vmem:[%s10742_s27 + $0x46c] sm:$0xf] %v756_v27  ;;  %v758_v28 = vld [vmem:[%s10735_s23 + $0x8e0] sm:$0xf] }
  0xdd   : > { %v760_v29 = vld [vmem:[%s10735_s23 + $0x8e8] sm:$0xf]  ;;  %v762_v30 = vld [vmem:[%s10735_s23 + $0x8f0] sm:$0xf]  ;;  %759 = vst [vmem:[%s10742_s27 + $0x470] sm:$0xf] %v758_v28 }
  0xde   : > { %761 = vst [vmem:[%s10742_s27 + $0x474] sm:$0xf] %v760_v29  ;;  %763 = vst [vmem:[%s10742_s27 + $0x478] sm:$0xf] %v762_v30  ;;  %v764_v31 = vld [vmem:[%s10735_s23 + $0x8f8] sm:$0xf] }
  0xdf   : > { %765 = vst [vmem:[%s10742_s27 + $0x47c] sm:$0xf] %v764_v31 }
  0xe0 PF: > { %p8207_p0 = scmp.ge.s32.totalorder %s10611_s21, 1  ;;  %p1369_p1 = scmp.lt.s32.totalorder %s10611_s21, 5 }
  0xe2   : > { %p1370_p2 = pnand %p8207_p0, %p1369_p1 }
  0xe4   : > { %1373 = sbr.rel (%p1370_p2) target bundleno = 1083 (0x43b), region = 69 }
  0xeb   : > { %s1376_s28 = sand.u32 1, %s10587_s15   ;;  %p1407_p3 = scmp.lt.s32.totalorder %s10599_s18, 1  ;;  %vm2963_vm0 = vcmask 1042432   ;;  %vm2964_vm1 = vcmask 1046532   ;;  %vm2046_vm3 = vsmask.f32 3328 }
  0xec   : > { %s10073_s29 = smul.u32 1152, %s1376_s28  ;;  %vm11350_vm2 = vmor %vm2963_vm0, %vm2964_vm1  ;;  %vm2047_vm4 = vsmask.f32 7440  ;;  %p1412_p4 = scmp.lt.s32.totalorder %s10595_s17, 1 }
  0xed   : > { %s1408_s15 = scalar_select %p1407_p3, %s10599_s18, 1  ;;  %vm11513_vm5 = vmor %vm2046_vm3, %vm2047_vm4 }
  0xee   : > { %s11318_s4 = scalar_lea.vmem [#allocation3], %s10073_s29  ;;  %s1404_s28 = sand.u32 1, %s10579_s13  }
  0xef   : > { %v10165_v32 = vld [vmem:[%s11318_s4 + $0x40] sm:$0xff]   ;;  %v10167_v34 = vld [vmem:[%s11318_s4 + $0x48] sm:$0xff]   ;;  %v10169_v36 = vld [vmem:[%s11318_s4 + $0x50] sm:$0xff]   ;;  %s10074_s5 = smul.u32 432, %s1408_s15  ;;  %s8208_s29 = sshll.u32 %s1404_s28, 8 }
  0xf0   : > { %v10166_v33 = vld [vmem:[%s11318_s4] sm:$0xff]   ;;  %9048 = vmatprep.subr.bf16.mxu0 %v10165_v32  ;;  %10056 = vmatprep.subr.bf16.mxu1 %v10165_v32  ;;  %v10168_v35 = vld [vmem:[%s11318_s4 + $0x8] sm:$0xff]   ;;  %v10170_v37 = vld [vmem:[%s11318_s4 + $0x10] sm:$0xff]   ;;  %s1413_s22 = scalar_select %p1412_p4, %s10595_s17, 1 }
  0xf1   : > { %9049 = vmatpush3.bf16.msra.mxu0 %v10166_v33  ;;  %10064 = vmatpush3.bf16.msra.mxu1 %v10166_v33  ;;  %v10171_v38 = vld [vmem:[%s11318_s4 + $0x58] sm:$0xff]   ;;  %v10173_v40 = vld [vmem:[%s11318_s4 + $0x60] sm:$0xff]   ;;  %s11334_s11 = scalar_lea.vmem %s14113_s0, %s10074_s5  ;;  %v10175_v42 = vld [vmem:[%s11318_s4 + $0x68] sm:$0xff]   ;;  %s9044_s15 = sshll.u32 %s10599_s18, 6 }
  0xf2   : > { %9050 = vmatprep.subr.bf16.mxu0 %v10167_v34  ;;  %10057 = vmatprep.subr.bf16.mxu1 %v10167_v34  ;;  %v10172_v39 = vld [vmem:[%s11318_s4 + $0x18] sm:$0xff]   ;;  %v10174_v41 = vld [vmem:[%s11318_s4 + $0x20] sm:$0xff]   ;;  %v11342_v44 = vld [vmem:[%s11334_s11 + $0x8] sm:$0xff]  ;;  %s1414_s27 = scalar_lea.vmem %s14115_s2, %s1413_s22  ;;  %s8082_s5 = sadd.s32 %s10595_s17, %s9044_s15 }
  0xf3   : > { %v11339_v43 = vld [vmem:[%s11334_s11] sm:$0xff]  ;;  %v1478_v47 = vld [vmem:[%s11334_s11 + $0xc8] sm:$0xff]  ;;  %v10177_v50 = vld [vmem:[%s11318_s4 + $0x70] sm:$0xff]   ;;  %v2968_v53 = vrot.slane %v11342_v44, 5  ;;  %s9045_s18 = sshll.u32 %s8082_s5, 7  ;;  %s14055_s22 = scalar_lea.sflag [#allocation5], %s1404_s28 }
  0xf4   : > { %v1477_v45 = vld [vmem:[%s11334_s11 + $0xc0] sm:$0xff]  ;;  %v8211_v46 = vcombine.high %v11339_v43, %v11342_v44  ;;  %v10176_v49 = vld [vmem:[%s11318_s4 + $0x28] sm:$0xff]   ;;  %v8338_v52 = vrot.slane %v11339_v43, 9  ;;  %v10178_v54 = vld [vmem:[%s11318_s4 + $0x30] sm:$0xff]   ;;  %v8210_v0 = vcombine.low %v11339_v43, %v11342_v44  ;;  %s14047_s17 = scalar_lea.hbm %s14116_s3, %s9045_s18  ;;  %s10613_s23 = smov [#allocation4]  }
  0xf5   : > { %9051 = vmatpush3.bf16.msra.mxu0 %v10168_v35  ;;  %10065 = vmatpush3.bf16.msra.mxu1 %v10168_v35  ;;  %v8227_v48 = vcombine.high %v1477_v45, %v1478_v47  ;;  %v10179_v55 = vld [vmem:[%s11318_s4 + $0x78] sm:$0xff]   ;;  %v10185_v58 = vld [vmem:[%s11318_s4 + $0xc0] sm:$0xff]   ;;  %v8226_v1 = vcombine.low %v1477_v45, %v1478_v47  ;;  %v10193_v6 = vld [vmem:[%s11318_s4 + $0xc8] sm:$0xff]  }
  0xf6   : > { %9052 = vmatprep.subr.bf16.mxu0 %v10169_v36  ;;  %10058 = vmatprep.subr.bf16.mxu1 %v10169_v36  ;;  %v11362_v56 = vsel %vm11350_vm2, %v8338_v52, %v2968_v53  ;;  %v10180_v57 = vld [vmem:[%s11318_s4 + $0x38] sm:$0xff]   ;;  %v10187_v59 = vld [vmem:[%s11318_s4 + $0x140] sm:$0xff]   ;;  %v10195_v7 = vld [vmem:[%s11318_s4 + $0x148] sm:$0xff]  }
  0xf7   : > { %1853 = vmatprep.mubr.bf16.mxu0 %v8211_v46  ;;  %1917 = vmatprep.mubr.bf16.mxu1 %v8227_v48  ;;  %v11368_v60 = vld [vmem:[%s11334_s11 + $0x18] sm:$0xff]  ;;  %v11371_v61 = vld [vmem:[%s11334_s11 + $0x20] sm:$0xff]  ;;  %v10194_v8 = vld [vmem:[%s11318_s4 + $0x88] sm:$0xff]  }
  0xf8   : > { %v1480_v62 = vld [vmem:[%s11334_s11 + $0xd8] sm:$0xff]  ;;  %v1481_v63 = vld [vmem:[%s11334_s11 + $0xe0] sm:$0xff]  ;;  %v8213_v4 = vcombine.high %v11368_v60, %v11371_v61  ;;  %v10196_v9 = vld [vmem:[%s11318_s4 + $0x108] sm:$0xff]   ;;  %v8212_v16 = vcombine.low %v11368_v60, %v11371_v61 }
  0xf9   : > { %9053 = vmatpush3.bf16.msra.mxu0 %v10170_v37  ;;  %10066 = vmatpush3.bf16.msra.mxu1 %v10170_v37  ;;  %v10186_v2 = vld [vmem:[%s11318_s4 + $0x80] sm:$0xff]   ;;  %v8229_v5 = vcombine.high %v1480_v62, %v1481_v63  ;;  %v11386_v10 = vld [vmem:[%s11334_s11 + $0x30] sm:$0xff]  ;;  %v11389_v11 = vld [vmem:[%s11334_s11 + $0x38] sm:$0xff]  ;;  %v8228_v17 = vcombine.low %v1480_v62, %v1481_v63  ;;  %v2970_v63 = vrot.slane %v2968_v53, 4 }
  0xfa   : > { %9054 = vmatprep.subr.bf16.mxu0 %v10171_v38  ;;  %10059 = vmatprep.subr.bf16.mxu1 %v10171_v38  ;;  %v10188_v3 = vld [vmem:[%s11318_s4 + $0x100] sm:$0xff]   ;;  %v1483_v12 = vld [vmem:[%s11334_s11 + $0xf0] sm:$0xff]  ;;  %v1484_v13 = vld [vmem:[%s11334_s11 + $0xf8] sm:$0xff]  ;;  %v8215_v19 = vcombine.high %v11386_v10, %v11389_v11  ;;  %v8214_v32 = vcombine.low %v11386_v10, %v11389_v11 }
  0xfb   : > { %v10201_v14 = vld [vmem:[%s11318_s4 + $0xd0] sm:$0xff]   ;;  %v8231_v20 = vcombine.high %v1483_v12, %v1484_v13  ;;  %v10209_v22 = vld [vmem:[%s11318_s4 + $0xd8] sm:$0xff]   ;;  %v11404_v24 = vld [vmem:[%s11334_s11 + $0x48] sm:$0xff]  ;;  %v8230_v33 = vcombine.low %v1483_v12, %v1484_v13 }
  0xfc   : > { %v10203_v15 = vld [vmem:[%s11318_s4 + $0x150] sm:$0xff]   ;;  %v10211_v23 = vld [vmem:[%s11318_s4 + $0x158] sm:$0xff]   ;;  %v1486_v26 = vld [vmem:[%s11334_s11 + $0x108] sm:$0xff] }
  0xfd   : > { %9055 = vmatpush3.bf16.msra.mxu0 %v10172_v39  ;;  %10067 = vmatpush3.bf16.msra.mxu1 %v10172_v39  ;;  %v10202_v18 = vld [vmem:[%s11318_s4 + $0x90] sm:$0xff]   ;;  %v10210_v28 = vld [vmem:[%s11318_s4 + $0x98] sm:$0xff]   ;;  %v10217_v30 = vld [vmem:[%s11318_s4 + $0xe0] sm:$0xff]  }
  0xfe   : > { %9056 = vmatprep.subr.bf16.mxu0 %v10173_v40  ;;  %10060 = vmatprep.subr.bf16.mxu1 %v10173_v40  ;;  %v10204_v21 = vld [vmem:[%s11318_s4 + $0x110] sm:$0xff]   ;;  %v10212_v29 = vld [vmem:[%s11318_s4 + $0x118] sm:$0xff]   ;;  %v10219_v31 = vld [vmem:[%s11318_s4 + $0x160] sm:$0xff]  }
  0xff   : > { %v11407_v25 = vld [vmem:[%s11334_s11 + $0x50] sm:$0xff]  ;;  %v10218_v36 = vld [vmem:[%s11318_s4 + $0xa0] sm:$0xff]   ;;  %v10225_v38 = vld [vmem:[%s11318_s4 + $0xe8] sm:$0xff]  }
 0x100   : > { %v1487_v27 = vld [vmem:[%s11334_s11 + $0x110] sm:$0xff]  ;;  %v8217_v34 = vcombine.high %v11404_v24, %v11407_v25  ;;  %v10220_v37 = vld [vmem:[%s11318_s4 + $0x120] sm:$0xff]   ;;  %v10227_v39 = vld [vmem:[%s11318_s4 + $0x168] sm:$0xff]  }
 0x101   : > { %9057 = vmatpush3.bf16.msra.mxu0 %v10174_v41  ;;  %10068 = vmatpush3.bf16.msra.mxu1 %v10174_v41  ;;  %v8233_v35 = vcombine.high %v1486_v26, %v1487_v27  ;;  %v11424_v40 = vld [vmem:[%s11334_s11 + $0x60] sm:$0xff]  ;;  %v11427_v41 = vld [vmem:[%s11334_s11 + $0x68] sm:$0xff]  ;;  %v10233_v48 = vld [vmem:[%s11318_s4 + $0xf0] sm:$0xff]   ;;  %v8232_v52 = vcombine.low %v1486_v26, %v1487_v27  ;;  %v2063_v27 = vshrl.u32 %v11342_v44, 16 }
 0x102   : > { %9058 = vmatprep.subr.bf16.mxu0 %v10175_v42  ;;  %10061 = vmatprep.subr.bf16.mxu1 %v10175_v42  ;;  %v1489_v42 = vld [vmem:[%s11334_s11 + $0x120] sm:$0xff]  ;;  %v1490_v45 = vld [vmem:[%s11334_s11 + $0x128] sm:$0xff]  ;;  %v10243_v62 = vld [vmem:[%s11318_s4 + $0x178] sm:$0xff]  }
 0x103   : > { %v10226_v46 = vld [vmem:[%s11318_s4 + $0xa8] sm:$0xff]   ;;  %v10244_v53 = vld [vmem:[%s11318_s4 + $0x138] sm:$0xff]   ;;  %v8234_v12 = vcombine.low %v1489_v42, %v1490_v45 }
 0x104   : > { %v10228_v47 = vld [vmem:[%s11318_s4 + $0x128] sm:$0xff]   ;;  %v1496_v26 = vld [vmem:[%s11334_s11 + $0x158] sm:$0xff] }
 0x105   : > { %9059 = vmatpush3.bf16.msra.mxu0 %v10176_v49  ;;  %10069 = vmatpush3.bf16.msra.mxu1 %v10176_v49  ;;  %v10235_v49 = vld [vmem:[%s11318_s4 + $0x170] sm:$0xff]  }
 0x106   : > { %9060 = vmatprep.subr.bf16.mxu0 %v10177_v50  ;;  %10062 = vmatprep.subr.bf16.mxu1 %v10177_v50  ;;  %v8216_v50 = vcombine.low %v11404_v24, %v11407_v25 }
 0x109   : > { %9061 = vmatpush3.bf16.msra.mxu0 %v10178_v54  ;;  %10070 = vmatpush3.bf16.msra.mxu1 %v10178_v54  ;;  %v10234_v54 = vld [vmem:[%s11318_s4 + $0xb0] sm:$0xff]  }
 0x10a   : > { %9062 = vmatprep.subr.bf16.mxu0 %v10179_v55  ;;  %10063 = vmatprep.subr.bf16.mxu1 %v10179_v55  ;;  %v8219_v55 = vcombine.high %v11424_v40, %v11427_v41 }
 0x10d   : > { %9063 = vmatpush3.bf16.msra.mxu0 %v10180_v57  ;;  %10071 = vmatpush3.bf16.msra.mxu1 %v10180_v57  ;;  %v8235_v57 = vcombine.high %v1489_v42, %v1490_v45  ;;  %v11494_v42 = vld [vmem:[%s11334_s11 + $0xa8] sm:$0xff]  ;;  %v2098_v45 = vshrl.u32 %v11386_v10, 16 }
 0x10e   : > { %9160 = vmatprep.subr.bf16.mxu1 %v10185_v58  ;;  %9272 = vmatprep.subr.bf16.mxu0 %v10187_v59  ;;  %v10236_v58 = vld [vmem:[%s11318_s4 + $0x130] sm:$0xff]   ;;  %v10241_v59 = vld [vmem:[%s11318_s4 + $0xf8] sm:$0xff]  }
 0x110   : > { %1854 = vmatmul.mubr.bf16.vlgmr.msra.gmra.mrb[0].mxu0 %v8210_v0  ;;  %1918 = vmatmul.mubr.bf16.vlgmr.msra.gmra.mrb[0].mxu1 %v8226_v1  ;;  %v11446_v0 = vld [vmem:[%s11334_s11 + $0x78] sm:$0xff]  ;;  %v11449_v1 = vld [vmem:[%s11334_s11 + $0x80] sm:$0xff] }
 0x111   : > { %9161 = vmatpush3.bf16.msra.mxu1 %v10186_v2  ;;  %9273 = vmatpush3.bf16.msra.mxu0 %v10188_v3  ;;  %v1492_v2 = vld [vmem:[%s11334_s11 + $0x138] sm:$0xff]  ;;  %v1493_v3 = vld [vmem:[%s11334_s11 + $0x140] sm:$0xff] }
 0x112   : > { %1861 = vmatprep.mubr.bf16.mxu0 %v8213_v4  ;;  %1925 = vmatprep.mubr.bf16.mxu1 %v8229_v5  ;;  %v11454_v4 = vld [vmem:[%s11334_s11 + $0x10] sm:$0x11]  ;;  %v10242_v5 = vld [vmem:[%s11318_s4 + $0xb8] sm:$0xff]  }
 0x113   : > { %9162 = vmatprep.subr.bf16.mxu1 %v10193_v6  ;;  %9274 = vmatprep.subr.bf16.mxu0 %v10195_v7  ;;  %v2971_v6 = vrot.slane %v11454_v4, 5 }
 0x115   : > { %9163 = vmatpush3.bf16.msra.mxu1 %v10194_v8  ;;  %9275 = vmatpush3.bf16.msra.mxu0 %v10196_v9  ;;  %v11461_v7 = vsel %vm11350_vm2, %v2970_v63, %v2971_v6  ;;  %v10245_v8 = vld [vmem:[%s11318_s4 + $0x1c0] sm:$0xff]   ;;  %v8218_v9 = vcombine.low %v11424_v40, %v11427_v41 }
 0x116   : > { %9164 = vmatprep.subr.bf16.mxu1 %v10201_v14  ;;  %9276 = vmatprep.subr.bf16.mxu0 %v10203_v15  ;;  %v8386_v13 = vcombine.low %v11362_v56, %v11461_v7  ;;  %v8387_v14 = vcombine.high %v11362_v56, %v11461_v7  ;;  %v10247_v15 = vld [vmem:[%s11318_s4 + $0x240] sm:$0xff]  }
 0x118   : > { %1862 = vmatmul.mubr.bf16.gmra.mrb[4].mxu0 %v8212_v16  ;;  %1926 = vmatmul.mubr.bf16.gmra.mrb[4].mxu1 %v8228_v17  ;;  %v8221_v16 = vcombine.high %v11446_v0, %v11449_v1  ;;  %v8237_v17 = vcombine.high %v1492_v2, %v1493_v3 }
 0x119   : > { %1869 = vmatprep.mubr.bf16.mxu0 %v8215_v19  ;;  %1933 = vmatprep.mubr.bf16.mxu1 %v8231_v20  ;;  %v11475_v19 = vld [vmem:[%s11334_s11 + $0x90] sm:$0xff]  ;;  %v2053_v20 = vshll.u32 %v11339_v43, 16 }
 0x11a   : > { %9165 = vmatpush3.bf16.msra.mxu1 %v10202_v18  ;;  %9277 = vmatpush3.bf16.msra.mxu0 %v10204_v21  ;;  %v2050_v18 = vshrl.u32 %v11339_v43, 16  ;;  %v11479_v21 = vld [vmem:[%s11334_s11 + $0x98] sm:$0xff] }
 0x11b   : > { %9166 = vmatprep.subr.bf16.mxu1 %v10209_v22  ;;  %9278 = vmatprep.subr.bf16.mxu0 %v10211_v23  ;;  %v2059_v22 = vshll.u32 %v11342_v44, 16  ;;  %v1495_v23 = vld [vmem:[%s11334_s11 + $0x150] sm:$0xff]  ;;  %v2065_v44 = vrot.slane %v2063_v27, 4  ;;  %v2982_v27 = vrot.slane %v11389_v11, 5 }
 0x11c   : > { %v2052_v43 = vrot.slane %v2050_v18, 4  ;;  %v8238_v63 = vcombine.low %v1495_v23, %v1496_v26  ;;  %v8339_v18 = vrot.slane %v11368_v60, 9 }
 0x11e   : > { %9167 = vmatpush3.bf16.msra.mxu1 %v10210_v28  ;;  %9279 = vmatpush3.bf16.msra.mxu0 %v10212_v29  ;;  %v2074_v28 = vshrl.u32 %v11368_v60, 16  ;;  %v2077_v29 = vshll.u32 %v11368_v60, 16 }
 0x11f   : > { %9168 = vmatprep.subr.bf16.mxu1 %v10217_v30  ;;  %9280 = vmatprep.subr.bf16.mxu0 %v10219_v31  ;;  %v8220_v30 = vcombine.low %v11446_v0, %v11449_v1  ;;  %v8236_v31 = vcombine.low %v1492_v2, %v1493_v3  ;;  %v2100_v2 = vrot.slane %v2098_v45, 4  ;;  %v2107_v3 = vshll.u32 %v11389_v11, 16 }
 0x120   : > { %1870 = vmatmul.mubr.bf16.gmra.mrb[8].mxu0 %v8214_v32  ;;  %1934 = vmatmul.mubr.bf16.gmra.mrb[8].mxu1 %v8230_v33  ;;  %v8223_v32 = vcombine.high %v11475_v19, %v11479_v21  ;;  %v8239_v33 = vcombine.high %v1495_v23, %v1496_v26 }
 0x121   : > { %1877 = vmatprep.mubr.bf16.mxu0 %v8217_v34  ;;  %1941 = vmatprep.mubr.bf16.mxu1 %v8233_v35  ;;  %v2055_v34 = vrot.slane %v2053_v20, 5  ;;  %v2061_v35 = vrot.slane %v2059_v22, 5  ;;  %v11519_v22 = vrot.slane %v2107_v3, 5  ;;  %v2989_v3 = vrot.slane %v11407_v25, 5 }
 0x122   : > { %9169 = vmatpush3.bf16.msra.mxu1 %v10218_v36  ;;  %9281 = vmatpush3.bf16.msra.mxu0 %v10220_v37  ;;  %v2083_v36 = vshll.u32 %v11371_v61, 16  ;;  %v2076_v37 = vrot.slane %v2074_v28, 4 }
 0x123   : > { %9170 = vmatprep.subr.bf16.mxu1 %v10225_v38  ;;  %9282 = vmatprep.subr.bf16.mxu0 %v10227_v39  ;;  %v2079_v38 = vrot.slane %v2077_v29, 5  ;;  %v2087_v39 = vshrl.u32 %v11371_v61, 16 }
 0x126   : > { %9171 = vmatpush3.bf16.msra.mxu1 %v10226_v46  ;;  %9283 = vmatpush3.bf16.msra.mxu0 %v10228_v47  ;;  %v11498_v46 = vld [vmem:[%s11334_s11 + $0xb0] sm:$0xff]  ;;  %v2101_v47 = vshll.u32 %v11386_v10, 16 }
 0x127   : > { %9172 = vmatprep.subr.bf16.mxu1 %v10233_v48  ;;  %9284 = vmatprep.subr.bf16.mxu0 %v10235_v49  ;;  %v1498_v48 = vld [vmem:[%s11334_s11 + $0x168] sm:$0xff]  ;;  %v1499_v49 = vld [vmem:[%s11334_s11 + $0x170] sm:$0xff]  ;;  %v8224_v60 = vcombine.low %v11494_v42, %v11498_v46 }
 0x128   : > { %1878 = vmatmul.mubr.bf16.gmra.mrb[12].mxu0 %v8216_v50  ;;  %1942 = vmatmul.mubr.bf16.gmra.mrb[12].mxu1 %v8232_v52  ;;  %v2056_v50 = vor.u32 %v2055_v34, %v2052_v43  ;;  %v2066_v52 = vor.u32 %v2065_v44, %v2061_v35  ;;  %v8241_v6 = vcombine.high %v1498_v48, %v1499_v49 }
 0x129   : > { %1885 = vmatprep.mubr.bf16.mxu0 %v8219_v55  ;;  %1949 = vmatprep.mubr.bf16.mxu1 %v8235_v57  ;;  %v2085_v55 = vrot.slane %v2083_v36, 5  ;;  %v2080_v57 = vor.u32 %v2079_v38, %v2076_v37  ;;  %v8240_v43 = vcombine.low %v1498_v48, %v1499_v49  ;;  %v2984_v36 = vrot.slane %v2982_v27, 4  ;;  %v1461_v48 = vld [vmem:[%s11334_s11 + $0x40] sm:$0x11] }
 0x12a   : > { %9173 = vmatpush3.bf16.msra.mxu1 %v10234_v54  ;;  %9285 = vmatpush3.bf16.msra.mxu0 %v10236_v58  ;;  %v2069_v54 = vshll.u32 %v11454_v4, 16  ;;  %v2089_v58 = vrot.slane %v2087_v39, 4  ;;  %v2111_v4 = vshrl.u32 %v11389_v11, 16  ;;  %v2131_v37 = vshll.u32 %v11407_v25, 16 }
 0x12b   : > { %9174 = vmatprep.subr.bf16.mxu1 %v10241_v59  ;;  %9286 = vmatprep.subr.bf16.mxu0 %v10243_v62  ;;  %v2975_v59 = vrot.slane %v11371_v61, 5  ;;  %v8222_v62 = vcombine.low %v11475_v19, %v11479_v21  ;;  %v2135_v38 = vshrl.u32 %v11407_v25, 16  ;;  %v2146_v39 = vshrl.u32 %v11424_v40, 16 }
 0x12c   : > { %v2113_v26 = vrot.slane %v2111_v4, 4  ;;  %v2155_v49 = vshll.u32 %v11427_v41, 16 }
 0x12d   : > { %v2977_v20 = vrot.slane %v2975_v59, 4 }
 0x12e   : > { %9175 = vmatpush3.bf16.msra.mxu1 %v10242_v5  ;;  %9287 = vmatpush3.bf16.msra.mxu0 %v10244_v53  ;;  %v8225_v5 = vcombine.high %v11494_v42, %v11498_v46  ;;  %v2103_v53 = vrot.slane %v2101_v47, 5  ;;  %v2114_v11 = vor.u32 %v2113_v26, %v11519_v22  ;;  %v10251_v26 = vld [vmem:[%s11318_s4 + $0x248] sm:$0xff]  }
 0x12f   : > { %9384 = vmatprep.subr.bf16.mxu1 %v10245_v8  ;;  %9496 = vmatprep.subr.bf16.mxu0 %v10247_v15  ;;  %v2057_v8 = vrot.slane %v2056_v50, 4  ;;  %v2090_v15 = vor.u32 %v2089_v58, %v2085_v55  ;;  %v2117_v58 = vshll.u32 %v1461_v48, 16 }
 0x130   : > { %1886 = vmatmul.mubr.bf16.gmra.mrb[16].mxu0 %v8218_v9  ;;  %1950 = vmatmul.mubr.bf16.gmra.mrb[16].mxu1 %v8234_v12  ;;  %v2067_v9 = vrot.slane %v2066_v52, 4  ;;  %v2071_v12 = vrot.slane %v2069_v54, 5  ;;  %v2104_v23 = vor.u32 %v2103_v53, %v2100_v2  ;;  %v11547_v52 = vsel %vm11350_vm2, %v8339_v18, %v2975_v59 }
 0x131   : > { %1893 = vmatprep.mubr.bf16.mxu0 %v8221_v16  ;;  %1957 = vmatprep.mubr.bf16.mxu1 %v8237_v17  ;;  %v1458_v16 = vld [vmem:[%s11334_s11 + $0x28] sm:$0x11]  ;;  %v2081_v17 = vrot.slane %v2080_v57, 4  ;;  %v2062_v28 = vsel %vm11513_vm5, %v2057_v8, %v2061_v35  ;;  %v2125_v35 = vshll.u32 %v11404_v24, 16  ;;  %v2115_v54 = vrot.slane %v2114_v11, 4 }
 0x132   : > { %v2072_v29 = vsel %vm11513_vm5, %v2067_v9, %v2071_v12  ;;  %v2105_v44 = vrot.slane %v2104_v23, 4  ;;  %v2978_v47 = vrot.slane %v1458_v16, 5  ;;  %v2159_v57 = vshrl.u32 %v11427_v41, 16  ;;  %v10248_v9 = vld [vmem:[%s11318_s4 + $0x200] sm:$0xff]  }
 0x133   : > { %v8291_v34 = vcombine.high %v2062_v28, %v2072_v29  ;;  %v11543_v50 = vsel %vm11513_vm5, %v2081_v17, %v2085_v55  ;;  %v11550_v2 = vrot.slane %v2131_v37, 5  ;;  %v2137_v59 = vrot.slane %v2135_v38, 4 }
 0x134   : > { %v2979_v55 = vsel %vm11350_vm2, %v2977_v20, %v2978_v47  ;;  %v2148_v53 = vrot.slane %v2146_v39, 4  ;;  %v11558_v8 = vrot.slane %v2155_v49, 5  ;;  %v2985_v12 = vrot.slane %v1461_v48, 5 }
 0x135   : > { %v2161_v17 = vrot.slane %v2159_v57, 4  ;;  %v8389_v20 = vcombine.high %v11547_v52, %v2979_v55  ;;  %v2119_v23 = vrot.slane %v2117_v58, 5  ;;  %v2173_v49 = vshll.u32 %v11446_v0, 16  ;;  %v10259_v57 = vld [vmem:[%s11318_s4 + $0x258] sm:$0xff]  }
 0x136   : > { %v11587_v7 = vsel %vm11350_vm2, %v2984_v36, %v2985_v12  ;;  %v8388_v36 = vcombine.low %v11547_v52, %v2979_v55  ;;  %v2183_v52 = vshrl.u32 %v11449_v1, 16  ;;  %v10258_v12 = vld [vmem:[%s11318_s4 + $0x198] sm:$0xff]  }
 0x137   : > { %v11583_v56 = vsel %vm11513_vm5, %v2115_v54, %v2119_v23  ;;  %v10257_v54 = vld [vmem:[%s11318_s4 + $0x1d8] sm:$0xff]  }
 0x138   : > { %1894 = vmatmul.mubr.bf16.gmra.mrb[20].mxu0 %v8220_v30  ;;  %1958 = vmatmul.mubr.bf16.gmra.mrb[20].mxu1 %v8236_v31  ;;  %v2091_v30 = vrot.slane %v2090_v15, 4  ;;  %v2093_v31 = vshll.u32 %v1458_v16, 16  ;;  %v10249_v15 = vld [vmem:[%s11318_s4 + $0x1c8] sm:$0xff]   ;;  %v1464_v16 = vld [vmem:[%s11334_s11 + $0x58] sm:$0x11] }
 0x139   : > { %1901 = vmatprep.mubr.bf16.mxu0 %v8223_v32  ;;  %1965 = vmatprep.mubr.bf16.mxu1 %v8239_v33  ;;  %v8340_v32 = vrot.slane %v11386_v10, 9  ;;  %v2122_v33 = vshrl.u32 %v11404_v24, 16  ;;  %v2149_v10 = vshll.u32 %v11424_v40, 16  ;;  %v2992_v39 = vrot.slane %v1464_v16, 5 }
 0x13a   : > { %v2095_v45 = vrot.slane %v2093_v31, 5 }
 0x13b   : > { %v2151_v4 = vrot.slane %v2149_v10, 5  ;;  %v11577_v31 = vsel %vm11350_vm2, %v8340_v32, %v2982_v27  ;;  %v10255_v27 = vld [vmem:[%s11318_s4 + $0x250] sm:$0xff]   ;;  %v2170_v10 = vshrl.u32 %v11446_v0, 16 }
 0x13c   : > { %v8391_v48 = vcombine.high %v11577_v31, %v11587_v7 }
 0x13d   : > { %v2152_v11 = vor.u32 %v2151_v4, %v2148_v53 }
 0x140   : > { %1902 = vmatmul.mubr.bf16.gmra.mrb[24].mxu0 %v8222_v62  ;;  %1966 = vmatmul.mubr.bf16.gmra.mrb[24].mxu1 %v8238_v63  ;;  %v2124_v62 = vrot.slane %v2122_v33, 4  ;;  %v2127_v63 = vrot.slane %v2125_v35, 5  ;;  %v10253_v33 = vld [vmem:[%s11318_s4 + $0x1d0] sm:$0xff]   ;;  %v2162_v35 = vor.u32 %v2161_v17, %v11558_v8  ;;  %v8342_v17 = vrot.slane %v11424_v40, 9 }
 0x141   : > { %1909 = vmatprep.mubr.bf16.mxu0 %v8225_v5  ;;  %1973 = vmatprep.mubr.bf16.mxu1 %v8241_v6  ;;  %v8290_v5 = vcombine.low %v2062_v28, %v2072_v29  ;;  %v10246_v6 = vld [vmem:[%s11318_s4 + $0x180] sm:$0xff]   ;;  %v2138_v28 = vor.u32 %v2137_v59, %v11550_v2  ;;  %v2141_v29 = vshll.u32 %v1464_v16, 16  ;;  %v8390_v16 = vcombine.low %v11577_v31, %v11587_v7 }
 0x142   : > { %v2128_v25 = vor.u32 %v2127_v63, %v2124_v62  ;;  %v2153_v62 = vrot.slane %v2152_v11, 4  ;;  %v2163_v59 = vrot.slane %v2162_v35, 4  ;;  %v2194_v7 = vshrl.u32 %v11475_v19, 16 }
 0x143   : > { %v2139_v32 = vrot.slane %v2138_v28, 4  ;;  %v2143_v38 = vrot.slane %v2141_v29, 5 }
 0x145   : > { %v11627_v53 = vsel %vm11513_vm5, %v2139_v32, %v2143_v38  ;;  %v10267_v32 = vld [vmem:[%s11318_s4 + $0x268] sm:$0xff]   ;;  %v11679_v38 = vld [vmem:[%s11334_s11 + $0xa0] sm:$0x11] }
 0x148   : > { %1910 = vmatmul.mubr.bf16.gmra.mrb[28].mxu0 %v8224_v60  ;;  %1974 = vmatmul.mubr.bf16.gmra.mrb[28].mxu1 %v8240_v43  ;;  %v10250_v60 = vld [vmem:[%s11318_s4 + $0x188] sm:$0xff]  }
 0x149   : > { %2754 = vmatprep.mubr.bf16.mxu1 %v8291_v34  ;;  %3399 = vmatprep.mubr.bf16.mxu0 %v8387_v14  ;;  %v2096_v14 = vsel %vm11513_vm5, %v2091_v30, %v2095_v45  ;;  %v11573_v30 = vsel %vm11513_vm5, %v2105_v44, %v11519_v22  ;;  %v10252_v43 = vld [vmem:[%s11318_s4 + $0x208] sm:$0xff]   ;;  %v8341_v22 = vrot.slane %v11404_v24, 9  ;;  %v2991_v34 = vrot.slane %v2989_v3, 4  ;;  %v11593_v44 = vld [vmem:[%s11334_s11 + $0x70] sm:$0x11] }
 0x14a   : > { %v8293_v18 = vcombine.high %v11543_v50, %v2096_v14  ;;  %v8292_v37 = vcombine.low %v11543_v50, %v2096_v14  ;;  %v10254_v24 = vld [vmem:[%s11318_s4 + $0x190] sm:$0xff]   ;;  %v8295_v47 = vcombine.high %v11573_v30, %v11583_v56  ;;  %v2179_v50 = vshll.u32 %v11449_v1, 16 }
 0x14b   : > { %v10256_v45 = vld [vmem:[%s11318_s4 + $0x210] sm:$0xff]   ;;  %v11612_v58 = vsel %vm11350_vm2, %v8341_v22, %v2989_v3  ;;  %v2165_v63 = vshll.u32 %v11593_v44, 16  ;;  %v2996_v14 = vrot.slane %v11427_v41, 5  ;;  %v11618_v55 = vsel %vm11350_vm2, %v2991_v34, %v2992_v39  ;;  %v11630_v41 = vld [vmem:[%s11334_s11 + $0x88] sm:$0x11] }
 0x14c   : > { %v11632_v4 = vrot.slane %v2179_v50, 5  ;;  %v8294_v23 = vcombine.low %v11573_v30, %v11583_v56  ;;  %v2189_v31 = vshll.u32 %v11630_v41, 16  ;;  %v2197_v30 = vshll.u32 %v11475_v19, 16  ;;  %v10262_v56 = vld [vmem:[%s11318_s4 + $0x1a0] sm:$0xff]  }
 0x14d   : > { %v2998_v28 = vrot.slane %v2996_v14, 4  ;;  %v11658_v22 = vsel %vm11513_vm5, %v2153_v62, %v11558_v8  ;;  %v11670_v8 = vsel %vm11350_vm2, %v8342_v17, %v2996_v14  ;;  %v2227_v17 = vshll.u32 %v11498_v46, 16 }
 0x14e   : > { %v2191_v35 = vrot.slane %v2189_v31, 5 }
 0x150   : > { %2755 = vmatmul.mubr.bf16.vlgmr.msra.gmra.mrb[32].mxu1 %v8290_v5  ;;  %3400 = vmatmul.mubr.bf16.vlgmr.msra.gmra.mrb[32].mxu0 %v8386_v13  ;;  %v2129_v13 = vrot.slane %v2128_v25, 4  ;;  %v2172_v5 = vrot.slane %v2170_v10, 4  ;;  %v2167_v25 = vrot.slane %v2165_v63, 5  ;;  %v10268_v10 = vld [vmem:[%s11318_s4 + $0x228] sm:$0xff]  }
 0x151   : > { %9385 = vmatpush3.bf16.msra.mxu1 %v10246_v6  ;;  %9497 = vmatpush3.bf16.msra.mxu0 %v10248_v9  ;;  %v2175_v6 = vrot.slane %v2173_v49, 5  ;;  %v2185_v9 = vrot.slane %v2183_v52, 4  ;;  %v10271_v52 = vld [vmem:[%s11318_s4 + $0x270] sm:$0xff]  }
 0x152   : > { %2762 = vmatprep.mubr.bf16.mxu1 %v8293_v18  ;;  %3407 = vmatprep.mubr.bf16.mxu0 %v8389_v20  ;;  %v11623_v3 = vsel %vm11513_vm5, %v2129_v13, %v11550_v2  ;;  %v2999_v2 = vrot.slane %v11593_v44, 5  ;;  %v10261_v18 = vld [vmem:[%s11318_s4 + $0x1e0] sm:$0xff]   ;;  %v11666_v34 = vsel %vm11513_vm5, %v2163_v59, %v2167_v25  ;;  %v10274_v25 = vld [vmem:[%s11318_s4 + $0x1b8] sm:$0xff]  }
 0x153   : > { %9386 = vmatprep.subr.bf16.mxu1 %v10249_v15  ;;  %9498 = vmatprep.subr.bf16.mxu0 %v10251_v26  ;;  %v10260_v15 = vld [vmem:[%s11318_s4 + $0x218] sm:$0xff]   ;;  %v10263_v20 = vld [vmem:[%s11318_s4 + $0x260] sm:$0xff]   ;;  %v8393_v26 = vcombine.high %v11612_v58, %v11618_v55  ;;  %v8297_v29 = vcombine.high %v11623_v3, %v11627_v53  ;;  %v2176_v40 = vor.u32 %v2175_v6, %v2172_v5  ;;  %v2213_v5 = vshll.u32 %v11679_v38, 16  ;;  %v10270_v6 = vld [vmem:[%s11318_s4 + $0x1b0] sm:$0xff]  }
 0x154   : > { %v10264_v13 = vld [vmem:[%s11318_s4 + $0x220] sm:$0xff]   ;;  %v11674_v44 = vsel %vm11350_vm2, %v2998_v28, %v2999_v2  ;;  %v8299_v62 = vcombine.high %v11658_v22, %v11666_v34  ;;  %v2231_v2 = vshrl.u32 %v11498_v46, 16  ;;  %v10276_v28 = vld [vmem:[%s11318_s4 + $0x238] sm:$0xff]  }
 0x155   : > { %9387 = vmatpush3.bf16.msra.mxu1 %v10250_v60  ;;  %9499 = vmatpush3.bf16.msra.mxu0 %v10252_v43  ;;  %v3003_v60 = vrot.slane %v11449_v1, 5  ;;  %v2186_v43 = vor.u32 %v2185_v9, %v11632_v4  ;;  %v10265_v1 = vld [vmem:[%s11318_s4 + $0x1e8] sm:$0xff]   ;;  %v2177_v11 = vrot.slane %v2176_v40, 4  ;;  %v8395_v63 = vcombine.high %v11670_v8, %v11674_v44 }
 0x156   : > { %9388 = vmatprep.subr.bf16.mxu1 %v10253_v33  ;;  %9500 = vmatprep.subr.bf16.mxu0 %v10255_v27  ;;  %v2203_v33 = vshll.u32 %v11479_v21, 16  ;;  %v2207_v27 = vshrl.u32 %v11479_v21, 16  ;;  %v2218_v9 = vshrl.u32 %v11494_v42, 16  ;;  %v2215_v31 = vrot.slane %v2213_v5, 5 }
 0x157   : > { %v2187_v39 = vrot.slane %v2186_v43, 4  ;;  %v11702_v59 = vsel %vm11513_vm5, %v2177_v11, %v11632_v4  ;;  %v3010_v4 = vrot.slane %v11479_v21, 5  ;;  %v8298_v21 = vcombine.low %v11658_v22, %v11666_v34  ;;  %v1476_v43 = vld [vmem:[%s11334_s11 + $0xb8] sm:$0x11] }
 0x158   : > { %2763 = vmatmul.mubr.bf16.gmra.mrb[36].mxu1 %v8292_v37  ;;  %3408 = vmatmul.mubr.bf16.gmra.mrb[36].mxu0 %v8388_v36  ;;  %v8343_v37 = vrot.slane %v11446_v0, 9  ;;  %v3006_v36 = vrot.slane %v11630_v41, 5  ;;  %v11683_v49 = vrot.slane %v2203_v33, 5  ;;  %v2209_v50 = vrot.slane %v2207_v27, 4  ;;  %v10269_v0 = vld [vmem:[%s11318_s4 + $0x1f0] sm:$0xff]   ;;  %v11738_v33 = vld [vmem:[%s11334_s11 + $0xc0] sm:$0xff] }
 0x159   : > { %2770 = vmatprep.mubr.bf16.mxu1 %v8295_v47  ;;  %3415 = vmatprep.mubr.bf16.mxu0 %v8391_v48  ;;  %v2199_v47 = vrot.slane %v2197_v30, 5  ;;  %v10266_v48 = vld [vmem:[%s11318_s4 + $0x1a8] sm:$0xff]   ;;  %v3012_v30 = vrot.slane %v3010_v4, 4  ;;  %v2233_v22 = vrot.slane %v2231_v2, 4  ;;  %v2242_v27 = vshrl.u32 %v11738_v33, 16 }
 0x15a   : > { %9389 = vmatpush3.bf16.msra.mxu1 %v10254_v24  ;;  %9501 = vmatpush3.bf16.msra.mxu0 %v10256_v45  ;;  %v3005_v24 = vrot.slane %v3003_v60, 4  ;;  %v2196_v45 = vrot.slane %v2194_v7, 4  ;;  %v11697_v14 = vsel %vm11350_vm2, %v8343_v37, %v3003_v60  ;;  %v2210_v41 = vor.u32 %v2209_v50, %v11683_v49  ;;  %v10279_v7 = vld [vmem:[%s11318_s4 + $0x2c0] sm:$0xff]  }
 0x15b   : > { %9390 = vmatprep.subr.bf16.mxu1 %v10257_v54  ;;  %9502 = vmatprep.subr.bf16.mxu0 %v10259_v57  ;;  %v8296_v54 = vcombine.low %v11623_v3, %v11627_v53  ;;  %v8392_v57 = vcombine.low %v11612_v58, %v11618_v55  ;;  %v11706_v58 = vsel %vm11513_vm5, %v2187_v39, %v2191_v35  ;;  %v10272_v3 = vld [vmem:[%s11318_s4 + $0x230] sm:$0xff]   ;;  %v3013_v60 = vrot.slane %v11679_v38, 5 }
 0x15c   : > { %v11710_v55 = vsel %vm11350_vm2, %v3005_v24, %v3006_v36  ;;  %v2200_v53 = vor.u32 %v2199_v47, %v2196_v45  ;;  %v2211_v40 = vrot.slane %v2210_v41, 4  ;;  %v2237_v11 = vshll.u32 %v1476_v43, 16 }
 0x15d   : > { %v3014_v24 = vsel %vm11350_vm2, %v3012_v30, %v3013_v60  ;;  %v3017_v45 = vrot.slane %v11498_v46, 5  ;;  %v2244_v47 = vrot.slane %v2242_v27, 4  ;;  %v11794_v27 = vld [vmem:[%s11334_s11 + $0xf8] sm:$0xff] }
 0x15e   : > { %9391 = vmatpush3.bf16.msra.mxu1 %v10258_v12  ;;  %9503 = vmatpush3.bf16.msra.mxu0 %v10260_v15  ;;  %v10273_v12 = vld [vmem:[%s11318_s4 + $0x1f8] sm:$0xff]   ;;  %v2216_v38 = vsel %vm11513_vm5, %v2211_v40, %v2215_v31 }
 0x15f   : > { %9392 = vmatprep.subr.bf16.mxu1 %v10261_v18  ;;  %9504 = vmatprep.subr.bf16.mxu0 %v10263_v20  ;;  %v10275_v15 = vld [vmem:[%s11318_s4 + $0x278] sm:$0xff]   ;;  %v8394_v18 = vcombine.low %v11670_v8, %v11674_v44  ;;  %v8301_v20 = vcombine.high %v11702_v59, %v11706_v58  ;;  %v10281_v44 = vld [vmem:[%s11318_s4 + $0x340] sm:$0xff]  }
 0x160   : > { %2771 = vmatmul.mubr.bf16.gmra.mrb[40].mxu1 %v8294_v23  ;;  %3416 = vmatmul.mubr.bf16.gmra.mrb[40].mxu0 %v8390_v16  ;;  %v2221_v16 = vshll.u32 %v11494_v42, 16  ;;  %v8397_v23 = vcombine.high %v11697_v14, %v11710_v55 }
 0x161   : > { %2778 = vmatprep.mubr.bf16.mxu1 %v8297_v29  ;;  %3423 = vmatprep.mubr.bf16.mxu0 %v8393_v26  ;;  %v8344_v26 = vrot.slane %v11475_v19, 9  ;;  %v2201_v29 = vrot.slane %v2200_v53, 4  ;;  %v2229_v19 = vrot.slane %v2227_v17, 5 }
 0x162   : > { %9393 = vmatpush3.bf16.msra.mxu1 %v10262_v56  ;;  %9505 = vmatpush3.bf16.msra.mxu0 %v10264_v13  ;;  %v2220_v56 = vrot.slane %v2218_v9, 4  ;;  %v2223_v13 = vrot.slane %v2221_v16, 5  ;;  %v10408_v16 = vld [vmem:[%s11334_s11 + $0xe0] sm:$0xff] }
 0x163   : > { %9394 = vmatprep.subr.bf16.mxu1 %v10265_v1  ;;  %9506 = vmatprep.subr.bf16.mxu0 %v10267_v32  ;;  %v2245_v1 = vshll.u32 %v11738_v33, 16  ;;  %v11743_v32 = vld [vmem:[%s11334_s11 + $0xc8] sm:$0xff]  ;;  %v2206_v35 = vsel %vm11513_vm5, %v2201_v29, %v11683_v49  ;;  %v2234_v36 = vor.u32 %v2233_v22, %v2229_v19  ;;  %v3011_v39 = vsel %vm11350_vm2, %v8344_v26, %v3010_v4 }
 0x164   : > { %v2251_v34 = vshll.u32 %v11743_v32, 16  ;;  %v2255_v8 = vshrl.u32 %v11743_v32, 16  ;;  %v2224_v37 = vor.u32 %v2223_v13, %v2220_v56  ;;  %v8300_v49 = vcombine.low %v11702_v59, %v11706_v58  ;;  %v11773_v58 = vld [vmem:[%s11334_s11 + $0xd8] sm:$0xff]  ;;  %v1482_v56 = vld [vmem:[%s11334_s11 + $0xe8] sm:$0x11]  ;;  %v11785_v13 = vld [vmem:[%s11334_s11 + $0xf0] sm:$0xff] }
 0x165   : > { %v2235_v46 = vrot.slane %v2234_v36, 4  ;;  %v2269_v9 = vshll.u32 %v11773_v58, 16  ;;  %v2275_v17 = vshll.u32 %v10408_v16, 16  ;;  %v8302_v26 = vcombine.low %v2206_v35, %v2216_v38 }
 0x166   : > { %9395 = vmatpush3.bf16.msra.mxu1 %v10266_v48  ;;  %9507 = vmatpush3.bf16.msra.mxu0 %v10268_v10  ;;  %v2247_v48 = vrot.slane %v2245_v1, 5  ;;  %v2253_v10 = vrot.slane %v2251_v34, 5  ;;  %v2257_v50 = vrot.slane %v2255_v8, 4  ;;  %v2225_v5 = vrot.slane %v2224_v37, 4 }
 0x167   : > { %9396 = vmatprep.subr.bf16.mxu1 %v10269_v0  ;;  %9508 = vmatprep.subr.bf16.mxu0 %v10271_v52  ;;  %v8396_v0 = vcombine.low %v11697_v14, %v11710_v55  ;;  %v2239_v52 = vrot.slane %v2237_v11, 5  ;;  %v2266_v55 = vshrl.u32 %v11773_v58, 16  ;;  %v2271_v31 = vrot.slane %v2269_v9, 5 }
 0x168   : > { %2779 = vmatmul.mubr.bf16.gmra.mrb[44].mxu1 %v8296_v54  ;;  %3424 = vmatmul.mubr.bf16.gmra.mrb[44].mxu0 %v8392_v57  ;;  %v8345_v54 = vrot.slane %v11494_v42, 9  ;;  %v1479_v57 = vld [vmem:[%s11334_s11 + $0xd0] sm:$0x11]  ;;  %v2248_v53 = vor.u32 %v2247_v48, %v2244_v47  ;;  %v2258_v41 = vor.u32 %v2257_v50, %v2253_v10  ;;  %v2230_v42 = vsel %vm11513_vm5, %v2225_v5, %v2229_v19 }
 0x169   : > { %2786 = vmatprep.mubr.bf16.mxu1 %v8299_v62  ;;  %3431 = vmatprep.mubr.bf16.mxu0 %v8395_v63  ;;  %v8303_v62 = vcombine.high %v2206_v35, %v2216_v38  ;;  %v8399_v63 = vcombine.high %v3011_v39, %v3014_v24  ;;  %v2261_v4 = vshll.u32 %v1479_v57, 16  ;;  %v2240_v59 = vsel %vm11513_vm5, %v2235_v46, %v2239_v52  ;;  %v11805_v38 = vld [vmem:[%s11334_s11 + $0x100] sm:$0x11] }
 0x16a   : > { %9397 = vmatpush3.bf16.msra.mxu1 %v10270_v6  ;;  %9509 = vmatpush3.bf16.msra.mxu0 %v10272_v3  ;;  %v3019_v6 = vrot.slane %v3017_v45, 4  ;;  %v3020_v3 = vrot.slane %v1476_v43, 5  ;;  %v11766_v14 = vsel %vm11350_vm2, %v8345_v54, %v3017_v45  ;;  %v2249_v2 = vrot.slane %v2248_v53, 4 }
 0x16b   : > { %9398 = vmatprep.subr.bf16.mxu1 %v10273_v12  ;;  %9510 = vmatprep.subr.bf16.mxu0 %v10275_v15  ;;  %v3024_v15 = vrot.slane %v11743_v32, 5  ;;  %v2268_v40 = vrot.slane %v2266_v55, 4  ;;  %v3027_v43 = vrot.slane %v1479_v57, 5  ;;  %v2290_v19 = vshrl.u32 %v11785_v13, 16  ;;  %v11826_v55 = vld [vmem:[%s11334_s11 + $0x110] sm:$0xff] }
 0x16c   : > { %v3021_v12 = vsel %vm11350_vm2, %v3019_v6, %v3020_v3  ;;  %v2293_v22 = vshll.u32 %v11785_v13, 16  ;;  %v2299_v1 = vshll.u32 %v11794_v27, 16  ;;  %v2303_v32 = vshrl.u32 %v11794_v27, 16 }
 0x16d   : > { %v8401_v29 = vcombine.high %v11766_v14, %v3021_v12  ;;  %v3026_v60 = vrot.slane %v3024_v15, 4  ;;  %v2254_v34 = vsel %vm11513_vm5, %v2249_v2, %v2253_v10  ;;  %v2285_v37 = vshll.u32 %v1482_v56, 16 }
 0x16e   : > { %9399 = vmatpush3.bf16.msra.mxu1 %v10274_v25  ;;  %9511 = vmatpush3.bf16.msra.mxu0 %v10276_v28  ;;  %v8398_v25 = vcombine.low %v3011_v39, %v3014_v24  ;;  %v8305_v28 = vcombine.high %v2230_v42, %v2240_v59  ;;  %v3031_v36 = vrot.slane %v10408_v16, 5  ;;  %v2292_v39 = vrot.slane %v2290_v19, 4 }
 0x16f   : > { %9608 = vmatprep.subr.bf16.mxu1 %v10279_v7  ;;  %9720 = vmatprep.subr.bf16.mxu0 %v10281_v44  ;;  %v2277_v7 = vrot.slane %v2275_v17, 5  ;;  %v2272_v44 = vor.u32 %v2271_v31, %v2268_v40  ;;  %v3028_v11 = vsel %vm11350_vm2, %v3026_v60, %v3027_v43  ;;  %v2295_v24 = vrot.slane %v2293_v22, 5  ;;  %v11835_v43 = vld [vmem:[%s11334_s11 + $0x120] sm:$0xff] }
 0x170   : > { %2787 = vmatmul.mubr.bf16.gmra.mrb[48].mxu1 %v8298_v21  ;;  %3432 = vmatmul.mubr.bf16.gmra.mrb[48].mxu0 %v8394_v18  ;;  %v2279_v21 = vshrl.u32 %v10408_v16, 16  ;;  %v2259_v18 = vrot.slane %v2258_v41, 4  ;;  %v8304_v45 = vcombine.low %v2230_v42, %v2240_v59  ;;  %v8400_v47 = vcombine.low %v11766_v14, %v3021_v12 }
 0x171   : > { %2794 = vmatprep.mubr.bf16.mxu1 %v8301_v20  ;;  %3439 = vmatprep.mubr.bf16.mxu0 %v8397_v23  ;;  %v2263_v20 = vrot.slane %v2261_v4, 5  ;;  %v8346_v23 = vrot.slane %v11738_v33, 9  ;;  %v2301_v48 = vrot.slane %v2299_v1, 5  ;;  %v2305_v50 = vrot.slane %v2303_v32, 4  ;;  %v11817_v4 = vld [vmem:[%s11334_s11 + $0x108] sm:$0xff] }
 0x172   : > { %v2281_v30 = vrot.slane %v2279_v21, 4  ;;  %v8347_v52 = vrot.slane %v11773_v58, 9  ;;  %v2287_v57 = vrot.slane %v2285_v37, 5  ;;  %v2309_v5 = vshll.u32 %v11805_v38, 16 }
 0x173   : > { %v11791_v33 = vsel %vm11350_vm2, %v8346_v23, %v3024_v15  ;;  %v2264_v8 = vsel %vm11513_vm5, %v2259_v18, %v2263_v20  ;;  %v2296_v46 = vor.u32 %v2295_v24, %v2292_v39  ;;  %v2306_v6 = vor.u32 %v2305_v50, %v2301_v48 }
 0x174   : > { %v2282_v35 = vor.u32 %v2281_v30, %v2277_v7  ;;  %v8307_v10 = vcombine.high %v2254_v34, %v2264_v8  ;;  %v3038_v3 = vrot.slane %v11794_v27, 5  ;;  %v3032_v41 = vsel %vm11350_vm2, %v8347_v52, %v3031_v36 }
 0x175   : > { %v2314_v14 = vshrl.u32 %v11817_v4, 16  ;;  %v2317_v42 = vshll.u32 %v11817_v4, 16  ;;  %v2323_v9 = vshll.u32 %v11826_v55, 16  ;;  %v2327_v12 = vshrl.u32 %v11826_v55, 16 }
 0x176   : > { %v2283_v54 = vrot.slane %v2282_v35, 4  ;;  %v8306_v15 = vcombine.low %v2254_v34, %v2264_v8  ;;  %v8402_v16 = vcombine.low %v11791_v33, %v3028_v11  ;;  %v2311_v17 = vrot.slane %v2309_v5, 5  ;;  %v11857_v5 = vld [vmem:[%s11334_s11 + $0x138] sm:$0xff] }
 0x177   : > { %v8348_v21 = vrot.slane %v11785_v13, 9  ;;  %v2297_v2 = vrot.slane %v2296_v46, 4  ;;  %v2307_v18 = vrot.slane %v2306_v6, 4  ;;  %v3040_v20 = vrot.slane %v3038_v3, 4 }
 0x178   : > { %2795 = vmatmul.mubr.bf16.gmra.mrb[52].mxu1 %v8300_v49  ;;  %3440 = vmatmul.mubr.bf16.gmra.mrb[52].mxu0 %v8396_v0  ;;  %v8403_v49 = vcombine.high %v11791_v33, %v3028_v11  ;;  %v2273_v0 = vrot.slane %v2272_v44, 4  ;;  %v2288_v59 = vsel %vm11513_vm5, %v2283_v54, %v2287_v57  ;;  %v3041_v23 = vrot.slane %v11805_v38, 5  ;;  %v1491_v11 = vld [vmem:[%s11334_s11 + $0x130] sm:$0x11] }
 0x179   : > { %2802 = vmatprep.mubr.bf16.mxu1 %v8303_v62  ;;  %3447 = vmatprep.mubr.bf16.mxu0 %v8399_v63  ;;  %v3033_v62 = vrot.slane %v3031_v36, 4  ;;  %v3034_v63 = vrot.slane %v1482_v56, 5  ;;  %v2319_v40 = vrot.slane %v2317_v42, 5  ;;  %v2325_v31 = vrot.slane %v2323_v9, 5  ;;  %v11840_v56 = vld [vmem:[%s11334_s11 + $0x128] sm:$0xff] }
 0x17a   : > { %v2278_v53 = vsel %vm11513_vm5, %v2273_v0, %v2277_v7  ;;  %v2329_v60 = vrot.slane %v2327_v12, 4  ;;  %v2338_v7 = vshrl.u32 %v11835_v43, 16  ;;  %v2341_v30 = vshll.u32 %v11835_v43, 16 }
 0x17b   : > { %v3035_v58 = vsel %vm11350_vm2, %v3033_v62, %v3034_v63  ;;  %v2347_v13 = vshll.u32 %v11840_v56, 16  ;;  %v2351_v19 = vshrl.u32 %v11840_v56, 16  ;;  %v2302_v22 = vsel %vm11513_vm5, %v2297_v2, %v2301_v48 }
 0x17c   : > { %v2312_v33 = vsel %vm11513_vm5, %v2307_v18, %v2311_v17  ;;  %v3039_v32 = vsel %vm11350_vm2, %v8348_v21, %v3038_v3  ;;  %v3042_v34 = vsel %vm11350_vm2, %v3040_v20, %v3041_v23  ;;  %v2330_v8 = vor.u32 %v2329_v60, %v2325_v31  ;;  %v1494_v17 = vld [vmem:[%s11334_s11 + $0x148] sm:$0x11] }
 0x17d   : > { %v3045_v44 = vrot.slane %v11826_v55, 5  ;;  %v2340_v35 = vrot.slane %v2338_v7, 4  ;;  %v2343_v37 = vrot.slane %v2341_v30, 5  ;;  %v2349_v36 = vrot.slane %v2347_v13, 5  ;;  %v11892_v13 = vld [vmem:[%s11334_s11 + $0x150] sm:$0xff] }
 0x17e   : > { %v2353_v38 = vrot.slane %v2351_v19, 4  ;;  %v8308_v39 = vcombine.low %v2278_v53, %v2288_v59  ;;  %v8404_v24 = vcombine.low %v3032_v41, %v3035_v58  ;;  %v2357_v54 = vshll.u32 %v1491_v11, 16 }
 0x17f   : > { %v3047_v0 = vrot.slane %v3045_v44, 4  ;;  %v2344_v57 = vor.u32 %v2343_v37, %v2340_v35  ;;  %v3052_v63 = vrot.slane %v11840_v56, 5  ;;  %v2362_v46 = vshrl.u32 %v11857_v5, 16 }
 0x180   : > { %2803 = vmatmul.mubr.bf16.gmra.mrb[56].mxu1 %v8302_v26  ;;  %3448 = vmatmul.mubr.bf16.gmra.mrb[56].mxu0 %v8398_v25  ;;  %v1488_v26 = vld [vmem:[%s11334_s11 + $0x118] sm:$0x11]  ;;  %v8309_v25 = vcombine.high %v2278_v53, %v2288_v59  ;;  %v2354_v62 = vor.u32 %v2353_v38, %v2349_v36  ;;  %v2365_v6 = vshll.u32 %v11857_v5, 16  ;;  %v8350_v55 = vrot.slane %v11835_v43, 9 }
 0x181   : > { %2810 = vmatprep.mubr.bf16.mxu1 %v8305_v28  ;;  %3455 = vmatprep.mubr.bf16.mxu0 %v8401_v29  ;;  %v8405_v28 = vcombine.high %v3032_v41, %v3035_v58  ;;  %v2316_v29 = vrot.slane %v2314_v14, 4  ;;  %v2333_v1 = vshll.u32 %v1488_v26, 16  ;;  %v3048_v52 = vrot.slane %v1488_v26, 5  ;;  %v11866_v41 = vld [vmem:[%s11334_s11 + $0x140] sm:$0xff] }
 0x182   : > { %v2375_v14 = vshrl.u32 %v11866_v41, 16  ;;  %v2359_v58 = vrot.slane %v2357_v54, 5  ;;  %v2345_v9 = vrot.slane %v2344_v57, 4  ;;  %v2355_v12 = vrot.slane %v2354_v62, 4  ;;  %v11916_v54 = vld [vmem:[%s11334_s11 + $0x170] sm:$0xff] }
 0x183   : > { %v2320_v27 = vor.u32 %v2319_v40, %v2316_v29  ;;  %v2335_v50 = vrot.slane %v2333_v1, 5  ;;  %v3049_v59 = vsel %vm11350_vm2, %v3047_v0, %v3048_v52  ;;  %v8310_v21 = vcombine.low %v2302_v22, %v2312_v33 }
 0x184   : > { %v8406_v2 = vcombine.low %v3039_v32, %v3042_v34  ;;  %v2364_v18 = vrot.slane %v2362_v46, 4  ;;  %v2367_v20 = vrot.slane %v2365_v6, 5  ;;  %v11878_v29 = vsel %vm11513_vm5, %v2345_v9, %v2349_v36 }
 0x185   : > { %v2321_v48 = vrot.slane %v2320_v27, 4  ;;  %v11882_v40 = vsel %vm11350_vm2, %v8350_v55, %v3052_v63  ;;  %v2381_v43 = vshll.u32 %v1494_v17, 16  ;;  %v3059_v7 = vrot.slane %v11866_v41, 5 }
 0x186   : > { %v2368_v60 = vor.u32 %v2367_v20, %v2364_v18  ;;  %v2386_v19 = vshrl.u32 %v11892_v13, 16  ;;  %v8351_v35 = vrot.slane %v11857_v5, 9  ;;  %v2419_v57 = vshll.u32 %v11916_v54, 16 }
 0x187   : > { %v2326_v3 = vsel %vm11513_vm5, %v2321_v48, %v2325_v31  ;;  %v11886_v31 = vsel %vm11513_vm5, %v2355_v12, %v2359_v58  ;;  %v2383_v36 = vrot.slane %v2381_v43, 5  ;;  %v2423_v62 = vshrl.u32 %v11916_v54, 16  ;;  %v11932_v12 = vld [vmem:[%s11334_s11 + $0x18] sm:$0xff] }
 0x188   : > { %2811 = vmatmul.mubr.bf16.gmra.mrb[60].mxu1 %v8304_v45  ;;  %3456 = vmatmul.mubr.bf16.gmra.mrb[60].mxu0 %v8400_v47  ;;  %v8311_v45 = vcombine.high %v2302_v22, %v2312_v33  ;;  %v8407_v47 = vcombine.high %v3039_v32, %v3042_v34  ;;  %v2389_v22 = vshll.u32 %v11892_v13, 16  ;;  %v11897_v33 = vld [vmem:[%s11334_s11 + $0x158] sm:$0xff]  ;;  %v2388_v38 = vrot.slane %v2386_v19, 4 }
 0x189   : > { %2818 = vmatprep.mubr.bf16.mxu1 %v8307_v10  ;;  %3463 = vmatprep.mubr.bf16.mxu0 %v8403_v49  ;;  %v8349_v10 = vrot.slane %v11817_v4, 9  ;;  %v2331_v49 = vrot.slane %v2330_v8, 4  ;;  %v2371_v4 = vshll.u32 %v11866_v41, 16  ;;  %v2395_v27 = vshll.u32 %v11897_v33, 16 }
 0x18a   : > { %v2399_v1 = vshrl.u32 %v11897_v33, 16  ;;  %v8315_v8 = vcombine.high %v11878_v29, %v11886_v31  ;;  %v3060_v5 = vsel %vm11350_vm2, %v8351_v35, %v3059_v7  ;;  %v3066_v41 = vrot.slane %v11897_v33, 5 }
 0x18b   : > { %v3046_v53 = vsel %vm11350_vm2, %v8349_v10, %v3045_v44  ;;  %v2336_v42 = vsel %vm11513_vm5, %v2331_v49, %v2335_v50  ;;  %v1497_v50 = vld [vmem:[%s11334_s11 + $0x160] sm:$0x11]  ;;  %v11907_v10 = vld [vmem:[%s11334_s11 + $0x168] sm:$0xff]  ;;  %v2421_v55 = vrot.slane %v2419_v57, 5  ;;  %v2425_v9 = vrot.slane %v2423_v62, 4 }
 0x18c   : > { %v8313_v23 = vcombine.high %v2326_v3, %v2336_v42  ;;  %v8409_v26 = vcombine.high %v3046_v53, %v3049_v59  ;;  %v8312_v32 = vcombine.low %v2326_v3, %v2336_v42  ;;  %v8408_v34 = vcombine.low %v3046_v53, %v3049_v59 }
 0x18d   : > { %v2401_v48 = vrot.slane %v2399_v1, 4  ;;  %v2410_v49 = vshrl.u32 %v11907_v10, 16  ;;  %v2413_v0 = vshll.u32 %v11907_v10, 16  ;;  %v2405_v53 = vshll.u32 %v1497_v50, 16 }
 0x18e   : > { %v8314_v59 = vcombine.low %v11878_v29, %v11886_v31  ;;  %v3068_v20 = vrot.slane %v3066_v41, 4  ;;  %v2426_v29 = vor.u32 %v2425_v9, %v2421_v55  ;;  %v4191_v43 = vshrl.u32 %v11932_v12, 16 }
 0x18f   : > { %v2415_v42 = vrot.slane %v2413_v0, 5  ;;  %v2407_v18 = vrot.slane %v2405_v53, 5 }
 0x190   : > { %2819 = vmatmul.mubr.bf16.gmra.mrb[64].mxu1 %v8306_v15  ;;  %3464 = vmatmul.mubr.bf16.gmra.mrb[64].mxu0 %v8402_v16  ;;  %v3054_v15 = vrot.slane %v3052_v63, 4  ;;  %v3055_v16 = vrot.slane %v1491_v11, 5  ;;  %v2369_v11 = vrot.slane %v2368_v60, 4 }
 0x191   : > { %2826 = vmatprep.mubr.bf16.mxu1 %v8309_v25  ;;  %3471 = vmatprep.mubr.bf16.mxu0 %v8405_v28  ;;  %v2373_v25 = vrot.slane %v2371_v4, 5  ;;  %v2377_v28 = vrot.slane %v2375_v14, 4  ;;  %v1500_v4 = vld [vmem:[%s11334_s11 + $0x178] sm:$0x11]  ;;  %v2412_v14 = vrot.slane %v2410_v49, 4 }
 0x192   : > { %v3056_v30 = vsel %vm11350_vm2, %v3054_v15, %v3055_v16 }
 0x193   : > { %v2378_v56 = vor.u32 %v2377_v28, %v2373_v25  ;;  %v8411_v44 = vcombine.high %v11882_v40, %v3056_v30  ;;  %v11913_v52 = vsel %vm11513_vm5, %v2369_v11, %v2373_v25  ;;  %v8410_v58 = vcombine.low %v11882_v40, %v3056_v30  ;;  %v11937_v28 = vld [vmem:[%s11334_s11 + $0x20] sm:$0xff] }
 0x194   : > { %v2429_v25 = vshll.u32 %v1500_v4, 16  ;;  %v3073_v40 = vrot.slane %v11916_v54, 5  ;;  %v4204_v19 = vshrl.u32 %v11937_v28, 16 }
 0x195   : > { %v2379_v37 = vrot.slane %v2378_v56, 4 }
 0x196   : > { %v2431_v1 = vrot.slane %v2429_v25, 5 }
 0x197   : > { %v2384_v63 = vsel %vm11513_vm5, %v2379_v37, %v2383_v36  ;;  %v4193_v37 = vrot.slane %v4191_v43, 4  ;;  %v8442_v43 = vld [vmem:[%s11334_s11 + $0x58] sm:$0x11] }
 0x198   : > { %2827 = vmatmul.mubr.bf16.gmra.mrb[68].mxu1 %v8308_v39  ;;  %3472 = vmatmul.mubr.bf16.gmra.mrb[68].mxu0 %v8404_v24  ;;  %v2391_v39 = vrot.slane %v2389_v22, 5  ;;  %v3061_v24 = vrot.slane %v3059_v7, 4  ;;  %v8317_v15 = vcombine.high %v11913_v52, %v2384_v63  ;;  %v4194_v7 = vshll.u32 %v11932_v12, 16 }
 0x199   : > { %2834 = vmatprep.mubr.bf16.mxu1 %v8311_v45  ;;  %3479 = vmatprep.mubr.bf16.mxu0 %v8407_v47  ;;  %v3062_v45 = vrot.slane %v1494_v17, 5  ;;  %v2397_v47 = vrot.slane %v2395_v27, 5  ;;  %v8316_v22 = vcombine.low %v11913_v52, %v2384_v63 }
 0x19a   : > { %v2392_v46 = vor.u32 %v2391_v39, %v2388_v38  ;;  %v4196_v36 = vrot.slane %v4194_v7, 5  ;;  %v11955_v38 = vld [vmem:[%s11334_s11 + $0x30] sm:$0xff]  ;;  %v11958_v39 = vld [vmem:[%s11334_s11 + $0x38] sm:$0xff] }
 0x19b   : > { %v3063_v6 = vsel %vm11350_vm2, %v3061_v24, %v3062_v45  ;;  %v2402_v3 = vor.u32 %v2401_v48, %v2397_v47  ;;  %v4206_v45 = vrot.slane %v4204_v19, 4  ;;  %v8436_v48 = vld [vmem:[%s11334_s11 + $0x28] sm:$0x11]  ;;  %v4215_v0 = vshrl.u32 %v11955_v38, 16 }
 0x19c   : > { %v8413_v16 = vcombine.high %v3060_v5, %v3063_v6  ;;  %v2393_v17 = vrot.slane %v2392_v46, 4  ;;  %v8412_v33 = vcombine.low %v3060_v5, %v3063_v6  ;;  %v4218_v52 = vshll.u32 %v11955_v38, 16  ;;  %v8439_v46 = vld [vmem:[%s11334_s11 + $0x40] sm:$0x11]  ;;  %v11975_v6 = vld [vmem:[%s11334_s11 + $0x48] sm:$0xff] }
 0x19d   : > { %v4224_v54 = vshll.u32 %v11958_v39, 16  ;;  %v4228_v57 = vshrl.u32 %v11958_v39, 16  ;;  %v4197_v62 = vor.u32 %v4196_v36, %v4193_v37  ;;  %v4210_v5 = vshll.u32 %v8436_v48, 16 }
 0x19e   : > { %v2398_v31 = vsel %vm11513_vm5, %v2393_v17, %v2397_v47  ;;  %v4234_v17 = vshll.u32 %v8439_v46, 16  ;;  %v8515_v19 = vcombine.high %v11932_v12, %v11937_v28  ;;  %v12019_v46 = vld [vmem:[%s11334_s11 + $0x78] sm:$0xff] }
 0x19f   : > { %v4198_v9 = vrot.slane %v4197_v62, 4  ;;  %v8445_v62 = vld [vmem:[%s11334_s11 + $0x70] sm:$0x11] }
 0x1a0   : > { %2835 = vmatmul.mubr.bf16.gmra.mrb[72].mxu1 %v8310_v21  ;;  %3480 = vmatmul.mubr.bf16.gmra.mrb[72].mxu0 %v8406_v2  ;;  %v8352_v21 = vrot.slane %v11892_v13, 9  ;;  %v2403_v2 = vrot.slane %v2402_v3, 4  ;;  %v4200_v13 = vshll.u32 %v11937_v28, 16 }
 0x1a1   : > { %2842 = vmatprep.mubr.bf16.mxu1 %v8313_v23  ;;  %3487 = vmatprep.mubr.bf16.mxu0 %v8409_v26  ;;  %v3069_v23 = vrot.slane %v1497_v50, 5  ;;  %v2416_v26 = vor.u32 %v2415_v42, %v2412_v14  ;;  %v11978_v14 = vld [vmem:[%s11334_s11 + $0x50] sm:$0xff]  ;;  %v4217_v42 = vrot.slane %v4215_v0, 4  ;;  %v10280_v0 = vld [vmem:[%s11318_s4 + $0x280] sm:$0xff]  }
 0x1a2   : > { %v3067_v60 = vsel %vm11350_vm2, %v8352_v21, %v3066_v41  ;;  %v2408_v30 = vsel %vm11513_vm5, %v2403_v2, %v2407_v18  ;;  %v4202_v24 = vrot.slane %v4200_v13, 5  ;;  %v4239_v21 = vshrl.u32 %v11975_v6, 16 }
 0x1a3   : > { %v3070_v56 = vsel %vm11350_vm2, %v3068_v20, %v3069_v23  ;;  %v2417_v27 = vrot.slane %v2416_v26, 4  ;;  %v8319_v11 = vcombine.high %v2398_v31, %v2408_v30  ;;  %v8318_v3 = vcombine.low %v2398_v31, %v2408_v30 }
 0x1a4   : > { %v8415_v35 = vcombine.high %v3067_v60, %v3070_v56  ;;  %v4207_v63 = vor.u32 %v4206_v45, %v4202_v24  ;;  %v8414_v53 = vcombine.low %v3067_v60, %v3070_v56  ;;  %v4242_v2 = vshll.u32 %v11975_v6, 16 }
 0x1a5   : > { %v2422_v47 = vsel %vm11513_vm5, %v2417_v27, %v2421_v55  ;;  %v4230_v55 = vrot.slane %v4228_v57, 4  ;;  %v4248_v18 = vshll.u32 %v11978_v14, 16  ;;  %v4252_v20 = vshrl.u32 %v11978_v14, 16 }
 0x1a6   : > { %v4203_v25 = vsel %vm11513_vm5, %v4198_v9, %v4202_v24  ;;  %v4236_v60 = vrot.slane %v4234_v17, 5  ;;  %v4241_v7 = vrot.slane %v4239_v21, 4  ;;  %v4244_v30 = vrot.slane %v4242_v2, 5 }
 0x1a7   : > { %v4250_v56 = vrot.slane %v4248_v18, 5  ;;  %v4254_v13 = vrot.slane %v4252_v20, 4  ;;  %v4287_v9 = vshrl.u32 %v12019_v46, 16  ;;  %v10295_v18 = vld [vmem:[%s11318_s4 + $0x2d0] sm:$0xff]  }
 0x1a8   : > { %2843 = vmatmul.mubr.bf16.gmra.mrb[76].mxu1 %v8312_v32  ;;  %3488 = vmatmul.mubr.bf16.gmra.mrb[76].mxu0 %v8408_v34  ;;  %v2427_v32 = vrot.slane %v2426_v29, 4  ;;  %v8353_v34 = vrot.slane %v11907_v10, 9  ;;  %v10297_v20 = vld [vmem:[%s11318_s4 + $0x350] sm:$0xff]  }
 0x1a9   : > { %2850 = vmatprep.mubr.bf16.mxu1 %v8315_v8  ;;  %3495 = vmatprep.mubr.bf16.mxu0 %v8411_v44  ;;  %v3075_v8 = vrot.slane %v3073_v40, 4  ;;  %v3076_v44 = vrot.slane %v1500_v4, 5 }
 0x1aa   : > { %v2432_v50 = vsel %vm11513_vm5, %v2427_v32, %v2431_v1  ;;  %v3074_v10 = vsel %vm11350_vm2, %v8353_v34, %v3073_v40  ;;  %v11992_v1 = vld [vmem:[%s11334_s11 + $0x60] sm:$0xff]  ;;  %v11995_v32 = vld [vmem:[%s11334_s11 + $0x68] sm:$0xff]  ;;  %v4245_v34 = vor.u32 %v4244_v30, %v4241_v7 }
 0x1ab   : > { %v3077_v49 = vsel %vm11350_vm2, %v3075_v8, %v3076_v44  ;;  %v8321_v41 = vcombine.high %v2422_v47, %v2432_v50  ;;  %v8320_v40 = vcombine.low %v2422_v47, %v2432_v50  ;;  %v4255_v8 = vor.u32 %v4254_v13, %v4250_v56 }
 0x1ac   : > { %v8417_v4 = vcombine.high %v3074_v10, %v3077_v49  ;;  %v8416_v31 = vcombine.low %v3074_v10, %v3077_v49  ;;  %v4258_v44 = vshll.u32 %v8442_v43, 16  ;;  %v4263_v37 = vshrl.u32 %v11992_v1, 16 }
 0x1ad   : > { %v4266_v36 = vshll.u32 %v11992_v1, 16  ;;  %v4272_v24 = vshll.u32 %v11995_v32, 16  ;;  %v4276_v45 = vshrl.u32 %v11995_v32, 16  ;;  %v8514_v47 = vcombine.low %v11932_v12, %v11937_v28 }
 0x1ae   : > { %v4246_v50 = vrot.slane %v4245_v34, 4  ;;  %v4256_v10 = vrot.slane %v4255_v8, 4  ;;  %v4260_v49 = vrot.slane %v4258_v44, 5  ;;  %v10303_v44 = vld [vmem:[%s11318_s4 + $0x2d8] sm:$0xff]  }
 0x1af   : > { %v4274_v12 = vrot.slane %v4272_v24, 5  ;;  %v4278_v28 = vrot.slane %v4276_v45, 4 }
 0x1b0   : > { %2851 = vmatmul.mubr.bf16.gmra.mrb[80].mxu1 %v8314_v59  ;;  %3496 = vmatmul.mubr.bf16.gmra.mrb[80].mxu0 %v8410_v58  ;;  %v4220_v59 = vrot.slane %v4218_v52, 5  ;;  %v4226_v58 = vrot.slane %v4224_v54, 5  ;;  %v10282_v52 = vld [vmem:[%s11318_s4 + $0x300] sm:$0xff]   ;;  %v8517_v54 = vcombine.high %v11955_v38, %v11958_v39 }
 0x1b1   : > { %2858 = vmatprep.mubr.bf16.mxu1 %v8317_v15  ;;  %3503 = vmatprep.mubr.bf16.mxu0 %v8413_v16  ;;  %v4208_v15 = vrot.slane %v4207_v63, 4  ;;  %v4212_v16 = vrot.slane %v4210_v5, 5  ;;  %v4265_v63 = vrot.slane %v4263_v37, 4  ;;  %v4268_v5 = vrot.slane %v4266_v36, 5 }
 0x1b2   : > { %v4221_v23 = vor.u32 %v4220_v59, %v4217_v42  ;;  %v4231_v26 = vor.u32 %v4230_v55, %v4226_v58  ;;  %v12032_v42 = vsel %vm11513_vm5, %v4256_v10, %v4260_v49  ;;  %v4282_v59 = vshll.u32 %v8445_v62, 16  ;;  %v10290_v55 = vld [vmem:[%s11318_s4 + $0x308] sm:$0xff]   ;;  %v10306_v10 = vld [vmem:[%s11318_s4 + $0x318] sm:$0xff]  }
 0x1b3   : > { %v4213_v29 = vsel %vm11513_vm5, %v4208_v15, %v4212_v16  ;;  %v4290_v15 = vshll.u32 %v12019_v46, 16  ;;  %v4269_v21 = vor.u32 %v4268_v5, %v4265_v63  ;;  %v4279_v2 = vor.u32 %v4278_v28, %v4274_v12  ;;  %v8451_v5 = vld [vmem:[%s11334_s11 + $0xa0] sm:$0x11] }
 0x1b4   : > { %v4232_v27 = vrot.slane %v4231_v26, 4  ;;  %v8594_v48 = vcombine.low %v4203_v25, %v4213_v29  ;;  %v12045_v26 = vld [vmem:[%s11334_s11 + $0x90] sm:$0xff]  ;;  %v8521_v63 = vcombine.high %v11992_v1, %v11995_v32 }
 0x1b5   : > { %v4292_v43 = vrot.slane %v4290_v15, 5  ;;  %v4280_v13 = vrot.slane %v4279_v2, 4  ;;  %v10321_v15 = vld [vmem:[%s11318_s4 + $0x368] sm:$0xff]  }
 0x1b8   : > { %2859 = vmatmul.mubr.bf16.gmra.mrb[84].mxu1 %v8316_v22  ;;  %3504 = vmatmul.mubr.bf16.gmra.mrb[84].mxu0 %v8412_v33  ;;  %v8595_v22 = vcombine.high %v4203_v25, %v4213_v29  ;;  %v4222_v33 = vrot.slane %v4221_v23, 4  ;;  %v8516_v23 = vcombine.low %v11955_v38, %v11958_v39  ;;  %v8519_v29 = vcombine.high %v11975_v6, %v11978_v14  ;;  %v8448_v38 = vld [vmem:[%s11334_s11 + $0x88] sm:$0x11] }
 0x1b9   : > { %2866 = vmatprep.mubr.bf16.mxu1 %v8319_v11  ;;  %3511 = vmatprep.mubr.bf16.mxu0 %v8415_v35  ;;  %v12003_v35 = vsel %vm11513_vm5, %v4232_v27, %v4236_v60  ;;  %v12054_v60 = vld [vmem:[%s11334_s11 + $0x98] sm:$0xff]  ;;  %v4289_v39 = vrot.slane %v4287_v9, 4  ;;  %v4314_v27 = vshll.u32 %v12045_v26, 16  ;;  %v4306_v36 = vshll.u32 %v8448_v38, 16  ;;  %v10319_v9 = vld [vmem:[%s11318_s4 + $0x2e8] sm:$0xff]  }
 0x1ba   : > { %v11999_v11 = vsel %vm11513_vm5, %v4222_v33, %v4226_v58  ;;  %v10288_v58 = vld [vmem:[%s11318_s4 + $0x288] sm:$0xff]   ;;  %v4311_v33 = vshrl.u32 %v12045_v26, 16  ;;  %v4320_v34 = vshll.u32 %v12054_v60, 16  ;;  %v4324_v8 = vshrl.u32 %v12054_v60, 16 }
 0x1bb   : > { %v8597_v57 = vcombine.high %v11999_v11, %v12003_v35  ;;  %v8596_v25 = vcombine.low %v11999_v11, %v12003_v35  ;;  %v10305_v11 = vld [vmem:[%s11318_s4 + $0x358] sm:$0xff]   ;;  %v4293_v35 = vor.u32 %v4292_v43, %v4289_v39  ;;  %v8520_v38 = vcombine.low %v11992_v1, %v11995_v32 }
 0x1bc   : > { %v12078_v49 = vrot.slane %v4320_v34, 5  ;;  %v8454_v1 = vld [vmem:[%s11334_s11 + $0xb8] sm:$0x11] }
 0x1bd   : > { %v4294_v28 = vrot.slane %v4293_v35, 4 }
 0x1c0   : > { %2867 = vmatmul.mubr.bf16.gmra.mrb[88].mxu1 %v8318_v3  ;;  %3512 = vmatmul.mubr.bf16.gmra.mrb[88].mxu0 %v8414_v53  ;;  %v12022_v3 = vld [vmem:[%s11334_s11 + $0x80] sm:$0xff]  ;;  %v10287_v53 = vld [vmem:[%s11318_s4 + $0x2c8] sm:$0xff]  }
 0x1c1   : > { %2874 = vmatprep.mubr.bf16.mxu1 %v8321_v41  ;;  %3519 = vmatprep.mubr.bf16.mxu0 %v8417_v4  ;;  %v10289_v41 = vld [vmem:[%s11318_s4 + $0x348] sm:$0xff]   ;;  %v12028_v4 = vsel %vm11513_vm5, %v4246_v50, %v4250_v56  ;;  %v4296_v16 = vshll.u32 %v12022_v3, 16  ;;  %v4300_v17 = vshrl.u32 %v12022_v3, 16  ;;  %v4270_v56 = vrot.slane %v4269_v21, 4  ;;  %v10304_v50 = vld [vmem:[%s11318_s4 + $0x298] sm:$0xff]  }
 0x1c2   : > { %v8598_v62 = vcombine.low %v12028_v4, %v12032_v42  ;;  %v8523_v39 = vcombine.high %v12019_v46, %v12022_v3 }
 0x1c3   : > { %v12057_v7 = vrot.slane %v4296_v16, 5  ;;  %v4302_v30 = vrot.slane %v4300_v17, 4  ;;  %v12070_v24 = vsel %vm11513_vm5, %v4270_v56, %v4274_v12  ;;  %v10329_v56 = vld [vmem:[%s11318_s4 + $0x370] sm:$0xff]  }
 0x1c5   : > { %v4303_v37 = vor.u32 %v4302_v30, %v12057_v7  ;;  %v12107_v21 = vsel %vm11513_vm5, %v4294_v28, %v12057_v7  ;;  %v10327_v30 = vld [vmem:[%s11318_s4 + $0x2f0] sm:$0xff]  }
 0x1c8   : > { %2875 = vmatmul.mubr.bf16.gmra.mrb[92].mxu1 %v8320_v40  ;;  %3520 = vmatmul.mubr.bf16.gmra.mrb[92].mxu0 %v8416_v31  ;;  %v8599_v40 = vcombine.high %v12028_v4, %v12032_v42  ;;  %v4284_v31 = vrot.slane %v4282_v59, 5  ;;  %v12092_v59 = vld [vmem:[%s11334_s11 + $0xa8] sm:$0xff]  ;;  %v4330_v42 = vshll.u32 %v8451_v5, 16 }
 0x1c9   : > { %3997 = vmatprep.mubr.bf16.mxu1 %v8515_v19  ;;  %4895 = vmatprep.mubr.bf16.mxu0 %v8595_v22  ;;  %v10296_v19 = vld [vmem:[%s11318_s4 + $0x290] sm:$0xff]   ;;  %v4335_v16 = vshrl.u32 %v12092_v59, 16  ;;  %v4338_v17 = vshll.u32 %v12092_v59, 16 }
 0x1ca   : > { %v10298_v22 = vld [vmem:[%s11318_s4 + $0x310] sm:$0xff]   ;;  %v12074_v45 = vsel %vm11513_vm5, %v4280_v13, %v4284_v31  ;;  %v4332_v7 = vrot.slane %v4330_v42, 5 }
 0x1cb   : > { %v8601_v12 = vcombine.high %v12070_v24, %v12074_v45  ;;  %v4337_v32 = vrot.slane %v4335_v16, 4  ;;  %v8525_v16 = vcombine.high %v12045_v26, %v12054_v60 }
 0x1d0   : > { %3998 = vmatmul.mubr.bf16.vlgmr.msra.gmra.mrb[96].mxu1 %v8514_v47  ;;  %4896 = vmatmul.mubr.bf16.vlgmr.msra.gmra.mrb[96].mxu0 %v8594_v48  ;;  %v4313_v47 = vrot.slane %v4311_v33, 4  ;;  %v4316_v48 = vrot.slane %v4314_v27, 5  ;;  %v4340_v27 = vrot.slane %v4338_v17, 5 }
 0x1d1   : > { %9609 = vmatpush3.bf16.msra.mxu1 %v10280_v0  ;;  %9721 = vmatpush3.bf16.msra.mxu0 %v10282_v52  ;;  %v4326_v0 = vrot.slane %v4324_v8, 4  ;;  %v10311_v52 = vld [vmem:[%s11318_s4 + $0x2e0] sm:$0xff]  }
 0x1d2   : > { %4005 = vmatprep.mubr.bf16.mxu1 %v8517_v54  ;;  %4903 = vmatprep.mubr.bf16.mxu0 %v8597_v57  ;;  %v10313_v54 = vld [vmem:[%s11318_s4 + $0x360] sm:$0xff]   ;;  %v8518_v57 = vcombine.low %v11975_v6, %v11978_v14 }
 0x1d3   : > { %9610 = vmatprep.subr.bf16.mxu1 %v10287_v53  ;;  %9722 = vmatprep.subr.bf16.mxu0 %v10289_v41  ;;  %v4304_v53 = vrot.slane %v4303_v37, 4  ;;  %v4308_v41 = vrot.slane %v4306_v36, 5  ;;  %v10312_v6 = vld [vmem:[%s11318_s4 + $0x2a0] sm:$0xff]   ;;  %v4327_v4 = vor.u32 %v4326_v0, %v12078_v49 }
 0x1d4   : > { %v10314_v14 = vld [vmem:[%s11318_s4 + $0x320] sm:$0xff]  }
 0x1d5   : > { %9611 = vmatpush3.bf16.msra.mxu1 %v10288_v58  ;;  %9723 = vmatpush3.bf16.msra.mxu0 %v10290_v55  ;;  %v4317_v58 = vor.u32 %v4316_v48, %v4313_v47  ;;  %v12095_v55 = vld [vmem:[%s11334_s11 + $0xb0] sm:$0xff]  ;;  %v12111_v2 = vsel %vm11513_vm5, %v4304_v53, %v4308_v41  ;;  %v4328_v43 = vrot.slane %v4327_v4, 4  ;;  %v12135_v36 = vld [vmem:[%s11334_s11 + $0xc0] sm:$0xff]  ;;  %v10338_v4 = vld [vmem:[%s11318_s4 + $0x338] sm:$0xff]  }
 0x1d6   : > { %9612 = vmatprep.subr.bf16.mxu1 %v10295_v18  ;;  %9724 = vmatprep.subr.bf16.mxu0 %v10297_v20  ;;  %v4344_v18 = vshll.u32 %v12095_v55, 16  ;;  %v4348_v20 = vshrl.u32 %v12095_v55, 16  ;;  %v8603_v33 = vcombine.high %v12107_v21, %v12111_v2  ;;  %v4359_v5 = vshrl.u32 %v12135_v36, 16 }
 0x1d8   : > { %4006 = vmatmul.mubr.bf16.gmra.mrb[100].mxu1 %v8516_v23  ;;  %4904 = vmatmul.mubr.bf16.gmra.mrb[100].mxu0 %v8596_v25  ;;  %v4318_v23 = vrot.slane %v4317_v58, 4  ;;  %v10320_v25 = vld [vmem:[%s11318_s4 + $0x2a8] sm:$0xff]   ;;  %v12132_v35 = vrot.slane %v4344_v18, 5  ;;  %v4350_v37 = vrot.slane %v4348_v20, 4  ;;  %v8522_v58 = vcombine.low %v12019_v46, %v12022_v3  ;;  %v12176_v46 = vld [vmem:[%s11334_s11 + $0xe0] sm:$0xff] }
 0x1d9   : > { %4013 = vmatprep.mubr.bf16.mxu1 %v8519_v29  ;;  %4911 = vmatprep.mubr.bf16.mxu0 %v8599_v40  ;;  %v10322_v29 = vld [vmem:[%s11318_s4 + $0x328] sm:$0xff]   ;;  %v10343_v3 = vld [vmem:[%s11318_s4 + $0x3c0] sm:$0xff]  }
 0x1da   : > { %9613 = vmatpush3.bf16.msra.mxu1 %v10296_v19  ;;  %9725 = vmatpush3.bf16.msra.mxu0 %v10298_v22  ;;  %v8600_v22 = vcombine.low %v12070_v24, %v12074_v45  ;;  %v12138_v24 = vld [vmem:[%s11334_s11 + $0xc8] sm:$0xff]  ;;  %v12143_v48 = vsel %vm11513_vm5, %v4318_v23, %v12078_v49  ;;  %v10337_v49 = vld [vmem:[%s11318_s4 + $0x378] sm:$0xff]   ;;  %v4351_v53 = vor.u32 %v4350_v37, %v12132_v35  ;;  %v10345_v20 = vld [vmem:[%s11318_s4 + $0x440] sm:$0xff]  }
 0x1db   : > { %9614 = vmatprep.subr.bf16.mxu1 %v10303_v44  ;;  %9726 = vmatprep.subr.bf16.mxu0 %v10305_v11  ;;  %v4368_v28 = vshll.u32 %v12138_v24, 16  ;;  %v4372_v41 = vshrl.u32 %v12138_v24, 16 }
 0x1de   : > { %9615 = vmatpush3.bf16.msra.mxu1 %v10304_v50  ;;  %9727 = vmatpush3.bf16.msra.mxu0 %v10306_v10  ;;  %v10328_v50 = vld [vmem:[%s11318_s4 + $0x2b0] sm:$0xff]  }
 0x1df   : > { %9616 = vmatprep.subr.bf16.mxu1 %v10311_v52  ;;  %9728 = vmatprep.subr.bf16.mxu0 %v10313_v54  ;;  %v10330_v10 = vld [vmem:[%s11318_s4 + $0x330] sm:$0xff]   ;;  %v12153_v54 = vsel %vm11513_vm5, %v4328_v43, %v4332_v7  ;;  %v4352_v7 = vrot.slane %v4351_v53, 4 }
 0x1e0   : > { %4014 = vmatmul.mubr.bf16.gmra.mrb[104].mxu1 %v8518_v57  ;;  %4912 = vmatmul.mubr.bf16.gmra.mrb[104].mxu0 %v8598_v62  ;;  %v4354_v57 = vshll.u32 %v8454_v1, 16  ;;  %v10335_v62 = vld [vmem:[%s11318_s4 + $0x2f8] sm:$0xff]   ;;  %v8605_v17 = vcombine.high %v12143_v48, %v12153_v54 }
 0x1e1   : > { %4021 = vmatprep.mubr.bf16.mxu1 %v8521_v63  ;;  %4919 = vmatprep.mubr.bf16.mxu0 %v8601_v12  ;;  %v4341_v63 = vor.u32 %v4340_v27, %v4337_v32  ;;  %v4362_v12 = vshll.u32 %v12135_v36, 16  ;;  %v4392_v27 = vshll.u32 %v12176_v46, 16 }
 0x1e2   : > { %9617 = vmatpush3.bf16.msra.mxu1 %v10312_v6  ;;  %9729 = vmatpush3.bf16.msra.mxu0 %v10314_v14  ;;  %v12165_v6 = vld [vmem:[%s11334_s11 + $0xd8] sm:$0xff]  ;;  %v4356_v18 = vrot.slane %v4354_v57, 5  ;;  %v8460_v57 = vld [vmem:[%s11334_s11 + $0xe8] sm:$0x11] }
 0x1e3   : > { %v9064_v40 = vpop.f32.mrb[0].mxu0  ;;  %v9112_v31 = vpop.f32.mrb[0].mxu1  ;;  %9618 = vmatprep.subr.bf16.mxu1 %v10319_v9  ;;  %9730 = vmatprep.subr.bf16.mxu0 %v10321_v15  ;;  %v10336_v14 = vld [vmem:[%s11318_s4 + $0x2b8] sm:$0xff]   ;;  %v8602_v15 = vcombine.low %v12107_v21, %v12111_v2  ;;  %v12180_v21 = vrot.slane %v4368_v28, 5 }
 0x1e4   : > { %v9065_v13 = vpop.f32.mrb[1].mxu0  ;;  %v9113_v19 = vpop.f32.mrb[1].mxu1 }
 0x1e5   : > { %v12128_v34 = vadd.f32 %v9065_v13, %v9064_v40  ;;  %v12130_v8 = vadd.f32 %v9113_v19, %v9112_v31  ;;  %v9067_v44 = vpop.f32.mrb[2].mxu0  ;;  %v9115_v11 = vpop.f32.mrb[2].mxu1  ;;  %v4361_v40 = vrot.slane %v4359_v5, 4  ;;  %v4364_v31 = vrot.slane %v4362_v12, 5 }
 0x1e6   : > { %v9068_v45 = vpop.f32.mrb[3].mxu0  ;;  %v9116_v47 = vpop.f32.mrb[3].mxu1  ;;  %9619 = vmatpush3.bf16.msra.mxu1 %v10320_v25  ;;  %9731 = vmatpush3.bf16.msra.mxu0 %v10322_v29  ;;  %v4342_v29 = vrot.slane %v4341_v63, 4  ;;  %v4394_v5 = vrot.slane %v4392_v27, 5 }
 0x1e7   : > { %v12147_v0 = vadd.f32 %v9068_v45, %v9067_v44  ;;  %v12149_v52 = vadd.f32 %v9116_v47, %v9115_v11  ;;  %9620 = vmatprep.subr.bf16.mxu1 %v10327_v30  ;;  %9732 = vmatprep.subr.bf16.mxu0 %v10329_v56  ;;  %v8457_v30 = vld [vmem:[%s11334_s11 + $0xd0] sm:$0x11]  ;;  %v4374_v56 = vrot.slane %v4372_v41, 4  ;;  %v4396_v44 = vshrl.u32 %v12176_v46, 16 }
 0x1e8   : > { %4022 = vmatmul.mubr.bf16.gmra.mrb[108].mxu1 %v8520_v38  ;;  %4920 = vmatmul.mubr.bf16.gmra.mrb[108].mxu0 %v8600_v22  ;;  %v4383_v22 = vshrl.u32 %v12165_v6, 16  ;;  %v12198_v11 = vsel %vm11513_vm5, %v4342_v29, %v12132_v35  ;;  %v4378_v37 = vshll.u32 %v8457_v30, 16  ;;  %v12202_v45 = vsel %vm11513_vm5, %v4352_v7, %v4356_v18 }
 0x1e9   : > { %4029 = vmatprep.mubr.bf16.mxu1 %v8523_v39  ;;  %4927 = vmatprep.mubr.bf16.mxu0 %v8603_v33  ;;  %v4386_v33 = vshll.u32 %v12165_v6, 16  ;;  %v4365_v47 = vor.u32 %v4364_v31, %v4361_v40  ;;  %v4398_v12 = vrot.slane %v4396_v44, 4  ;;  %v8604_v41 = vcombine.low %v12143_v48, %v12153_v54  ;;  %v12222_v54 = vld [vmem:[%s11334_s11 + $0xf8] sm:$0xff] }
 0x1ea   : > { %9621 = vmatpush3.bf16.msra.mxu1 %v10328_v50  ;;  %9733 = vmatpush3.bf16.msra.mxu0 %v10330_v10  ;;  %v4375_v50 = vor.u32 %v4374_v56, %v12180_v21  ;;  %v8524_v10 = vcombine.low %v12045_v26, %v12054_v60  ;;  %v4385_v63 = vrot.slane %v4383_v22, 4  ;;  %v8607_v26 = vcombine.high %v12198_v11, %v12202_v45 }
 0x1eb   : > { %v9070_v42 = vpop.f32.mrb[4].mxu0  ;;  %v9118_v9 = vpop.f32.mrb[4].mxu1  ;;  %9622 = vmatprep.subr.bf16.mxu1 %v10335_v62  ;;  %9734 = vmatprep.subr.bf16.mxu0 %v10337_v49  ;;  %v4388_v35 = vrot.slane %v4386_v33, 5  ;;  %v4380_v60 = vrot.slane %v4378_v37, 5  ;;  %v4402_v48 = vshll.u32 %v8460_v57, 16  ;;  %v4399_v29 = vor.u32 %v4398_v12, %v4394_v5 }
 0x1ec   : > { %v9071_v23 = vpop.f32.mrb[5].mxu0  ;;  %v9119_v25 = vpop.f32.mrb[5].mxu1  ;;  %v4416_v7 = vshll.u32 %v12222_v54, 16  ;;  %v4420_v30 = vshrl.u32 %v12222_v54, 16  ;;  %v8526_v56 = vcombine.low %v12092_v59, %v12095_v55  ;;  %v8529_v33 = vcombine.high %v12135_v36, %v12138_v24 }
 0x1ed   : > { %v12182_v2 = vadd.f32 %v9071_v23, %v9070_v42  ;;  %v12184_v38 = vadd.f32 %v9119_v25, %v9118_v9  ;;  %v9073_v39 = vpop.f32.mrb[6].mxu0  ;;  %v9121_v43 = vpop.f32.mrb[6].mxu1  ;;  %v4389_v25 = vor.u32 %v4388_v35, %v4385_v63  ;;  %v4400_v27 = vrot.slane %v4399_v29, 4 }
 0x1ee   : > { %v9074_v13 = vpop.f32.mrb[7].mxu0  ;;  %v9122_v19 = vpop.f32.mrb[7].mxu1  ;;  %9623 = vmatpush3.bf16.msra.mxu1 %v10336_v14  ;;  %9735 = vmatpush3.bf16.msra.mxu0 %v10338_v4  ;;  %v4404_v44 = vrot.slane %v4402_v48, 5  ;;  %v4418_v35 = vrot.slane %v4416_v7, 5  ;;  %v4422_v12 = vrot.slane %v4420_v30, 4  ;;  %v8528_v48 = vcombine.low %v12135_v36, %v12138_v24 }
 0x1ef   : > { %v12189_v1 = vadd.f32 %v9074_v13, %v9073_v39  ;;  %v12191_v32 = vadd.f32 %v9122_v19, %v9121_v43  ;;  %9832 = vmatprep.subr.bf16.mxu1 %v10343_v3  ;;  %9944 = vmatprep.subr.bf16.mxu0 %v10345_v20  ;;  %v8463_v13 = vld [vmem:[%s11334_s11 + $0x100] sm:$0x11] }
 0x1f0   : > { %4030 = vmatmul.mubr.bf16.gmra.mrb[112].mxu1 %v8522_v58  ;;  %4928 = vmatmul.mubr.bf16.gmra.mrb[112].mxu0 %v8602_v15  ;;  %v8527_v58 = vcombine.high %v12092_v59, %v12095_v55  ;;  %v4366_v15 = vrot.slane %v4365_v47, 4 }
 0x1f1   : > { %4037 = vmatprep.mubr.bf16.mxu1 %v8525_v16  ;;  %4935 = vmatprep.mubr.bf16.mxu0 %v8605_v17  ;;  %v4376_v16 = vrot.slane %v4375_v50, 4  ;;  %v12219_v17 = vld [vmem:[%s11334_s11 + $0xf0] sm:$0xff]  ;;  %v8606_v50 = vcombine.low %v12198_v11, %v12202_v45  ;;  %v4426_v11 = vshll.u32 %v8463_v13, 16 }
 0x1f2   : > { %v4407_v40 = vshrl.u32 %v12219_v17, 16  ;;  %v4410_v31 = vshll.u32 %v12219_v17, 16  ;;  %v12233_v39 = vsel %vm11513_vm5, %v4366_v15, %v12180_v21  ;;  %v4390_v21 = vrot.slane %v4389_v25, 4 }
 0x1f3   : > { %v9076_v62 = vpop.f32.mrb[8].mxu0  ;;  %v9124_v49 = vpop.f32.mrb[8].mxu1  ;;  %v12237_v43 = vsel %vm11513_vm5, %v4376_v16, %v4380_v60  ;;  %v4428_v30 = vrot.slane %v4426_v11, 5 }
 0x1f4   : > { %v9077_v28 = vpop.f32.mrb[9].mxu0  ;;  %v9125_v53 = vpop.f32.mrb[9].mxu1  ;;  %v4409_v59 = vrot.slane %v4407_v40, 4  ;;  %v4412_v55 = vrot.slane %v4410_v31, 5  ;;  %v12266_v60 = vsel %vm11513_vm5, %v4390_v21, %v4394_v5  ;;  %v8608_v40 = vcombine.low %v12233_v39, %v12237_v43 }
 0x1f5   : > { %v12214_v14 = vadd.f32 %v9077_v28, %v9076_v62  ;;  %v12216_v4 = vadd.f32 %v9125_v53, %v9124_v49  ;;  %v9079_v42 = vpop.f32.mrb[10].mxu0  ;;  %v9127_v9 = vpop.f32.mrb[10].mxu1  ;;  %v12255_v28 = vld [vmem:[%s11334_s11 + $0x108] sm:$0xff]  ;;  %v12258_v53 = vld [vmem:[%s11334_s11 + $0x110] sm:$0xff]  ;;  %v8531_v31 = vcombine.high %v12165_v6, %v12176_v46 }
 0x1f6   : > { %v9080_v18 = vpop.f32.mrb[11].mxu0  ;;  %v9128_v3 = vpop.f32.mrb[11].mxu1  ;;  %v4431_v15 = vshrl.u32 %v12255_v28, 16  ;;  %v4434_v16 = vshll.u32 %v12255_v28, 16  ;;  %v4444_v5 = vshrl.u32 %v12258_v53, 16 }
 0x1f7   : > { %v12224_v20 = vadd.f32 %v9080_v18, %v9079_v42  ;;  %v12226_v23 = vadd.f32 %v9128_v3, %v9127_v9  ;;  %v12270_v42 = vsel %vm11513_vm5, %v4400_v27, %v4404_v44  ;;  %v4413_v9 = vor.u32 %v4412_v55, %v4409_v59 }
 0x1f8   : > { %4038 = vmatmul.mubr.bf16.gmra.mrb[116].mxu1 %v8524_v10  ;;  %4936 = vmatmul.mubr.bf16.gmra.mrb[116].mxu0 %v8604_v41  ;;  %v8609_v10 = vcombine.high %v12233_v39, %v12237_v43  ;;  %v4440_v18 = vshll.u32 %v12258_v53, 16  ;;  %v4423_v3 = vor.u32 %v4422_v12, %v4418_v35  ;;  %v8611_v7 = vcombine.high %v12266_v60, %v12270_v42 }
 0x1f9   : > { %14124 = vst [vmem:[#allocation7_spill] sm:$0xff] %v12226_v23  ;;  %4045 = vmatprep.mubr.bf16.mxu1 %v8527_v58  ;;  %4943 = vmatprep.mubr.bf16.mxu0 %v8607_v26  ;;  %v4436_v36 = vrot.slane %v4434_v16, 5  ;;  %v12427_v23 = vld [vmem:[%s11334_s11 + $0x180] sm:$0xff] }
 0x1fa   : > { %v4442_v24 = vrot.slane %v4440_v18, 5  ;;  %v4424_v44 = vrot.slane %v4423_v3, 4 }
 0x1fb   : > { %v9082_v19 = vpop.f32.mrb[12].mxu0  ;;  %v9130_v22 = vpop.f32.mrb[12].mxu1 }
 0x1fc   : > { %v9083_v37 = vpop.f32.mrb[13].mxu0  ;;  %v9131_v47 = vpop.f32.mrb[13].mxu1  ;;  %v12306_v11 = vsel %vm11513_vm5, %v4424_v44, %v4428_v30 }
 0x1fd   : > { %v12250_v57 = vadd.f32 %v9083_v37, %v9082_v19  ;;  %v12252_v62 = vadd.f32 %v9131_v47, %v9130_v22  ;;  %v9085_v49 = vpop.f32.mrb[14].mxu0  ;;  %v9133_v63 = vpop.f32.mrb[14].mxu1  ;;  %v4414_v22 = vrot.slane %v4413_v9, 4  ;;  %v4446_v37 = vrot.slane %v4444_v5, 4  ;;  %v12290_v47 = vld [vmem:[%s11334_s11 + $0x120] sm:$0xff] }
 0x1fe   : > { %v9086_v41 = vpop.f32.mrb[15].mxu0  ;;  %v9134_v58 = vpop.f32.mrb[15].mxu1 }
 0x1ff   : > { %14125 = vst [vmem:[#allocation8_spill] sm:$0xff] %v12252_v62  ;;  %v12260_v45 = vadd.f32 %v9086_v41, %v9085_v49  ;;  %v12262_v26 = vadd.f32 %v9134_v58, %v9133_v63  ;;  %v12297_v49 = vld [vmem:[%s11334_s11 + $0x128] sm:$0xff]  ;;  %v4455_v41 = vshrl.u32 %v12290_v47, 16  ;;  %v12302_v58 = vsel %vm11513_vm5, %v4414_v22, %v4418_v35 }
 0x200   : > { %4046 = vmatmul.mubr.bf16.gmra.mrb[120].mxu1 %v8526_v56  ;;  %4944 = vmatmul.mubr.bf16.gmra.mrb[120].mxu0 %v8606_v50  ;;  %v8466_v56 = vld [vmem:[%s11334_s11 + $0x118] sm:$0x11]  ;;  %v4447_v9 = vor.u32 %v4446_v37, %v4442_v24  ;;  %v4464_v16 = vshll.u32 %v12297_v49, 16  ;;  %v4468_v18 = vshrl.u32 %v12297_v49, 16  ;;  %v8610_v35 = vcombine.low %v12266_v60, %v12270_v42 }
 0x201   : > { %14126 = vst [vmem:[#allocation9_spill] sm:$0xff] %v12262_v26  ;;  %4053 = vmatprep.mubr.bf16.mxu1 %v8529_v33  ;;  %4951 = vmatprep.mubr.bf16.mxu0 %v8609_v10  ;;  %v4433_v33 = vrot.slane %v4431_v15, 4  ;;  %v4450_v12 = vshll.u32 %v8466_v56, 16  ;;  %v4458_v15 = vshll.u32 %v12290_v47, 16 }
 0x202   : > { %v4448_v42 = vrot.slane %v4447_v9, 4  ;;  %v4466_v44 = vrot.slane %v4464_v16, 5  ;;  %v4470_v37 = vrot.slane %v4468_v18, 4 }
 0x203   : > { %v9088_v25 = vpop.f32.mrb[16].mxu0  ;;  %v9136_v29 = vpop.f32.mrb[16].mxu1  ;;  %v4437_v63 = vor.u32 %v4436_v36, %v4433_v33  ;;  %v4452_v56 = vrot.slane %v4450_v12, 5  ;;  %v4460_v33 = vrot.slane %v4458_v15, 5  ;;  %v12328_v36 = vld [vmem:[%s11334_s11 + $0x140] sm:$0xff] }
 0x204   : > { %v9089_v13 = vpop.f32.mrb[17].mxu0  ;;  %v9137_v19 = vpop.f32.mrb[17].mxu1  ;;  %v4492_v9 = vshrl.u32 %v12328_v36, 16 }
 0x205   : > { %v12285_v21 = vadd.f32 %v9089_v13, %v9088_v25  ;;  %v12287_v27 = vadd.f32 %v9137_v19, %v9136_v29  ;;  %v9091_v39 = vpop.f32.mrb[18].mxu0  ;;  %v9139_v43 = vpop.f32.mrb[18].mxu1  ;;  %v8533_v25 = vcombine.high %v12219_v17, %v12222_v54  ;;  %v12318_v29 = vld [vmem:[%s11334_s11 + $0x138] sm:$0xff]  ;;  %v4438_v30 = vrot.slane %v4437_v63, 4  ;;  %v8469_v13 = vld [vmem:[%s11334_s11 + $0x130] sm:$0x11] }
 0x206   : > { %v9092_v50 = vpop.f32.mrb[19].mxu0  ;;  %v9140_v10 = vpop.f32.mrb[19].mxu1  ;;  %v4457_v19 = vrot.slane %v4455_v41, 4  ;;  %v4488_v41 = vshll.u32 %v12328_v36, 16  ;;  %v12344_v16 = vsel %vm11513_vm5, %v4448_v42, %v4452_v56  ;;  %v4474_v18 = vshll.u32 %v8469_v13, 16 }
 0x207   : > { %14127 = vst [vmem:[#allocation10_spill] sm:$0xff] %v12287_v27  ;;  %v12292_v59 = vadd.f32 %v9092_v50, %v9091_v39  ;;  %v12294_v55 = vadd.f32 %v9140_v10, %v9139_v43  ;;  %v4479_v50 = vshrl.u32 %v12318_v29, 16  ;;  %v4482_v10 = vshll.u32 %v12318_v29, 16 }
 0x208   : > { %4054 = vmatmul.mubr.bf16.gmra.mrb[124].mxu1 %v8528_v48  ;;  %4952 = vmatmul.mubr.bf16.gmra.mrb[124].mxu0 %v8608_v40  ;;  %v8530_v48 = vcombine.low %v12165_v6, %v12176_v46  ;;  %v12340_v15 = vsel %vm11513_vm5, %v4438_v30, %v4442_v24  ;;  %v8612_v24 = vcombine.low %v12302_v58, %v12306_v11  ;;  %v4490_v30 = vrot.slane %v4488_v41, 5 }
 0x209   : > { %14128 = vst [vmem:[#allocation11_spill] sm:$0xff] %v12294_v55  ;;  %4061 = vmatprep.mubr.bf16.mxu1 %v8531_v31  ;;  %4959 = vmatprep.mubr.bf16.mxu0 %v8611_v7  ;;  %v8613_v7 = vcombine.high %v12302_v58, %v12306_v11  ;;  %v4494_v56 = vrot.slane %v4492_v9, 4 }
 0x20b   : > { %v9094_v3 = vpop.f32.mrb[20].mxu0  ;;  %v9142_v5 = vpop.f32.mrb[20].mxu1 }
 0x20c   : > { %v9095_v40 = vpop.f32.mrb[21].mxu0  ;;  %v9143_v31 = vpop.f32.mrb[21].mxu1 }
 0x20d   : > { %v12323_v22 = vadd.f32 %v9095_v40, %v9094_v3  ;;  %v12325_v6 = vadd.f32 %v9143_v31, %v9142_v5  ;;  %v9097_v46 = vpop.f32.mrb[22].mxu0  ;;  %v9145_v60 = vpop.f32.mrb[22].mxu1  ;;  %v4461_v3 = vor.u32 %v4460_v33, %v4457_v19  ;;  %v4471_v5 = vor.u32 %v4470_v37, %v4466_v44 }
 0x20e   : > { %v9098_v39 = vpop.f32.mrb[23].mxu0  ;;  %v9146_v43 = vpop.f32.mrb[23].mxu1 }
 0x20f   : > { %14129 = vst [vmem:[#allocation12_spill] sm:$0xff] %v12325_v6  ;;  %v12332_v63 = vadd.f32 %v9098_v39, %v9097_v46  ;;  %v12334_v12 = vadd.f32 %v9146_v43, %v9145_v60  ;;  %v8532_v46 = vcombine.low %v12219_v17, %v12222_v54  ;;  %v12351_v60 = vld [vmem:[%s11334_s11 + $0x150] sm:$0xff]  ;;  %v8535_v39 = vcombine.high %v12255_v28, %v12258_v53  ;;  %v8472_v17 = vld [vmem:[%s11334_s11 + $0x148] sm:$0x11]  ;;  %v12363_v54 = vld [vmem:[%s11334_s11 + $0x158] sm:$0xff] }
 0x210   : > { %4062 = vmatmul.mubr.bf16.gmra.mrb[128].mxu1 %v8530_v48  ;;  %4960 = vmatmul.mubr.bf16.gmra.mrb[128].mxu0 %v8610_v35  ;;  %v4481_v48 = vrot.slane %v4479_v50, 4  ;;  %v4484_v35 = vrot.slane %v4482_v10, 5  ;;  %v8615_v43 = vcombine.high %v12340_v15, %v12344_v16  ;;  %v4462_v37 = vrot.slane %v4461_v3, 4 }
 0x211   : > { %14130 = vst [vmem:[#allocation13_spill] sm:$0xff] %v12334_v12  ;;  %4069 = vmatprep.mubr.bf16.mxu1 %v8533_v25  ;;  %4967 = vmatprep.mubr.bf16.mxu0 %v8613_v7  ;;  %v4472_v50 = vrot.slane %v4471_v5, 4  ;;  %v4476_v10 = vrot.slane %v4474_v18, 5  ;;  %v4512_v12 = vshll.u32 %v12363_v54, 16  ;;  %v4516_v3 = vshrl.u32 %v12363_v54, 16 }
 0x212   : > { %v4485_v41 = vor.u32 %v4484_v35, %v4481_v48  ;;  %v8534_v18 = vcombine.low %v12255_v28, %v12258_v53  ;;  %v12377_v5 = vsel %vm11513_vm5, %v4462_v37, %v4466_v44  ;;  %v8475_v35 = vld [vmem:[%s11334_s11 + $0x160] sm:$0x11] }
 0x213   : > { %v9100_v40 = vpop.f32.mrb[24].mxu0  ;;  %v9148_v31 = vpop.f32.mrb[24].mxu1  ;;  %v12381_v48 = vsel %vm11513_vm5, %v4472_v50, %v4476_v10 }
 0x214   : > { %v9101_v25 = vpop.f32.mrb[25].mxu0  ;;  %v9149_v7 = vpop.f32.mrb[25].mxu1 }
 0x215   : > { %v12353_v13 = vadd.f32 %v9101_v25, %v9100_v40  ;;  %v12355_v19 = vadd.f32 %v9149_v7, %v9148_v31  ;;  %v9103_v42 = vpop.f32.mrb[26].mxu0  ;;  %v9151_v33 = vpop.f32.mrb[26].mxu1  ;;  %v4503_v31 = vshrl.u32 %v12351_v60, 16  ;;  %v4506_v25 = vshll.u32 %v12351_v60, 16 }
 0x216   : > { %v9104_v58 = vpop.f32.mrb[27].mxu0  ;;  %v9152_v11 = vpop.f32.mrb[27].mxu1  ;;  %v4495_v7 = vor.u32 %v4494_v56, %v4490_v30  ;;  %v8614_v56 = vcombine.low %v12340_v15, %v12344_v16  ;;  %v8537_v15 = vcombine.high %v12290_v47, %v12297_v49  ;;  %v8617_v16 = vcombine.high %v12377_v5, %v12381_v48 }
 0x217   : > { %14131 = vst [vmem:[#allocation14_spill] sm:$0xff] %v12355_v19  ;;  %v12365_v9 = vadd.f32 %v9104_v58, %v9103_v42  ;;  %v12367_v40 = vadd.f32 %v9152_v11, %v9151_v33  ;;  %v4498_v19 = vshll.u32 %v8472_v17, 16  ;;  %v4486_v42 = vrot.slane %v4485_v41, 4  ;;  %v12395_v41 = vld [vmem:[%s11334_s11 + $0x168] sm:$0xff] }
 0x218   : > { %4070 = vmatmul.mubr.bf16.gmra.mrb[132].mxu1 %v8532_v46  ;;  %4968 = vmatmul.mubr.bf16.gmra.mrb[132].mxu0 %v8612_v24  ;;  %v4505_v33 = vrot.slane %v4503_v31, 4  ;;  %v4496_v53 = vrot.slane %v4495_v7, 4  ;;  %v4514_v17 = vrot.slane %v4512_v12, 5  ;;  %v4518_v58 = vrot.slane %v4516_v3, 4 }
 0x219   : > { %14132 = vst [vmem:[#allocation15_spill] sm:$0xff] %v12367_v40  ;;  %4077 = vmatprep.mubr.bf16.mxu1 %v8535_v39  ;;  %4975 = vmatprep.mubr.bf16.mxu0 %v8615_v43  ;;  %v4508_v39 = vrot.slane %v4506_v25, 5  ;;  %v4500_v44 = vrot.slane %v4498_v19, 5  ;;  %v4522_v7 = vshll.u32 %v8475_v35, 16  ;;  %v12398_v19 = vld [vmem:[%s11334_s11 + $0x170] sm:$0xff]  ;;  %v4527_v35 = vshrl.u32 %v12395_v41, 16 }
 0x21b   : > { %v9106_v46 = vpop.f32.mrb[28].mxu0  ;;  %v9154_v24 = vpop.f32.mrb[28].mxu1 }
 0x21c   : > { %v9107_v43 = vpop.f32.mrb[29].mxu0  ;;  %v9155_v28 = vpop.f32.mrb[29].mxu1 }
 0x21d   : > { %v12386_v11 = vadd.f32 %v9107_v43, %v9106_v46  ;;  %v12388_v37 = vadd.f32 %v9155_v28, %v9154_v24  ;;  %v9109_v50 = vpop.f32.mrb[30].mxu0  ;;  %v9157_v10 = vpop.f32.mrb[30].mxu1  ;;  %v12406_v46 = vsel %vm11513_vm5, %v4486_v42, %v4490_v30  ;;  %v4509_v24 = vor.u32 %v4508_v39, %v4505_v33 }
 0x21e   : > { %v9110_v31 = vpop.f32.mrb[31].mxu0  ;;  %v9158_v25 = vpop.f32.mrb[31].mxu1  ;;  %v12410_v43 = vsel %vm11513_vm5, %v4496_v53, %v4500_v44  ;;  %v4519_v28 = vor.u32 %v4518_v58, %v4514_v17  ;;  %v8536_v30 = vcombine.low %v12290_v47, %v12297_v49  ;;  %v8616_v42 = vcombine.low %v12377_v5, %v12381_v48  ;;  %v8478_v5 = vld [vmem:[%s11334_s11 + $0x178] sm:$0x11] }
 0x21f   : > { %14133 = vst [vmem:[#allocation16_spill] sm:$0xff] %v12388_v37  ;;  %v12400_v12 = vadd.f32 %v9110_v31, %v9109_v50  ;;  %v12402_v3 = vadd.f32 %v9158_v25, %v9157_v10  ;;  %v4530_v37 = vshll.u32 %v12395_v41, 16  ;;  %v4536_v50 = vshll.u32 %v12398_v19, 16 }
 0x220   : > { %4078 = vmatmul.mubr.bf16.gmra.mrb[136].mxu1 %v8534_v18  ;;  %4976 = vmatmul.mubr.bf16.gmra.mrb[136].mxu0 %v8614_v56  ;;  %v4540_v10 = vshrl.u32 %v12398_v19, 16  ;;  %v8539_v33 = vcombine.high %v12318_v29, %v12328_v36  ;;  %v8619_v39 = vcombine.high %v12406_v46, %v12410_v43  ;;  %v4524_v53 = vrot.slane %v4522_v7, 5 }
 0x221   : > { %14134 = vst [vmem:[#allocation17_spill] sm:$0xff] %v12402_v3  ;;  %4085 = vmatprep.mubr.bf16.mxu1 %v8537_v15  ;;  %4983 = vmatprep.mubr.bf16.mxu0 %v8617_v16  ;;  %v4510_v15 = vrot.slane %v4509_v24, 4  ;;  %v4520_v16 = vrot.slane %v4519_v28, 4  ;;  %v4529_v47 = vrot.slane %v4527_v35, 4  ;;  %v4532_v49 = vrot.slane %v4530_v37, 5  ;;  %v12430_v24 = vld [vmem:[%s11334_s11 + $0x188] sm:$0xff] }
 0x222   : > { %v4538_v48 = vrot.slane %v4536_v50, 5  ;;  %v4542_v6 = vrot.slane %v4540_v10, 4  ;;  %v4546_v50 = vshll.u32 %v8478_v5, 16 }
 0x223   : > { %v9176_v18 = vpop.f32.mrb[32].mxu1  ;;  %v9288_v56 = vpop.f32.mrb[32].mxu0  ;;  %v12434_v37 = vsel %vm11513_vm5, %v4510_v15, %v4514_v17  ;;  %v12438_v28 = vsel %vm11513_vm5, %v4520_v16, %v4524_v53  ;;  %v4533_v35 = vor.u32 %v4532_v49, %v4529_v47  ;;  %v4560_v17 = vshll.u32 %v12430_v24, 16  ;;  %v8481_v49 = vld [vmem:[%s11334_s11 + $0x190] sm:$0x11] }
 0x224   : > { %v9177_v44 = vpop.f32.mrb[33].mxu1  ;;  %v9289_v58 = vpop.f32.mrb[33].mxu0  ;;  %v4548_v53 = vrot.slane %v4546_v50, 5 }
 0x225   : > { %v9178_v31 = vadd.f32 %v9177_v44, %v9176_v18  ;;  %v9290_v25 = vadd.f32 %v9289_v58, %v9288_v56  ;;  %v9179_v3 = vpop.f32.mrb[34].mxu1  ;;  %v9291_v40 = vpop.f32.mrb[34].mxu0  ;;  %v4534_v16 = vrot.slane %v4533_v35, 4  ;;  %v4562_v5 = vrot.slane %v4560_v17, 5 }
 0x226   : > { %v9180_v55 = vpop.f32.mrb[35].mxu1  ;;  %v9292_v27 = vpop.f32.mrb[35].mxu0  ;;  %v4570_v35 = vshll.u32 %v8481_v49, 16 }
 0x227   : > { %v2883_v26 = vadd.f32 %v9178_v31, %v12128_v34  ;;  %v9181_v7 = vadd.f32 %v9180_v55, %v9179_v3  ;;  %v9293_v62 = vadd.f32 %v9292_v27, %v9291_v40  ;;  %v4543_v27 = vor.u32 %v4542_v6, %v4538_v48 }
 0x228   : > { %4086 = vmatmul.mubr.bf16.gmra.mrb[140].mxu1 %v8536_v30  ;;  %4984 = vmatmul.mubr.bf16.gmra.mrb[140].mxu0 %v8616_v42  ;;  %v4551_v55 = vshrl.u32 %v12427_v23, 16  ;;  %v4554_v40 = vshll.u32 %v12427_v23, 16  ;;  %v4564_v3 = vshrl.u32 %v12430_v24, 16  ;;  %v8618_v6 = vcombine.low %v12406_v46, %v12410_v43 }
 0x229   : > { %v12440_v10 = vadd.f32 %v9290_v25, %v2883_v26  ;;  %v2884_v34 = vadd.f32 %v9181_v7, %v12147_v0  ;;  %4093 = vmatprep.mubr.bf16.mxu1 %v8539_v33  ;;  %4991 = vmatprep.mubr.bf16.mxu0 %v8619_v39  ;;  %v8538_v26 = vcombine.low %v12318_v29, %v12328_v36  ;;  %v4544_v47 = vrot.slane %v4543_v27, 4 }
 0x22a   : > { %v8541_v33 = vcombine.high %v12351_v60, %v12363_v54  ;;  %v8621_v39 = vcombine.high %v12434_v37, %v12438_v28  ;;  %v4553_v31 = vrot.slane %v4551_v55, 4  ;;  %v4556_v25 = vrot.slane %v4554_v40, 5 }
 0x22b   : > { %v12447_v30 = vadd.f32 %v9293_v62, %v2884_v34  ;;  %v9182_v18 = vpop.f32.mrb[36].mxu1  ;;  %v9294_v56 = vpop.f32.mrb[36].mxu0  ;;  %v4566_v46 = vrot.slane %v4564_v3, 4  ;;  %v4539_v27 = vsel %vm11513_vm5, %v4534_v16, %v4538_v48  ;;  %v4549_v55 = vsel %vm11513_vm5, %v4544_v47, %v4548_v53 }
 0x22c   : > { %v9183_v0 = vpop.f32.mrb[37].mxu1  ;;  %v9295_v42 = vpop.f32.mrb[37].mxu0  ;;  %v4557_v40 = vor.u32 %v4556_v25, %v4553_v31  ;;  %v8543_v53 = vcombine.high %v12395_v41, %v12398_v19  ;;  %v4572_v47 = vrot.slane %v4570_v35, 5  ;;  %v10421_v31 = vld [vmem:[%s11334_s11 + $0x20] sm:$0xff] }
 0x22d   : > { %v9184_v62 = vadd.f32 %v9183_v0, %v9182_v18  ;;  %v9296_v44 = vadd.f32 %v9295_v42, %v9294_v56  ;;  %v9185_v58 = vpop.f32.mrb[38].mxu1  ;;  %v9297_v15 = vpop.f32.mrb[38].mxu0  ;;  %v4567_v17 = vor.u32 %v4566_v46, %v4562_v5  ;;  %v8620_v42 = vcombine.low %v12434_v37, %v12438_v28 }
 0x22e   : > { %v9186_v29 = vpop.f32.mrb[39].mxu1  ;;  %v9298_v36 = vpop.f32.mrb[39].mxu0  ;;  %v5106_v25 = vrot.slane %v10421_v31, 5 }
 0x22f   : > { %v2885_v43 = vadd.f32 %v9184_v62, %v12182_v2  ;;  %v9187_v7 = vadd.f32 %v9186_v29, %v9185_v58  ;;  %v9299_v34 = vadd.f32 %v9298_v36, %v9297_v15  ;;  %v8623_v62 = vcombine.high %v4539_v27, %v4549_v55 }
 0x230   : > { %4094 = vmatmul.mubr.bf16.gmra.mrb[144].mxu1 %v8538_v26  ;;  %4992 = vmatmul.mubr.bf16.gmra.mrb[144].mxu0 %v8618_v6  ;;  %v4558_v15 = vrot.slane %v4557_v40, 4  ;;  %v4568_v16 = vrot.slane %v4567_v17, 4 }
 0x231   : > { %v12459_v50 = vadd.f32 %v9296_v44, %v2885_v43  ;;  %v2886_v18 = vadd.f32 %v9187_v7, %v12189_v1  ;;  %4101 = vmatprep.mubr.bf16.mxu1 %v8541_v33  ;;  %4999 = vmatprep.mubr.bf16.mxu0 %v8621_v39  ;;  %v8540_v1 = vcombine.low %v12351_v60, %v12363_v54 }
 0x232   : > { %v12480_v29 = vsel %vm11513_vm5, %v4558_v15, %v4562_v5  ;;  %v4573_v36 = vsel %vm11513_vm5, %v4568_v16, %v4572_v47 }
 0x233   : > { %v12466_v2 = vadd.f32 %v9299_v34, %v2886_v18  ;;  %v9188_v3 = vpop.f32.mrb[40].mxu1  ;;  %v9300_v56 = vpop.f32.mrb[40].mxu0  ;;  %v8622_v18 = vcombine.low %v4539_v27, %v4549_v55 }
 0x234   : > { %v9189_v26 = vpop.f32.mrb[41].mxu1  ;;  %v9301_v0 = vpop.f32.mrb[41].mxu0 }
 0x235   : > { %v9190_v6 = vadd.f32 %v9189_v26, %v9188_v3  ;;  %v9302_v33 = vadd.f32 %v9301_v0, %v9300_v56  ;;  %v9191_v48 = vpop.f32.mrb[42].mxu1  ;;  %v9303_v39 = vpop.f32.mrb[42].mxu0  ;;  %v8545_v3 = vcombine.high %v12427_v23, %v12430_v24  ;;  %v8625_v56 = vcombine.high %v12480_v29, %v4573_v36 }
 0x236   : > { %v9192_v44 = vpop.f32.mrb[43].mxu1  ;;  %v9304_v58 = vpop.f32.mrb[43].mxu0 }
 0x237   : > { %v2887_v49 = vadd.f32 %v9190_v6, %v12214_v14  ;;  %v9193_v60 = vadd.f32 %v9192_v44, %v9191_v48  ;;  %v9305_v54 = vadd.f32 %v9304_v58, %v9303_v39  ;;  %v5108_v6 = vrot.slane %v5106_v25, 4  ;;  %v12510_v44 = vld [vmem:[%s11334_s11 + $0x38] sm:$0xff] }
 0x238   : > { %4102 = vmatmul.mubr.bf16.gmra.mrb[148].mxu1 %v8540_v1  ;;  %5000 = vmatmul.mubr.bf16.gmra.mrb[148].mxu0 %v8620_v42  ;;  %v10422_v1 = vld [vmem:[%s11334_s11 + $0x18] sm:$0xff] }
 0x239   : > { %v12475_v37 = vadd.f32 %v9302_v33, %v2887_v49  ;;  %v2888_v28 = vadd.f32 %v9193_v60, %v12224_v20  ;;  %4109 = vmatprep.mubr.bf16.mxu1 %v8543_v53  ;;  %5007 = vmatprep.mubr.bf16.mxu0 %v8623_v62  ;;  %v8542_v20 = vcombine.low %v12395_v41, %v12398_v19  ;;  %v8642_v42 = vrot.slane %v10422_v1, 9  ;;  %v10423_v33 = vld [vmem:[%s11334_s11 + $0x28] sm:$0x11] }
 0x23a   : > { %v5109_v48 = vrot.slane %v10423_v33, 5 }
 0x23b   : > { %v12485_v14 = vadd.f32 %v9305_v54, %v2888_v28  ;;  %v9194_v46 = vpop.f32.mrb[44].mxu1  ;;  %v9306_v43 = vpop.f32.mrb[44].mxu0  ;;  %v12500_v53 = vsel %vm11350_vm2, %v8642_v42, %v5106_v25  ;;  %v8544_v54 = vcombine.low %v12427_v23, %v12430_v24  ;;  %v8624_v28 = vcombine.low %v12480_v29, %v4573_v36 }
 0x23c   : > { %v9195_v7 = vpop.f32.mrb[45].mxu1  ;;  %v9307_v34 = vpop.f32.mrb[45].mxu0  ;;  %v12504_v62 = vsel %vm11350_vm2, %v5108_v6, %v5109_v48  ;;  %v12543_v48 = vld [vmem:[%s11334_s11 + $0x50] sm:$0xff] }
 0x23d   : > { %v9196_v35 = vadd.f32 %v9195_v7, %v9194_v46  ;;  %v9308_v5 = vadd.f32 %v9307_v34, %v9306_v43  ;;  %v9197_v40 = vpop.f32.mrb[46].mxu1  ;;  %v9309_v17 = vpop.f32.mrb[46].mxu0  ;;  %v8691_v7 = vcombine.high %v12500_v53, %v12504_v62 }
 0x23e   : > { %v9198_v26 = vpop.f32.mrb[47].mxu1  ;;  %v9310_v0 = vpop.f32.mrb[47].mxu0 }
 0x23f   : > { %v2889_v41 = vadd.f32 %v9196_v35, %v12250_v57  ;;  %v9199_v19 = vadd.f32 %v9198_v26, %v9197_v40  ;;  %v9311_v27 = vadd.f32 %v9310_v0, %v9309_v17  ;;  %v12507_v57 = vld [vmem:[%s11334_s11 + $0x30] sm:$0xff]  ;;  %v10426_v40 = vld [vmem:[%s11334_s11 + $0x40] sm:$0x11] }
 0x240   : > { %4110 = vmatmul.mubr.bf16.gmra.mrb[152].mxu1 %v8542_v20  ;;  %5008 = vmatmul.mubr.bf16.gmra.mrb[152].mxu0 %v8622_v18  ;;  %v8819_v34 = vcombine.high %v12507_v57, %v12510_v44  ;;  %v10425_v35 = vld [vmem:[%s11334_s11 + $0x30] sm:$0xff]  ;;  %v5116_v17 = vrot.slane %v10426_v40, 5 }
 0x241   : > { %v12495_v55 = vadd.f32 %v9308_v5, %v2889_v41  ;;  %v2890_v39 = vadd.f32 %v9199_v19, %v12260_v45  ;;  %4117 = vmatprep.mubr.bf16.mxu1 %v8545_v3  ;;  %5015 = vmatprep.mubr.bf16.mxu0 %v8625_v56  ;;  %v10424_v45 = vld [vmem:[%s11334_s11 + $0x38] sm:$0xff]  ;;  %v8643_v5 = vrot.slane %v10425_v35, 9  ;;  %v10427_v26 = vld [vmem:[%s11334_s11 + $0x50] sm:$0xff]  ;;  %v10351_v35 = vld [vmem:[%s11318_s4 + $0x3c8] sm:$0xff]  }
 0x242   : > { %v5113_v47 = vrot.slane %v10424_v45, 5  ;;  %v5120_v0 = vrot.slane %v10427_v26, 5  ;;  %v10430_v26 = vld [vmem:[%s11334_s11 + $0x68] sm:$0xff] }
 0x243   : > { %v12512_v58 = vadd.f32 %v9311_v27, %v2890_v39  ;;  %v9200_v15 = vpop.f32.mrb[48].mxu1  ;;  %v9312_v16 = vpop.f32.mrb[48].mxu0  ;;  %v8690_v27 = vcombine.low %v12500_v53, %v12504_v62  ;;  %v8818_v39 = vcombine.low %v12507_v57, %v12510_v44 }
 0x244   : > { %v9201_v49 = vpop.f32.mrb[49].mxu1  ;;  %v9313_v60 = vpop.f32.mrb[49].mxu0  ;;  %v5115_v36 = vrot.slane %v5113_v47, 4  ;;  %v12533_v6 = vsel %vm11350_vm2, %v8643_v5, %v5113_v47  ;;  %v10353_v5 = vld [vmem:[%s11318_s4 + $0x448] sm:$0xff]  }
 0x245   : > { %v9202_v31 = vadd.f32 %v9201_v49, %v9200_v15  ;;  %v9314_v25 = vadd.f32 %v9313_v60, %v9312_v16  ;;  %v9203_v46 = vpop.f32.mrb[50].mxu1  ;;  %v9315_v43 = vpop.f32.mrb[50].mxu0  ;;  %v10428_v15 = vld [vmem:[%s11334_s11 + $0x48] sm:$0xff] }
 0x246   : > { %v9204_v20 = vpop.f32.mrb[51].mxu1  ;;  %v9316_v18 = vpop.f32.mrb[51].mxu0  ;;  %v12537_v33 = vsel %vm11350_vm2, %v5115_v36, %v5116_v17  ;;  %v8644_v16 = vrot.slane %v10428_v15, 9  ;;  %v12565_v17 = vld [vmem:[%s11334_s11 + $0x60] sm:$0xff]  ;;  %v10352_v36 = vld [vmem:[%s11318_s4 + $0x388] sm:$0xff]  }
 0x247   : > { %v2891_v23 = vadd.f32 %v9202_v31, %v12285_v21  ;;  %v9205_v24 = vadd.f32 %v9204_v20, %v9203_v46  ;;  %v9317_v29 = vadd.f32 %v9316_v18, %v9315_v43  ;;  %v5122_v31 = vrot.slane %v5120_v0, 4 }
 0x248   : > { %4118 = vmatmul.mubr.bf16.gmra.mrb[156].mxu1 %v8544_v54  ;;  %5016 = vmatmul.mubr.bf16.gmra.mrb[156].mxu0 %v8624_v28  ;;  %v10344_v54 = vld [vmem:[%s11318_s4 + $0x380] sm:$0xff]   ;;  %v8693_v53 = vcombine.high %v12533_v6, %v12537_v33  ;;  %v12562_v40 = vsel %vm11350_vm2, %v8644_v16, %v5120_v0  ;;  %v10359_v0 = vld [vmem:[%s11318_s4 + $0x3d0] sm:$0xff]  }
 0x249   : > { %v12525_v3 = vadd.f32 %v9314_v25, %v2891_v23  ;;  %v2892_v56 = vadd.f32 %v9205_v24, %v12292_v59  ;;  %5537 = vmatprep.mubr.bf16.mxu1 %v8691_v7  ;;  %6135 = vmatprep.mubr.bf16.mxu0 %v8819_v34  ;;  %v12540_v59 = vld [vmem:[%s11334_s11 + $0x48] sm:$0xff]  ;;  %v10346_v28 = vld [vmem:[%s11318_s4 + $0x400] sm:$0xff]   ;;  %v10429_v25 = vld [vmem:[%s11334_s11 + $0x58] sm:$0x11] }
 0x24a   : > { %v5123_v46 = vrot.slane %v10429_v25, 5  ;;  %v8821_v62 = vcombine.high %v12540_v59, %v12543_v48  ;;  %v8820_v16 = vcombine.low %v12540_v59, %v12543_v48  ;;  %v10432_v25 = vld [vmem:[%s11334_s11 + $0x70] sm:$0x11] }
 0x24b   : > { %v12529_v1 = vadd.f32 %v9317_v29, %v2892_v56  ;;  %v9206_v42 = vpop.f32.mrb[52].mxu1  ;;  %v9318_v21 = vpop.f32.mrb[52].mxu0  ;;  %v12575_v29 = vld [vmem:[%s11334_s11 + $0x68] sm:$0xff] }
 0x24c   : > { %v9207_v41 = vpop.f32.mrb[53].mxu1  ;;  %v9319_v19 = vpop.f32.mrb[53].mxu0  ;;  %v12572_v24 = vsel %vm11350_vm2, %v5122_v31, %v5123_v46  ;;  %v10354_v56 = vld [vmem:[%s11318_s4 + $0x408] sm:$0xff]   ;;  %v5130_v46 = vrot.slane %v10432_v25, 5 }
 0x24d   : > { %v9208_v45 = vadd.f32 %v9207_v41, %v9206_v42  ;;  %v9320_v47 = vadd.f32 %v9319_v19, %v9318_v21  ;;  %v9209_v49 = vpop.f32.mrb[54].mxu1  ;;  %v9321_v60 = vpop.f32.mrb[54].mxu0  ;;  %v5127_v42 = vrot.slane %v10430_v26, 5  ;;  %v10361_v21 = vld [vmem:[%s11318_s4 + $0x450] sm:$0xff]   ;;  %v12611_v26 = vld [vmem:[%s11334_s11 + $0x78] sm:$0xff] }
 0x24e   : > { %v9210_v43 = vpop.f32.mrb[55].mxu1  ;;  %v9322_v7 = vpop.f32.mrb[55].mxu0 }
 0x24f   : > { %v2893_v34 = vadd.f32 %v9208_v45, %v12323_v22  ;;  %v9211_v20 = vadd.f32 %v9210_v43, %v9209_v49  ;;  %v9323_v18 = vadd.f32 %v9322_v7, %v9321_v60  ;;  %v8695_v45 = vcombine.high %v12562_v40, %v12572_v24  ;;  %v10431_v49 = vld [vmem:[%s11334_s11 + $0x60] sm:$0xff] }
 0x250   : > { %5538 = vmatmul.mubr.bf16.vlgmr.msra.gmra.mrb[160].mxu1 %v8690_v27  ;;  %6136 = vmatmul.mubr.bf16.vlgmr.msra.gmra.mrb[160].mxu0 %v8818_v39  ;;  %v8692_v27 = vcombine.low %v12533_v6, %v12537_v33  ;;  %v8645_v60 = vrot.slane %v10431_v49, 9  ;;  %v5129_v31 = vrot.slane %v5127_v42, 4 }
 0x251   : > { %v12567_v23 = vadd.f32 %v9320_v47, %v2893_v34  ;;  %v2894_v22 = vadd.f32 %v9211_v20, %v12332_v63  ;;  %9833 = vmatpush3.bf16.msra.mxu1 %v10344_v54  ;;  %9945 = vmatpush3.bf16.msra.mxu0 %v10346_v28  ;;  %v8823_v47 = vcombine.high %v12565_v17, %v12575_v29 }
 0x252   : > { %5545 = vmatprep.mubr.bf16.mxu1 %v8693_v53  ;;  %6143 = vmatprep.mubr.bf16.mxu0 %v8821_v62  ;;  %v10360_v53 = vld [vmem:[%s11318_s4 + $0x390] sm:$0xff]  }
 0x253   : > { %v12582_v41 = vadd.f32 %v9323_v18, %v2894_v22  ;;  %v9212_v63 = vpop.f32.mrb[56].mxu1  ;;  %v9324_v19 = vpop.f32.mrb[56].mxu0  ;;  %9834 = vmatprep.subr.bf16.mxu1 %v10351_v35  ;;  %9946 = vmatprep.subr.bf16.mxu0 %v10353_v5  ;;  %v10362_v62 = vld [vmem:[%s11318_s4 + $0x410] sm:$0xff]   ;;  %v10367_v35 = vld [vmem:[%s11318_s4 + $0x3d8] sm:$0xff]   ;;  %v12601_v22 = vsel %vm11350_vm2, %v8645_v60, %v5127_v42  ;;  %v8822_v60 = vcombine.low %v12565_v17, %v12575_v29 }
 0x254   : > { %v9213_v39 = vpop.f32.mrb[57].mxu1  ;;  %v9325_v15 = vpop.f32.mrb[57].mxu0  ;;  %v10369_v5 = vld [vmem:[%s11318_s4 + $0x458] sm:$0xff]  }
 0x255   : > { %v9214_v54 = vadd.f32 %v9213_v39, %v9212_v63  ;;  %v9326_v6 = vadd.f32 %v9325_v15, %v9324_v19  ;;  %v9215_v33 = vpop.f32.mrb[58].mxu1  ;;  %v9327_v28 = vpop.f32.mrb[58].mxu0  ;;  %9835 = vmatpush3.bf16.msra.mxu1 %v10352_v36  ;;  %9947 = vmatpush3.bf16.msra.mxu0 %v10354_v56  ;;  %v10368_v42 = vld [vmem:[%s11318_s4 + $0x398] sm:$0xff]   ;;  %v8694_v15 = vcombine.low %v12562_v40, %v12572_v24 }
 0x256   : > { %v9216_v43 = vpop.f32.mrb[59].mxu1  ;;  %v9328_v7 = vpop.f32.mrb[59].mxu0  ;;  %9836 = vmatprep.subr.bf16.mxu1 %v10359_v0  ;;  %9948 = vmatprep.subr.bf16.mxu0 %v10361_v21  ;;  %v12614_v0 = vld [vmem:[%s11334_s11 + $0x80] sm:$0xff]  ;;  %v10370_v19 = vld [vmem:[%s11318_s4 + $0x418] sm:$0xff]  }
 0x257   : > { %v2895_v34 = vadd.f32 %v9214_v54, %v12353_v13  ;;  %v9217_v20 = vadd.f32 %v9216_v43, %v9215_v33  ;;  %v9329_v18 = vadd.f32 %v9328_v7, %v9327_v28  ;;  %v12608_v13 = vsel %vm11350_vm2, %v5129_v31, %v5130_v46  ;;  %v10433_v21 = vld [vmem:[%s11334_s11 + $0x80] sm:$0xff]  ;;  %v10434_v33 = vld [vmem:[%s11334_s11 + $0x78] sm:$0xff]  ;;  %v10435_v43 = vld [vmem:[%s11334_s11 + $0x88] sm:$0x11] }
 0x258   : > { %5546 = vmatmul.mubr.bf16.gmra.mrb[164].mxu1 %v8692_v27  ;;  %6144 = vmatmul.mubr.bf16.gmra.mrb[164].mxu0 %v8820_v16  ;;  %v5134_v63 = vrot.slane %v10433_v21, 5  ;;  %v10375_v16 = vld [vmem:[%s11318_s4 + $0x3e0] sm:$0xff]   ;;  %v8697_v54 = vcombine.high %v12601_v22, %v12608_v13  ;;  %v8646_v40 = vrot.slane %v10434_v33, 9  ;;  %v5137_v7 = vrot.slane %v10435_v43, 5  ;;  %v10385_v21 = vld [vmem:[%s11318_s4 + $0x468] sm:$0xff]   ;;  %v10393_v33 = vld [vmem:[%s11318_s4 + $0x470] sm:$0xff]  }
 0x259   : > { %v12603_v36 = vadd.f32 %v9326_v6, %v2895_v34  ;;  %v2896_v56 = vadd.f32 %v9217_v20, %v12365_v9  ;;  %5553 = vmatprep.mubr.bf16.mxu1 %v8695_v45  ;;  %6151 = vmatprep.mubr.bf16.mxu0 %v8823_v47  ;;  %v10377_v45 = vld [vmem:[%s11318_s4 + $0x460] sm:$0xff]   ;;  %v8825_v6 = vcombine.high %v12611_v26, %v12614_v0 }
 0x25a   : > { %9837 = vmatpush3.bf16.msra.mxu1 %v10360_v53  ;;  %9949 = vmatpush3.bf16.msra.mxu0 %v10362_v62  ;;  %v5136_v46 = vrot.slane %v5134_v63, 4  ;;  %v10376_v34 = vld [vmem:[%s11318_s4 + $0x3a0] sm:$0xff]  }
 0x25b   : > { %v12619_v9 = vadd.f32 %v9329_v18, %v2896_v56  ;;  %v9218_v27 = vpop.f32.mrb[60].mxu1  ;;  %v9330_v39 = vpop.f32.mrb[60].mxu0  ;;  %9838 = vmatprep.subr.bf16.mxu1 %v10367_v35  ;;  %9950 = vmatprep.subr.bf16.mxu0 %v10369_v5  ;;  %v10378_v20 = vld [vmem:[%s11318_s4 + $0x420] sm:$0xff]   ;;  %v10383_v56 = vld [vmem:[%s11318_s4 + $0x3e8] sm:$0xff]  }
 0x25c   : > { %v9219_v47 = vpop.f32.mrb[61].mxu1  ;;  %v9331_v49 = vpop.f32.mrb[61].mxu0 }
 0x25d   : > { %v9220_v24 = vadd.f32 %v9219_v47, %v9218_v27  ;;  %v9332_v28 = vadd.f32 %v9331_v49, %v9330_v39  ;;  %v9221_v31 = vpop.f32.mrb[62].mxu1  ;;  %v9333_v25 = vpop.f32.mrb[62].mxu0  ;;  %v12647_v27 = vsel %vm11350_vm2, %v5136_v46, %v5137_v7  ;;  %v12650_v39 = vld [vmem:[%s11334_s11 + $0x90] sm:$0xff]  ;;  %v10386_v47 = vld [vmem:[%s11318_s4 + $0x428] sm:$0xff]  }
 0x25e   : > { %v9222_v53 = vpop.f32.mrb[63].mxu1  ;;  %v9334_v62 = vpop.f32.mrb[63].mxu0  ;;  %9839 = vmatpush3.bf16.msra.mxu1 %v10368_v42  ;;  %9951 = vmatpush3.bf16.msra.mxu0 %v10370_v19  ;;  %v12640_v42 = vsel %vm11350_vm2, %v8646_v40, %v5134_v63  ;;  %v10384_v63 = vld [vmem:[%s11318_s4 + $0x3a8] sm:$0xff]   ;;  %v10437_v46 = vld [vmem:[%s11334_s11 + $0x90] sm:$0xff] }
 0x25f   : > { %v2897_v18 = vadd.f32 %v9220_v24, %v12386_v11  ;;  %v9223_v35 = vadd.f32 %v9222_v53, %v9221_v31  ;;  %v9335_v5 = vadd.f32 %v9334_v62, %v9333_v25  ;;  %9840 = vmatprep.subr.bf16.mxu1 %v10375_v16  ;;  %9952 = vmatprep.subr.bf16.mxu0 %v10377_v45  ;;  %v10436_v16 = vld [vmem:[%s11334_s11 + $0x98] sm:$0xff] }
 0x260   : > { %5554 = vmatmul.mubr.bf16.gmra.mrb[168].mxu1 %v8694_v15  ;;  %6152 = vmatmul.mubr.bf16.gmra.mrb[168].mxu0 %v8822_v60  ;;  %v12653_v15 = vld [vmem:[%s11334_s11 + $0x98] sm:$0xff]  ;;  %v5141_v45 = vrot.slane %v10436_v16, 5  ;;  %v8699_v31 = vcombine.high %v12640_v42, %v12647_v27 }
 0x261   : > { %v12642_v19 = vadd.f32 %v9332_v28, %v2897_v18  ;;  %v2898_v11 = vadd.f32 %v9223_v35, %v12400_v12  ;;  %5561 = vmatprep.mubr.bf16.mxu1 %v8697_v54  ;;  %6159 = vmatprep.mubr.bf16.mxu0 %v8825_v6  ;;  %v8696_v54 = vcombine.low %v12601_v22, %v12608_v13  ;;  %v10391_v6 = vld [vmem:[%s11318_s4 + $0x3f0] sm:$0xff]   ;;  %v8647_v22 = vrot.slane %v10437_v46, 9  ;;  %v10399_v16 = vld [vmem:[%s11318_s4 + $0x3f8] sm:$0xff]  }
 0x262   : > { %9841 = vmatpush3.bf16.msra.mxu1 %v10376_v34  ;;  %9953 = vmatpush3.bf16.msra.mxu0 %v10378_v20  ;;  %v8824_v28 = vcombine.low %v12611_v26, %v12614_v0  ;;  %v8827_v25 = vcombine.high %v12650_v39, %v12653_v15  ;;  %v5143_v62 = vrot.slane %v5141_v45, 4  ;;  %v10438_v34 = vld [vmem:[%s11334_s11 + $0xa0] sm:$0x11]  ;;  %v10392_v35 = vld [vmem:[%s11318_s4 + $0x3b0] sm:$0xff]  }
 0x263   : > { %v12658_v12 = vadd.f32 %v9335_v5, %v2898_v11  ;;  %v9224_v49 = vpop.f32.mrb[64].mxu1  ;;  %v9336_v60 = vpop.f32.mrb[64].mxu0  ;;  %9842 = vmatprep.subr.bf16.mxu1 %v10383_v56  ;;  %9954 = vmatprep.subr.bf16.mxu0 %v10385_v21  ;;  %v5144_v20 = vrot.slane %v10438_v34, 5  ;;  %v10394_v5 = vld [vmem:[%s11318_s4 + $0x430] sm:$0xff]  }
 0x264   : > { %v9225_v40 = vpop.f32.mrb[65].mxu1  ;;  %v9337_v24 = vpop.f32.mrb[65].mxu0 }
 0x265   : > { %v9226_v13 = vadd.f32 %v9225_v40, %v9224_v49  ;;  %v9338_v43 = vadd.f32 %v9337_v24, %v9336_v60  ;;  %v9227_v7 = vpop.f32.mrb[66].mxu1  ;;  %v9339_v53 = vpop.f32.mrb[66].mxu0  ;;  %v10401_v49 = vld [vmem:[%s11318_s4 + $0x478] sm:$0xff]   ;;  %v12686_v60 = vsel %vm11350_vm2, %v5143_v62, %v5144_v20 }
 0x266   : > { %v9228_v0 = vpop.f32.mrb[67].mxu1  ;;  %v9340_v18 = vpop.f32.mrb[67].mxu0  ;;  %9843 = vmatpush3.bf16.msra.mxu1 %v10384_v63  ;;  %9955 = vmatpush3.bf16.msra.mxu0 %v10386_v47  ;;  %v12679_v63 = vsel %vm11350_vm2, %v8647_v22, %v5141_v45  ;;  %v10400_v45 = vld [vmem:[%s11318_s4 + $0x3b8] sm:$0xff]  }
 0x267   : > { %v2899_v56 = vadd.f32 %v9226_v13, %v12130_v8  ;;  %v9229_v21 = vadd.f32 %v9228_v0, %v9227_v7  ;;  %v9341_v11 = vadd.f32 %v9340_v18, %v9339_v53  ;;  %9844 = vmatprep.subr.bf16.mxu1 %v10391_v6  ;;  %9956 = vmatprep.subr.bf16.mxu0 %v10393_v33  ;;  %v12689_v6 = vld [vmem:[%s11334_s11 + $0xa8] sm:$0xff]  ;;  %v12692_v33 = vld [vmem:[%s11334_s11 + $0xb0] sm:$0xff]  ;;  %v10402_v24 = vld [vmem:[%s11318_s4 + $0x438] sm:$0xff]   ;;  %s13950_s4 = scalar_lea.vmem [#allocation4], %s8208_s29 }
 0x268   : > { %5562 = vmatmul.mubr.bf16.gmra.mrb[172].mxu1 %v8696_v54  ;;  %6160 = vmatmul.mubr.bf16.gmra.mrb[172].mxu0 %v8824_v28  ;;  %v10439_v54 = vld [vmem:[%s11334_s11 + $0xb0] sm:$0xff]  ;;  %v8826_v13 = vcombine.low %v12650_v39, %v12653_v15  ;;  %v8829_v7 = vcombine.high %v12689_v6, %v12692_v33  ;;  %v10440_v53 = vld [vmem:[%s11334_s11 + $0xa8] sm:$0xff]  ;;  %s8085_s9 = sshll.u32 %s13950_s4, 4  ;;  %s14050_s9 = int_to_ptr.vmem [resolvable:$true] %s8085_s9 }
 0x269   : > { %v12681_v47 = vadd.f32 %v9338_v43, %v2899_v56  ;;  %v2900_v8 = vadd.f32 %v9229_v21, %v12149_v52  ;;  %5569 = vmatprep.mubr.bf16.mxu1 %v8699_v31  ;;  %6167 = vmatprep.mubr.bf16.mxu0 %v8827_v25  ;;  %v5148_v40 = vrot.slane %v10439_v54, 5  ;;  %v8698_v25 = vcombine.low %v12640_v42, %v12647_v27  ;;  %v10441_v27 = vld [vmem:[%s11334_s11 + $0xb8] sm:$0x11]  ;;  %v8757_v54 = vld [vmem:[%s11334_s11 + $0xc8] sm:$0xff]  ;;  %s10501_s26 = scalar_lea.vmem %s14050_s9, 4096 }
 0x26a   : > { %9845 = vmatpush3.bf16.msra.mxu1 %v10392_v35  ;;  %9957 = vmatpush3.bf16.msra.mxu0 %v10394_v5  ;;  %v8701_v43 = vcombine.high %v12679_v63, %v12686_v60  ;;  %v8648_v62 = vrot.slane %v10440_v53, 9  ;;  %v5151_v35 = vrot.slane %v10441_v27, 5  ;;  %p10502_p5 = scmp.ne.s32.totalorder %s14050_s9, %s10501_s26 }
 0x26b   : > { %v12697_v28 = vadd.f32 %v9341_v11, %v2900_v8  ;;  %v9230_v52 = vpop.f32.mrb[68].mxu1  ;;  %v9342_v31 = vpop.f32.mrb[68].mxu0  ;;  %9846 = vmatprep.subr.bf16.mxu1 %v10399_v16  ;;  %9958 = vmatprep.subr.bf16.mxu0 %v10401_v49  ;;  %v5150_v42 = vrot.slane %v5148_v40, 4 }
 0x26c   : > { %v9231_v46 = vpop.f32.mrb[69].mxu1  ;;  %v9343_v22 = vpop.f32.mrb[69].mxu0  ;;  %v12712_v11 = vsel %vm11350_vm2, %v8648_v62, %v5148_v40  ;;  %p10503_p6 = pnand %p10502_p5, %p10716_p10 }
 0x26d   : > { %v9232_v34 = vadd.f32 %v9231_v46, %v9230_v52  ;;  %v9344_v20 = vadd.f32 %v9343_v22, %v9342_v31  ;;  %v9233_v0 = vpop.f32.mrb[70].mxu1  ;;  %v9345_v18 = vpop.f32.mrb[70].mxu0  ;;  %v12719_v8 = vsel %vm11350_vm2, %v5150_v42, %v5151_v35  ;;  %v8828_v22 = vcombine.low %v12689_v6, %v12692_v33  ;;  %v10444_v42 = vld [vmem:[%s11334_s11 + $0xd0] sm:$0x11] }
 0x26e   : > { %v9234_v5 = vpop.f32.mrb[71].mxu1  ;;  %v9346_v56 = vpop.f32.mrb[71].mxu0  ;;  %9847 = vmatpush3.bf16.msra.mxu1 %v10400_v45  ;;  %9959 = vmatpush3.bf16.msra.mxu0 %v10402_v24  ;;  %v10442_v45 = vld [vmem:[%s11334_s11 + $0xc8] sm:$0xff]  ;;  %p10504_p7 = pneg %p10503_p6 }
 0x26f   : > { %v2901_v39 = vadd.f32 %v9232_v34, %v12184_v38  ;;  %v9235_v15 = vadd.f32 %v9234_v5, %v9233_v0  ;;  %v9347_v21 = vadd.f32 %v9346_v56, %v9345_v18  ;;  %v12722_v38 = vld [vmem:[%s11334_s11 + $0xc0] sm:$0xff]  ;;  %v5155_v24 = vrot.slane %v10442_v45, 5 }
 0x270   : > { %5570 = vmatmul.mubr.bf16.gmra.mrb[176].mxu1 %v8698_v25  ;;  %6168 = vmatmul.mubr.bf16.gmra.mrb[176].mxu0 %v8826_v13  ;;  %v8703_v13 = vcombine.high %v12712_v11, %v12719_v8 }
 0x271   : > { %v12714_v16 = vadd.f32 %v9344_v20, %v2901_v39  ;;  %v2902_v49 = vadd.f32 %v9235_v15, %v12191_v32  ;;  %5577 = vmatprep.mubr.bf16.mxu1 %v8701_v43  ;;  %6175 = vmatprep.mubr.bf16.mxu0 %v8829_v7  ;;  %v8700_v32 = vcombine.low %v12679_v63, %v12686_v60  ;;  %v10443_v7 = vld [vmem:[%s11334_s11 + $0xc0] sm:$0xff]  ;;  %v5157_v18 = vrot.slane %v5155_v24, 4 }
 0x272   : > { %v8831_v43 = vcombine.high %v12722_v38, %v8757_v54  ;;  %v8649_v53 = vrot.slane %v10443_v7, 9  ;;  %v5158_v63 = vrot.slane %v10444_v42, 5 }
 0x273   : > { %14135 = vst [vmem:[#allocation18_spill] sm:$0xff] %v12714_v16  ;;  %v12726_v52 = vadd.f32 %v9347_v21, %v2902_v49  ;;  %v9236_v40 = vpop.f32.mrb[72].mxu1  ;;  %v9348_v31 = vpop.f32.mrb[72].mxu0  ;;  %v14138_v21 = vld [vmem:[#allocation7_spill] sm:$0xff] }
 0x274   : > { %v9237_v25 = vpop.f32.mrb[73].mxu1  ;;  %v9349_v46 = vpop.f32.mrb[73].mxu0  ;;  %v12740_v39 = vsel %vm11350_vm2, %v8649_v53, %v5155_v24  ;;  %v12747_v45 = vsel %vm11350_vm2, %v5157_v18, %v5158_v63 }
 0x275   : > { %14136 = vst [vmem:[#allocation19_spill] sm:$0xff] %v12726_v52  ;;  %v9238_v62 = vadd.f32 %v9237_v25, %v9236_v40  ;;  %v9350_v34 = vadd.f32 %v9349_v46, %v9348_v31  ;;  %v9239_v20 = vpop.f32.mrb[74].mxu1  ;;  %v9351_v0 = vpop.f32.mrb[74].mxu0  ;;  %v8760_v40 = vld [vmem:[%s11334_s11 + $0xe0] sm:$0xff]  ;;  %v8705_v53 = vcombine.high %v12740_v39, %v12747_v45 }
 0x276   : > { %v9240_v60 = vpop.f32.mrb[75].mxu1  ;;  %v9352_v27 = vpop.f32.mrb[75].mxu0  ;;  %v10445_v31 = vld [vmem:[%s11334_s11 + $0xe0] sm:$0xff] }
 0x277   : > { %v2903_v35 = vadd.f32 %v9238_v62, %v12216_v4  ;;  %v9241_v5 = vadd.f32 %v9240_v60, %v9239_v20  ;;  %v9353_v56 = vadd.f32 %v9352_v27, %v9351_v0  ;;  %v12750_v4 = vld [vmem:[%s11334_s11 + $0xd8] sm:$0xff]  ;;  %v10447_v27 = vld [vmem:[%s11334_s11 + $0xe8] sm:$0x11] }
 0x278   : > { %5578 = vmatmul.mubr.bf16.gmra.mrb[180].mxu1 %v8700_v32  ;;  %6176 = vmatmul.mubr.bf16.gmra.mrb[180].mxu0 %v8828_v22  ;;  %v5162_v32 = vrot.slane %v10445_v31, 5  ;;  %v8702_v22 = vcombine.low %v12712_v11, %v12719_v8  ;;  %v8833_v62 = vcombine.high %v12750_v4, %v8760_v40  ;;  %v5165_v11 = vrot.slane %v10447_v27, 5  ;;  %v14142_v31 = vld [vmem:[#allocation9_spill] sm:$0xff] }
 0x279   : > { %v12742_v15 = vadd.f32 %v9350_v34, %v2903_v35  ;;  %v2904_v49 = vadd.f32 %v9241_v5, %v14138_v21  ;;  %5585 = vmatprep.mubr.bf16.mxu1 %v8703_v13  ;;  %6183 = vmatprep.mubr.bf16.mxu0 %v8831_v43  ;;  %v8830_v43 = vcombine.low %v12722_v38, %v8757_v54  ;;  %v10446_v34 = vld [vmem:[%s11334_s11 + $0xd8] sm:$0xff]  ;;  %v14140_v38 = vld [vmem:[#allocation8_spill] sm:$0xff] }
 0x27a   : > { %v8650_v20 = vrot.slane %v10446_v34, 9  ;;  %v5164_v60 = vrot.slane %v5162_v32, 4 }
 0x27b   : > { %14137 = vst [vmem:[#allocation20_spill] sm:$0xff] %v12742_v15  ;;  %v12754_v25 = vadd.f32 %v9353_v56, %v2904_v49  ;;  %v9242_v24 = vpop.f32.mrb[76].mxu1  ;;  %v9354_v46 = vpop.f32.mrb[76].mxu0  ;;  %v12955_v15 = vld [vmem:[%s11334_s11 + $0x180] sm:$0xff] }
 0x27c   : > { %v9243_v13 = vpop.f32.mrb[77].mxu1  ;;  %v9355_v7 = vpop.f32.mrb[77].mxu0  ;;  %v12767_v21 = vsel %vm11350_vm2, %v8650_v20, %v5162_v32 }
 0x27d   : > { %14139 = vst [vmem:[#allocation7_spill] sm:$0xff] %v12754_v25  ;;  %v9244_v0 = vadd.f32 %v9243_v13, %v9242_v24  ;;  %v9356_v18 = vadd.f32 %v9355_v7, %v9354_v46  ;;  %v9245_v42 = vpop.f32.mrb[78].mxu1  ;;  %v9357_v63 = vpop.f32.mrb[78].mxu0  ;;  %v12774_v46 = vsel %vm11350_vm2, %v5164_v60, %v5165_v11  ;;  %v12777_v13 = vld [vmem:[%s11334_s11 + $0xf0] sm:$0xff]  ;;  %v8763_v7 = vld [vmem:[%s11334_s11 + $0xf8] sm:$0xff] }
 0x27e   : > { %v9246_v8 = vpop.f32.mrb[79].mxu1  ;;  %v9358_v35 = vpop.f32.mrb[79].mxu0  ;;  %v10449_v60 = vld [vmem:[%s11334_s11 + $0xf0] sm:$0xff] }
 0x27f   : > { %v2905_v54 = vadd.f32 %v9244_v0, %v14140_v38  ;;  %v9247_v5 = vadd.f32 %v9246_v8, %v9245_v42  ;;  %v9359_v56 = vadd.f32 %v9358_v35, %v9357_v63  ;;  %v8704_v0 = vcombine.low %v12740_v39, %v12747_v45 }
 0x280   : > { %5586 = vmatmul.mubr.bf16.gmra.mrb[184].mxu1 %v8702_v22  ;;  %6184 = vmatmul.mubr.bf16.gmra.mrb[184].mxu0 %v8830_v43  ;;  %v10448_v22 = vld [vmem:[%s11334_s11 + $0xf8] sm:$0xff]  ;;  %v8707_v42 = vcombine.high %v12767_v21, %v12774_v46  ;;  %v8835_v63 = vcombine.high %v12777_v13, %v8763_v7  ;;  %v8651_v27 = vrot.slane %v10449_v60, 9  ;;  %v12804_v60 = vld [vmem:[%s11334_s11 + $0x108] sm:$0xff] }
 0x281   : > { %v12769_v49 = vadd.f32 %v9356_v18, %v2905_v54  ;;  %v2906_v24 = vadd.f32 %v9247_v5, %v14142_v31  ;;  %5593 = vmatprep.mubr.bf16.mxu1 %v8705_v53  ;;  %6191 = vmatprep.mubr.bf16.mxu0 %v8833_v62  ;;  %v5169_v43 = vrot.slane %v10448_v22, 5  ;;  %v8832_v62 = vcombine.low %v12750_v4, %v8760_v40  ;;  %v10450_v5 = vld [vmem:[%s11334_s11 + $0x100] sm:$0x11]  ;;  %v14144_v4 = vld [vmem:[#allocation10_spill] sm:$0xff] }
 0x282   : > { %v5172_v39 = vrot.slane %v10450_v5, 5 }
 0x283   : > { %14141 = vst [vmem:[#allocation8_spill] sm:$0xff] %v12769_v49  ;;  %v12781_v34 = vadd.f32 %v9359_v56, %v2906_v24  ;;  %v9248_v32 = vpop.f32.mrb[80].mxu1  ;;  %v9360_v20 = vpop.f32.mrb[80].mxu0  ;;  %v5171_v54 = vrot.slane %v5169_v43, 4  ;;  %v12794_v22 = vsel %vm11350_vm2, %v8651_v27, %v5169_v43 }
 0x284   : > { %v9249_v53 = vpop.f32.mrb[81].mxu1  ;;  %v9361_v18 = vpop.f32.mrb[81].mxu0 }
 0x285   : > { %14143 = vst [vmem:[#allocation9_spill] sm:$0xff] %v12781_v34  ;;  %v9250_v11 = vadd.f32 %v9249_v53, %v9248_v32  ;;  %v9362_v8 = vadd.f32 %v9361_v18, %v9360_v20  ;;  %v9251_v35 = vpop.f32.mrb[82].mxu1  ;;  %v9363_v38 = vpop.f32.mrb[82].mxu0  ;;  %v14146_v20 = vld [vmem:[#allocation11_spill] sm:$0xff]  ;;  %v12801_v18 = vsel %vm11350_vm2, %v5171_v54, %v5172_v39  ;;  %v10452_v39 = vld [vmem:[%s11334_s11 + $0x108] sm:$0xff] }
 0x286   : > { %v9252_v45 = vpop.f32.mrb[83].mxu1  ;;  %v9364_v56 = vpop.f32.mrb[83].mxu0  ;;  %v8709_v54 = vcombine.high %v12794_v22, %v12801_v18 }
 0x287   : > { %v2907_v40 = vadd.f32 %v9250_v11, %v14144_v4  ;;  %v9253_v31 = vadd.f32 %v9252_v45, %v9251_v35  ;;  %v9365_v24 = vadd.f32 %v9364_v56, %v9363_v38  ;;  %v12807_v11 = vld [vmem:[%s11334_s11 + $0x110] sm:$0xff]  ;;  %v8834_v38 = vcombine.low %v12777_v13, %v8763_v7  ;;  %v14148_v7 = vld [vmem:[#allocation12_spill] sm:$0xff] }
 0x288   : > { %5594 = vmatmul.mubr.bf16.gmra.mrb[188].mxu1 %v8704_v0  ;;  %6192 = vmatmul.mubr.bf16.gmra.mrb[188].mxu0 %v8832_v62  ;;  %v10451_v0 = vld [vmem:[%s11334_s11 + $0x110] sm:$0xff]  ;;  %v8837_v5 = vcombine.high %v12804_v60, %v12807_v11  ;;  %v8652_v45 = vrot.slane %v10452_v39, 9 }
 0x289   : > { %v12796_v32 = vadd.f32 %v9362_v8, %v2907_v40  ;;  %v2908_v53 = vadd.f32 %v9253_v31, %v14146_v20  ;;  %5601 = vmatprep.mubr.bf16.mxu1 %v8707_v42  ;;  %6199 = vmatprep.mubr.bf16.mxu0 %v8835_v63  ;;  %v5176_v62 = vrot.slane %v10451_v0, 5  ;;  %v8706_v42 = vcombine.low %v12767_v21, %v12774_v46  ;;  %v10453_v20 = vld [vmem:[%s11334_s11 + $0x118] sm:$0x11] }
 0x28a   : > { %v5179_v21 = vrot.slane %v10453_v20, 5 }
 0x28b   : > { %14145 = vst [vmem:[#allocation10_spill] sm:$0xff] %v12796_v32  ;;  %v12810_v35 = vadd.f32 %v9365_v24, %v2908_v53  ;;  %v9254_v43 = vpop.f32.mrb[84].mxu1  ;;  %v9366_v27 = vpop.f32.mrb[84].mxu0  ;;  %v5178_v24 = vrot.slane %v5176_v62, 4 }
 0x28c   : > { %v9255_v8 = vpop.f32.mrb[85].mxu1  ;;  %v9367_v63 = vpop.f32.mrb[85].mxu0 }
 0x28d   : > { %14147 = vst [vmem:[#allocation11_spill] sm:$0xff] %v12810_v35  ;;  %v9256_v56 = vadd.f32 %v9255_v8, %v9254_v43  ;;  %v9368_v4 = vadd.f32 %v9367_v63, %v9366_v27  ;;  %v9257_v40 = vpop.f32.mrb[86].mxu1  ;;  %v9369_v31 = vpop.f32.mrb[86].mxu0  ;;  %v12824_v43 = vsel %vm11350_vm2, %v8652_v45, %v5176_v62  ;;  %v14150_v8 = vld [vmem:[#allocation13_spill] sm:$0xff]  ;;  %v12831_v39 = vsel %vm11350_vm2, %v5178_v24, %v5179_v21 }
 0x28e   : > { %v9258_v46 = vpop.f32.mrb[87].mxu1  ;;  %v9370_v13 = vpop.f32.mrb[87].mxu0  ;;  %v8836_v24 = vcombine.low %v12804_v60, %v12807_v11  ;;  %v8711_v20 = vcombine.high %v12824_v43, %v12831_v39  ;;  %v10457_v60 = vld [vmem:[%s11334_s11 + $0x140] sm:$0xff] }
 0x28f   : > { %v2909_v53 = vadd.f32 %v9256_v56, %v14148_v7  ;;  %v9259_v0 = vadd.f32 %v9258_v46, %v9257_v40  ;;  %v9371_v35 = vadd.f32 %v9370_v13, %v9369_v31  ;;  %v12834_v56 = vld [vmem:[%s11334_s11 + $0x120] sm:$0xff]  ;;  %v12837_v40 = vld [vmem:[%s11334_s11 + $0x128] sm:$0xff]  ;;  %v5190_v11 = vrot.slane %v10457_v60, 5 }
 0x290   : > { %5602 = vmatmul.mubr.bf16.gmra.mrb[192].mxu1 %v8706_v42  ;;  %6200 = vmatmul.mubr.bf16.gmra.mrb[192].mxu0 %v8834_v38  ;;  %v10454_v42 = vld [vmem:[%s11334_s11 + $0x128] sm:$0xff]  ;;  %v8839_v21 = vcombine.high %v12834_v56, %v12837_v40 }
 0x291   : > { %v12826_v27 = vadd.f32 %v9368_v4, %v2909_v53  ;;  %v2910_v63 = vadd.f32 %v9259_v0, %v14150_v8  ;;  %5609 = vmatprep.mubr.bf16.mxu1 %v8709_v54  ;;  %6207 = vmatprep.mubr.bf16.mxu0 %v8837_v5  ;;  %v5183_v38 = vrot.slane %v10454_v42, 5  ;;  %v8708_v54 = vcombine.low %v12794_v22, %v12801_v18  ;;  %v10456_v22 = vld [vmem:[%s11334_s11 + $0x130] sm:$0x11] }
 0x292   : > { %v5186_v18 = vrot.slane %v10456_v22, 5 }
 0x293   : > { %14149 = vst [vmem:[#allocation12_spill] sm:$0xff] %v12826_v27  ;;  %v12840_v31 = vadd.f32 %v9371_v35, %v2910_v63  ;;  %v9260_v62 = vpop.f32.mrb[88].mxu1  ;;  %v9372_v45 = vpop.f32.mrb[88].mxu0  ;;  %v10455_v35 = vld [vmem:[%s11334_s11 + $0x120] sm:$0xff]  ;;  %v5185_v8 = vrot.slane %v5183_v38, 4 }
 0x294   : > { %v9261_v4 = vpop.f32.mrb[89].mxu1  ;;  %v9373_v5 = vpop.f32.mrb[89].mxu0  ;;  %v8653_v46 = vrot.slane %v10455_v35, 9 }
 0x295   : > { %14151 = vst [vmem:[#allocation13_spill] sm:$0xff] %v12840_v31  ;;  %v9262_v13 = vadd.f32 %v9261_v4, %v9260_v62  ;;  %v9374_v7 = vadd.f32 %v9373_v5, %v9372_v45  ;;  %v9263_v53 = vpop.f32.mrb[90].mxu1  ;;  %v9375_v0 = vpop.f32.mrb[90].mxu0  ;;  %v14152_v31 = vld [vmem:[#allocation14_spill] sm:$0xff]  ;;  %v14154_v4 = vld [vmem:[#allocation15_spill] sm:$0xff]  ;;  %v12863_v35 = vsel %vm11350_vm2, %v5185_v8, %v5186_v18  ;;  %v8710_v8 = vcombine.low %v12824_v43, %v12831_v39 }
 0x296   : > { %v9264_v63 = vpop.f32.mrb[91].mxu1  ;;  %v9376_v42 = vpop.f32.mrb[91].mxu0  ;;  %v12856_v62 = vsel %vm11350_vm2, %v8653_v46, %v5183_v38  ;;  %v10460_v46 = vld [vmem:[%s11334_s11 + $0x158] sm:$0xff]  ;;  %v8838_v18 = vcombine.low %v12834_v56, %v12837_v40  ;;  %v10461_v56 = vld [vmem:[%s11334_s11 + $0x150] sm:$0xff] }
 0x297   : > { %v2911_v27 = vadd.f32 %v9262_v13, %v14152_v31  ;;  %v9265_v32 = vadd.f32 %v9264_v63, %v9263_v53  ;;  %v9377_v34 = vadd.f32 %v9376_v42, %v9375_v0  ;;  %v10458_v31 = vld [vmem:[%s11334_s11 + $0x138] sm:$0xff]  ;;  %v10459_v0 = vld [vmem:[%s11334_s11 + $0x148] sm:$0x11]  ;;  %v8713_v63 = vcombine.high %v12856_v62, %v12863_v35 }
 0x298   : > { %5610 = vmatmul.mubr.bf16.gmra.mrb[196].mxu1 %v8708_v54  ;;  %6208 = vmatmul.mubr.bf16.gmra.mrb[196].mxu0 %v8836_v24  ;;  %v8654_v13 = vrot.slane %v10458_v31, 9  ;;  %v12867_v53 = vld [vmem:[%s11334_s11 + $0x138] sm:$0xff]  ;;  %v12870_v54 = vld [vmem:[%s11334_s11 + $0x140] sm:$0xff]  ;;  %v5192_v24 = vrot.slane %v5190_v11, 4  ;;  %v5193_v38 = vrot.slane %v10459_v0, 5  ;;  %v8655_v40 = vrot.slane %v10461_v56, 9 }
 0x299   : > { %v12858_v45 = vadd.f32 %v9374_v7, %v2911_v27  ;;  %v2912_v5 = vadd.f32 %v9265_v32, %v14154_v4  ;;  %5617 = vmatprep.mubr.bf16.mxu1 %v8711_v20  ;;  %6215 = vmatprep.mubr.bf16.mxu0 %v8839_v21  ;;  %v5197_v27 = vrot.slane %v10460_v46, 5  ;;  %v8712_v56 = vcombine.low %v12856_v62, %v12863_v35 }
 0x29a   : > { %v12886_v31 = vsel %vm11350_vm2, %v8654_v13, %v5190_v11  ;;  %v12890_v39 = vsel %vm11350_vm2, %v5192_v24, %v5193_v38  ;;  %v10463_v11 = vld [vmem:[%s11334_s11 + $0x170] sm:$0xff] }
 0x29b   : > { %14153 = vst [vmem:[#allocation14_spill] sm:$0xff] %v12858_v45  ;;  %v12874_v7 = vadd.f32 %v9377_v34, %v2912_v5  ;;  %v9266_v32 = vpop.f32.mrb[92].mxu1  ;;  %v9378_v20 = vpop.f32.mrb[92].mxu0  ;;  %v8841_v5 = vcombine.high %v12867_v53, %v12870_v54  ;;  %v5199_v46 = vrot.slane %v5197_v27, 4  ;;  %v5204_v13 = vrot.slane %v10463_v11, 5  ;;  %v14158_v24 = vld [vmem:[#allocation17_spill] sm:$0xff] }
 0x29c   : > { %v9267_v21 = vpop.f32.mrb[93].mxu1  ;;  %v9379_v22 = vpop.f32.mrb[93].mxu0 }
 0x29d   : > { %14155 = vst [vmem:[#allocation15_spill] sm:$0xff] %v12874_v7  ;;  %v9268_v42 = vadd.f32 %v9267_v21, %v9266_v32  ;;  %v9380_v60 = vadd.f32 %v9379_v22, %v9378_v20  ;;  %v9269_v34 = vpop.f32.mrb[94].mxu1  ;;  %v9381_v4 = vpop.f32.mrb[94].mxu0  ;;  %v10462_v32 = vld [vmem:[%s11334_s11 + $0x160] sm:$0x11]  ;;  %v14156_v21 = vld [vmem:[#allocation16_spill] sm:$0xff] }
 0x29e   : > { %v9270_v0 = vpop.f32.mrb[95].mxu1  ;;  %v9382_v43 = vpop.f32.mrb[95].mxu0  ;;  %v5200_v20 = vrot.slane %v10462_v32, 5 }
 0x29f   : > { %v2913_v22 = vadd.f32 %v9268_v42, %v14156_v21  ;;  %v9271_v7 = vadd.f32 %v9270_v0, %v9269_v34  ;;  %v9383_v45 = vadd.f32 %v9382_v43, %v9381_v4  ;;  %v8840_v42 = vcombine.low %v12867_v53, %v12870_v54  ;;  %v12906_v4 = vld [vmem:[%s11334_s11 + $0x150] sm:$0xff]  ;;  %v10465_v54 = vld [vmem:[%s11334_s11 + $0x178] sm:$0x11] }
 0x2a0   : > { %5618 = vmatmul.mubr.bf16.gmra.mrb[200].mxu1 %v8710_v8  ;;  %6216 = vmatmul.mubr.bf16.gmra.mrb[200].mxu0 %v8838_v18  ;;  %v8715_v34 = vcombine.high %v12886_v31, %v12890_v39  ;;  %v12909_v8 = vld [vmem:[%s11334_s11 + $0x158] sm:$0xff]  ;;  %v12913_v18 = vsel %vm11350_vm2, %v8655_v40, %v5197_v27  ;;  %v12920_v35 = vsel %vm11350_vm2, %v5199_v46, %v5200_v20  ;;  %v5206_v53 = vrot.slane %v5204_v13, 4 }
 0x2a1   : > { %v12896_v49 = vadd.f32 %v9380_v60, %v2913_v22  ;;  %v2914_v38 = vadd.f32 %v9271_v7, %v14158_v24  ;;  %5625 = vmatprep.mubr.bf16.mxu1 %v8713_v63  ;;  %6223 = vmatprep.mubr.bf16.mxu0 %v8841_v5  ;;  %v10464_v7 = vld [vmem:[%s11334_s11 + $0x168] sm:$0xff]  ;;  %v5207_v0 = vrot.slane %v10465_v54, 5  ;;  %v6329_v27 = vshrl.u32 %v12507_v57, 16 }
 0x2a2   : > { %v8656_v63 = vrot.slane %v10464_v7, 9  ;;  %v6332_v40 = vshll.u32 %v12507_v57, 16  ;;  %v6342_v21 = vshrl.u32 %v12510_v44, 16  ;;  %v8843_v24 = vcombine.high %v12906_v4, %v12909_v8 }
 0x2a3   : > { %14157 = vst [vmem:[#allocation16_spill] sm:$0xff] %v12896_v49  ;;  %v12916_v60 = vadd.f32 %v9383_v45, %v2914_v38  ;;  %v9400_v5 = vpop.f32.mrb[96].mxu1  ;;  %v9512_v62 = vpop.f32.mrb[96].mxu0  ;;  %v6338_v45 = vshll.u32 %v12510_v44, 16  ;;  %v12949_v57 = vsel %vm11350_vm2, %v5206_v53, %v5207_v0  ;;  %v12952_v44 = vld [vmem:[%s11334_s11 + $0x40] sm:$0x11] }
 0x2a4   : > { %v9401_v43 = vpop.f32.mrb[97].mxu1  ;;  %v9513_v32 = vpop.f32.mrb[97].mxu0 }
 0x2a5   : > { %14159 = vst [vmem:[#allocation17_spill] sm:$0xff] %v12916_v60  ;;  %v9402_v22 = vadd.f32 %v9401_v43, %v9400_v5  ;;  %v9514_v11 = vadd.f32 %v9513_v32, %v9512_v62  ;;  %v9403_v46 = vpop.f32.mrb[98].mxu1  ;;  %v9515_v20 = vpop.f32.mrb[98].mxu0  ;;  %v12936_v5 = vld [vmem:[%s11334_s11 + $0x168] sm:$0xff]  ;;  %v12939_v62 = vld [vmem:[%s11334_s11 + $0x170] sm:$0xff]  ;;  %v12943_v43 = vsel %vm11350_vm2, %v8656_v63, %v5204_v13  ;;  %v6331_v63 = vrot.slane %v6329_v27, 4 }
 0x2a6   : > { %v9404_v7 = vpop.f32.mrb[99].mxu1  ;;  %v9516_v54 = vpop.f32.mrb[99].mxu0  ;;  %v10466_v32 = vld [vmem:[%s11334_s11 + $0x188] sm:$0xff]  ;;  %v12960_v52 = vrot.slane %v6338_v45, 5 }
 0x2a7   : > { %v5211_v38 = vrot.slane %v10466_v32, 5  ;;  %v4126_v60 = vadd.f32 %v9402_v22, %v12440_v10  ;;  %v9405_v49 = vadd.f32 %v9404_v7, %v9403_v46  ;;  %v9517_v25 = vadd.f32 %v9516_v54, %v9515_v20  ;;  %v12958_v13 = vld [vmem:[%s11334_s11 + $0x188] sm:$0xff]  ;;  %v12998_v20 = vld [vmem:[%s11334_s11 + $0x198] sm:$0xff] }
 0x2a8   : > { %5626 = vmatmul.mubr.bf16.gmra.mrb[204].mxu1 %v8712_v56  ;;  %6224 = vmatmul.mubr.bf16.gmra.mrb[204].mxu0 %v8840_v42  ;;  %v6334_v32 = vrot.slane %v6332_v40, 5  ;;  %v6344_v10 = vrot.slane %v6342_v21, 4  ;;  %v8845_v56 = vcombine.high %v12936_v5, %v12939_v62  ;;  %v10467_v42 = vld [vmem:[%s11334_s11 + $0x180] sm:$0xff]  ;;  %v10468_v40 = vld [vmem:[%s11334_s11 + $0x190] sm:$0x11]  ;;  %v6348_v21 = vshll.u32 %v12952_v44, 16 }
 0x2a9   : > { %v12962_v22 = vadd.f32 %v9514_v11, %v4126_v60  ;;  %v4127_v46 = vadd.f32 %v9405_v49, %v12447_v30  ;;  %5633 = vmatprep.mubr.bf16.mxu1 %v8715_v34  ;;  %6231 = vmatprep.mubr.bf16.mxu0 %v8843_v24  ;;  %v8657_v53 = vrot.slane %v10467_v42, 9  ;;  %v5213_v27 = vrot.slane %v5211_v38, 4 }
 0x2aa   : > { %v5214_v45 = vrot.slane %v10468_v40, 5  ;;  %v6335_v42 = vor.u32 %v6334_v32, %v6331_v63 }
 0x2ab   : > { %14160 = vst [vmem:[#allocation21_spill] sm:$0xff] %v12962_v22  ;;  %v12972_v60 = vadd.f32 %v9517_v25, %v4127_v46  ;;  %v9406_v11 = vpop.f32.mrb[100].mxu1  ;;  %v9518_v30 = vpop.f32.mrb[100].mxu0  ;;  %v6345_v25 = vor.u32 %v6344_v10, %v12960_v52  ;;  %v10469_v46 = vld [vmem:[%s11334_s11 + $0x38] sm:$0xff]  ;;  %v12988_v22 = vsel %vm11350_vm2, %v8657_v53, %v5211_v38  ;;  %v6350_v10 = vrot.slane %v6348_v21, 5  ;;  %v13001_v38 = vld [vmem:[%s11334_s11 + $0x1a0] sm:$0xff] }
 0x2ac   : > { %v9407_v24 = vpop.f32.mrb[101].mxu1  ;;  %v9519_v7 = vpop.f32.mrb[101].mxu0  ;;  %v7244_v40 = vrot.slane %v10469_v46, 5  ;;  %v12992_v32 = vsel %vm11350_vm2, %v5213_v27, %v5214_v45  ;;  %v10470_v53 = vld [vmem:[%s11334_s11 + $0x30] sm:$0xff]  ;;  %v14162_v27 = vcombine.low %v12886_v31, %v12890_v39  ;;  %v14163_v45 = vcombine.low %v12906_v4, %v12909_v8  ;;  %v13018_v31 = vld [vmem:[%s11334_s11 + $0x58] sm:$0x11] }
 0x2ad   : > { %14161 = vst [vmem:[#allocation22_spill] sm:$0xff] %v12972_v60  ;;  %v9408_v0 = vadd.f32 %v9407_v24, %v9406_v11  ;;  %v9520_v49 = vadd.f32 %v9519_v7, %v9518_v30  ;;  %v9409_v60 = vpop.f32.mrb[102].mxu1  ;;  %v9521_v34 = vpop.f32.mrb[102].mxu0  ;;  %v6353_v11 = vshrl.u32 %v12540_v59, 16  ;;  %v6356_v30 = vshll.u32 %v12540_v59, 16 }
 0x2ae   : > { %v9410_v54 = vpop.f32.mrb[103].mxu1  ;;  %v9522_v63 = vpop.f32.mrb[103].mxu0  ;;  %v8946_v16 = vrot.slane %v10470_v53, 9  ;;  %v6336_v59 = vrot.slane %v6335_v42, 4  ;;  %v6346_v21 = vrot.slane %v6345_v25, 4  ;;  %v6362_v39 = vshll.u32 %v12543_v48, 16 }
 0x2af   : > { %v4128_v24 = vadd.f32 %v9408_v0, %v12459_v50  ;;  %v9411_v7 = vadd.f32 %v9410_v54, %v9409_v60  ;;  %v9523_v46 = vadd.f32 %v9522_v63, %v9521_v34  ;;  %v7246_v50 = vrot.slane %v7244_v40, 4 }
 0x2b0   : > { %5634 = vmatmul.mubr.bf16.gmra.mrb[208].mxu1 %v14162_v27  ;;  %6232 = vmatmul.mubr.bf16.gmra.mrb[208].mxu0 %v14163_v45  ;;  %v7247_v0 = vrot.slane %v12952_v44, 5  ;;  %v14164_v54 = vcombine.high %v12913_v18, %v12920_v35  ;;  %v6366_v4 = vshrl.u32 %v12543_v48, 16  ;;  %v8721_v8 = vcombine.high %v12988_v22, %v12992_v32 }
 0x2b1   : > { %v13011_v60 = vadd.f32 %v9520_v49, %v4128_v24  ;;  %v4129_v34 = vadd.f32 %v9411_v7, %v12466_v2  ;;  %6239 = vmatprep.mubr.bf16.mxu0 %v8845_v56  ;;  %v6355_v49 = vrot.slane %v6353_v11, 4  ;;  %v6358_v42 = vrot.slane %v6356_v30, 5 }
 0x2b2   : > { %5641 = vmatprep.mubr.bf16.mxu1 %v14164_v54  ;;  %v13034_v48 = vsel %vm11350_vm2, %v8946_v16, %v7244_v40  ;;  %v13039_v11 = vsel %vm11513_vm5, %v6336_v59, %v12960_v52  ;;  %v13043_v30 = vsel %vm11513_vm5, %v6346_v21, %v6350_v10  ;;  %v6372_v27 = vshll.u32 %v13018_v31, 16 }
 0x2b3   : > { %v13026_v2 = vadd.f32 %v9523_v46, %v4129_v34  ;;  %v9412_v25 = vpop.f32.mrb[104].mxu1  ;;  %v9524_v63 = vpop.f32.mrb[104].mxu0  ;;  %v13047_v46 = vsel %vm11350_vm2, %v7246_v50, %v7247_v0  ;;  %v6364_v54 = vrot.slane %v6362_v39, 5  ;;  %v6368_v24 = vrot.slane %v6366_v4, 4 }
 0x2b4   : > { %v9413_v7 = vpop.f32.mrb[105].mxu1  ;;  %v9525_v53 = vpop.f32.mrb[105].mxu0  ;;  %v6359_v59 = vor.u32 %v6358_v42, %v6355_v49  ;;  %v6377_v44 = vshrl.u32 %v12565_v17, 16  ;;  %v6380_v10 = vshll.u32 %v12565_v17, 16  ;;  %v6386_v21 = vshll.u32 %v12575_v29, 16  ;;  %v10471_v42 = vld [vmem:[%s11334_s11 + $0x50] sm:$0xff] }
 0x2b5   : > { %v9414_v45 = vadd.f32 %v9413_v7, %v9412_v25  ;;  %v9526_v16 = vadd.f32 %v9525_v53, %v9524_v63  ;;  %v9415_v40 = vpop.f32.mrb[106].mxu1  ;;  %v9527_v34 = vpop.f32.mrb[106].mxu0  ;;  %v6390_v63 = vshrl.u32 %v12575_v29, 16  ;;  %v14165_v39 = vcombine.low %v12913_v18, %v12920_v35  ;;  %v10472_v7 = vld [vmem:[%s11334_s11 + $0x48] sm:$0xff] }
 0x2b6   : > { %v9416_v56 = vpop.f32.mrb[107].mxu1  ;;  %v9528_v52 = vpop.f32.mrb[107].mxu0  ;;  %v14166_v4 = vcombine.low %v12936_v5, %v12939_v62  ;;  %v14167_v35 = vcombine.high %v12943_v43, %v12949_v57  ;;  %v14168_v5 = vcombine.high %v12955_v15, %v12958_v13  ;;  %v6369_v62 = vor.u32 %v6368_v24, %v6364_v54 }
 0x2b7   : > { %v4130_v50 = vadd.f32 %v9414_v45, %v12475_v37  ;;  %v9417_v0 = vadd.f32 %v9416_v56, %v9415_v40  ;;  %v9529_v25 = vadd.f32 %v9528_v52, %v9527_v34  ;;  %v7251_v56 = vrot.slane %v10471_v42, 5 }
 0x2b8   : > { %5642 = vmatmul.mubr.bf16.gmra.mrb[212].mxu1 %v14165_v39  ;;  %6240 = vmatmul.mubr.bf16.gmra.mrb[212].mxu0 %v14166_v4  ;;  %v8947_v53 = vrot.slane %v10472_v7, 9  ;;  %v6360_v45 = vrot.slane %v6359_v59, 4  ;;  %v6374_v40 = vrot.slane %v6372_v27, 5  ;;  %v6379_v34 = vrot.slane %v6377_v44, 4 }
 0x2b9   : > { %v13068_v29 = vadd.f32 %v9526_v16, %v4130_v50  ;;  %v4131_v18 = vadd.f32 %v9417_v0, %v12485_v14  ;;  %5649 = vmatprep.mubr.bf16.mxu1 %v14167_v35  ;;  %6247 = vmatprep.mubr.bf16.mxu0 %v14168_v5  ;;  %v6382_v52 = vrot.slane %v6380_v10, 5  ;;  %v13083_v0 = vld [vmem:[%s11334_s11 + $0x70] sm:$0x11]  ;;  %v13085_v4 = vrot.slane %v6386_v21, 5 }
 0x2ba   : > { %v6392_v42 = vrot.slane %v6390_v63, 4  ;;  %v7253_v5 = vrot.slane %v7251_v56, 4  ;;  %v7254_v27 = vrot.slane %v13018_v31, 5  ;;  %v6401_v44 = vshrl.u32 %v12611_v26, 16 }
 0x2bb   : > { %v13078_v39 = vadd.f32 %v9529_v25, %v4131_v18  ;;  %v9418_v16 = vpop.f32.mrb[108].mxu1  ;;  %v9530_v50 = vpop.f32.mrb[108].mxu0  ;;  %v6404_v59 = vshll.u32 %v12611_v26, 16  ;;  %v6370_v49 = vrot.slane %v6369_v62, 4  ;;  %v13092_v21 = vsel %vm11350_vm2, %v8947_v53, %v7251_v56  ;;  %v10473_v26 = vld [vmem:[%s11334_s11 + $0x68] sm:$0xff] }
 0x2bc   : > { %v9419_v35 = vpop.f32.mrb[109].mxu1  ;;  %v9531_v24 = vpop.f32.mrb[109].mxu0  ;;  %v13096_v37 = vsel %vm11513_vm5, %v6360_v45, %v6364_v54  ;;  %v6383_v31 = vor.u32 %v6382_v52, %v6379_v34  ;;  %v6396_v14 = vshll.u32 %v13083_v0, 16  ;;  %v6393_v56 = vor.u32 %v6392_v42, %v13085_v4 }
 0x2bd   : > { %v9420_v10 = vadd.f32 %v9419_v35, %v9418_v16  ;;  %v9532_v25 = vadd.f32 %v9531_v24, %v9530_v50  ;;  %v9421_v18 = vpop.f32.mrb[110].mxu1  ;;  %v9533_v7 = vpop.f32.mrb[110].mxu0  ;;  %v7258_v16 = vrot.slane %v10473_v26, 5  ;;  %v14169_v53 = vcombine.low %v12943_v43, %v12949_v57 }
 0x2be   : > { %v9422_v63 = vpop.f32.mrb[111].mxu1  ;;  %v9534_v17 = vpop.f32.mrb[111].mxu0  ;;  %v14170_v54 = vcombine.low %v12955_v15, %v12958_v13  ;;  %v13110_v45 = vsel %vm11350_vm2, %v7253_v5, %v7254_v27  ;;  %v6403_v34 = vrot.slane %v6401_v44, 4  ;;  %v6406_v52 = vrot.slane %v6404_v59, 5  ;;  %v10475_v5 = vld [vmem:[%s11334_s11 + $0x60] sm:$0xff] }
 0x2bf   : > { %v4132_v50 = vadd.f32 %v9420_v10, %v12495_v55  ;;  %v9423_v35 = vadd.f32 %v9422_v63, %v9421_v18  ;;  %v9535_v62 = vadd.f32 %v9534_v17, %v9533_v7  ;;  %v13113_v55 = vld [vmem:[%s11334_s11 + $0x80] sm:$0xff]  ;;  %v14171_v15 = vcombine.high %v12998_v20, %v13001_v38 }
 0x2c0   : > { %5650 = vmatmul.mubr.bf16.gmra.mrb[216].mxu1 %v14169_v53  ;;  %6248 = vmatmul.mubr.bf16.gmra.mrb[216].mxu0 %v14170_v54  ;;  %v6410_v17 = vshll.u32 %v13113_v55, 16  ;;  %v13127_v57 = vsel %vm11513_vm5, %v6370_v49, %v6374_v40  ;;  %v6414_v43 = vshrl.u32 %v13113_v55, 16  ;;  %v6384_v13 = vrot.slane %v6383_v31, 4  ;;  %v8749_v54 = vld [vmem:[%s11334_s11 + $0x88] sm:$0x11] }
 0x2c1   : > { %v13116_v24 = vadd.f32 %v9532_v25, %v4132_v50  ;;  %v4133_v42 = vadd.f32 %v9423_v35, %v12512_v58  ;;  %5657 = vmatprep.mubr.bf16.mxu1 %v8721_v8  ;;  %6255 = vmatprep.mubr.bf16.mxu0 %v14171_v15  ;;  %v8948_v27 = vrot.slane %v10475_v5, 9  ;;  %v7260_v44 = vrot.slane %v7258_v16, 4 }
 0x2c2   : > { %v7261_v58 = vrot.slane %v13083_v0, 5  ;;  %v8997_v25 = vcombine.high %v13092_v21, %v13110_v45  ;;  %v6394_v18 = vrot.slane %v6393_v56, 4  ;;  %v6398_v7 = vrot.slane %v6396_v14, 5 }
 0x2c3   : > { %v13132_v59 = vadd.f32 %v9535_v62, %v4133_v42  ;;  %v9424_v8 = vpop.f32.mrb[112].mxu1  ;;  %v9536_v10 = vpop.f32.mrb[112].mxu0  ;;  %v8901_v63 = vcombine.high %v13096_v37, %v13127_v57  ;;  %v6407_v26 = vor.u32 %v6406_v52, %v6403_v34  ;;  %v6412_v0 = vrot.slane %v6410_v17, 5 }
 0x2c4   : > { %v9425_v49 = vpop.f32.mrb[113].mxu1  ;;  %v9537_v40 = vpop.f32.mrb[113].mxu0  ;;  %v6416_v42 = vrot.slane %v6414_v43, 4  ;;  %v7265_v56 = vrot.slane %v13113_v55, 5  ;;  %v13147_v31 = vsel %vm11513_vm5, %v6384_v13, %v13085_v4  ;;  %v13151_v34 = vsel %vm11350_vm2, %v8948_v27, %v7258_v16 }
 0x2c5   : > { %v9426_v50 = vadd.f32 %v9425_v49, %v9424_v8  ;;  %v9538_v35 = vadd.f32 %v9537_v40, %v9536_v10  ;;  %v9427_v62 = vpop.f32.mrb[114].mxu1  ;;  %v9539_v53 = vpop.f32.mrb[114].mxu0  ;;  %v13155_v52 = vsel %vm11350_vm2, %v7260_v44, %v7261_v58  ;;  %v13160_v8 = vsel %vm11513_vm5, %v6394_v18, %v6398_v7  ;;  %v10476_v44 = vld [vmem:[%s11334_s11 + $0x78] sm:$0xff]  ;;  %v13181_v7 = vld [vmem:[%s11334_s11 + $0x90] sm:$0xff] }
 0x2c6   : > { %v9428_v14 = vpop.f32.mrb[115].mxu1  ;;  %v9540_v15 = vpop.f32.mrb[115].mxu0  ;;  %v14172_v4 = vcombine.low %v12988_v22, %v12992_v32  ;;  %v14173_v16 = vcombine.low %v12998_v20, %v13001_v38  ;;  %v6408_v13 = vrot.slane %v6407_v26, 4  ;;  %v6420_v27 = vshll.u32 %v8749_v54, 16 }
 0x2c7   : > { %v4134_v55 = vadd.f32 %v9426_v50, %v12525_v3  ;;  %v9429_v17 = vadd.f32 %v9428_v14, %v9427_v62  ;;  %v9541_v43 = vadd.f32 %v9540_v15, %v9539_v53  ;;  %v8949_v3 = vrot.slane %v10476_v44, 9 }
 0x2c8   : > { %5658 = vmatmul.mubr.bf16.gmra.mrb[220].mxu1 %v14172_v4  ;;  %6256 = vmatmul.mubr.bf16.gmra.mrb[220].mxu0 %v14173_v16  ;;  %v7268_v58 = vrot.slane %v8749_v54, 5  ;;  %v14174_v18 = vcombine.high %v13039_v11, %v13043_v30  ;;  %v14175_v22 = vcombine.high %v13034_v48, %v13047_v46  ;;  %v6417_v20 = vor.u32 %v6416_v42, %v6412_v0 }
 0x2c9   : > { %v13169_v10 = vadd.f32 %v9538_v35, %v4134_v55  ;;  %v4135_v49 = vadd.f32 %v9429_v17, %v12529_v1  ;;  %v7267_v32 = vrot.slane %v7265_v56, 4  ;;  %v6425_v40 = vshrl.u32 %v13181_v7, 16  ;;  %v13186_v1 = vld [vmem:[%s11334_s11 + $0x98] sm:$0xff] }
 0x2ca   : > { %7033 = vmatprep.mubr.bf16.mxu1 %v14174_v18  ;;  %7675 = vmatprep.mubr.bf16.mxu0 %v14175_v22  ;;  %v6428_v26 = vshll.u32 %v13181_v7, 16  ;;  %v6434_v50 = vshll.u32 %v13186_v1, 16  ;;  %v6438_v14 = vshrl.u32 %v13186_v1, 16  ;;  %v13200_v4 = vsel %vm11513_vm5, %v6408_v13, %v6412_v0 }
 0x2cb   : > { %v13189_v35 = vadd.f32 %v9541_v43, %v4135_v49  ;;  %v9430_v62 = vpop.f32.mrb[116].mxu1  ;;  %v9542_v53 = vpop.f32.mrb[116].mxu0  ;;  %v6422_v43 = vrot.slane %v6420_v27, 5  ;;  %v13204_v16 = vsel %vm11350_vm2, %v8949_v3, %v7265_v56  ;;  %v6418_v42 = vrot.slane %v6417_v20, 4 }
 0x2cc   : > { %v9431_v15 = vpop.f32.mrb[117].mxu1  ;;  %v9543_v55 = vpop.f32.mrb[117].mxu0  ;;  %v13208_v38 = vsel %vm11350_vm2, %v7267_v32, %v7268_v58  ;;  %v6427_v5 = vrot.slane %v6425_v40, 4  ;;  %v6430_v0 = vrot.slane %v6428_v26, 5  ;;  %v13210_v13 = vrot.slane %v6434_v50, 5 }
 0x2cd   : > { %v9432_v44 = vadd.f32 %v9431_v15, %v9430_v62  ;;  %v9544_v49 = vadd.f32 %v9543_v55, %v9542_v53  ;;  %v9433_v18 = vpop.f32.mrb[118].mxu1  ;;  %v9545_v22 = vpop.f32.mrb[118].mxu0  ;;  %v7272_v27 = vrot.slane %v13186_v1, 5  ;;  %v8752_v53 = vld [vmem:[%s11334_s11 + $0xa0] sm:$0x11]  ;;  %v6440_v15 = vrot.slane %v6438_v14, 4 }
 0x2ce   : > { %v9434_v17 = vpop.f32.mrb[119].mxu1  ;;  %v9546_v54 = vpop.f32.mrb[119].mxu0  ;;  %v14176_v20 = vcombine.low %v13039_v11, %v13043_v30  ;;  %v14177_v58 = vcombine.low %v13034_v48, %v13047_v46  ;;  %v6449_v32 = vshrl.u32 %v12689_v6, 16  ;;  %v6452_v40 = vshll.u32 %v12689_v6, 16 }
 0x2cf   : > { %v4136_v56 = vadd.f32 %v9432_v44, %v12567_v23  ;;  %v9435_v3 = vadd.f32 %v9434_v17, %v9433_v18  ;;  %v9547_v62 = vadd.f32 %v9546_v54, %v9545_v22  ;;  %v6458_v26 = vshll.u32 %v12692_v33, 16 }
 0x2d0   : > { %7034 = vmatmul.mubr.bf16.vlgmr.msra.gmra.mrb[224].mxu1 %v14176_v20  ;;  %7676 = vmatmul.mubr.bf16.vlgmr.msra.gmra.mrb[224].mxu0 %v14177_v58  ;;  %v6462_v23 = vshrl.u32 %v12692_v33, 16  ;;  %v9001_v48 = vcombine.high %v13204_v16, %v13208_v38  ;;  %v13238_v6 = vsel %vm11513_vm5, %v6418_v42, %v6422_v43  ;;  %v6431_v33 = vor.u32 %v6430_v0, %v6427_v5 }
 0x2d1   : > { %v13225_v1 = vadd.f32 %v9544_v49, %v4136_v56  ;;  %v4137_v50 = vadd.f32 %v9435_v3, %v12582_v41  ;;  %7041 = vmatprep.mubr.bf16.mxu1 %v8901_v63  ;;  %7683 = vmatprep.mubr.bf16.mxu0 %v8997_v25  ;;  %v6444_v11 = vshll.u32 %v8752_v53, 16  ;;  %v8950_v30 = vrot.slane %v13181_v7, 9  ;;  %v8755_v3 = vld [vmem:[%s11334_s11 + $0xb8] sm:$0x11] }
 0x2d2   : > { %v6441_v63 = vor.u32 %v6440_v15, %v13210_v13  ;;  %v7274_v14 = vrot.slane %v7272_v27, 4  ;;  %v7275_v25 = vrot.slane %v8752_v53, 5  ;;  %v6451_v44 = vrot.slane %v6449_v32, 4  ;;  %v10479_v32 = vld [vmem:[%s11334_s11 + $0xb0] sm:$0xff] }
 0x2d3   : > { %v13241_v41 = vadd.f32 %v9547_v62, %v4137_v50  ;;  %v9436_v46 = vpop.f32.mrb[120].mxu1  ;;  %v9548_v54 = vpop.f32.mrb[120].mxu0  ;;  %v6454_v49 = vrot.slane %v6452_v40, 5  ;;  %v13244_v42 = vrot.slane %v6458_v26, 5  ;;  %v6464_v5 = vrot.slane %v6462_v23, 4 }
 0x2d4   : > { %v9437_v55 = vpop.f32.mrb[121].mxu1  ;;  %v9549_v17 = vpop.f32.mrb[121].mxu0  ;;  %v8905_v0 = vcombine.high %v13200_v4, %v13238_v6  ;;  %v6432_v15 = vrot.slane %v6431_v33, 4  ;;  %v6446_v20 = vrot.slane %v6444_v11, 5  ;;  %v13253_v58 = vsel %vm11350_vm2, %v8950_v30, %v7272_v27 }
 0x2d5   : > { %v9438_v43 = vadd.f32 %v9437_v55, %v9436_v46  ;;  %v9550_v18 = vadd.f32 %v9549_v17, %v9548_v54  ;;  %v9439_v7 = vpop.f32.mrb[122].mxu1  ;;  %v9551_v22 = vpop.f32.mrb[122].mxu0  ;;  %v7279_v40 = vrot.slane %v10479_v32, 5  ;;  %v13259_v46 = vsel %vm11350_vm2, %v7274_v14, %v7275_v25 }
 0x2d6   : > { %v9440_v62 = vpop.f32.mrb[123].mxu1  ;;  %v9552_v53 = vpop.f32.mrb[123].mxu0  ;;  %v14178_v54 = vcombine.low %v13096_v37, %v13127_v57  ;;  %v14179_v27 = vcombine.low %v13092_v21, %v13110_v45  ;;  %v6442_v33 = vrot.slane %v6441_v63, 4  ;;  %v6455_v11 = vor.u32 %v6454_v49, %v6451_v44  ;;  %v10480_v45 = vld [vmem:[%s11334_s11 + $0xa8] sm:$0xff]  ;;  %v13281_v44 = vld [vmem:[%s11334_s11 + $0xc0] sm:$0xff] }
 0x2d7   : > { %v4138_v26 = vadd.f32 %v9438_v43, %v12603_v36  ;;  %v9441_v23 = vadd.f32 %v9440_v62, %v9439_v7  ;;  %v9553_v50 = vadd.f32 %v9552_v53, %v9551_v22  ;;  %v6465_v30 = vor.u32 %v6464_v5, %v13244_v42 }
 0x2d8   : > { %7042 = vmatmul.mubr.bf16.gmra.mrb[228].mxu1 %v14178_v54  ;;  %7684 = vmatmul.mubr.bf16.gmra.mrb[228].mxu0 %v14179_v27  ;;  %v6468_v36 = vshll.u32 %v8755_v3, 16  ;;  %v14180_v14 = vcombine.high %v13147_v31, %v13160_v8  ;;  %v14181_v37 = vcombine.high %v13151_v34, %v13155_v52  ;;  %v8904_v21 = vcombine.low %v13200_v4, %v13238_v6  ;;  %v13386_v6 = vld [vmem:[%s11334_s11 + $0xf0] sm:$0xff] }
 0x2d9   : > { %v13268_v55 = vadd.f32 %v9550_v18, %v4138_v26  ;;  %v4139_v17 = vadd.f32 %v9441_v23, %v12619_v9  ;;  %v8951_v57 = vrot.slane %v10480_v45, 9  ;;  %v7281_v63 = vrot.slane %v7279_v40, 4 }
 0x2da   : > { %7049 = vmatprep.mubr.bf16.mxu1 %v14180_v14  ;;  %7691 = vmatprep.mubr.bf16.mxu0 %v14181_v37  ;;  %v7282_v25 = vrot.slane %v8755_v3, 5  ;;  %v6473_v49 = vshrl.u32 %v13281_v44, 16  ;;  %v6476_v9 = vshll.u32 %v13281_v44, 16  ;;  %v13290_v7 = vsel %vm11513_vm5, %v6432_v15, %v13210_v13  ;;  %v13305_v14 = vld [vmem:[%s11334_s11 + $0xc8] sm:$0xff] }
 0x2db   : > { %v13285_v5 = vadd.f32 %v9553_v50, %v4139_v17  ;;  %v9442_v43 = vpop.f32.mrb[124].mxu1  ;;  %v9554_v18 = vpop.f32.mrb[124].mxu0  ;;  %v13298_v32 = vsel %vm11513_vm5, %v6442_v33, %v6446_v20  ;;  %v6456_v26 = vrot.slane %v6455_v11, 4  ;;  %v6466_v23 = vrot.slane %v6465_v30, 4 }
 0x2dc   : > { %v9443_v62 = vpop.f32.mrb[125].mxu1  ;;  %v9555_v53 = vpop.f32.mrb[125].mxu0  ;;  %v6470_v50 = vrot.slane %v6468_v36, 5  ;;  %v13302_v15 = vsel %vm11350_vm2, %v8951_v57, %v7279_v40  ;;  %v6482_v37 = vshll.u32 %v13305_v14, 16  ;;  %v13310_v20 = vsel %vm11350_vm2, %v7281_v63, %v7282_v25 }
 0x2dd   : > { %v9444_v54 = vadd.f32 %v9443_v62, %v9442_v43  ;;  %v9556_v27 = vadd.f32 %v9555_v53, %v9554_v18  ;;  %v9445_v17 = vpop.f32.mrb[126].mxu1  ;;  %v9557_v13 = vpop.f32.mrb[126].mxu0  ;;  %v6475_v33 = vrot.slane %v6473_v49, 4  ;;  %v6478_v11 = vrot.slane %v6476_v9, 5 }
 0x2de   : > { %v9446_v45 = vpop.f32.mrb[127].mxu1  ;;  %v9558_v3 = vpop.f32.mrb[127].mxu0  ;;  %v6486_v30 = vshrl.u32 %v13305_v14, 16  ;;  %v8907_v57 = vcombine.high %v13290_v7, %v13298_v32  ;;  %v14182_v18 = vcombine.low %v13147_v31, %v13160_v8  ;;  %v14183_v63 = vcombine.low %v13151_v34, %v13155_v52  ;;  %v8758_v52 = vld [vmem:[%s11334_s11 + $0xd0] sm:$0x11] }
 0x2df   : > { %v4140_v36 = vadd.f32 %v9444_v54, %v12642_v19  ;;  %v9447_v43 = vadd.f32 %v9446_v45, %v9445_v17  ;;  %v9559_v40 = vadd.f32 %v9558_v3, %v9557_v13  ;;  %v13327_v19 = vsel %vm11513_vm5, %v6456_v26, %v13244_v42 }
 0x2e0   : > { %7050 = vmatmul.mubr.bf16.gmra.mrb[232].mxu1 %v14182_v18  ;;  %7692 = vmatmul.mubr.bf16.gmra.mrb[232].mxu0 %v14183_v63  ;;  %v13331_v49 = vsel %vm11513_vm5, %v6466_v23, %v6470_v50  ;;  %v13345_v8 = vrot.slane %v6482_v37, 5  ;;  %v6479_v42 = vor.u32 %v6478_v11, %v6475_v33  ;;  %v6488_v3 = vrot.slane %v6486_v30, 4  ;;  %v13362_v37 = vld [vmem:[%s11334_s11 + $0xe0] sm:$0xff] }
 0x2e1   : > { %v13333_v9 = vadd.f32 %v9556_v27, %v4140_v36  ;;  %v4141_v31 = vadd.f32 %v9447_v43, %v12658_v12  ;;  %7057 = vmatprep.mubr.bf16.mxu1 %v8905_v0  ;;  %7699 = vmatprep.mubr.bf16.mxu0 %v9001_v48  ;;  %v7286_v62 = vrot.slane %v13305_v14, 5  ;;  %v13349_v12 = vld [vmem:[%s11334_s11 + $0xd8] sm:$0xff]  ;;  %v6492_v14 = vshll.u32 %v8758_v52, 16 }
 0x2e2   : > { %v6497_v53 = vshrl.u32 %v13349_v12, 16  ;;  %v6500_v54 = vshll.u32 %v13349_v12, 16  ;;  %v6506_v45 = vshll.u32 %v13362_v37, 16  ;;  %v6510_v33 = vshrl.u32 %v13362_v37, 16 }
 0x2e3   : > { %v13352_v0 = vadd.f32 %v9559_v40, %v4141_v31  ;;  %v9448_v26 = vpop.f32.mrb[128].mxu1  ;;  %v9560_v23 = vpop.f32.mrb[128].mxu0  ;;  %v8952_v40 = vrot.slane %v13281_v44, 9  ;;  %v7289_v18 = vrot.slane %v8758_v52, 5  ;;  %v6480_v50 = vrot.slane %v6479_v42, 4 }
 0x2e4   : > { %v9449_v27 = vpop.f32.mrb[129].mxu1  ;;  %v9561_v17 = vpop.f32.mrb[129].mxu0  ;;  %v6489_v13 = vor.u32 %v6488_v3, %v13345_v8  ;;  %v7288_v34 = vrot.slane %v7286_v62, 4  ;;  %v6499_v48 = vrot.slane %v6497_v53, 4  ;;  %v14184_v44 = vcombine.low %v13204_v16, %v13208_v38  ;;  %v8761_v42 = vld [vmem:[%s11334_s11 + $0xe8] sm:$0x11] }
 0x2e5   : > { %v9450_v11 = vadd.f32 %v9449_v27, %v9448_v26  ;;  %v9562_v30 = vadd.f32 %v9561_v17, %v9560_v23  ;;  %v9451_v36 = vpop.f32.mrb[130].mxu1  ;;  %v9563_v43 = vpop.f32.mrb[130].mxu0  ;;  %v6502_v26 = vrot.slane %v6500_v54, 5  ;;  %v6494_v52 = vrot.slane %v6492_v14, 5 }
 0x2e6   : > { %v9452_v63 = vpop.f32.mrb[131].mxu1  ;;  %v9564_v31 = vpop.f32.mrb[131].mxu0  ;;  %v13376_v3 = vrot.slane %v6506_v45, 5  ;;  %v6512_v53 = vrot.slane %v6510_v33, 4  ;;  %v7293_v23 = vrot.slane %v13362_v37, 5  ;;  %v14185_v4 = vcombine.high %v13253_v58, %v13259_v46 }
 0x2e7   : > { %v4142_v25 = vadd.f32 %v9450_v11, %v12681_v47  ;;  %v9453_v22 = vadd.f32 %v9452_v63, %v9451_v36  ;;  %v9565_v56 = vadd.f32 %v9564_v31, %v9563_v43  ;;  %v6521_v38 = vshrl.u32 %v13386_v6, 16 }
 0x2e8   : > { %7058 = vmatmul.mubr.bf16.gmra.mrb[236].mxu1 %v8904_v21  ;;  %7700 = vmatmul.mubr.bf16.gmra.mrb[236].mxu0 %v14184_v44  ;;  %v6524_v16 = vshll.u32 %v13386_v6, 16  ;;  %v6490_v21 = vrot.slane %v6489_v13, 4  ;;  %v13392_v27 = vsel %vm11350_vm2, %v8952_v40, %v7286_v62  ;;  %v13403_v37 = vsel %vm11350_vm2, %v7288_v34, %v7289_v18 }
 0x2e9   : > { %v13379_v47 = vadd.f32 %v9562_v30, %v4142_v25  ;;  %v4143_v54 = vadd.f32 %v9453_v22, %v12697_v28  ;;  %7065 = vmatprep.mubr.bf16.mxu1 %v8907_v57  ;;  %7707 = vmatprep.mubr.bf16.mxu0 %v14185_v4  ;;  %v13395_v25 = vld [vmem:[%s11334_s11 + $0xf8] sm:$0xff]  ;;  %v6503_v45 = vor.u32 %v6502_v26, %v6499_v48  ;;  %v6516_v13 = vshll.u32 %v8761_v42, 16 }
 0x2ea   : > { %v6530_v28 = vshll.u32 %v13395_v25, 16  ;;  %v6534_v22 = vshrl.u32 %v13395_v25, 16  ;;  %v6513_v62 = vor.u32 %v6512_v53, %v13376_v3  ;;  %v8953_v30 = vrot.slane %v13349_v12, 9 }
 0x2eb   : > { %v13399_v57 = vadd.f32 %v9565_v56, %v4143_v54  ;;  %v9454_v17 = vpop.f32.mrb[132].mxu1  ;;  %v9566_v14 = vpop.f32.mrb[132].mxu0  ;;  %v7295_v36 = vrot.slane %v7293_v23, 4  ;;  %v7296_v43 = vrot.slane %v8761_v42, 5  ;;  %v6523_v44 = vrot.slane %v6521_v38, 4  ;;  %v14186_v42 = vld [vmem:[#allocation18_spill] sm:$0xff] }
 0x2ec   : > { %v9455_v33 = vpop.f32.mrb[133].mxu1  ;;  %v9567_v11 = vpop.f32.mrb[133].mxu0  ;;  %v6526_v54 = vrot.slane %v6524_v16, 5  ;;  %v13410_v48 = vsel %vm11513_vm5, %v6480_v50, %v13345_v8  ;;  %v13414_v18 = vsel %vm11513_vm5, %v6490_v21, %v6494_v52  ;;  %v13416_v12 = vrot.slane %v6530_v28, 5  ;;  %v13420_v16 = vld [vmem:[%s11334_s11 + $0x100] sm:$0x11] }
 0x2ed   : > { %v9456_v40 = vadd.f32 %v9455_v33, %v9454_v17  ;;  %v9568_v56 = vadd.f32 %v9567_v11, %v9566_v14  ;;  %v9457_v63 = vpop.f32.mrb[134].mxu1  ;;  %v9569_v31 = vpop.f32.mrb[134].mxu0  ;;  %v6536_v26 = vrot.slane %v6534_v22, 4  ;;  %v6504_v38 = vrot.slane %v6503_v45, 4 }
 0x2ee   : > { %v9458_v4 = vpop.f32.mrb[135].mxu1  ;;  %v9570_v34 = vpop.f32.mrb[135].mxu0  ;;  %v14187_v33 = vcombine.low %v13290_v7, %v13298_v32  ;;  %v14188_v8 = vcombine.low %v13253_v58, %v13259_v46  ;;  %v9007_v50 = vcombine.high %v13392_v27, %v13403_v37  ;;  %v6518_v52 = vrot.slane %v6516_v13, 5  ;;  %v14189_v7 = vld [vmem:[#allocation19_spill] sm:$0xff] }
 0x2ef   : > { %v4144_v53 = vadd.f32 %v9456_v40, %v14186_v42  ;;  %v9459_v17 = vadd.f32 %v9458_v4, %v9457_v63  ;;  %v9571_v14 = vadd.f32 %v9570_v34, %v9569_v31  ;;  %v13432_v21 = vsel %vm11350_vm2, %v8953_v30, %v7293_v23  ;;  %v14193_v4 = vld [vmem:[#allocation20_spill] sm:$0xff] }
 0x2f0   : > { %7066 = vmatmul.mubr.bf16.gmra.mrb[240].mxu1 %v14187_v33  ;;  %7708 = vmatmul.mubr.bf16.gmra.mrb[240].mxu0 %v14188_v8  ;;  %v13436_v28 = vsel %vm11350_vm2, %v7295_v36, %v7296_v43  ;;  %v14190_v58 = vcombine.high %v13327_v19, %v13331_v49  ;;  %v14191_v46 = vcombine.high %v13302_v15, %v13310_v20  ;;  %v6514_v45 = vrot.slane %v6513_v62, 4  ;;  %v13530_v63 = vld [vmem:[%s11334_s11 + $0x128] sm:$0xff] }
 0x2f1   : > { %v13438_v22 = vadd.f32 %v9568_v56, %v4144_v53  ;;  %v4145_v32 = vadd.f32 %v9459_v17, %v14189_v7  ;;  %v6527_v23 = vor.u32 %v6526_v54, %v6523_v44  ;;  %v8911_v13 = vcombine.high %v13410_v48, %v13414_v18 }
 0x2f2   : > { %7073 = vmatprep.mubr.bf16.mxu1 %v14190_v58  ;;  %7715 = vmatprep.mubr.bf16.mxu0 %v14191_v46  ;;  %v6537_v30 = vor.u32 %v6536_v26, %v13416_v12  ;;  %v6540_v36 = vshll.u32 %v13420_v16, 16  ;;  %v13460_v62 = vsel %vm11513_vm5, %v6504_v38, %v13376_v3  ;;  %v7300_v31 = vrot.slane %v13395_v25, 5  ;;  %v13468_v26 = vld [vmem:[%s11334_s11 + $0x108] sm:$0xff] }
 0x2f3   : > { %v13453_v43 = vadd.f32 %v9571_v14, %v4145_v32  ;;  %v9460_v40 = vpop.f32.mrb[136].mxu1  ;;  %v9572_v56 = vpop.f32.mrb[136].mxu0  ;;  %v6545_v42 = vshrl.u32 %v13468_v26, 16  ;;  %v6548_v53 = vshll.u32 %v13468_v26, 16  ;;  %v13474_v25 = vsel %vm11513_vm5, %v6514_v45, %v6518_v52 }
 0x2f4   : > { %v9461_v44 = vpop.f32.mrb[137].mxu1  ;;  %v9573_v54 = vpop.f32.mrb[137].mxu0  ;;  %v6528_v33 = vrot.slane %v6527_v23, 4  ;;  %v6538_v32 = vrot.slane %v6537_v30, 4  ;;  %v6542_v58 = vrot.slane %v6540_v36, 5  ;;  %v8954_v46 = vrot.slane %v13386_v6, 9 }
 0x2f5   : > { %14192 = vst [vmem:[#allocation18_spill] sm:$0xff] %v13453_v43  ;;  %v9462_v17 = vadd.f32 %v9461_v44, %v9460_v40  ;;  %v9574_v14 = vadd.f32 %v9573_v54, %v9572_v56  ;;  %v9463_v3 = vpop.f32.mrb[138].mxu1  ;;  %v9575_v38 = vpop.f32.mrb[138].mxu0  ;;  %v7303_v34 = vrot.slane %v13420_v16, 5  ;;  %v7302_v44 = vrot.slane %v7300_v31, 4  ;;  %v13486_v6 = vld [vmem:[%s11334_s11 + $0x110] sm:$0xff] }
 0x2f6   : > { %v9464_v8 = vpop.f32.mrb[139].mxu1  ;;  %v9576_v7 = vpop.f32.mrb[139].mxu0  ;;  %v14194_v52 = vcombine.low %v13327_v19, %v13331_v49  ;;  %v14195_v45 = vcombine.low %v13302_v15, %v13310_v20  ;;  %v6547_v23 = vrot.slane %v6545_v42, 4  ;;  %v6550_v30 = vrot.slane %v6548_v53, 5  ;;  %v13496_v15 = vld [vmem:[%s11334_s11 + $0x118] sm:$0x11] }
 0x2f7   : > { %v4146_v11 = vadd.f32 %v9462_v17, %v14193_v4  ;;  %v9465_v40 = vadd.f32 %v9464_v8, %v9463_v3  ;;  %v9577_v56 = vadd.f32 %v9576_v7, %v9575_v38  ;;  %v6554_v16 = vshll.u32 %v13486_v6, 16  ;;  %v14197_v4 = vld [vmem:[#allocation7_spill] sm:$0xff] }
 0x2f8   : > { %7074 = vmatmul.mubr.bf16.gmra.mrb[244].mxu1 %v14194_v52  ;;  %7716 = vmatmul.mubr.bf16.gmra.mrb[244].mxu0 %v14195_v45  ;;  %v6558_v36 = vshrl.u32 %v13486_v6, 16  ;;  %v8913_v19 = vcombine.high %v13460_v62, %v13474_v25  ;;  %v13503_v49 = vsel %vm11513_vm5, %v6528_v33, %v13416_v12  ;;  %v13510_v42 = vld [vmem:[%s11334_s11 + $0x120] sm:$0xff]  ;;  %v13517_v3 = vsel %vm11350_vm2, %v8954_v46, %v7300_v31 }
 0x2f9   : > { %v13490_v54 = vadd.f32 %v9574_v14, %v4146_v11  ;;  %v4147_v17 = vadd.f32 %v9465_v40, %v14197_v4  ;;  %7081 = vmatprep.mubr.bf16.mxu1 %v8911_v13  ;;  %7723 = vmatprep.mubr.bf16.mxu0 %v9007_v50  ;;  %v13507_v11 = vsel %vm11513_vm5, %v6538_v32, %v6542_v58  ;;  %v6569_v50 = vshrl.u32 %v13510_v42, 16 }
 0x2fa   : > { %v13521_v12 = vsel %vm11350_vm2, %v7302_v44, %v7303_v34  ;;  %v6572_v38 = vshll.u32 %v13510_v42, 16  ;;  %v6551_v7 = vor.u32 %v6550_v30, %v6547_v23  ;;  %v6556_v32 = vrot.slane %v6554_v16, 5  ;;  %v14199_v16 = vld [vmem:[#allocation8_spill] sm:$0xff] }
 0x2fb   : > { %14196 = vst [vmem:[#allocation19_spill] sm:$0xff] %v13490_v54  ;;  %v13513_v13 = vadd.f32 %v9577_v56, %v4147_v17  ;;  %v9466_v53 = vpop.f32.mrb[140].mxu1  ;;  %v9578_v14 = vpop.f32.mrb[140].mxu0  ;;  %v6560_v58 = vrot.slane %v6558_v36, 4  ;;  %v6564_v40 = vshll.u32 %v13496_v15, 16  ;;  %v8955_v34 = vrot.slane %v13468_v26, 9 }
 0x2fc   : > { %v9467_v33 = vpop.f32.mrb[141].mxu1  ;;  %v9579_v8 = vpop.f32.mrb[141].mxu0  ;;  %v7307_v17 = vrot.slane %v13486_v6, 5  ;;  %v6571_v20 = vrot.slane %v6569_v50, 4  ;;  %v6578_v23 = vshll.u32 %v13530_v63, 16  ;;  %v6582_v30 = vshrl.u32 %v13530_v63, 16 }
 0x2fd   : > { %14198 = vst [vmem:[#allocation20_spill] sm:$0xff] %v13513_v13  ;;  %v9468_v56 = vadd.f32 %v9467_v33, %v9466_v53  ;;  %v9580_v52 = vadd.f32 %v9579_v8, %v9578_v14  ;;  %v9469_v45 = vpop.f32.mrb[142].mxu1  ;;  %v9581_v4 = vpop.f32.mrb[142].mxu0  ;;  %v6574_v33 = vrot.slane %v6572_v38, 5  ;;  %v14200_v8 = vcombine.low %v13410_v48, %v13414_v18  ;;  %v14203_v38 = vld [vmem:[#allocation9_spill] sm:$0xff] }
 0x2fe   : > { %v9470_v46 = vpop.f32.mrb[143].mxu1  ;;  %v9582_v44 = vpop.f32.mrb[143].mxu0  ;;  %v14201_v26 = vcombine.low %v13392_v27, %v13403_v37  ;;  %v8915_v6 = vcombine.high %v13503_v49, %v13507_v11  ;;  %v6552_v31 = vrot.slane %v6551_v7, 4  ;;  %v14204_v48 = vcombine.high %v13432_v21, %v13436_v28 }
 0x2ff   : > { %v4148_v36 = vadd.f32 %v9468_v56, %v14199_v16  ;;  %v9471_v53 = vadd.f32 %v9470_v46, %v9469_v45  ;;  %v9583_v14 = vadd.f32 %v9582_v44, %v9581_v4  ;;  %v6561_v56 = vor.u32 %v6560_v58, %v6556_v32 }
 0x300   : > { %7082 = vmatmul.mubr.bf16.gmra.mrb[248].mxu1 %v14200_v8  ;;  %7724 = vmatmul.mubr.bf16.gmra.mrb[248].mxu0 %v14201_v26  ;;  %v9011_v27 = vcombine.high %v13517_v3, %v13521_v12  ;;  %v7309_v37 = vrot.slane %v7307_v17, 4  ;;  %v7310_v18 = vrot.slane %v13496_v15, 5  ;;  %v6580_v46 = vrot.slane %v6578_v23, 5 }
 0x301   : > { %v13545_v45 = vadd.f32 %v9580_v52, %v4148_v36  ;;  %v4149_v4 = vadd.f32 %v9471_v53, %v14203_v38  ;;  %7089 = vmatprep.mubr.bf16.mxu1 %v8913_v19  ;;  %7731 = vmatprep.mubr.bf16.mxu0 %v14204_v48  ;;  %v6584_v7 = vrot.slane %v6582_v30, 4  ;;  %v6566_v16 = vrot.slane %v6564_v40, 5  ;;  %v13561_v36 = vld [vmem:[%s11334_s11 + $0x130] sm:$0x11]  ;;  %v13568_v30 = vld [vmem:[%s11334_s11 + $0x138] sm:$0xff]  ;;  %v13573_v48 = vld [vmem:[%s11334_s11 + $0x140] sm:$0xff] }
 0x302   : > { %v13558_v19 = vsel %vm11350_vm2, %v8955_v34, %v7307_v17  ;;  %v6575_v53 = vor.u32 %v6574_v33, %v6571_v20  ;;  %v13565_v15 = vsel %vm11513_vm5, %v6552_v31, %v6556_v32  ;;  %v6562_v23 = vrot.slane %v6561_v56, 4 }
 0x303   : > { %14202 = vst [vmem:[#allocation7_spill] sm:$0xff] %v13545_v45  ;;  %v13554_v44 = vadd.f32 %v9583_v14, %v4149_v4  ;;  %v9472_v58 = vpop.f32.mrb[144].mxu1  ;;  %v9584_v52 = vpop.f32.mrb[144].mxu0  ;;  %v6593_v14 = vshrl.u32 %v13568_v30, 16  ;;  %v6596_v40 = vshll.u32 %v13568_v30, 16  ;;  %v6602_v20 = vshll.u32 %v13573_v48, 16 }
 0x304   : > { %v9473_v8 = vpop.f32.mrb[145].mxu1  ;;  %v9585_v26 = vpop.f32.mrb[145].mxu0  ;;  %v6606_v33 = vshrl.u32 %v13573_v48, 16  ;;  %v13579_v31 = vsel %vm11350_vm2, %v7309_v37, %v7310_v18  ;;  %v6585_v56 = vor.u32 %v6584_v7, %v6580_v46  ;;  %v6576_v13 = vrot.slane %v6575_v53, 4  ;;  %v14210_v53 = vld [vmem:[#allocation11_spill] sm:$0xff] }
 0x305   : > { %14205 = vst [vmem:[#allocation8_spill] sm:$0xff] %v13554_v44  ;;  %v9474_v38 = vadd.f32 %v9473_v8, %v9472_v58  ;;  %v9586_v4 = vadd.f32 %v9585_v26, %v9584_v52  ;;  %v9475_v34 = vpop.f32.mrb[146].mxu1  ;;  %v9587_v17 = vpop.f32.mrb[146].mxu0  ;;  %v6588_v44 = vshll.u32 %v13561_v36, 16  ;;  %v7314_v58 = vrot.slane %v13530_v63, 5  ;;  %v14206_v52 = vld [vmem:[#allocation10_spill] sm:$0xff] }
 0x306   : > { %v9476_v50 = vpop.f32.mrb[147].mxu1  ;;  %v9588_v32 = vpop.f32.mrb[147].mxu0  ;;  %v14207_v54 = vcombine.low %v13460_v62, %v13474_v25  ;;  %v14208_v43 = vcombine.low %v13432_v21, %v13436_v28  ;;  %v13592_v37 = vsel %vm11513_vm5, %v6562_v23, %v6566_v16  ;;  %v8956_v63 = vrot.slane %v13510_v42, 9  ;;  %v13602_v16 = vld [vmem:[%s11334_s11 + $0x148] sm:$0x11] }
 0x307   : > { %v4150_v8 = vadd.f32 %v9474_v38, %v14206_v52  ;;  %v9477_v26 = vadd.f32 %v9476_v50, %v9475_v34  ;;  %v9589_v45 = vadd.f32 %v9588_v32, %v9587_v17  ;;  %v6595_v18 = vrot.slane %v6593_v14, 4  ;;  %v13619_v34 = vld [vmem:[%s11334_s11 + $0x150] sm:$0xff] }
 0x308   : > { %7090 = vmatmul.mubr.bf16.gmra.mrb[252].mxu1 %v14207_v54  ;;  %7732 = vmatmul.mubr.bf16.gmra.mrb[252].mxu0 %v14208_v43  ;;  %v6598_v7 = vrot.slane %v6596_v40, 5  ;;  %v13598_v62 = vrot.slane %v6602_v20, 5  ;;  %v6608_v25 = vrot.slane %v6606_v33, 4  ;;  %v6586_v21 = vrot.slane %v6585_v56, 4 }
 0x309   : > { %v13595_v50 = vadd.f32 %v9586_v4, %v4150_v8  ;;  %v4151_v38 = vadd.f32 %v9477_v26, %v14210_v53  ;;  %7097 = vmatprep.mubr.bf16.mxu1 %v8915_v6  ;;  %7739 = vmatprep.mubr.bf16.mxu0 %v9011_v27  ;;  %v6590_v28 = vrot.slane %v6588_v44, 5  ;;  %v7316_v43 = vrot.slane %v7314_v58, 4 }
 0x30a   : > { %v7317_v54 = vrot.slane %v13561_v36, 5  ;;  %v8917_v40 = vcombine.high %v13565_v15, %v13592_v37  ;;  %v9013_v6 = vcombine.high %v13558_v19, %v13579_v31  ;;  %v13612_v27 = vsel %vm11513_vm5, %v6576_v13, %v6580_v46 }
 0x30b   : > { %14209 = vst [vmem:[#allocation9_spill] sm:$0xff] %v13595_v50  ;;  %v13604_v42 = vadd.f32 %v9589_v45, %v4151_v38  ;;  %v9478_v23 = vpop.f32.mrb[148].mxu1  ;;  %v9590_v14 = vpop.f32.mrb[148].mxu0  ;;  %v13616_v36 = vsel %vm11350_vm2, %v8956_v63, %v7314_v58  ;;  %v6599_v45 = vor.u32 %v6598_v7, %v6595_v18  ;;  %v6617_v17 = vshrl.u32 %v13619_v34, 16  ;;  %v13634_v18 = vld [vmem:[%s11334_s11 + $0x158] sm:$0xff]  ;;  %v14212_v38 = vld [vmem:[#allocation12_spill] sm:$0xff] }
 0x30c   : > { %v9479_v44 = vpop.f32.mrb[149].mxu1  ;;  %v9591_v4 = vpop.f32.mrb[149].mxu0  ;;  %v6620_v20 = vshll.u32 %v13619_v34, 16  ;;  %v6609_v13 = vor.u32 %v6608_v25, %v13598_v62  ;;  %v6612_v46 = vshll.u32 %v13602_v16, 16  ;;  %v13627_v58 = vsel %vm11513_vm5, %v6586_v21, %v6590_v28 }
 0x30d   : > { %14211 = vst [vmem:[#allocation10_spill] sm:$0xff] %v13604_v42  ;;  %v9480_v33 = vadd.f32 %v9479_v44, %v9478_v23  ;;  %v9592_v32 = vadd.f32 %v9591_v4, %v9590_v14  ;;  %v9481_v56 = vpop.f32.mrb[150].mxu1  ;;  %v9593_v52 = vpop.f32.mrb[150].mxu0  ;;  %v13631_v63 = vsel %vm11350_vm2, %v7316_v43, %v7317_v54  ;;  %v6626_v7 = vshll.u32 %v13634_v18, 16 }
 0x30e   : > { %v9482_v8 = vpop.f32.mrb[151].mxu1  ;;  %v9594_v26 = vpop.f32.mrb[151].mxu0  ;;  %v6630_v53 = vshrl.u32 %v13634_v18, 16  ;;  %v7321_v44 = vrot.slane %v13573_v48, 5  ;;  %v14213_v21 = vcombine.low %v13503_v49, %v13507_v11  ;;  %v14214_v28 = vcombine.low %v13517_v3, %v13521_v12  ;;  %v13655_v3 = vld [vmem:[%s11334_s11 + $0x160] sm:$0x11] }
 0x30f   : > { %v4152_v25 = vadd.f32 %v9480_v33, %v14212_v38  ;;  %v9483_v23 = vadd.f32 %v9482_v8, %v9481_v56  ;;  %v9595_v14 = vadd.f32 %v9594_v26, %v9593_v52  ;;  %v6600_v43 = vrot.slane %v6599_v45, 4  ;;  %v14215_v33 = vld [vmem:[#allocation13_spill] sm:$0xff] }
 0x310   : > { %7098 = vmatmul.mubr.bf16.gmra.mrb[0].mxu1 %v14213_v21  ;;  %7740 = vmatmul.mubr.bf16.gmra.mrb[0].mxu0 %v14214_v28  ;;  %v8957_v54 = vrot.slane %v13568_v30, 9  ;;  %v6619_v4 = vrot.slane %v6617_v17, 4  ;;  %v6622_v42 = vrot.slane %v6620_v20, 5  ;;  %v6610_v48 = vrot.slane %v6609_v13, 4  ;;  %v14216_v28 = vld [vmem:[#allocation14_spill] sm:$0xff] }
 0x311   : > { %v13647_v50 = vadd.f32 %v9592_v32, %v4152_v25  ;;  %v4153_v56 = vadd.f32 %v9483_v23, %v14215_v33  ;;  %7105 = vmatprep.mubr.bf16.mxu1 %v8917_v40  ;;  %7747 = vmatprep.mubr.bf16.mxu0 %v9013_v6  ;;  %v6614_v52 = vrot.slane %v6612_v46, 5  ;;  %v8916_v49 = vcombine.low %v13565_v15, %v13592_v37 }
 0x312   : > { %v9012_v11 = vcombine.low %v13558_v19, %v13579_v31  ;;  %v13657_v12 = vrot.slane %v6626_v7, 5  ;;  %v6632_v30 = vrot.slane %v6630_v53, 4  ;;  %v9015_v40 = vcombine.high %v13616_v36, %v13631_v63 }
 0x313   : > { %v13659_v45 = vadd.f32 %v9595_v14, %v4153_v56  ;;  %v9484_v17 = vpop.f32.mrb[152].mxu1  ;;  %v9596_v20 = vpop.f32.mrb[152].mxu0  ;;  %v7323_v6 = vrot.slane %v7321_v44, 4  ;;  %v7324_v32 = vrot.slane %v13602_v16, 5  ;;  %v8919_v19 = vcombine.high %v13612_v27, %v13627_v58 }
 0x314   : > { %v9485_v13 = vpop.f32.mrb[153].mxu1  ;;  %v9597_v15 = vpop.f32.mrb[153].mxu0  ;;  %v13669_v31 = vsel %vm11513_vm5, %v6600_v43, %v13598_v62  ;;  %v13673_v37 = vsel %vm11350_vm2, %v8957_v54, %v7321_v44  ;;  %v6623_v46 = vor.u32 %v6622_v42, %v6619_v4  ;;  %v13677_v53 = vsel %vm11513_vm5, %v6610_v48, %v6614_v52  ;;  %v13683_v44 = vld [vmem:[%s11334_s11 + $0x168] sm:$0xff] }
 0x315   : > { %v9486_v8 = vadd.f32 %v9485_v13, %v9484_v17  ;;  %v9598_v26 = vadd.f32 %v9597_v15, %v9596_v20  ;;  %v9487_v7 = vpop.f32.mrb[154].mxu1  ;;  %v9599_v16 = vpop.f32.mrb[154].mxu0  ;;  %v6636_v38 = vshll.u32 %v13655_v3, 16  ;;  %v6633_v62 = vor.u32 %v6632_v30, %v13657_v12  ;;  %v14218_v20 = vld [vmem:[#allocation15_spill] sm:$0xff] }
 0x316   : > { %v9488_v25 = vpop.f32.mrb[155].mxu1  ;;  %v9600_v23 = vpop.f32.mrb[155].mxu0  ;;  %v7328_v14 = vrot.slane %v13634_v18, 5  ;;  %v6641_v42 = vshrl.u32 %v13683_v44, 16  ;;  %v6644_v21 = vshll.u32 %v13683_v44, 16  ;;  %v13690_v33 = vsel %vm11350_vm2, %v7323_v6, %v7324_v32  ;;  %v13694_v18 = vld [vmem:[%s11334_s11 + $0x170] sm:$0xff] }
 0x317   : > { %v4154_v43 = vadd.f32 %v9486_v8, %v14216_v28  ;;  %v9489_v54 = vadd.f32 %v9488_v25, %v9487_v7  ;;  %v9601_v4 = vadd.f32 %v9600_v23, %v9599_v16  ;;  %v6624_v56 = vrot.slane %v6623_v46, 4  ;;  %v13713_v25 = vld [vmem:[%s11334_s11 + $0x178] sm:$0x11] }
 0x318   : > { %7106 = vmatmul.mubr.bf16.gmra.mrb[4].mxu1 %v8916_v49  ;;  %7748 = vmatmul.mubr.bf16.gmra.mrb[4].mxu0 %v9012_v11  ;;  %v8958_v48 = vrot.slane %v13619_v34, 9  ;;  %v6650_v52 = vshll.u32 %v13694_v18, 16  ;;  %v6654_v30 = vshrl.u32 %v13694_v18, 16  ;;  %v6638_v6 = vrot.slane %v6636_v38, 5 }
 0x319   : > { %v13698_v17 = vadd.f32 %v9598_v26, %v4154_v43  ;;  %v4155_v13 = vadd.f32 %v9489_v54, %v14218_v20  ;;  %7113 = vmatprep.mubr.bf16.mxu1 %v8919_v19  ;;  %7755 = vmatprep.mubr.bf16.mxu0 %v9015_v40  ;;  %v7331_v49 = vrot.slane %v13655_v3, 5  ;;  %v6634_v11 = vrot.slane %v6633_v62, 4  ;;  %v14220_v20 = vld [vmem:[#allocation16_spill] sm:$0xff] }
 0x31a   : > { %v7330_v32 = vrot.slane %v7328_v14, 4  ;;  %v6643_v15 = vrot.slane %v6641_v42, 4  ;;  %v6646_v34 = vrot.slane %v6644_v21, 5  ;;  %v8918_v26 = vcombine.low %v13612_v27, %v13627_v58 }
 0x31b   : > { %14217 = vst [vmem:[#allocation11_spill] sm:$0xff] %v13698_v17  ;;  %v13702_v46 = vadd.f32 %v9601_v4, %v4155_v13  ;;  %v9490_v8 = vpop.f32.mrb[156].mxu1  ;;  %v9602_v7 = vpop.f32.mrb[156].mxu0  ;;  %v9014_v16 = vcombine.low %v13616_v36, %v13631_v63  ;;  %v8921_v3 = vcombine.high %v13669_v31, %v13677_v53  ;;  %v13715_v23 = vrot.slane %v6650_v52, 5 }
 0x31c   : > { %v9491_v19 = vpop.f32.mrb[157].mxu1  ;;  %v9603_v40 = vpop.f32.mrb[157].mxu0  ;;  %v6656_v62 = vrot.slane %v6654_v30, 4  ;;  %v9017_v36 = vcombine.high %v13673_v37, %v13690_v33  ;;  %v13722_v58 = vsel %vm11513_vm5, %v6624_v56, %v13657_v12  ;;  %v13726_v54 = vsel %vm11513_vm5, %v6634_v11, %v6638_v6 }
 0x31d   : > { %14219 = vst [vmem:[#allocation12_spill] sm:$0xff] %v13702_v46  ;;  %v9492_v42 = vadd.f32 %v9491_v19, %v9490_v8  ;;  %v9604_v21 = vadd.f32 %v9603_v40, %v9602_v7  ;;  %v9493_v28 = vpop.f32.mrb[158].mxu1  ;;  %v9605_v27 = vpop.f32.mrb[158].mxu0  ;;  %v13730_v4 = vsel %vm11350_vm2, %v8958_v48, %v7328_v14  ;;  %v13734_v52 = vsel %vm11350_vm2, %v7330_v32, %v7331_v49  ;;  %v13741_v14 = vld [vmem:[%s11334_s11 + $0x180] sm:$0xff]  ;;  %v13749_v7 = vld [vmem:[%s11334_s11 + $0x188] sm:$0xff] }
 0x31e   : > { %v9494_v63 = vpop.f32.mrb[159].mxu1  ;;  %v9606_v43 = vpop.f32.mrb[159].mxu0  ;;  %v6647_v30 = vor.u32 %v6646_v34, %v6643_v15  ;;  %v6660_v8 = vshll.u32 %v13713_v25, 16  ;;  %v6657_v6 = vor.u32 %v6656_v62, %v13715_v23  ;;  %v7335_v11 = vrot.slane %v13694_v18, 5  ;;  %v14222_v15 = vld [vmem:[#allocation17_spill] sm:$0xff] }
 0x31f   : > { %v4156_v13 = vadd.f32 %v9492_v42, %v14220_v20  ;;  %v9495_v12 = vadd.f32 %v9494_v63, %v9493_v28  ;;  %v9607_v56 = vadd.f32 %v9606_v43, %v9605_v27  ;;  %v6665_v48 = vshrl.u32 %v13741_v14, 16 }
 0x320   : > { %7114 = vmatmul.mubr.bf16.gmra.mrb[8].mxu1 %v8918_v26  ;;  %7756 = vmatmul.mubr.bf16.gmra.mrb[8].mxu0 %v9014_v16  ;;  %v6668_v49 = vshll.u32 %v13741_v14, 16  ;;  %v6674_v26 = vshll.u32 %v13749_v7, 16  ;;  %v6678_v16 = vshrl.u32 %v13749_v7, 16  ;;  %v9016_v18 = vcombine.low %v13673_v37, %v13690_v33 }
 0x321   : > { %v13745_v32 = vadd.f32 %v9604_v21, %v4156_v13  ;;  %v4157_v34 = vadd.f32 %v9495_v12, %v14222_v15  ;;  %7121 = vmatprep.mubr.bf16.mxu1 %v8921_v3  ;;  %7763 = vmatprep.mubr.bf16.mxu0 %v9017_v36  ;;  %v8923_v19 = vcombine.high %v13722_v58, %v13726_v54  ;;  %v8959_v62 = vrot.slane %v13683_v44, 9 }
 0x322   : > { %v9019_v40 = vcombine.high %v13730_v4, %v13734_v52  ;;  %v6648_v28 = vrot.slane %v6647_v30, 4  ;;  %v6662_v27 = vrot.slane %v6660_v8, 5  ;;  %v7338_v36 = vrot.slane %v13713_v25, 5  ;;  %v8782_v8 = vld [vmem:[%s11334_s11 + $0x190] sm:$0x11] }
 0x323   : > { %14221 = vst [vmem:[#allocation13_spill] sm:$0xff] %v13745_v32  ;;  %v13760_v42 = vadd.f32 %v9607_v56, %v4157_v34  ;;  %v9624_v3 = vpop.f32.mrb[160].mxu1  ;;  %v9736_v21 = vpop.f32.mrb[160].mxu0  ;;  %v6658_v37 = vrot.slane %v6657_v6, 4  ;;  %v7337_v33 = vrot.slane %v7335_v11, 4  ;;  %v6667_v20 = vrot.slane %v6665_v48, 4 }
 0x324   : > { %v9625_v63 = vpop.f32.mrb[161].mxu1  ;;  %v9737_v43 = vpop.f32.mrb[161].mxu0  ;;  %v6670_v13 = vrot.slane %v6668_v49, 5  ;;  %v6676_v44 = vrot.slane %v6674_v26, 5  ;;  %v6680_v56 = vrot.slane %v6678_v16, 4  ;;  %v9018_v30 = vcombine.low %v13730_v4, %v13734_v52  ;;  %v14224_v6 = vld [vmem:[#allocation21_spill] sm:$0xff] }
 0x325   : > { %14223 = vst [vmem:[#allocation14_spill] sm:$0xff] %v13760_v42  ;;  %v9626_v12 = vadd.f32 %v9625_v63, %v9624_v3  ;;  %v9738_v15 = vadd.f32 %v9737_v43, %v9736_v21  ;;  %v9627_v38 = vpop.f32.mrb[162].mxu1  ;;  %v9739_v32 = vpop.f32.mrb[162].mxu0  ;;  %v13767_v25 = vsel %vm11350_vm2, %v8959_v62, %v7335_v11  ;;  %v13774_v26 = vsel %vm11513_vm5, %v6648_v28, %v13715_v23  ;;  %v14227_v23 = vld [vmem:[#allocation22_spill] sm:$0xff]  ;;  %v13797_v21 = vld [vmem:[%s11334_s11 + $0x1a0] sm:$0xff] }
 0x326   : > { %v9628_v34 = vpop.f32.mrb[163].mxu1  ;;  %v9740_v42 = vpop.f32.mrb[163].mxu0  ;;  %v14225_v16 = vcombine.low %v13669_v31, %v13677_v53  ;;  %v13781_v4 = vsel %vm11513_vm5, %v6658_v37, %v6662_v27  ;;  %v13785_v52 = vsel %vm11350_vm2, %v7337_v33, %v7338_v36  ;;  %v7342_v11 = vrot.slane %v13749_v7, 5 }
 0x327   : > { %v5666_v46 = vadd.f32 %v9626_v12, %v14224_v6  ;;  %v9629_v48 = vadd.f32 %v9628_v34, %v9627_v38  ;;  %v9741_v49 = vadd.f32 %v9740_v42, %v9739_v32  ;;  %v6671_v38 = vor.u32 %v6670_v13, %v6667_v20 }
 0x328   : > { %7122 = vmatmul.mubr.bf16.gmra.mrb[12].mxu1 %v14225_v16  ;;  %7764 = vmatmul.mubr.bf16.gmra.mrb[12].mxu0 %v9016_v18  ;;  %v6681_v31 = vor.u32 %v6680_v56, %v6676_v44  ;;  %v6684_v53 = vshll.u32 %v8782_v8, 16  ;;  %v13792_v18 = vld [vmem:[%s11334_s11 + $0x198] sm:$0xff]  ;;  %v6698_v28 = vshll.u32 %v13797_v21, 16  ;;  %v6702_v7 = vshrl.u32 %v13797_v21, 16 }
 0x329   : > { %v13788_v32 = vadd.f32 %v9738_v15, %v5666_v46  ;;  %v5667_v62 = vadd.f32 %v9629_v48, %v14227_v23  ;;  %7129 = vmatprep.mubr.bf16.mxu1 %v8923_v19  ;;  %7771 = vmatprep.mubr.bf16.mxu0 %v9019_v40  ;;  %v6689_v42 = vshrl.u32 %v13792_v18, 16  ;;  %v6692_v3 = vshll.u32 %v13792_v18, 16 }
 0x32a   : > { %v8922_v19 = vcombine.low %v13722_v58, %v13726_v54  ;;  %v8925_v40 = vcombine.high %v13774_v26, %v13781_v4  ;;  %v9021_v63 = vcombine.high %v13767_v25, %v13785_v52  ;;  %v6672_v33 = vrot.slane %v6671_v38, 4 }
 0x32b   : > { %14226 = vst [vmem:[#allocation15_spill] sm:$0xff] %v13788_v32  ;;  %v13801_v46 = vadd.f32 %v9741_v49, %v5667_v62  ;;  %v9630_v27 = vpop.f32.mrb[164].mxu1  ;;  %v9742_v36 = vpop.f32.mrb[164].mxu0  ;;  %v8960_v20 = vrot.slane %v13741_v14, 9  ;;  %v7344_v13 = vrot.slane %v7342_v11, 4  ;;  %v7345_v12 = vrot.slane %v8782_v8, 5 }
 0x32c   : > { %v9631_v43 = vpop.f32.mrb[165].mxu1  ;;  %v9743_v37 = vpop.f32.mrb[165].mxu0  ;;  %v6682_v48 = vrot.slane %v6681_v31, 4  ;;  %v6686_v58 = vrot.slane %v6684_v53, 5  ;;  %v6691_v16 = vrot.slane %v6689_v42, 4  ;;  %v6694_v23 = vrot.slane %v6692_v3, 5 }
 0x32d   : > { %14228 = vst [vmem:[#allocation16_spill] sm:$0xff] %v13801_v46  ;;  %v9632_v15 = vadd.f32 %v9631_v43, %v9630_v27  ;;  %v9744_v56 = vadd.f32 %v9743_v37, %v9742_v36  ;;  %v9633_v34 = vpop.f32.mrb[166].mxu1  ;;  %v9745_v6 = vpop.f32.mrb[166].mxu0  ;;  %v6700_v62 = vrot.slane %v6698_v28, 5  ;;  %v6704_v46 = vrot.slane %v6702_v7, 4 }
 0x32e   : > { %v9634_v54 = vpop.f32.mrb[167].mxu1  ;;  %v9746_v49 = vpop.f32.mrb[167].mxu0  ;;  %v8785_v14 = vld [vmem:[%s11334_s11 + $0x1a8] sm:$0x11]  ;;  %v13814_v8 = vsel %vm11513_vm5, %v6672_v33, %v6676_v44  ;;  %v13818_v31 = vsel %vm11350_vm2, %v8960_v20, %v7342_v11  ;;  %v13822_v53 = vsel %vm11350_vm2, %v7344_v13, %v7345_v12  ;;  %v6695_v3 = vor.u32 %v6694_v23, %v6691_v16 }
 0x32f   : > { %v5668_v32 = vadd.f32 %v9632_v15, %v13011_v60  ;;  %v9635_v38 = vadd.f32 %v9634_v54, %v9633_v34  ;;  %v9747_v17 = vadd.f32 %v9746_v49, %v9745_v6  ;;  %v6705_v44 = vor.u32 %v6704_v46, %v6700_v62 }
 0x330   : > { %7130 = vmatmul.mubr.bf16.gmra.mrb[16].mxu1 %v8922_v19  ;;  %7772 = vmatmul.mubr.bf16.gmra.mrb[16].mxu0 %v9018_v30  ;;  %v6687_v30 = vsel %vm11513_vm5, %v6682_v48, %v6686_v58  ;;  %v6708_v28 = vshll.u32 %v8785_v14, 16  ;;  %v7349_v7 = vrot.slane %v13797_v21, 5  ;;  %v9023_v46 = vcombine.high %v13818_v31, %v13822_v53 }
 0x331   : > { %v13824_v42 = vadd.f32 %v9744_v56, %v5668_v32  ;;  %v5669_v60 = vadd.f32 %v9635_v38, %v13026_v2  ;;  %7137 = vmatprep.mubr.bf16.mxu1 %v8925_v40  ;;  %7779 = vmatprep.mubr.bf16.mxu0 %v9021_v63  ;;  %v8924_v32 = vcombine.low %v13774_v26, %v13781_v4  ;;  %v8961_v33 = vrot.slane %v13792_v18, 9 }
 0x332   : > { %v9020_v2 = vcombine.low %v13767_v25, %v13785_v52  ;;  %v8927_v40 = vcombine.high %v13814_v8, %v6687_v30  ;;  %v7352_v20 = vrot.slane %v8785_v14, 5  ;;  %v6696_v15 = vrot.slane %v6695_v3, 4 }
 0x333   : > { %v13830_v11 = vadd.f32 %v9747_v17, %v5669_v60  ;;  %v9636_v27 = vpop.f32.mrb[168].mxu1  ;;  %v9748_v36 = vpop.f32.mrb[168].mxu0  ;;  %v6706_v56 = vrot.slane %v6705_v44, 4  ;;  %v6710_v26 = vrot.slane %v6708_v28, 5  ;;  %v7351_v4 = vrot.slane %v7349_v7, 4 }
 0x334   : > { %v9637_v19 = vpop.f32.mrb[169].mxu1  ;;  %v9749_v43 = vpop.f32.mrb[169].mxu0  ;;  %v6701_v18 = vsel %vm11513_vm5, %v6696_v15, %v6700_v62  ;;  %v7350_v54 = vsel %vm11350_vm2, %v8961_v33, %v7349_v7  ;;  %v8926_v14 = vcombine.low %v13814_v8, %v6687_v30  ;;  %v9022_v62 = vcombine.low %v13818_v31, %v13822_v53 }
 0x335   : > { %v9638_v63 = vadd.f32 %v9637_v19, %v9636_v27  ;;  %v9750_v37 = vadd.f32 %v9749_v43, %v9748_v36  ;;  %v9639_v21 = vpop.f32.mrb[170].mxu1  ;;  %v9751_v17 = vpop.f32.mrb[170].mxu0  ;;  %v6711_v58 = vsel %vm11513_vm5, %v6706_v56, %v6710_v26 }
 0x336   : > { %v9640_v13 = vpop.f32.mrb[171].mxu1  ;;  %v9752_v12 = vpop.f32.mrb[171].mxu0  ;;  %v8929_v28 = vcombine.high %v6701_v18, %v6711_v58 }
 0x337   : > { %v5670_v25 = vadd.f32 %v9638_v63, %v13068_v29  ;;  %v9641_v52 = vadd.f32 %v9640_v13, %v9639_v21  ;;  %v9753_v34 = vadd.f32 %v9752_v12, %v9751_v17  ;;  %v7353_v29 = vsel %vm11350_vm2, %v7351_v4, %v7352_v20 }
 0x338   : > { %7138 = vmatmul.mubr.bf16.gmra.mrb[20].mxu1 %v8924_v32  ;;  %7780 = vmatmul.mubr.bf16.gmra.mrb[20].mxu0 %v9020_v2  ;;  %v9025_v7 = vcombine.high %v7350_v54, %v7353_v29  ;;  %v9024_v63 = vcombine.low %v7350_v54, %v7353_v29 }
 0x339   : > { %v13841_v6 = vadd.f32 %v9750_v37, %v5670_v25  ;;  %v5671_v48 = vadd.f32 %v9641_v52, %v13078_v39  ;;  %7145 = vmatprep.mubr.bf16.mxu1 %v8927_v40  ;;  %7787 = vmatprep.mubr.bf16.mxu0 %v9023_v46  ;;  %v8928_v46 = vcombine.low %v6701_v18, %v6711_v58 }
 0x33b   : > { %v13852_v49 = vadd.f32 %v9753_v34, %v5671_v48  ;;  %v9642_v16 = vpop.f32.mrb[172].mxu1  ;;  %v9754_v23 = vpop.f32.mrb[172].mxu0 }
 0x33c   : > { %v9643_v38 = vpop.f32.mrb[173].mxu1  ;;  %v9755_v39 = vpop.f32.mrb[173].mxu0 }
 0x33d   : > { %v9644_v60 = vadd.f32 %v9643_v38, %v9642_v16  ;;  %v9756_v61 = vadd.f32 %v9755_v39, %v9754_v23  ;;  %v9645_v3 = vpop.f32.mrb[174].mxu1  ;;  %v9757_v44 = vpop.f32.mrb[174].mxu0 }
 0x33e   : > { %v9646_v27 = vpop.f32.mrb[175].mxu1  ;;  %v9758_v51 = vpop.f32.mrb[175].mxu0 }
 0x33f   : > { %v5672_v36 = vadd.f32 %v9644_v60, %v13116_v24  ;;  %v9647_v19 = vadd.f32 %v9646_v27, %v9645_v3  ;;  %v9759_v43 = vadd.f32 %v9758_v51, %v9757_v44 }
 0x340   : > { %7146 = vmatmul.mubr.bf16.gmra.mrb[24].mxu1 %v8926_v14  ;;  %7788 = vmatmul.mubr.bf16.gmra.mrb[24].mxu0 %v9022_v62 }
 0x341   : > { %v13858_v32 = vadd.f32 %v9756_v61, %v5672_v36  ;;  %v5673_v8 = vadd.f32 %v9647_v19, %v13132_v59  ;;  %7153 = vmatprep.mubr.bf16.mxu1 %v8929_v28  ;;  %7795 = vmatprep.mubr.bf16.mxu0 %v9025_v7 }
 0x343   : > { %v13861_v31 = vadd.f32 %v9759_v43, %v5673_v8  ;;  %v9648_v53 = vpop.f32.mrb[176].mxu1  ;;  %v9760_v30 = vpop.f32.mrb[176].mxu0 }
 0x344   : > { %v9649_v2 = vpop.f32.mrb[177].mxu1  ;;  %v9761_v40 = vpop.f32.mrb[177].mxu0 }
 0x345   : > { %v9650_v37 = vadd.f32 %v9649_v2, %v9648_v53  ;;  %v9762_v24 = vadd.f32 %v9761_v40, %v9760_v30  ;;  %v9651_v21 = vpop.f32.mrb[178].mxu1  ;;  %v9763_v17 = vpop.f32.mrb[178].mxu0 }
 0x346   : > { %v9652_v33 = vpop.f32.mrb[179].mxu1  ;;  %v9764_v20 = vpop.f32.mrb[179].mxu0 }
 0x347   : > { %v5674_v13 = vadd.f32 %v9650_v37, %v13169_v10  ;;  %v9653_v12 = vadd.f32 %v9652_v33, %v9651_v21  ;;  %v9765_v59 = vadd.f32 %v9764_v20, %v9763_v17 }
 0x348   : > { %7154 = vmatmul.mubr.bf16.gmra.mrb[28].mxu1 %v8928_v46  ;;  %7796 = vmatmul.mubr.bf16.gmra.mrb[28].mxu0 %v9024_v63 }
 0x349   : > { %v13864_v15 = vadd.f32 %v9762_v24, %v5674_v13  ;;  %v5675_v56 = vadd.f32 %v9653_v12, %v13189_v35 }
 0x34b   : > { %v13867_v26 = vadd.f32 %v9765_v59, %v5675_v56  ;;  %v9654_v4 = vpop.f32.mrb[180].mxu1  ;;  %v9766_v25 = vpop.f32.mrb[180].mxu0 }
 0x34c   : > { %v9655_v52 = vpop.f32.mrb[181].mxu1  ;;  %v9767_v34 = vpop.f32.mrb[181].mxu0 }
 0x34d   : > { %v9656_v48 = vadd.f32 %v9655_v52, %v9654_v4  ;;  %v9768_v18 = vadd.f32 %v9767_v34, %v9766_v25  ;;  %v9657_v58 = vpop.f32.mrb[182].mxu1  ;;  %v9769_v54 = vpop.f32.mrb[182].mxu0 }
 0x34e   : > { %v9658_v29 = vpop.f32.mrb[183].mxu1  ;;  %v9770_v10 = vpop.f32.mrb[183].mxu0 }
 0x34f   : > { %v5676_v16 = vadd.f32 %v9656_v48, %v13225_v1  ;;  %v9659_v23 = vadd.f32 %v9658_v29, %v9657_v58  ;;  %v9771_v38 = vadd.f32 %v9770_v10, %v9769_v54 }
 0x351   : > { %v13870_v39 = vadd.f32 %v9768_v18, %v5676_v16  ;;  %v5677_v35 = vadd.f32 %v9659_v23, %v13241_v41 }
 0x353   : > { %v13873_v14 = vadd.f32 %v9771_v38, %v5677_v35  ;;  %v9660_v62 = vpop.f32.mrb[184].mxu1  ;;  %v9772_v60 = vpop.f32.mrb[184].mxu0 }
 0x354   : > { %v9661_v61 = vpop.f32.mrb[185].mxu1  ;;  %v9773_v3 = vpop.f32.mrb[185].mxu0 }
 0x355   : > { %v9662_v44 = vadd.f32 %v9661_v61, %v9660_v62  ;;  %v9774_v28 = vadd.f32 %v9773_v3, %v9772_v60  ;;  %v9663_v7 = vpop.f32.mrb[186].mxu1  ;;  %v9775_v27 = vpop.f32.mrb[186].mxu0 }
 0x356   : > { %v9664_v51 = vpop.f32.mrb[187].mxu1  ;;  %v9776_v36 = vpop.f32.mrb[187].mxu0 }
 0x357   : > { %v5678_v1 = vadd.f32 %v9662_v44, %v13268_v55  ;;  %v9665_v19 = vadd.f32 %v9664_v51, %v9663_v7  ;;  %v9777_v43 = vadd.f32 %v9776_v36, %v9775_v27 }
 0x359   : > { %v13876_v8 = vadd.f32 %v9774_v28, %v5678_v1  ;;  %v5679_v41 = vadd.f32 %v9665_v19, %v13285_v5 }
 0x35b   : > { %v13879_v53 = vadd.f32 %v9777_v43, %v5679_v41  ;;  %v9666_v30 = vpop.f32.mrb[188].mxu1  ;;  %v9778_v2 = vpop.f32.mrb[188].mxu0  ;;  %v14229_v43 = vld [vmem:[#allocation18_spill] sm:$0xff] }
 0x35c   : > { %v9667_v40 = vpop.f32.mrb[189].mxu1  ;;  %v9779_v46 = vpop.f32.mrb[189].mxu0 }
 0x35d   : > { %v9668_v63 = vadd.f32 %v9667_v40, %v9666_v30  ;;  %v9780_v37 = vadd.f32 %v9779_v46, %v9778_v2  ;;  %v9669_v24 = vpop.f32.mrb[190].mxu1  ;;  %v9781_v21 = vpop.f32.mrb[190].mxu0 }
 0x35e   : > { %v9670_v17 = vpop.f32.mrb[191].mxu1  ;;  %v9782_v33 = vpop.f32.mrb[191].mxu0 }
 0x35f   : > { %v5680_v55 = vadd.f32 %v9668_v63, %v13333_v9  ;;  %v9671_v20 = vadd.f32 %v9670_v17, %v9669_v24  ;;  %v9783_v13 = vadd.f32 %v9782_v33, %v9781_v21 }
 0x361   : > { %v13882_v12 = vadd.f32 %v9780_v37, %v5680_v55  ;;  %v5681_v5 = vadd.f32 %v9671_v20, %v13352_v0  ;;  %v14230_v55 = vld [vmem:[#allocation19_spill] sm:$0xff] }
 0x363   : > { %v13885_v59 = vadd.f32 %v9783_v13, %v5681_v5  ;;  %v9672_v56 = vpop.f32.mrb[192].mxu1  ;;  %v9784_v4 = vpop.f32.mrb[192].mxu0 }
 0x364   : > { %v9673_v25 = vpop.f32.mrb[193].mxu1  ;;  %v9785_v52 = vpop.f32.mrb[193].mxu0 }
 0x365   : > { %v9674_v34 = vadd.f32 %v9673_v25, %v9672_v56  ;;  %v9786_v48 = vadd.f32 %v9785_v52, %v9784_v4  ;;  %v9675_v18 = vpop.f32.mrb[194].mxu1  ;;  %v9787_v58 = vpop.f32.mrb[194].mxu0  ;;  %v14231_v56 = vld [vmem:[#allocation20_spill] sm:$0xff] }
 0x366   : > { %v9676_v54 = vpop.f32.mrb[195].mxu1  ;;  %v9788_v29 = vpop.f32.mrb[195].mxu0 }
 0x367   : > { %v5682_v9 = vadd.f32 %v9674_v34, %v13379_v47  ;;  %v9677_v10 = vadd.f32 %v9676_v54, %v9675_v18  ;;  %v9789_v16 = vadd.f32 %v9788_v29, %v9787_v58 }
 0x369   : > { %v13888_v23 = vadd.f32 %v9786_v48, %v5682_v9  ;;  %v5683_v0 = vadd.f32 %v9677_v10, %v13399_v57 }
 0x36b   : > { %v13891_v38 = vadd.f32 %v9789_v16, %v5683_v0  ;;  %v9678_v35 = vpop.f32.mrb[196].mxu1  ;;  %v9790_v62 = vpop.f32.mrb[196].mxu0  ;;  %v14232_v0 = vld [vmem:[#allocation7_spill] sm:$0xff] }
 0x36c   : > { %v9679_v60 = vpop.f32.mrb[197].mxu1  ;;  %v9791_v61 = vpop.f32.mrb[197].mxu0 }
 0x36d   : > { %v9680_v3 = vadd.f32 %v9679_v60, %v9678_v35  ;;  %v9792_v44 = vadd.f32 %v9791_v61, %v9790_v62  ;;  %v9681_v28 = vpop.f32.mrb[198].mxu1  ;;  %v9793_v7 = vpop.f32.mrb[198].mxu0 }
 0x36e   : > { %v9682_v27 = vpop.f32.mrb[199].mxu1  ;;  %v9794_v51 = vpop.f32.mrb[199].mxu0 }
 0x36f   : > { %v5684_v47 = vadd.f32 %v9680_v3, %v13438_v22  ;;  %v9683_v36 = vadd.f32 %v9682_v27, %v9681_v28  ;;  %v9795_v1 = vadd.f32 %v9794_v51, %v9793_v7  ;;  %v14233_v3 = vld [vmem:[#allocation8_spill] sm:$0xff] }
 0x371   : > { %v13894_v19 = vadd.f32 %v9792_v44, %v5684_v47  ;;  %v5685_v57 = vadd.f32 %v9683_v36, %v14229_v43 }
 0x373   : > { %v13897_v41 = vadd.f32 %v9795_v1, %v5685_v57  ;;  %v9684_v30 = vpop.f32.mrb[200].mxu1  ;;  %v9796_v2 = vpop.f32.mrb[200].mxu0 }
 0x374   : > { %v9685_v40 = vpop.f32.mrb[201].mxu1  ;;  %v9797_v46 = vpop.f32.mrb[201].mxu0 }
 0x375   : > { %v9686_v63 = vadd.f32 %v9685_v40, %v9684_v30  ;;  %v9798_v37 = vadd.f32 %v9797_v46, %v9796_v2  ;;  %v9687_v24 = vpop.f32.mrb[202].mxu1  ;;  %v9799_v21 = vpop.f32.mrb[202].mxu0  ;;  %v14234_v40 = vld [vmem:[#allocation9_spill] sm:$0xff] }
 0x376   : > { %v9688_v17 = vpop.f32.mrb[203].mxu1  ;;  %v9800_v33 = vpop.f32.mrb[203].mxu0 }
 0x377   : > { %v5686_v22 = vadd.f32 %v9686_v63, %v14230_v55  ;;  %v9689_v20 = vadd.f32 %v9688_v17, %v9687_v24  ;;  %v9801_v13 = vadd.f32 %v9800_v33, %v9799_v21  ;;  %v14235_v21 = vld [vmem:[#allocation10_spill] sm:$0xff] }
 0x379   : > { %v13900_v5 = vadd.f32 %v9798_v37, %v5686_v22  ;;  %v5687_v4 = vadd.f32 %v9689_v20, %v14231_v56 }
 0x37b   : > { %v13903_v25 = vadd.f32 %v9801_v13, %v5687_v4  ;;  %v9690_v52 = vpop.f32.mrb[204].mxu1  ;;  %v9802_v34 = vpop.f32.mrb[204].mxu0 }
 0x37c   : > { %v9691_v48 = vpop.f32.mrb[205].mxu1  ;;  %v9803_v18 = vpop.f32.mrb[205].mxu0 }
 0x37d   : > { %v9692_v58 = vadd.f32 %v9691_v48, %v9690_v52  ;;  %v9804_v54 = vadd.f32 %v9803_v18, %v9802_v34  ;;  %v9693_v29 = vpop.f32.mrb[206].mxu1  ;;  %v9805_v9 = vpop.f32.mrb[206].mxu0 }
 0x37e   : > { %v9694_v10 = vpop.f32.mrb[207].mxu1  ;;  %v9806_v16 = vpop.f32.mrb[207].mxu0 }
 0x37f   : > { %v5688_v35 = vadd.f32 %v9692_v58, %v14232_v0  ;;  %v9695_v62 = vadd.f32 %v9694_v10, %v9693_v29  ;;  %v9807_v60 = vadd.f32 %v9806_v16, %v9805_v9 }
 0x381   : > { %v13906_v61 = vadd.f32 %v9804_v54, %v5688_v35  ;;  %v5689_v44 = vadd.f32 %v9695_v62, %v14233_v3 }
 0x383   : > { %v13909_v28 = vadd.f32 %v9807_v60, %v5689_v44  ;;  %v9696_v7 = vpop.f32.mrb[208].mxu1  ;;  %v9808_v27 = vpop.f32.mrb[208].mxu0 }
 0x384   : > { %v9697_v51 = vpop.f32.mrb[209].mxu1  ;;  %v9809_v47 = vpop.f32.mrb[209].mxu0 }
 0x385   : > { %v9698_v36 = vadd.f32 %v9697_v51, %v9696_v7  ;;  %v9810_v1 = vadd.f32 %v9809_v47, %v9808_v27  ;;  %v9699_v43 = vpop.f32.mrb[210].mxu1  ;;  %v9811_v57 = vpop.f32.mrb[210].mxu0 }
 0x386   : > { %v9700_v30 = vpop.f32.mrb[211].mxu1  ;;  %v9812_v2 = vpop.f32.mrb[211].mxu0 }
 0x387   : > { %v5690_v46 = vadd.f32 %v9698_v36, %v14234_v40  ;;  %v9701_v63 = vadd.f32 %v9700_v30, %v9699_v43  ;;  %v9813_v37 = vadd.f32 %v9812_v2, %v9811_v57 }
 0x389   : > { %v13912_v24 = vadd.f32 %v9810_v1, %v5690_v46  ;;  %v5691_v17 = vadd.f32 %v9701_v63, %v14235_v21 }
 0x38b   : > { %v13915_v33 = vadd.f32 %v9813_v37, %v5691_v17  ;;  %v9702_v55 = vpop.f32.mrb[212].mxu1  ;;  %v9814_v22 = vpop.f32.mrb[212].mxu0 }
 0x38c   : > { %v9703_v20 = vpop.f32.mrb[213].mxu1  ;;  %v9815_v13 = vpop.f32.mrb[213].mxu0 }
 0x38d   : > { %v9704_v56 = vadd.f32 %v9703_v20, %v9702_v55  ;;  %v9816_v4 = vadd.f32 %v9815_v13, %v9814_v22  ;;  %v9705_v52 = vpop.f32.mrb[214].mxu1  ;;  %v9817_v34 = vpop.f32.mrb[214].mxu0 }
 0x38e   : > { %v9706_v48 = vpop.f32.mrb[215].mxu1  ;;  %v9818_v18 = vpop.f32.mrb[215].mxu0 }
 0x38f   : > { %v5692_v58 = vadd.f32 %v9704_v56, %v13647_v50  ;;  %v9707_v54 = vadd.f32 %v9706_v48, %v9705_v52  ;;  %v9819_v29 = vadd.f32 %v9818_v18, %v9817_v34  ;;  %v14236_v50 = vld [vmem:[#allocation11_spill] sm:$0xff]  ;;  %v14238_v56 = vld [vmem:[#allocation13_spill] sm:$0xff]  ;;  %v14239_v18 = vld [vmem:[#allocation14_spill] sm:$0xff] }
 0x391   : > { %v13918_v9 = vadd.f32 %v9816_v4, %v5692_v58  ;;  %v5693_v10 = vadd.f32 %v9707_v54, %v13659_v45  ;;  %v14237_v45 = vld [vmem:[#allocation12_spill] sm:$0xff] }
 0x393   : > { %v13921_v16 = vadd.f32 %v9819_v29, %v5693_v10  ;;  %v9708_v0 = vpop.f32.mrb[216].mxu1  ;;  %v9820_v35 = vpop.f32.mrb[216].mxu0 }
 0x394   : > { %v9709_v62 = vpop.f32.mrb[217].mxu1  ;;  %v9821_v60 = vpop.f32.mrb[217].mxu0 }
 0x395   : > { %v9710_v3 = vadd.f32 %v9709_v62, %v9708_v0  ;;  %v9822_v44 = vadd.f32 %v9821_v60, %v9820_v35  ;;  %v9711_v7 = vpop.f32.mrb[218].mxu1  ;;  %v9823_v27 = vpop.f32.mrb[218].mxu0 }
 0x396   : > { %v9712_v51 = vpop.f32.mrb[219].mxu1  ;;  %v9824_v47 = vpop.f32.mrb[219].mxu0 }
 0x397   : > { %v5694_v36 = vadd.f32 %v9710_v3, %v14236_v50  ;;  %v9713_v1 = vadd.f32 %v9712_v51, %v9711_v7  ;;  %v9825_v43 = vadd.f32 %v9824_v47, %v9823_v27  ;;  %v14240_v51 = vld [vmem:[#allocation15_spill] sm:$0xff] }
 0x399   : > { %v13924_v57 = vadd.f32 %v9822_v44, %v5694_v36  ;;  %v5695_v30 = vadd.f32 %v9713_v1, %v14237_v45  ;;  %v13942_v1 = vld [vmem:[%s1414_s27] ss:$0 sm:$0xff]  ;;  %v14241_v45 = vld [vmem:[#allocation16_spill] sm:$0xff]  ;;  %s10505_s27 = sshll.u32 %s10613_s23, 4  ;;  %s10506_s27 = int_to_ptr.vmem [resolvable:$false] %s10505_s27 }
 0x39a   : > { %s10507_s29 = scalar_lea.vmem %s10506_s27, 8192  ;;  %p10508_p8 = scmp.lt.s32.totalorder %s14050_s9, %s10506_s27 }
 0x39b   : > { %v13927_v2 = vadd.f32 %v9825_v43, %v5695_v30  ;;  %v9714_v40 = vpop.f32.mrb[220].mxu1  ;;  %v9826_v46 = vpop.f32.mrb[220].mxu0  ;;  %p10509_p9 = scmp.lt.s32.totalorder %s10507_s29, %s10501_s26 }
 0x39c   : > { %v9715_v63 = vpop.f32.mrb[221].mxu1  ;;  %v9827_v37 = vpop.f32.mrb[221].mxu0 }
 0x39d   : > { %v9716_v21 = vadd.f32 %v9715_v63, %v9714_v40  ;;  %v9828_v17 = vadd.f32 %v9827_v37, %v9826_v46  ;;  %v9717_v55 = vpop.f32.mrb[222].mxu1  ;;  %v9829_v22 = vpop.f32.mrb[222].mxu0  ;;  %p10510_p11 = por %p10509_p9, %p10508_p8 }
 0x39e   : > { %v9718_v20 = vpop.f32.mrb[223].mxu1  ;;  %v9830_v13 = vpop.f32.mrb[223].mxu0 }
 0x39f   : > { %v5696_v4 = vadd.f32 %v9716_v21, %v14238_v56  ;;  %v9719_v52 = vadd.f32 %v9718_v20, %v9717_v55  ;;  %v9831_v34 = vadd.f32 %v9830_v13, %v9829_v22  ;;  %p10511_p13 = pnand %p10510_p11, %p10504_p7 }
 0x3a1   : > { %v13931_v48 = vadd.f32 %v9828_v17, %v5696_v4  ;;  %v5697_v58 = vadd.f32 %v9719_v52, %v14239_v18 }
 0x3a3   : > { %v13935_v54 = vadd.f32 %v9831_v34, %v5697_v58  ;;  %v9848_v29 = vpop.f32.mrb[224].mxu1  ;;  %v9960_v10 = vpop.f32.mrb[224].mxu0 }
 0x3a4   : > { %v9849_v0 = vpop.f32.mrb[225].mxu1  ;;  %v9961_v35 = vpop.f32.mrb[225].mxu0 }
 0x3a5   : > { %v9850_v62 = vadd.f32 %v9849_v0, %v9848_v29  ;;  %v9962_v60 = vadd.f32 %v9961_v35, %v9960_v10  ;;  %v9851_v3 = vpop.f32.mrb[226].mxu1  ;;  %v9963_v44 = vpop.f32.mrb[226].mxu0 }
 0x3a6   : > { %v9852_v7 = vpop.f32.mrb[227].mxu1  ;;  %v9964_v27 = vpop.f32.mrb[227].mxu0 }
 0x3a7   : > { %v7162_v47 = vadd.f32 %v9850_v62, %v14240_v51  ;;  %v9853_v50 = vadd.f32 %v9852_v7, %v9851_v3  ;;  %v9965_v36 = vadd.f32 %v9964_v27, %v9963_v44 }
 0x3a9   : > { %v7804_v43 = vadd.f32 %v9962_v60, %v7162_v47  ;;  %v7163_v30 = vadd.f32 %v9853_v50, %v14241_v45 }
 0x3ab   : > { %v7907_v40 = vadd.f32 %v13942_v1, %v7804_v43  ;;  %v7805_v46 = vadd.f32 %v9965_v36, %v7163_v30  ;;  %v9854_v63 = vpop.f32.mrb[228].mxu1  ;;  %v9966_v37 = vpop.f32.mrb[228].mxu0 }
 0x3ac   : > { %v9855_v21 = vpop.f32.mrb[229].mxu1  ;;  %v9967_v17 = vpop.f32.mrb[229].mxu0 }
 0x3ad   : > { %vm7939_vm6 = vcmp.gt.f32.partialorder %v7907_v40, 0.0  ;;  %v7971_v55 = vmul.f32 0.1, %v7907_v40  ;;  %v7908_v22 = vadd.f32 %v13942_v1, %v7805_v46  ;;  %v9856_v20 = vadd.f32 %v9855_v21, %v9854_v63  ;;  %v9857_v13 = vpop.f32.mrb[230].mxu1  ;;  %v9969_v56 = vpop.f32.mrb[230].mxu0 }
 0x3ae   : > { %v9968_v4 = vadd.f32 %v9967_v17, %v9966_v37  ;;  %v9858_v52 = vpop.f32.mrb[231].mxu1  ;;  %v9970_v34 = vpop.f32.mrb[231].mxu0 }
 0x3af   : > { %v8003_v18 = vsel %vm7939_vm6, %v7907_v40, %v7971_v55  ;;  %vm7940_vm7 = vcmp.gt.f32.partialorder %v7908_v22, 0.0  ;;  %v7972_v58 = vmul.f32 0.1, %v7908_v22  ;;  %v7164_v29 = vadd.f32 %v9856_v20, %v13824_v42 }
 0x3b0   : > { %8035 = vst [vmem:[%s13950_s4] sm:$0xff] %v8003_v18  ;;  %v9859_v10 = vadd.f32 %v9858_v52, %v9857_v13  ;;  %v9971_v0 = vadd.f32 %v9970_v34, %v9969_v56 }
 0x3b1   : > { %v8004_v35 = vsel %vm7940_vm7, %v7908_v22, %v7972_v58  ;;  %v7806_v62 = vadd.f32 %v9968_v4, %v7164_v29 }
 0x3b2   : > { %8036 = vst [vmem:[%s13950_s4 + $0x8] sm:$0xff] %v8004_v35  ;;  %v7165_v60 = vadd.f32 %v9859_v10, %v13830_v11 }
 0x3b3   : > { %v7909_v3 = vadd.f32 %v13942_v1, %v7806_v62  ;;  %v9860_v44 = vpop.f32.mrb[232].mxu1  ;;  %v9972_v7 = vpop.f32.mrb[232].mxu0 }
 0x3b4   : > { %v7807_v27 = vadd.f32 %v9971_v0, %v7165_v60  ;;  %v9861_v51 = vpop.f32.mrb[233].mxu1  ;;  %v9973_v42 = vpop.f32.mrb[233].mxu0 }
 0x3b5   : > { %vm7941_vm8 = vcmp.gt.f32.partialorder %v7909_v3, 0.0  ;;  %v7973_v47 = vmul.f32 0.1, %v7909_v3  ;;  %v9862_v50 = vadd.f32 %v9861_v51, %v9860_v44  ;;  %v9974_v36 = vadd.f32 %v9973_v42, %v9972_v7  ;;  %v9863_v43 = vpop.f32.mrb[234].mxu1  ;;  %v9975_v45 = vpop.f32.mrb[234].mxu0 }
 0x3b6   : > { %v7910_v30 = vadd.f32 %v13942_v1, %v7807_v27  ;;  %v9864_v40 = vpop.f32.mrb[235].mxu1  ;;  %v9976_v46 = vpop.f32.mrb[235].mxu0 }
 0x3b7   : > { %v8005_v11 = vsel %vm7941_vm8, %v7909_v3, %v7973_v47  ;;  %v7166_v63 = vadd.f32 %v9862_v50, %v13841_v6  ;;  %v9865_v37 = vadd.f32 %v9864_v40, %v9863_v43  ;;  %v9977_v21 = vadd.f32 %v9976_v46, %v9975_v45 }
 0x3b8   : > { %8037 = vst [vmem:[%s13950_s4 + $0x10] sm:$0xff] %v8005_v11  ;;  %vm7942_vm9 = vcmp.gt.f32.partialorder %v7910_v30, 0.0  ;;  %v7974_v17 = vmul.f32 0.1, %v7910_v30 }
 0x3b9   : > { %v7808_v55 = vadd.f32 %v9974_v36, %v7166_v63  ;;  %v7167_v22 = vadd.f32 %v9865_v37, %v13852_v49 }
 0x3ba   : > { %v8006_v20 = vsel %vm7942_vm9, %v7910_v30, %v7974_v17 }
 0x3bb   : > { %8038 = vst [vmem:[%s13950_s4 + $0x18] sm:$0xff] %v8006_v20  ;;  %v7911_v13 = vadd.f32 %v13942_v1, %v7808_v55  ;;  %v7809_v56 = vadd.f32 %v9977_v21, %v7167_v22  ;;  %v9866_v4 = vpop.f32.mrb[236].mxu1  ;;  %v9978_v52 = vpop.f32.mrb[236].mxu0 }
 0x3bc   : > { %v9867_v34 = vpop.f32.mrb[237].mxu1  ;;  %v9979_v18 = vpop.f32.mrb[237].mxu0 }
 0x3bd   : > { %vm7943_vm10 = vcmp.gt.f32.partialorder %v7911_v13, 0.0  ;;  %v7975_v6 = vmul.f32 0.1, %v7911_v13  ;;  %v7912_v58 = vadd.f32 %v13942_v1, %v7809_v56  ;;  %v9868_v29 = vadd.f32 %v9867_v34, %v9866_v4  ;;  %v9869_v10 = vpop.f32.mrb[238].mxu1  ;;  %v9981_v0 = vpop.f32.mrb[238].mxu0 }
 0x3be   : > { %v9980_v35 = vadd.f32 %v9979_v18, %v9978_v52  ;;  %v9870_v49 = vpop.f32.mrb[239].mxu1  ;;  %v9982_v62 = vpop.f32.mrb[239].mxu0 }
 0x3bf   : > { %v8007_v60 = vsel %vm7943_vm10, %v7911_v13, %v7975_v6  ;;  %vm7944_vm11 = vcmp.gt.f32.partialorder %v7912_v58, 0.0  ;;  %v7976_v3 = vmul.f32 0.1, %v7912_v58  ;;  %v7168_v44 = vadd.f32 %v9868_v29, %v13858_v32 }
 0x3c0   : > { %8039 = vst [vmem:[%s13950_s4 + $0x20] sm:$0xff] %v8007_v60  ;;  %v9871_v7 = vadd.f32 %v9870_v49, %v9869_v10  ;;  %v9983_v27 = vadd.f32 %v9982_v62, %v9981_v0 }
 0x3c1   : > { %v8008_v51 = vsel %vm7944_vm11, %v7912_v58, %v7976_v3  ;;  %v7810_v42 = vadd.f32 %v9980_v35, %v7168_v44 }
 0x3c2   : > { %8040 = vst [vmem:[%s13950_s4 + $0x28] sm:$0xff] %v8008_v51  ;;  %v7169_v47 = vadd.f32 %v9871_v7, %v13861_v31 }
 0x3c3   : > { %v7913_v50 = vadd.f32 %v13942_v1, %v7810_v42  ;;  %v9872_v36 = vpop.f32.mrb[240].mxu1  ;;  %v9984_v43 = vpop.f32.mrb[240].mxu0 }
 0x3c4   : > { %v7811_v45 = vadd.f32 %v9983_v27, %v7169_v47  ;;  %v9873_v30 = vpop.f32.mrb[241].mxu1  ;;  %v9985_v40 = vpop.f32.mrb[241].mxu0 }
 0x3c5   : > { %vm7945_vm12 = vcmp.gt.f32.partialorder %v7913_v50, 0.0  ;;  %v7977_v46 = vmul.f32 0.1, %v7913_v50  ;;  %v9874_v11 = vadd.f32 %v9873_v30, %v9872_v36  ;;  %v9986_v32 = vadd.f32 %v9985_v40, %v9984_v43  ;;  %v9875_v63 = vpop.f32.mrb[242].mxu1  ;;  %v9987_v37 = vpop.f32.mrb[242].mxu0 }
 0x3c6   : > { %v7914_v21 = vadd.f32 %v13942_v1, %v7811_v45  ;;  %v9876_v17 = vpop.f32.mrb[243].mxu1  ;;  %v9988_v55 = vpop.f32.mrb[243].mxu0 }
 0x3c7   : > { %v8009_v31 = vsel %vm7945_vm12, %v7913_v50, %v7977_v46  ;;  %v7170_v22 = vadd.f32 %v9874_v11, %v13864_v15  ;;  %v9877_v20 = vadd.f32 %v9876_v17, %v9875_v63  ;;  %v9989_v13 = vadd.f32 %v9988_v55, %v9987_v37 }
 0x3c8   : > { %8041 = vst [vmem:[%s13950_s4 + $0x30] sm:$0xff] %v8009_v31  ;;  %vm7946_vm13 = vcmp.gt.f32.partialorder %v7914_v21, 0.0  ;;  %v7978_v56 = vmul.f32 0.1, %v7914_v21 }
 0x3c9   : > { %v7812_v4 = vadd.f32 %v9986_v32, %v7170_v22  ;;  %v7171_v52 = vadd.f32 %v9877_v20, %v13867_v26 }
 0x3ca   : > { %v8010_v34 = vsel %vm7946_vm13, %v7914_v21, %v7978_v56 }
 0x3cb   : > { %8042 = vst [vmem:[%s13950_s4 + $0x38] sm:$0xff] %v8010_v34  ;;  %v7915_v18 = vadd.f32 %v13942_v1, %v7812_v4  ;;  %v7813_v6 = vadd.f32 %v9989_v13, %v7171_v52  ;;  %v9878_v58 = vpop.f32.mrb[244].mxu1  ;;  %v9990_v29 = vpop.f32.mrb[244].mxu0 }
 0x3cc   : > { %v9879_v10 = vpop.f32.mrb[245].mxu1  ;;  %v9991_v0 = vpop.f32.mrb[245].mxu0 }
 0x3cd   : > { %vm7947_vm14 = vcmp.gt.f32.partialorder %v7915_v18, 0.0  ;;  %v7979_v15 = vmul.f32 0.1, %v7915_v18  ;;  %v7916_v35 = vadd.f32 %v13942_v1, %v7813_v6  ;;  %v9880_v49 = vadd.f32 %v9879_v10, %v9878_v58  ;;  %v9881_v62 = vpop.f32.mrb[246].mxu1  ;;  %v9993_v60 = vpop.f32.mrb[246].mxu0 }
 0x3ce   : > { %v9992_v3 = vadd.f32 %v9991_v0, %v9990_v29  ;;  %v9882_v26 = vpop.f32.mrb[247].mxu1  ;;  %v9994_v44 = vpop.f32.mrb[247].mxu0 }
 0x3cf   : > { %v8011_v7 = vsel %vm7947_vm14, %v7915_v18, %v7979_v15  ;;  %vm7948_vm15 = vcmp.gt.f32.partialorder %v7916_v35, 0.0  ;;  %v7980_v27 = vmul.f32 0.1, %v7916_v35  ;;  %v7172_v51 = vadd.f32 %v9880_v49, %v13870_v39 }
 0x3d0   : > { %8043 = vst [vmem:[%s13950_s4 + $0x40] sm:$0xff] %v8011_v7  ;;  %v9883_v42 = vadd.f32 %v9882_v26, %v9881_v62  ;;  %v9995_v47 = vadd.f32 %v9994_v44, %v9993_v60 }
 0x3d1   : > { %v8012_v50 = vsel %vm7948_vm15, %v7916_v35, %v7980_v27  ;;  %v7814_v36 = vadd.f32 %v9992_v3, %v7172_v51 }
 0x3d2   : > { %8044 = vst [vmem:[%s13950_s4 + $0x48] sm:$0xff] %v8012_v50  ;;  %v7173_v43 = vadd.f32 %v9883_v42, %v13873_v14 }
 0x3d3   : > { %v7917_v45 = vadd.f32 %v13942_v1, %v7814_v36  ;;  %v9884_v30 = vpop.f32.mrb[248].mxu1  ;;  %v9996_v40 = vpop.f32.mrb[248].mxu0 }
 0x3d4   : > { %v7815_v46 = vadd.f32 %v9995_v47, %v7173_v43  ;;  %v9885_v11 = vpop.f32.mrb[249].mxu1  ;;  %v9997_v32 = vpop.f32.mrb[249].mxu0 }
 0x3d5   : > { %vm7949_vm0 = vcmp.gt.f32.partialorder %v7917_v45, 0.0  ;;  %v7981_v63 = vmul.f32 0.1, %v7917_v45  ;;  %v9886_v37 = vadd.f32 %v9885_v11, %v9884_v30  ;;  %v9998_v39 = vadd.f32 %v9997_v32, %v9996_v40  ;;  %v9887_v21 = vpop.f32.mrb[250].mxu1  ;;  %v9999_v17 = vpop.f32.mrb[250].mxu0 }
 0x3d6   : > { %v7918_v55 = vadd.f32 %v13942_v1, %v7815_v46  ;;  %v9888_v31 = vpop.f32.mrb[251].mxu1  ;;  %v10000_v22 = vpop.f32.mrb[251].mxu0 }
 0x3d7   : > { %v8013_v14 = vsel %vm7949_vm0, %v7917_v45, %v7981_v63  ;;  %v7174_v20 = vadd.f32 %v9886_v37, %v13876_v8  ;;  %v9889_v13 = vadd.f32 %v9888_v31, %v9887_v21  ;;  %v10001_v56 = vadd.f32 %v10000_v22, %v9999_v17 }
 0x3d8   : > { %8045 = vst [vmem:[%s13950_s4 + $0x50] sm:$0xff] %v8013_v14  ;;  %vm7950_vm1 = vcmp.gt.f32.partialorder %v7918_v55, 0.0  ;;  %v7982_v4 = vmul.f32 0.1, %v7918_v55 }
 0x3d9   : > { %v7816_v52 = vadd.f32 %v9998_v39, %v7174_v20  ;;  %v7175_v34 = vadd.f32 %v9889_v13, %v13879_v53 }
 0x3da   : > { %v8014_v18 = vsel %vm7950_vm1, %v7918_v55, %v7982_v4 }
 0x3db   : > { %8046 = vst [vmem:[%s13950_s4 + $0x58] sm:$0xff] %v8014_v18  ;;  %v7919_v6 = vadd.f32 %v13942_v1, %v7816_v52  ;;  %v7817_v58 = vadd.f32 %v10001_v56, %v7175_v34  ;;  %v9890_v29 = vpop.f32.mrb[252].mxu1  ;;  %v10002_v10 = vpop.f32.mrb[252].mxu0 }
 0x3dc   : > { %v9891_v0 = vpop.f32.mrb[253].mxu1  ;;  %v10003_v15 = vpop.f32.mrb[253].mxu0 }
 0x3dd   : > { %vm7951_vm2 = vcmp.gt.f32.partialorder %v7919_v6, 0.0  ;;  %v7983_v8 = vmul.f32 0.1, %v7919_v6  ;;  %v7920_v35 = vadd.f32 %v13942_v1, %v7817_v58  ;;  %v9892_v49 = vadd.f32 %v9891_v0, %v9890_v29  ;;  %v9893_v62 = vpop.f32.mrb[254].mxu1  ;;  %v10005_v60 = vpop.f32.mrb[254].mxu0 }
 0x3de   : > { %v10004_v3 = vadd.f32 %v10003_v15, %v10002_v10  ;;  %v9894_v53 = vpop.f32.mrb[255].mxu1  ;;  %v10006_v26 = vpop.f32.mrb[255].mxu0 }
 0x3df   : > { %v8015_v44 = vsel %vm7951_vm2, %v7919_v6, %v7983_v8  ;;  %vm7952_vm3 = vcmp.gt.f32.partialorder %v7920_v35, 0.0  ;;  %v7984_v7 = vmul.f32 0.1, %v7920_v35  ;;  %v7176_v27 = vadd.f32 %v9892_v49, %v13882_v12 }
 0x3e0   : > { %8047 = vst [vmem:[%s13950_s4 + $0x60] sm:$0xff] %v8015_v44  ;;  %v9895_v51 = vadd.f32 %v9894_v53, %v9893_v62  ;;  %v10007_v42 = vadd.f32 %v10006_v26, %v10005_v60 }
 0x3e1   : > { %v8016_v47 = vsel %vm7952_vm3, %v7920_v35, %v7984_v7  ;;  %v7818_v50 = vadd.f32 %v10004_v3, %v7176_v27 }
 0x3e2   : > { %8048 = vst [vmem:[%s13950_s4 + $0x68] sm:$0xff] %v8016_v47  ;;  %v7177_v36 = vadd.f32 %v9895_v51, %v13885_v59 }
 0x3e3   : > { %v7921_v43 = vadd.f32 %v13942_v1, %v7818_v50  ;;  %v9896_v45 = vpop.f32.mrb[0].mxu1  ;;  %v10008_v30 = vpop.f32.mrb[0].mxu0 }
 0x3e4   : > { %v7819_v40 = vadd.f32 %v10007_v42, %v7177_v36  ;;  %v9897_v46 = vpop.f32.mrb[1].mxu1  ;;  %v10009_v11 = vpop.f32.mrb[1].mxu0 }
 0x3e5   : > { %vm7953_vm4 = vcmp.gt.f32.partialorder %v7921_v43, 0.0  ;;  %v7985_v32 = vmul.f32 0.1, %v7921_v43  ;;  %v9898_v63 = vadd.f32 %v9897_v46, %v9896_v45  ;;  %v10010_v12 = vadd.f32 %v10009_v11, %v10008_v30  ;;  %v9899_v37 = vpop.f32.mrb[2].mxu1  ;;  %v10011_v39 = vpop.f32.mrb[2].mxu0 }
 0x3e6   : > { %v7922_v21 = vadd.f32 %v13942_v1, %v7819_v40  ;;  %v9900_v17 = vpop.f32.mrb[3].mxu1  ;;  %v10012_v55 = vpop.f32.mrb[3].mxu0 }
 0x3e7   : > { %v8017_v59 = vsel %vm7953_vm4, %v7921_v43, %v7985_v32  ;;  %v7178_v31 = vadd.f32 %v9898_v63, %v13888_v23  ;;  %v9901_v22 = vadd.f32 %v9900_v17, %v9899_v37  ;;  %v10013_v14 = vadd.f32 %v10012_v55, %v10011_v39 }
 0x3e8   : > { %8049 = vst [vmem:[%s13950_s4 + $0x70] sm:$0xff] %v8017_v59  ;;  %vm7954_vm5 = vcmp.gt.f32.partialorder %v7922_v21, 0.0  ;;  %v7986_v20 = vmul.f32 0.1, %v7922_v21 }
 0x3e9   : > { %v7820_v13 = vadd.f32 %v10010_v12, %v7178_v31  ;;  %v7179_v56 = vadd.f32 %v9901_v22, %v13891_v38 }
 0x3ea   : > { %v8018_v4 = vsel %vm7954_vm5, %v7922_v21, %v7986_v20 }
 0x3eb   : > { %8050 = vst [vmem:[%s13950_s4 + $0x78] sm:$0xff] %v8018_v4  ;;  %v7923_v52 = vadd.f32 %v13942_v1, %v7820_v13  ;;  %v7821_v34 = vadd.f32 %v10013_v14, %v7179_v56  ;;  %v9902_v18 = vpop.f32.mrb[4].mxu1  ;;  %v10014_v6 = vpop.f32.mrb[4].mxu0 }
 0x3ec   : > { %v9903_v58 = vpop.f32.mrb[5].mxu1  ;;  %v10015_v29 = vpop.f32.mrb[5].mxu0 }
 0x3ed   : > { %vm7955_vm6 = vcmp.gt.f32.partialorder %v7923_v52, 0.0  ;;  %v7987_v23 = vmul.f32 0.1, %v7923_v52  ;;  %v7924_v10 = vadd.f32 %v13942_v1, %v7821_v34  ;;  %v9904_v0 = vadd.f32 %v9903_v58, %v9902_v18  ;;  %v9905_v15 = vpop.f32.mrb[6].mxu1  ;;  %v10017_v8 = vpop.f32.mrb[6].mxu0 }
 0x3ee   : > { %v10016_v35 = vadd.f32 %v10015_v29, %v10014_v6  ;;  %v9906_v38 = vpop.f32.mrb[7].mxu1  ;;  %v10018_v49 = vpop.f32.mrb[7].mxu0 }
 0x3ef   : > { %v8019_v62 = vsel %vm7955_vm6, %v7923_v52, %v7987_v23  ;;  %vm7956_vm7 = vcmp.gt.f32.partialorder %v7924_v10, 0.0  ;;  %v7988_v60 = vmul.f32 0.1, %v7924_v10  ;;  %v7180_v3 = vadd.f32 %v9904_v0, %v13894_v19 }
 0x3f0   : > { %8051 = vst [vmem:[%s13950_s4 + $0x80] sm:$0xff] %v8019_v62  ;;  %v9907_v53 = vadd.f32 %v9906_v38, %v9905_v15  ;;  %v10019_v26 = vadd.f32 %v10018_v49, %v10017_v8 }
 0x3f1   : > { %v8020_v44 = vsel %vm7956_vm7, %v7924_v10, %v7988_v60  ;;  %v7822_v7 = vadd.f32 %v10016_v35, %v7180_v3 }
 0x3f2   : > { %8052 = vst [vmem:[%s13950_s4 + $0x88] sm:$0xff] %v8020_v44  ;;  %v7181_v27 = vadd.f32 %v9907_v53, %v13897_v41 }
 0x3f3   : > { %v7925_v51 = vadd.f32 %v13942_v1, %v7822_v7  ;;  %v9908_v42 = vpop.f32.mrb[8].mxu1  ;;  %v10020_v47 = vpop.f32.mrb[8].mxu0 }
 0x3f4   : > { %v7823_v50 = vadd.f32 %v10019_v26, %v7181_v27  ;;  %v9909_v36 = vpop.f32.mrb[9].mxu1  ;;  %v10021_v43 = vpop.f32.mrb[9].mxu0 }
 0x3f5   : > { %vm7957_vm8 = vcmp.gt.f32.partialorder %v7925_v51, 0.0  ;;  %v7989_v45 = vmul.f32 0.1, %v7925_v51  ;;  %v9910_v30 = vadd.f32 %v9909_v36, %v9908_v42  ;;  %v10022_v19 = vadd.f32 %v10021_v43, %v10020_v47  ;;  %v9911_v40 = vpop.f32.mrb[10].mxu1  ;;  %v10023_v46 = vpop.f32.mrb[10].mxu0 }
 0x3f6   : > { %v7926_v11 = vadd.f32 %v13942_v1, %v7823_v50  ;;  %v9912_v32 = vpop.f32.mrb[11].mxu1  ;;  %v10024_v63 = vpop.f32.mrb[11].mxu0 }
 0x3f7   : > { %v8021_v41 = vsel %vm7957_vm8, %v7925_v51, %v7989_v45  ;;  %v7182_v12 = vadd.f32 %v9910_v30, %v13900_v5  ;;  %v9913_v37 = vadd.f32 %v9912_v32, %v9911_v40  ;;  %v10025_v39 = vadd.f32 %v10024_v63, %v10023_v46 }
 0x3f8   : > { %8053 = vst [vmem:[%s13950_s4 + $0x90] sm:$0xff] %v8021_v41  ;;  %vm7958_vm9 = vcmp.gt.f32.partialorder %v7926_v11, 0.0  ;;  %v7990_v21 = vmul.f32 0.1, %v7926_v11 }
 0x3f9   : > { %v7824_v17 = vadd.f32 %v10022_v19, %v7182_v12  ;;  %v7183_v55 = vadd.f32 %v9913_v37, %v13903_v25 }
 0x3fa   : > { %v8022_v59 = vsel %vm7958_vm9, %v7926_v11, %v7990_v21 }
 0x3fb   : > { %8054 = vst [vmem:[%s13950_s4 + $0x98] sm:$0xff] %v8022_v59  ;;  %v7927_v31 = vadd.f32 %v13942_v1, %v7824_v17  ;;  %v7825_v22 = vadd.f32 %v10025_v39, %v7183_v55  ;;  %v9914_v14 = vpop.f32.mrb[12].mxu1  ;;  %v10026_v20 = vpop.f32.mrb[12].mxu0 }
 0x3fc   : > { %v9915_v13 = vpop.f32.mrb[13].mxu1  ;;  %v10027_v56 = vpop.f32.mrb[13].mxu0 }
 0x3fd   : > { %vm7959_vm10 = vcmp.gt.f32.partialorder %v7927_v31, 0.0  ;;  %v7991_v5 = vmul.f32 0.1, %v7927_v31  ;;  %v7928_v4 = vadd.f32 %v13942_v1, %v7825_v22  ;;  %v9916_v52 = vadd.f32 %v9915_v13, %v9914_v14  ;;  %v9917_v34 = vpop.f32.mrb[14].mxu1  ;;  %v10029_v18 = vpop.f32.mrb[14].mxu0 }
 0x3fe   : > { %v10028_v6 = vadd.f32 %v10027_v56, %v10026_v20  ;;  %v9918_v25 = vpop.f32.mrb[15].mxu1  ;;  %v10030_v58 = vpop.f32.mrb[15].mxu0 }
 0x3ff   : > { %v8023_v29 = vsel %vm7959_vm10, %v7927_v31, %v7991_v5  ;;  %vm7960_vm11 = vcmp.gt.f32.partialorder %v7928_v4, 0.0  ;;  %v7992_v23 = vmul.f32 0.1, %v7928_v4  ;;  %v7184_v10 = vadd.f32 %v9916_v52, %v13906_v61 }
 0x400   : > { %8055 = vst [vmem:[%s13950_s4 + $0xa0] sm:$0xff] %v8023_v29  ;;  %v9919_v0 = vadd.f32 %v9918_v25, %v9917_v34  ;;  %v10031_v15 = vadd.f32 %v10030_v58, %v10029_v18 }
 0x401   : > { %v8024_v8 = vsel %vm7960_vm11, %v7928_v4, %v7992_v23  ;;  %v7826_v35 = vadd.f32 %v10028_v6, %v7184_v10 }
 0x402   : > { %8056 = vst [vmem:[%s13950_s4 + $0xa8] sm:$0xff] %v8024_v8  ;;  %v7185_v38 = vadd.f32 %v9919_v0, %v13909_v28 }
 0x403   : > { %v7929_v49 = vadd.f32 %v13942_v1, %v7826_v35  ;;  %v9920_v62 = vpop.f32.mrb[16].mxu1  ;;  %v10032_v60 = vpop.f32.mrb[16].mxu0 }
 0x404   : > { %v7827_v3 = vadd.f32 %v10031_v15, %v7185_v38  ;;  %v9921_v53 = vpop.f32.mrb[17].mxu1  ;;  %v10033_v26 = vpop.f32.mrb[17].mxu0 }
 0x405   : > { %vm7961_vm12 = vcmp.gt.f32.partialorder %v7929_v49, 0.0  ;;  %v7993_v44 = vmul.f32 0.1, %v7929_v49  ;;  %v9922_v7 = vadd.f32 %v9921_v53, %v9920_v62  ;;  %v10034_v61 = vadd.f32 %v10033_v26, %v10032_v60  ;;  %v9923_v27 = vpop.f32.mrb[18].mxu1  ;;  %v10035_v51 = vpop.f32.mrb[18].mxu0 }
 0x406   : > { %v7930_v42 = vadd.f32 %v13942_v1, %v7827_v3  ;;  %v9924_v47 = vpop.f32.mrb[19].mxu1  ;;  %v10036_v50 = vpop.f32.mrb[19].mxu0 }
 0x407   : > { %v8025_v28 = vsel %vm7961_vm12, %v7929_v49, %v7993_v44  ;;  %v7186_v36 = vadd.f32 %v9922_v7, %v13912_v24  ;;  %v9925_v43 = vadd.f32 %v9924_v47, %v9923_v27  ;;  %v10037_v45 = vadd.f32 %v10036_v50, %v10035_v51 }
 0x408   : > { %8057 = vst [vmem:[%s13950_s4 + $0xb0] sm:$0xff] %v8025_v28  ;;  %vm7962_vm13 = vcmp.gt.f32.partialorder %v7930_v42, 0.0  ;;  %v7994_v30 = vmul.f32 0.1, %v7930_v42 }
 0x409   : > { %v7828_v19 = vadd.f32 %v10034_v61, %v7186_v36  ;;  %v7187_v40 = vadd.f32 %v9925_v43, %v13915_v33 }
 0x40a   : > { %v8026_v46 = vsel %vm7962_vm13, %v7930_v42, %v7994_v30 }
 0x40b   : > { %8058 = vst [vmem:[%s13950_s4 + $0xb8] sm:$0xff] %v8026_v46  ;;  %v7931_v11 = vadd.f32 %v13942_v1, %v7828_v19  ;;  %v7829_v32 = vadd.f32 %v10037_v45, %v7187_v40  ;;  %v9926_v63 = vpop.f32.mrb[20].mxu1  ;;  %v10038_v41 = vpop.f32.mrb[20].mxu0 }
 0x40c   : > { %v9927_v12 = vpop.f32.mrb[21].mxu1  ;;  %v10039_v37 = vpop.f32.mrb[21].mxu0 }
 0x40d   : > { %vm7963_vm14 = vcmp.gt.f32.partialorder %v7931_v11, 0.0  ;;  %v7995_v24 = vmul.f32 0.1, %v7931_v11  ;;  %v7932_v39 = vadd.f32 %v13942_v1, %v7829_v32  ;;  %v9928_v21 = vadd.f32 %v9927_v12, %v9926_v63  ;;  %v9929_v17 = vpop.f32.mrb[22].mxu1  ;;  %v10041_v55 = vpop.f32.mrb[22].mxu0 }
 0x40e   : > { %v10040_v59 = vadd.f32 %v10039_v37, %v10038_v41  ;;  %v9930_v33 = vpop.f32.mrb[23].mxu1  ;;  %v10042_v31 = vpop.f32.mrb[23].mxu0 }
 0x40f   : > { %v8027_v22 = vsel %vm7963_vm14, %v7931_v11, %v7995_v24  ;;  %vm7964_vm15 = vcmp.gt.f32.partialorder %v7932_v39, 0.0  ;;  %v7996_v14 = vmul.f32 0.1, %v7932_v39  ;;  %v7188_v20 = vadd.f32 %v9928_v21, %v13918_v9 }
 0x410   : > { %8059 = vst [vmem:[%s13950_s4 + $0xc0] sm:$0xff] %v8027_v22  ;;  %v9931_v13 = vadd.f32 %v9930_v33, %v9929_v17  ;;  %v10043_v56 = vadd.f32 %v10042_v31, %v10041_v55 }
 0x411   : > { %v8028_v5 = vsel %vm7964_vm15, %v7932_v39, %v7996_v14  ;;  %v7830_v4 = vadd.f32 %v10040_v59, %v7188_v20 }
 0x412   : > { %8060 = vst [vmem:[%s13950_s4 + $0xc8] sm:$0xff] %v8028_v5  ;;  %v7189_v52 = vadd.f32 %v9931_v13, %v13921_v16 }
 0x413   : > { %v7933_v34 = vadd.f32 %v13942_v1, %v7830_v4  ;;  %v9932_v18 = vpop.f32.mrb[24].mxu1  ;;  %v10044_v6 = vpop.f32.mrb[24].mxu0 }
 0x414   : > { %v7831_v25 = vadd.f32 %v10043_v56, %v7189_v52  ;;  %v9933_v58 = vpop.f32.mrb[25].mxu1  ;;  %v10045_v29 = vpop.f32.mrb[25].mxu0 }
 0x415   : > { %vm7965_vm0 = vcmp.gt.f32.partialorder %v7933_v34, 0.0  ;;  %v7997_v23 = vmul.f32 0.1, %v7933_v34  ;;  %v9934_v10 = vadd.f32 %v9933_v58, %v9932_v18  ;;  %v10046_v9 = vadd.f32 %v10045_v29, %v10044_v6  ;;  %v9935_v0 = vpop.f32.mrb[26].mxu1  ;;  %v10047_v15 = vpop.f32.mrb[26].mxu0 }
 0x416   : > { %v7934_v8 = vadd.f32 %v13942_v1, %v7831_v25  ;;  %v9936_v35 = vpop.f32.mrb[27].mxu1  ;;  %v10048_v38 = vpop.f32.mrb[27].mxu0 }
 0x417   : > { %v8029_v16 = vsel %vm7965_vm0, %v7933_v34, %v7997_v23  ;;  %v7190_v49 = vadd.f32 %v9934_v10, %v13924_v57  ;;  %v9937_v62 = vadd.f32 %v9936_v35, %v9935_v0  ;;  %v10049_v60 = vadd.f32 %v10048_v38, %v10047_v15 }
 0x418   : > { %8061 = vst [vmem:[%s13950_s4 + $0xd0] sm:$0xff] %v8029_v16  ;;  %vm7966_vm1 = vcmp.gt.f32.partialorder %v7934_v8, 0.0  ;;  %v7998_v3 = vmul.f32 0.1, %v7934_v8 }
 0x419   : > { %v7832_v53 = vadd.f32 %v10046_v9, %v7190_v49  ;;  %v7191_v26 = vadd.f32 %v9937_v62, %v13927_v2 }
 0x41a   : > { %v8030_v44 = vsel %vm7966_vm1, %v7934_v8, %v7998_v3 }
 0x41b   : > { %8062 = vst [vmem:[%s13950_s4 + $0xd8] sm:$0xff] %v8030_v44  ;;  %v7935_v7 = vadd.f32 %v13942_v1, %v7832_v53  ;;  %v7833_v61 = vadd.f32 %v10049_v60, %v7191_v26  ;;  %v9938_v27 = vpop.f32.mrb[28].mxu1  ;;  %v10050_v51 = vpop.f32.mrb[28].mxu0 }
 0x41c   : > { %v9939_v42 = vpop.f32.mrb[29].mxu1  ;;  %v10051_v47 = vpop.f32.mrb[29].mxu0 }
 0x41d   : > { %vm7967_vm2 = vcmp.gt.f32.partialorder %v7935_v7, 0.0  ;;  %v7999_v57 = vmul.f32 0.1, %v7935_v7  ;;  %v7936_v50 = vadd.f32 %v13942_v1, %v7833_v61  ;;  %v9940_v28 = vadd.f32 %v9939_v42, %v9938_v27  ;;  %v9941_v36 = vpop.f32.mrb[30].mxu1  ;;  %v10053_v2 = vpop.f32.mrb[30].mxu0 }
 0x41e   : > { %v10052_v43 = vadd.f32 %v10051_v47, %v10050_v51  ;;  %v9942_v45 = vpop.f32.mrb[31].mxu1  ;;  %v10054_v30 = vpop.f32.mrb[31].mxu0 }
 0x41f   : > { %v8031_v19 = vsel %vm7967_vm2, %v7935_v7, %v7999_v57  ;;  %vm7968_vm3 = vcmp.gt.f32.partialorder %v7936_v50, 0.0  ;;  %v8000_v40 = vmul.f32 0.1, %v7936_v50  ;;  %v7192_v46 = vadd.f32 %v9940_v28, %v13931_v48 }
 0x420   : > { %8063 = vst [vmem:[%s13950_s4 + $0xe0] sm:$0xff] %v8031_v19  ;;  %v9943_v11 = vadd.f32 %v9942_v45, %v9941_v36  ;;  %v10055_v32 = vadd.f32 %v10054_v30, %v10053_v2 }
 0x421   : > { %v8032_v63 = vsel %vm7968_vm3, %v7936_v50, %v8000_v40  ;;  %v7834_v41 = vadd.f32 %v10052_v43, %v7192_v46 }
 0x422   : > { %8064 = vst [vmem:[%s13950_s4 + $0xe8] sm:$0xff] %v8032_v63  ;;  %v7193_v12 = vadd.f32 %v9943_v11, %v13935_v54 }
 0x423   : > { %v7937_v37 = vadd.f32 %v13942_v1, %v7834_v41 }
 0x424   : > { %v7835_v24 = vadd.f32 %v10055_v32, %v7193_v12 }
 0x425   : > { %vm7969_vm4 = vcmp.gt.f32.partialorder %v7937_v37, 0.0  ;;  %v8001_v39 = vmul.f32 0.1, %v7937_v37 }
 0x426   : > { %v7938_v48 = vadd.f32 %v13942_v1, %v7835_v24 }
 0x427   : > { %v8033_v21 = vsel %vm7969_vm4, %v7937_v37, %v8001_v39 }
 0x428   : > { %8065 = vst [vmem:[%s13950_s4 + $0xf0] sm:$0xff] %v8033_v21  ;;  %vm7970_vm5 = vcmp.gt.f32.partialorder %v7938_v48, 0.0  ;;  %v8002_v54 = vmul.f32 0.1, %v7938_v48 }
 0x42a   : > { %v8034_v17 = vsel %vm7970_vm5, %v7938_v48, %v8002_v54 }
 0x42b   : > { %8066 = vst [vmem:[%s13950_s4 + $0xf8] sm:$0xff] %v8034_v17 }
 0x42c   : > { %10514 = shalt.err (!%p10511_p13)
}
 0x42d   : > { %s10515_s28 = scalar_lea.hbm %s14047_s17, 4096  ;;  %s10519_s5 = scalar_lea.hbm %s14116_s3, 16384 }
 0x42e   : > { %p10516_p0 = scmp.ne.s32.totalorder %s14047_s17, %s10515_s28  ;;  %p10520_p3 = scmp.lt.u32.totalorder %s14047_s17, %s14116_s3 }
 0x42f   : > { %p10521_p4 = scmp.lt.u32.totalorder %s10519_s5, %s10515_s28  ;;  %p10523_p6 = scmp.lt.u32.totalorder %s10515_s28, %s14047_s17 }
 0x430   : > { %p10517_p1 = pnand %p10516_p0, %p10716_p10 }
 0x431   : > { %p10522_p5 = por %p10521_p4, %p10520_p3 }
 0x432   : > { %p10518_p2 = pneg %p10517_p1 }
 0x433   : > { %p10524_p7 = por %p10523_p6, %p10522_p5 }
 0x435   : > { %p10525_p8 = pnand %p10524_p7, %p10518_p2 }
 0x437   : > { %10528 = shalt.err (!%p10525_p8)
}
 0x438   : > { %s10614_s11 = smov 128   ;;  %s10615_s26 = smov 256  }
 0x439   : > { %s10616_s23 = smov 8  }
 0x43a   : > { %10075 = dma.vmem_to_hbm [thread:$0]  (%p10716_p10), %s14050_s9, 4096, %s14047_s17, %s14055_s22, %s10614_s11, %s10615_s26, %s10616_s23  }
 0x43b PF: > { %p10081_p9 = scmp.ge.s32.totalorder %s10611_s21, 2  ;;  %s8100_s27 = sand.u32 1, %s10575_s12  }
 0x43c   : > { %s8101_s29 = scalar_lea.sflag [#allocation5], %s8100_s27 }
 0x43d   : > { %p10078_p11 = pnand %p10081_p9, %p10723_p12 }
 0x43f   : > { %10570 = dma.done.wait (!%p10078_p11), %s8101_s29, 4096  }
 0x440   : > { %10572 = vsyncadd (!%p10078_p11), %s8101_s29, 4294963200  ;;  %s16_s21 = sadd.s32 1, %s10611_s21   ;;  %s14242_s12 = smov %s10579_s13 }
 0x441   : > { %p13_p13 = scmp.ge.s32.totalorder %s16_s21, 6   ;;  %s14243_s13 = smov %s10583_s14 }
 0x442   : > { %s14244_s14 = smov %s10721_s7  ;;  %s14245_s15 = smov %s10591_s16 }
 0x443   : > { %s14246_s16 = smov %s10710_s30  ;;  %s14247_s17 = smov %s10603_s19 }
 0x444   : > { %s14248_s18 = smov %s10607_s20  ;;  %s14249_s19 = smov %s14252_s24 }
 0x445   : > { %s14250_s20 = smov %s14256_s25  ;;  %15 = sbr.rel (!%p13_p13) target bundleno = 6 (0x6), region = 130 }
 0x44c   :  { %8106 = vsyncpa [#allocation5], 1 }
 0x44d   :  { %8108 = vsyncpa [#allocation5 + $0x1], 1 }

</bundles_post_ra>
